<compile_context>
chip_gen: v7x
topology: tpu7x:2x2x1
jax: 0.10.0
libtpu: 0.0.40
codegen_flags: <defaults>
</compile_context>

<pallas_src>
import numpy as np
import jax
import jax.numpy as jnp
from jax.experimental import pallas as pl
from jax.experimental.pallas import tpu as pltpu

BN_EPS = 1e-5
KSIZE = 4          # every ConvTranspose2d in the Generator uses kernel_size=4
NUM_LAYERS = 4     # 3 DCUnits + final ConvTranspose2d


# ------------------------------ Pallas kernel --------------------------------

def _generator_kernel(*refs):
    """refs = [x0] + per-layer [mt, cb, bias(, gamma, beta, pavg)] + [rup, cup, out].

    Activation layout throughout: rows = (channel * OH + oh), cols = (n * OW + ow).
    """
    idx = 0
    x_ref = refs[idx]; idx += 1
    layer_refs = []
    for l in range(NUM_LAYERS):
        mt_ref, cb_ref, bias_ref = refs[idx], refs[idx + 1], refs[idx + 2]
        idx += 3
        if l < NUM_LAYERS - 1:
            gamma_ref, beta_ref, pavg_ref = refs[idx], refs[idx + 1], refs[idx + 2]
            idx += 3
        else:
            gamma_ref = beta_ref = pavg_ref = None
        layer_refs.append((mt_ref, cb_ref, bias_ref, gamma_ref, beta_ref, pavg_ref))
    rup_ref, cup_ref = refs[idx], refs[idx + 1]
    o_ref = refs[idx + 2]

    x = x_ref[...]                                    # (Cin*H, N*W)
    for (mt_ref, cb_ref, bias_ref, gamma_ref, beta_ref, pavg_ref) in layer_refs:
        xb = x.astype(jnp.bfloat16)                   # bf16 MXU operands, f32 acc
        acc = None
        for j in range(KSIZE):                        # width taps
            # Width scatter: cb[j] is a 0/1 selector -> exact column placement.
            t = jnp.dot(xb, cb_ref[j],
                        preferred_element_type=jnp.float32).astype(jnp.bfloat16)
            for i in range(KSIZE):                    # height taps (+ channel mix)
                c = jnp.dot(mt_ref[i * KSIZE + j], t,
                            preferred_element_type=jnp.float32)
                acc = c if acc is None else acc + c
        y = acc + bias_ref[...]                       # (Cout*OH, N*OW) f32

        if gamma_ref is not None:
            # BatchNorm2d (training-mode batch stats, biased variance) + ReLU.
            inv_cols = 1.0 / float(y.shape[1])
            rm = jnp.sum(y, axis=-1, keepdims=True) * inv_cols        # E over (n, ow)
            rm2 = jnp.sum(y * y, axis=-1, keepdims=True) * inv_cols
            mean = jnp.dot(pavg_ref[...], rm, preferred_element_type=jnp.float32)
            ex2 = jnp.dot(pavg_ref[...], rm2, preferred_element_type=jnp.float32)
            var = jnp.maximum(ex2 - mean * mean, 0.0)
            y = (y - mean) * jax.lax.rsqrt(var + BN_EPS)
            y = y * gamma_ref[...] + beta_ref[...]
            x = jnp.maximum(y, 0.0)
        else:
            # Final layer: nearest Upsample(18, 11) as exact f32 0/1 selector
            # matmuls, then numerically-stable sigmoid.
            y = jnp.dot(rup_ref[...], y, preferred_element_type=jnp.float32)
            y = jnp.dot(y, cup_ref[...], preferred_element_type=jnp.float32)
            z = jnp.exp(-jnp.abs(y))
            r = 1.0 / (1.0 + z)
            o_ref[...] = jnp.where(y >= 0.0, r, z * r)


# -------------------------- constant precomputation ---------------------------

def _shift_selectors(size_in, k, s, p):
    """sel[i][a_in, a_out] = 1 iff a_out == a_in * s - p + i (ConvTranspose2d)."""
    size_out = (size_in - 1) * s - 2 * p + k
    sel = np.zeros((k, size_in, size_out), np.float32)
    for i in range(k):
        for a in range(size_in):
            o = a * s - p + i
            if 0 <= o < size_out:
                sel[i, a, o] = 1.0
    return sel, size_out


def init_generator_params(key, latent_size, n_features):
    cfgs = [
        (latent_size, 4 * n_features, 4, 1, 0),
        (4 * n_features, 2 * n_features, 4, 2, 1),
        (2 * n_features, n_features, 4, 2, 1),
        (n_features, 3, 4, 2, 1),
    ]
    params = []
    for (cin, cout, k, s, p) in cfgs:
        key, kw, kb, kg, kbe = jax.random.split(key, 5)
        w = 0.02 * jax.random.normal(kw, (cin, cout, k, k), jnp.float32)
        b = 0.1 * jax.random.normal(kb, (cout,), jnp.float32)
        gamma = 1.0 + 0.1 * jax.random.normal(kg, (cout,), jnp.float32)
        beta = 0.1 * jax.random.normal(kbe, (cout,), jnp.float32)
        params.append(dict(w=w, b=b, gamma=gamma, beta=beta, k=k, s=s, p=p))
    return params


def build_generator_plan(params, batch, out_hw=(18, 11)):
    """Precompute (once, off the hot path) every constant operand of the fused
    kernel.  mt[i*k+j] folds tap (i, j)'s channel mix and height scatter into a
    single (Cout*OH, Cin*H) matrix; cb[j] is the width scatter selector."""
    args = []
    h = w = 1                               # latent enters as a 1x1 "image"
    cout = None
    for l, layer in enumerate(params):
        wgt = np.asarray(layer['w'], np.float32)         # (cin, cout, k, k)
        cin, cout, k, _ = wgt.shape
        s, p = layer['s'], layer['p']
        rsel, oh = _shift_selectors(h, k, s, p)
        csel, ow = _shift_selectors(w, k, s, p)
        mt = np.zeros((k * k, cout * oh, cin * h), np.float32)
        for i in range(k):
            for j in range(k):
                m = np.einsum('cd,hH->chdH', wgt[:, :, i, j], rsel[i])
                mt[i * k + j] = m.reshape(cin * h, cout * oh).T
        cb = np.stack([np.kron(np.eye(batch, dtype=np.float32), csel[j])
                       for j in range(k)])               # (k, N*W, N*OW)
        bias_col = np.repeat(np.asarray(layer['b'], np.float32), oh)[:, None]
        args += [jnp.asarray(mt, jnp.bfloat16),
                 jnp.asarray(cb, jnp.bfloat16),
                 jnp.asarray(bias_col, jnp.float32)]
        if l < len(params) - 1:
            gcol = np.repeat(np.asarray(layer['gamma'], np.float32), oh)[:, None]
            bcol = np.repeat(np.asarray(layer['beta'], np.float32), oh)[:, None]
            pavg = np.kron(np.eye(cout, dtype=np.float32),
                           np.full((oh, oh), 1.0 / oh, np.float32))
            args += [jnp.asarray(gcol, jnp.float32),
                     jnp.asarray(bcol, jnp.float32),
                     jnp.asarray(pavg, jnp.float32)]
        h, w = oh, ow

    # nearest-neighbour Upsample(size=out_hw) as row/column 0/1 selectors
    uh, uw = out_hw
    h_idx = (np.arange(uh) * h) // uh
    w_idx = (np.arange(uw) * w) // uw
    sel_h = np.zeros((uh, h), np.float32); sel_h[np.arange(uh), h_idx] = 1.0
    sel_w = np.zeros((uw, w), np.float32); sel_w[np.arange(uw), w_idx] = 1.0
    rup = np.kron(np.eye(cout, dtype=np.float32), sel_h)      # (3*18, 3*32)
    cup = np.kron(np.eye(batch, dtype=np.float32), sel_w.T)   # (N*32, N*11)
    args += [jnp.asarray(rup, jnp.float32), jnp.asarray(cup, jnp.float32)]
    return tuple(args)


# ------------------------------- jitted forward --------------------------------

@jax.jit
def generator_forward(x_nchw, plan):
    """x_nchw: (N, latent, 1, 1) -> (N, 3, 18, 11), matching Generator.forward."""
    n = x_nchw.shape[0]
    rup, cup = plan[-2], plan[-1]
    out_ch = 3
    uh = rup.shape[0] // out_ch
    uw = cup.shape[1] // n

    # Layer-1 input in the kernel layout: rows = channel, cols = batch.
    x0 = x_nchw.reshape(n, -1).T.astype(jnp.bfloat16)

    vmem = pl.BlockSpec(memory_space=pltpu.MemorySpace.VMEM)
    args = (x0,) + tuple(plan)
    out2d = pl.pallas_call(
        _generator_kernel,
        out_shape=jax.ShapeDtypeStruct((out_ch * uh, n * uw), jnp.float32),
        in_specs=[vmem] * len(args),
        out_specs=vmem,
    )(*args)

    # rows = (channel, out_row), cols = (batch, out_col)  ->  NCHW
    return out2d.reshape(out_ch, uh, n, uw).transpose(2, 0, 1, 3)


if __name__ == "__main__":
    latent_size = 16
    n_features = 8
    batch = 2

    key = jax.random.PRNGKey(0)
    k_params, k_x = jax.random.split(key)
    params = init_generator_params(k_params, latent_size, n_features)
    plan = build_generator_plan(params, batch)
    x = jax.random.normal(k_x, (batch, latent_size, 1, 1), jnp.float32)

    out = generator_forward(x, plan)
    out = jax.block_until_ready(out)

    assert out.shape == (batch, 3, 18, 11), out.shape
    assert bool(jnp.all(jnp.isfinite(out)))
    assert bool(jnp.all((out >= 0.0) & (out <= 1.0)))  # post-sigmoid range
    print("KERNEL_OK")
</pallas_src>

<mosaic_0001>
module attributes {stable_mosaic.version = 11 : i64} {
  func.func @_generator_kernel(%arg0: memref<16x2xbf16, #tpu.memory_space<vmem>>, %arg1: memref<16x128x16xbf16, #tpu.memory_space<vmem>>, %arg2: memref<4x2x8xbf16, #tpu.memory_space<vmem>>, %arg3: memref<128x1xf32, #tpu.memory_space<vmem>>, %arg4: memref<128x1xf32, #tpu.memory_space<vmem>>, %arg5: memref<128x1xf32, #tpu.memory_space<vmem>>, %arg6: memref<128x128xf32, #tpu.memory_space<vmem>>, %arg7: memref<16x128x128xbf16, #tpu.memory_space<vmem>>, %arg8: memref<4x8x16xbf16, #tpu.memory_space<vmem>>, %arg9: memref<128x1xf32, #tpu.memory_space<vmem>>, %arg10: memref<128x1xf32, #tpu.memory_space<vmem>>, %arg11: memref<128x1xf32, #tpu.memory_space<vmem>>, %arg12: memref<128x128xf32, #tpu.memory_space<vmem>>, %arg13: memref<16x128x128xbf16, #tpu.memory_space<vmem>>, %arg14: memref<4x16x32xbf16, #tpu.memory_space<vmem>>, %arg15: memref<128x1xf32, #tpu.memory_space<vmem>>, %arg16: memref<128x1xf32, #tpu.memory_space<vmem>>, %arg17: memref<128x1xf32, #tpu.memory_space<vmem>>, %arg18: memref<128x128xf32, #tpu.memory_space<vmem>>, %arg19: memref<16x96x128xbf16, #tpu.memory_space<vmem>>, %arg20: memref<4x32x64xbf16, #tpu.memory_space<vmem>>, %arg21: memref<96x1xf32, #tpu.memory_space<vmem>>, %arg22: memref<54x96xf32, #tpu.memory_space<vmem>>, %arg23: memref<64x22xf32, #tpu.memory_space<vmem>>, %arg24: memref<54x22xf32, #tpu.memory_space<vmem>>) attributes {dimension_semantics = [], scalar_prefetch = 0 : i64, scratch_operands = 0 : i64, tpu.core_type = #tpu.core_type<tc>} {
    %c0 = arith.constant 0 : index
    %c0_0 = arith.constant 0 : index
    %0 = vector.load %arg0[%c0, %c0_0] : memref<16x2xbf16, #tpu.memory_space<vmem>>, vector<16x2xbf16>
    %c0_1 = arith.constant 0 : index
    %c0_2 = arith.constant 0 : index
    %c0_3 = arith.constant 0 : index
    %1 = vector.load %arg2[%c0_1, %c0_2, %c0_3] : memref<4x2x8xbf16, #tpu.memory_space<vmem>>, vector<1x2x8xbf16>
    %2 = vector.shape_cast %1 : vector<1x2x8xbf16> to vector<2x8xbf16>
    %cst = arith.constant dense<0.000000e+00> : vector<16x8xf32>
    %3 = tpu.matmul %0, %2, %cst {dimension_numbers = #tpu.dot_dimension_numbers<[1], [0], [0], [1], [0, 0, 1, 1], [], []>} : vector<16x2xbf16>, vector<2x8xbf16>, vector<16x8xf32> -> vector<16x8xf32>
    %4 = arith.truncf %3 : vector<16x8xf32> to vector<16x8xbf16>
    %c0_4 = arith.constant 0 : index
    %c0_5 = arith.constant 0 : index
    %c0_6 = arith.constant 0 : index
    %5 = vector.load %arg1[%c0_4, %c0_5, %c0_6] : memref<16x128x16xbf16, #tpu.memory_space<vmem>>, vector<1x128x16xbf16>
    %6 = vector.shape_cast %5 : vector<1x128x16xbf16> to vector<128x16xbf16>
    %cst_7 = arith.constant dense<0.000000e+00> : vector<128x8xf32>
    %7 = tpu.matmul %6, %4, %cst_7 {dimension_numbers = #tpu.dot_dimension_numbers<[1], [0], [0], [1], [0, 0, 1, 1], [], []>} : vector<128x16xbf16>, vector<16x8xbf16>, vector<128x8xf32> -> vector<128x8xf32>
    %c4 = arith.constant 4 : index
    %c0_8 = arith.constant 0 : index
    %c0_9 = arith.constant 0 : index
    %8 = vector.load %arg1[%c4, %c0_8, %c0_9] : memref<16x128x16xbf16, #tpu.memory_space<vmem>>, vector<1x128x16xbf16>
    %9 = vector.shape_cast %8 : vector<1x128x16xbf16> to vector<128x16xbf16>
    %cst_10 = arith.constant dense<0.000000e+00> : vector<128x8xf32>
    %10 = tpu.matmul %9, %4, %cst_10 {dimension_numbers = #tpu.dot_dimension_numbers<[1], [0], [0], [1], [0, 0, 1, 1], [], []>} : vector<128x16xbf16>, vector<16x8xbf16>, vector<128x8xf32> -> vector<128x8xf32>
    %11 = arith.addf %7, %10 : vector<128x8xf32>
    %c8 = arith.constant 8 : index
    %c0_11 = arith.constant 0 : index
    %c0_12 = arith.constant 0 : index
    %12 = vector.load %arg1[%c8, %c0_11, %c0_12] : memref<16x128x16xbf16, #tpu.memory_space<vmem>>, vector<1x128x16xbf16>
    %13 = vector.shape_cast %12 : vector<1x128x16xbf16> to vector<128x16xbf16>
    %cst_13 = arith.constant dense<0.000000e+00> : vector<128x8xf32>
    %14 = tpu.matmul %13, %4, %cst_13 {dimension_numbers = #tpu.dot_dimension_numbers<[1], [0], [0], [1], [0, 0, 1, 1], [], []>} : vector<128x16xbf16>, vector<16x8xbf16>, vector<128x8xf32> -> vector<128x8xf32>
    %15 = arith.addf %11, %14 : vector<128x8xf32>
    %c12 = arith.constant 12 : index
    %c0_14 = arith.constant 0 : index
    %c0_15 = arith.constant 0 : index
    %16 = vector.load %arg1[%c12, %c0_14, %c0_15] : memref<16x128x16xbf16, #tpu.memory_space<vmem>>, vector<1x128x16xbf16>
    %17 = vector.shape_cast %16 : vector<1x128x16xbf16> to vector<128x16xbf16>
    %cst_16 = arith.constant dense<0.000000e+00> : vector<128x8xf32>
    %18 = tpu.matmul %17, %4, %cst_16 {dimension_numbers = #tpu.dot_dimension_numbers<[1], [0], [0], [1], [0, 0, 1, 1], [], []>} : vector<128x16xbf16>, vector<16x8xbf16>, vector<128x8xf32> -> vector<128x8xf32>
    %19 = arith.addf %15, %18 : vector<128x8xf32>
    %c1 = arith.constant 1 : index
    %c0_17 = arith.constant 0 : index
    %c0_18 = arith.constant 0 : index
    %20 = vector.load %arg2[%c1, %c0_17, %c0_18] : memref<4x2x8xbf16, #tpu.memory_space<vmem>>, vector<1x2x8xbf16>
    %21 = vector.shape_cast %20 : vector<1x2x8xbf16> to vector<2x8xbf16>
    %cst_19 = arith.constant dense<0.000000e+00> : vector<16x8xf32>
    %22 = tpu.matmul %0, %21, %cst_19 {dimension_numbers = #tpu.dot_dimension_numbers<[1], [0], [0], [1], [0, 0, 1, 1], [], []>} : vector<16x2xbf16>, vector<2x8xbf16>, vector<16x8xf32> -> vector<16x8xf32>
    %23 = arith.truncf %22 : vector<16x8xf32> to vector<16x8xbf16>
    %c1_20 = arith.constant 1 : index
    %c0_21 = arith.constant 0 : index
    %c0_22 = arith.constant 0 : index
    %24 = vector.load %arg1[%c1_20, %c0_21, %c0_22] : memref<16x128x16xbf16, #tpu.memory_space<vmem>>, vector<1x128x16xbf16>
    %25 = vector.shape_cast %24 : vector<1x128x16xbf16> to vector<128x16xbf16>
    %cst_23 = arith.constant dense<0.000000e+00> : vector<128x8xf32>
    %26 = tpu.matmul %25, %23, %cst_23 {dimension_numbers = #tpu.dot_dimension_numbers<[1], [0], [0], [1], [0, 0, 1, 1], [], []>} : vector<128x16xbf16>, vector<16x8xbf16>, vector<128x8xf32> -> vector<128x8xf32>
    %27 = arith.addf %19, %26 : vector<128x8xf32>
    %c5 = arith.constant 5 : index
    %c0_24 = arith.constant 0 : index
    %c0_25 = arith.constant 0 : index
    %28 = vector.load %arg1[%c5, %c0_24, %c0_25] : memref<16x128x16xbf16, #tpu.memory_space<vmem>>, vector<1x128x16xbf16>
    %29 = vector.shape_cast %28 : vector<1x128x16xbf16> to vector<128x16xbf16>
    %cst_26 = arith.constant dense<0.000000e+00> : vector<128x8xf32>
    %30 = tpu.matmul %29, %23, %cst_26 {dimension_numbers = #tpu.dot_dimension_numbers<[1], [0], [0], [1], [0, 0, 1, 1], [], []>} : vector<128x16xbf16>, vector<16x8xbf16>, vector<128x8xf32> -> vector<128x8xf32>
    %31 = arith.addf %27, %30 : vector<128x8xf32>
    %c9 = arith.constant 9 : index
    %c0_27 = arith.constant 0 : index
    %c0_28 = arith.constant 0 : index
    %32 = vector.load %arg1[%c9, %c0_27, %c0_28] : memref<16x128x16xbf16, #tpu.memory_space<vmem>>, vector<1x128x16xbf16>
    %33 = vector.shape_cast %32 : vector<1x128x16xbf16> to vector<128x16xbf16>
    %cst_29 = arith.constant dense<0.000000e+00> : vector<128x8xf32>
    %34 = tpu.matmul %33, %23, %cst_29 {dimension_numbers = #tpu.dot_dimension_numbers<[1], [0], [0], [1], [0, 0, 1, 1], [], []>} : vector<128x16xbf16>, vector<16x8xbf16>, vector<128x8xf32> -> vector<128x8xf32>
    %35 = arith.addf %31, %34 : vector<128x8xf32>
    %c13 = arith.constant 13 : index
    %c0_30 = arith.constant 0 : index
    %c0_31 = arith.constant 0 : index
    %36 = vector.load %arg1[%c13, %c0_30, %c0_31] : memref<16x128x16xbf16, #tpu.memory_space<vmem>>, vector<1x128x16xbf16>
    %37 = vector.shape_cast %36 : vector<1x128x16xbf16> to vector<128x16xbf16>
    %cst_32 = arith.constant dense<0.000000e+00> : vector<128x8xf32>
    %38 = tpu.matmul %37, %23, %cst_32 {dimension_numbers = #tpu.dot_dimension_numbers<[1], [0], [0], [1], [0, 0, 1, 1], [], []>} : vector<128x16xbf16>, vector<16x8xbf16>, vector<128x8xf32> -> vector<128x8xf32>
    %39 = arith.addf %35, %38 : vector<128x8xf32>
    %c2 = arith.constant 2 : index
    %c0_33 = arith.constant 0 : index
    %c0_34 = arith.constant 0 : index
    %40 = vector.load %arg2[%c2, %c0_33, %c0_34] : memref<4x2x8xbf16, #tpu.memory_space<vmem>>, vector<1x2x8xbf16>
    %41 = vector.shape_cast %40 : vector<1x2x8xbf16> to vector<2x8xbf16>
    %cst_35 = arith.constant dense<0.000000e+00> : vector<16x8xf32>
    %42 = tpu.matmul %0, %41, %cst_35 {dimension_numbers = #tpu.dot_dimension_numbers<[1], [0], [0], [1], [0, 0, 1, 1], [], []>} : vector<16x2xbf16>, vector<2x8xbf16>, vector<16x8xf32> -> vector<16x8xf32>
    %43 = arith.truncf %42 : vector<16x8xf32> to vector<16x8xbf16>
    %c2_36 = arith.constant 2 : index
    %c0_37 = arith.constant 0 : index
    %c0_38 = arith.constant 0 : index
    %44 = vector.load %arg1[%c2_36, %c0_37, %c0_38] : memref<16x128x16xbf16, #tpu.memory_space<vmem>>, vector<1x128x16xbf16>
    %45 = vector.shape_cast %44 : vector<1x128x16xbf16> to vector<128x16xbf16>
    %cst_39 = arith.constant dense<0.000000e+00> : vector<128x8xf32>
    %46 = tpu.matmul %45, %43, %cst_39 {dimension_numbers = #tpu.dot_dimension_numbers<[1], [0], [0], [1], [0, 0, 1, 1], [], []>} : vector<128x16xbf16>, vector<16x8xbf16>, vector<128x8xf32> -> vector<128x8xf32>
    %47 = arith.addf %39, %46 : vector<128x8xf32>
    %c6 = arith.constant 6 : index
    %c0_40 = arith.constant 0 : index
    %c0_41 = arith.constant 0 : index
    %48 = vector.load %arg1[%c6, %c0_40, %c0_41] : memref<16x128x16xbf16, #tpu.memory_space<vmem>>, vector<1x128x16xbf16>
    %49 = vector.shape_cast %48 : vector<1x128x16xbf16> to vector<128x16xbf16>
    %cst_42 = arith.constant dense<0.000000e+00> : vector<128x8xf32>
    %50 = tpu.matmul %49, %43, %cst_42 {dimension_numbers = #tpu.dot_dimension_numbers<[1], [0], [0], [1], [0, 0, 1, 1], [], []>} : vector<128x16xbf16>, vector<16x8xbf16>, vector<128x8xf32> -> vector<128x8xf32>
    %51 = arith.addf %47, %50 : vector<128x8xf32>
    %c10 = arith.constant 10 : index
    %c0_43 = arith.constant 0 : index
    %c0_44 = arith.constant 0 : index
    %52 = vector.load %arg1[%c10, %c0_43, %c0_44] : memref<16x128x16xbf16, #tpu.memory_space<vmem>>, vector<1x128x16xbf16>
    %53 = vector.shape_cast %52 : vector<1x128x16xbf16> to vector<128x16xbf16>
    %cst_45 = arith.constant dense<0.000000e+00> : vector<128x8xf32>
    %54 = tpu.matmul %53, %43, %cst_45 {dimension_numbers = #tpu.dot_dimension_numbers<[1], [0], [0], [1], [0, 0, 1, 1], [], []>} : vector<128x16xbf16>, vector<16x8xbf16>, vector<128x8xf32> -> vector<128x8xf32>
    %55 = arith.addf %51, %54 : vector<128x8xf32>
    %c14 = arith.constant 14 : index
    %c0_46 = arith.constant 0 : index
    %c0_47 = arith.constant 0 : index
    %56 = vector.load %arg1[%c14, %c0_46, %c0_47] : memref<16x128x16xbf16, #tpu.memory_space<vmem>>, vector<1x128x16xbf16>
    %57 = vector.shape_cast %56 : vector<1x128x16xbf16> to vector<128x16xbf16>
    %cst_48 = arith.constant dense<0.000000e+00> : vector<128x8xf32>
    %58 = tpu.matmul %57, %43, %cst_48 {dimension_numbers = #tpu.dot_dimension_numbers<[1], [0], [0], [1], [0, 0, 1, 1], [], []>} : vector<128x16xbf16>, vector<16x8xbf16>, vector<128x8xf32> -> vector<128x8xf32>
    %59 = arith.addf %55, %58 : vector<128x8xf32>
    %c3 = arith.constant 3 : index
    %c0_49 = arith.constant 0 : index
    %c0_50 = arith.constant 0 : index
    %60 = vector.load %arg2[%c3, %c0_49, %c0_50] : memref<4x2x8xbf16, #tpu.memory_space<vmem>>, vector<1x2x8xbf16>
    %61 = vector.shape_cast %60 : vector<1x2x8xbf16> to vector<2x8xbf16>
    %cst_51 = arith.constant dense<0.000000e+00> : vector<16x8xf32>
    %62 = tpu.matmul %0, %61, %cst_51 {dimension_numbers = #tpu.dot_dimension_numbers<[1], [0], [0], [1], [0, 0, 1, 1], [], []>} : vector<16x2xbf16>, vector<2x8xbf16>, vector<16x8xf32> -> vector<16x8xf32>
    %63 = arith.truncf %62 : vector<16x8xf32> to vector<16x8xbf16>
    %c3_52 = arith.constant 3 : index
    %c0_53 = arith.constant 0 : index
    %c0_54 = arith.constant 0 : index
    %64 = vector.load %arg1[%c3_52, %c0_53, %c0_54] : memref<16x128x16xbf16, #tpu.memory_space<vmem>>, vector<1x128x16xbf16>
    %65 = vector.shape_cast %64 : vector<1x128x16xbf16> to vector<128x16xbf16>
    %cst_55 = arith.constant dense<0.000000e+00> : vector<128x8xf32>
    %66 = tpu.matmul %65, %63, %cst_55 {dimension_numbers = #tpu.dot_dimension_numbers<[1], [0], [0], [1], [0, 0, 1, 1], [], []>} : vector<128x16xbf16>, vector<16x8xbf16>, vector<128x8xf32> -> vector<128x8xf32>
    %67 = arith.addf %59, %66 : vector<128x8xf32>
    %c7 = arith.constant 7 : index
    %c0_56 = arith.constant 0 : index
    %c0_57 = arith.constant 0 : index
    %68 = vector.load %arg1[%c7, %c0_56, %c0_57] : memref<16x128x16xbf16, #tpu.memory_space<vmem>>, vector<1x128x16xbf16>
    %69 = vector.shape_cast %68 : vector<1x128x16xbf16> to vector<128x16xbf16>
    %cst_58 = arith.constant dense<0.000000e+00> : vector<128x8xf32>
    %70 = tpu.matmul %69, %63, %cst_58 {dimension_numbers = #tpu.dot_dimension_numbers<[1], [0], [0], [1], [0, 0, 1, 1], [], []>} : vector<128x16xbf16>, vector<16x8xbf16>, vector<128x8xf32> -> vector<128x8xf32>
    %71 = arith.addf %67, %70 : vector<128x8xf32>
    %c11 = arith.constant 11 : index
    %c0_59 = arith.constant 0 : index
    %c0_60 = arith.constant 0 : index
    %72 = vector.load %arg1[%c11, %c0_59, %c0_60] : memref<16x128x16xbf16, #tpu.memory_space<vmem>>, vector<1x128x16xbf16>
    %73 = vector.shape_cast %72 : vector<1x128x16xbf16> to vector<128x16xbf16>
    %cst_61 = arith.constant dense<0.000000e+00> : vector<128x8xf32>
    %74 = tpu.matmul %73, %63, %cst_61 {dimension_numbers = #tpu.dot_dimension_numbers<[1], [0], [0], [1], [0, 0, 1, 1], [], []>} : vector<128x16xbf16>, vector<16x8xbf16>, vector<128x8xf32> -> vector<128x8xf32>
    %75 = arith.addf %71, %74 : vector<128x8xf32>
    %c15 = arith.constant 15 : index
    %c0_62 = arith.constant 0 : index
    %c0_63 = arith.constant 0 : index
    %76 = vector.load %arg1[%c15, %c0_62, %c0_63] : memref<16x128x16xbf16, #tpu.memory_space<vmem>>, vector<1x128x16xbf16>
    %77 = vector.shape_cast %76 : vector<1x128x16xbf16> to vector<128x16xbf16>
    %cst_64 = arith.constant dense<0.000000e+00> : vector<128x8xf32>
    %78 = tpu.matmul %77, %63, %cst_64 {dimension_numbers = #tpu.dot_dimension_numbers<[1], [0], [0], [1], [0, 0, 1, 1], [], []>} : vector<128x16xbf16>, vector<16x8xbf16>, vector<128x8xf32> -> vector<128x8xf32>
    %79 = arith.addf %75, %78 : vector<128x8xf32>
    %c0_65 = arith.constant 0 : index
    %c0_66 = arith.constant 0 : index
    %80 = vector.load %arg3[%c0_65, %c0_66] : memref<128x1xf32, #tpu.memory_space<vmem>>, vector<128x1xf32>
    %81 = vector.broadcast %80 : vector<128x1xf32> to vector<128x8xf32>
    %82 = arith.addf %79, %81 : vector<128x8xf32>
    %cst_67 = arith.constant dense<0.000000e+00> : vector<128xf32>
    %83 = vector.multi_reduction <add>, %82, %cst_67 [1] : vector<128x8xf32> to vector<128xf32>
    %84 = vector.shape_cast %83 : vector<128xf32> to vector<128x1xf32>
    %cst_68 = arith.constant 1.250000e-01 : f32
    %85 = vector.broadcast %cst_68 : f32 to vector<128x1xf32>
    %86 = arith.mulf %84, %85 : vector<128x1xf32>
    %87 = arith.mulf %82, %82 : vector<128x8xf32>
    %cst_69 = arith.constant dense<0.000000e+00> : vector<128xf32>
    %88 = vector.multi_reduction <add>, %87, %cst_69 [1] : vector<128x8xf32> to vector<128xf32>
    %89 = vector.shape_cast %88 : vector<128xf32> to vector<128x1xf32>
    %cst_70 = arith.constant 1.250000e-01 : f32
    %90 = vector.broadcast %cst_70 : f32 to vector<128x1xf32>
    %91 = arith.mulf %89, %90 : vector<128x1xf32>
    %c0_71 = arith.constant 0 : index
    %c0_72 = arith.constant 0 : index
    %92 = vector.load %arg6[%c0_71, %c0_72] : memref<128x128xf32, #tpu.memory_space<vmem>>, vector<128x128xf32>
    %cst_73 = arith.constant dense<0.000000e+00> : vector<128x1xf32>
    %93 = tpu.matmul %92, %86, %cst_73 {dimension_numbers = #tpu.dot_dimension_numbers<[1], [0], [0], [1], [0, 0, 1, 1], [], []>} : vector<128x128xf32>, vector<128x1xf32>, vector<128x1xf32> -> vector<128x1xf32>
    %c0_74 = arith.constant 0 : index
    %c0_75 = arith.constant 0 : index
    %94 = vector.load %arg6[%c0_74, %c0_75] : memref<128x128xf32, #tpu.memory_space<vmem>>, vector<128x128xf32>
    %cst_76 = arith.constant dense<0.000000e+00> : vector<128x1xf32>
    %95 = tpu.matmul %94, %91, %cst_76 {dimension_numbers = #tpu.dot_dimension_numbers<[1], [0], [0], [1], [0, 0, 1, 1], [], []>} : vector<128x128xf32>, vector<128x1xf32>, vector<128x1xf32> -> vector<128x1xf32>
    %96 = arith.mulf %93, %93 : vector<128x1xf32>
    %97 = arith.subf %95, %96 : vector<128x1xf32>
    %cst_77 = arith.constant 0.000000e+00 : f32
    %98 = vector.broadcast %cst_77 : f32 to vector<128x1xf32>
    %99 = arith.maximumf %97, %98 : vector<128x1xf32>
    %100 = vector.broadcast %93 : vector<128x1xf32> to vector<128x8xf32>
    %101 = arith.subf %82, %100 : vector<128x8xf32>
    %cst_78 = arith.constant 9.99999974E-6 : f32
    %102 = vector.broadcast %cst_78 : f32 to vector<128x1xf32>
    %103 = arith.addf %99, %102 : vector<128x1xf32>
    %104 = math.rsqrt %103 : vector<128x1xf32>
    %105 = vector.broadcast %104 : vector<128x1xf32> to vector<128x8xf32>
    %106 = arith.mulf %101, %105 : vector<128x8xf32>
    %c0_79 = arith.constant 0 : index
    %c0_80 = arith.constant 0 : index
    %107 = vector.load %arg4[%c0_79, %c0_80] : memref<128x1xf32, #tpu.memory_space<vmem>>, vector<128x1xf32>
    %108 = vector.broadcast %107 : vector<128x1xf32> to vector<128x8xf32>
    %109 = arith.mulf %106, %108 : vector<128x8xf32>
    %c0_81 = arith.constant 0 : index
    %c0_82 = arith.constant 0 : index
    %110 = vector.load %arg5[%c0_81, %c0_82] : memref<128x1xf32, #tpu.memory_space<vmem>>, vector<128x1xf32>
    %111 = vector.broadcast %110 : vector<128x1xf32> to vector<128x8xf32>
    %112 = arith.addf %109, %111 : vector<128x8xf32>
    %cst_83 = arith.constant 0.000000e+00 : f32
    %113 = vector.broadcast %cst_83 : f32 to vector<128x8xf32>
    %114 = arith.maximumf %112, %113 : vector<128x8xf32>
    %115 = arith.truncf %114 : vector<128x8xf32> to vector<128x8xbf16>
    %c0_84 = arith.constant 0 : index
    %c0_85 = arith.constant 0 : index
    %c0_86 = arith.constant 0 : index
    %116 = vector.load %arg8[%c0_84, %c0_85, %c0_86] : memref<4x8x16xbf16, #tpu.memory_space<vmem>>, vector<1x8x16xbf16>
    %117 = vector.shape_cast %116 : vector<1x8x16xbf16> to vector<8x16xbf16>
    %cst_87 = arith.constant dense<0.000000e+00> : vector<128x16xf32>
    %118 = tpu.matmul %115, %117, %cst_87 {dimension_numbers = #tpu.dot_dimension_numbers<[1], [0], [0], [1], [0, 0, 1, 1], [], []>} : vector<128x8xbf16>, vector<8x16xbf16>, vector<128x16xf32> -> vector<128x16xf32>
    %119 = arith.truncf %118 : vector<128x16xf32> to vector<128x16xbf16>
    %c0_88 = arith.constant 0 : index
    %c0_89 = arith.constant 0 : index
    %c0_90 = arith.constant 0 : index
    %120 = vector.load %arg7[%c0_88, %c0_89, %c0_90] : memref<16x128x128xbf16, #tpu.memory_space<vmem>>, vector<1x128x128xbf16>
    %121 = vector.shape_cast %120 : vector<1x128x128xbf16> to vector<128x128xbf16>
    %cst_91 = arith.constant dense<0.000000e+00> : vector<128x16xf32>
    %122 = tpu.matmul %121, %119, %cst_91 {dimension_numbers = #tpu.dot_dimension_numbers<[1], [0], [0], [1], [0, 0, 1, 1], [], []>} : vector<128x128xbf16>, vector<128x16xbf16>, vector<128x16xf32> -> vector<128x16xf32>
    %c4_92 = arith.constant 4 : index
    %c0_93 = arith.constant 0 : index
    %c0_94 = arith.constant 0 : index
    %123 = vector.load %arg7[%c4_92, %c0_93, %c0_94] : memref<16x128x128xbf16, #tpu.memory_space<vmem>>, vector<1x128x128xbf16>
    %124 = vector.shape_cast %123 : vector<1x128x128xbf16> to vector<128x128xbf16>
    %cst_95 = arith.constant dense<0.000000e+00> : vector<128x16xf32>
    %125 = tpu.matmul %124, %119, %cst_95 {dimension_numbers = #tpu.dot_dimension_numbers<[1], [0], [0], [1], [0, 0, 1, 1], [], []>} : vector<128x128xbf16>, vector<128x16xbf16>, vector<128x16xf32> -> vector<128x16xf32>
    %126 = arith.addf %122, %125 : vector<128x16xf32>
    %c8_96 = arith.constant 8 : index
    %c0_97 = arith.constant 0 : index
    %c0_98 = arith.constant 0 : index
    %127 = vector.load %arg7[%c8_96, %c0_97, %c0_98] : memref<16x128x128xbf16, #tpu.memory_space<vmem>>, vector<1x128x128xbf16>
    %128 = vector.shape_cast %127 : vector<1x128x128xbf16> to vector<128x128xbf16>
    %cst_99 = arith.constant dense<0.000000e+00> : vector<128x16xf32>
    %129 = tpu.matmul %128, %119, %cst_99 {dimension_numbers = #tpu.dot_dimension_numbers<[1], [0], [0], [1], [0, 0, 1, 1], [], []>} : vector<128x128xbf16>, vector<128x16xbf16>, vector<128x16xf32> -> vector<128x16xf32>
    %130 = arith.addf %126, %129 : vector<128x16xf32>
    %c12_100 = arith.constant 12 : index
    %c0_101 = arith.constant 0 : index
    %c0_102 = arith.constant 0 : index
    %131 = vector.load %arg7[%c12_100, %c0_101, %c0_102] : memref<16x128x128xbf16, #tpu.memory_space<vmem>>, vector<1x128x128xbf16>
    %132 = vector.shape_cast %131 : vector<1x128x128xbf16> to vector<128x128xbf16>
    %cst_103 = arith.constant dense<0.000000e+00> : vector<128x16xf32>
    %133 = tpu.matmul %132, %119, %cst_103 {dimension_numbers = #tpu.dot_dimension_numbers<[1], [0], [0], [1], [0, 0, 1, 1], [], []>} : vector<128x128xbf16>, vector<128x16xbf16>, vector<128x16xf32> -> vector<128x16xf32>
    %134 = arith.addf %130, %133 : vector<128x16xf32>
    %c1_104 = arith.constant 1 : index
    %c0_105 = arith.constant 0 : index
    %c0_106 = arith.constant 0 : index
    %135 = vector.load %arg8[%c1_104, %c0_105, %c0_106] : memref<4x8x16xbf16, #tpu.memory_space<vmem>>, vector<1x8x16xbf16>
    %136 = vector.shape_cast %135 : vector<1x8x16xbf16> to vector<8x16xbf16>
    %cst_107 = arith.constant dense<0.000000e+00> : vector<128x16xf32>
    %137 = tpu.matmul %115, %136, %cst_107 {dimension_numbers = #tpu.dot_dimension_numbers<[1], [0], [0], [1], [0, 0, 1, 1], [], []>} : vector<128x8xbf16>, vector<8x16xbf16>, vector<128x16xf32> -> vector<128x16xf32>
    %138 = arith.truncf %137 : vector<128x16xf32> to vector<128x16xbf16>
    %c1_108 = arith.constant 1 : index
    %c0_109 = arith.constant 0 : index
    %c0_110 = arith.constant 0 : index
    %139 = vector.load %arg7[%c1_108, %c0_109, %c0_110] : memref<16x128x128xbf16, #tpu.memory_space<vmem>>, vector<1x128x128xbf16>
    %140 = vector.shape_cast %139 : vector<1x128x128xbf16> to vector<128x128xbf16>
    %cst_111 = arith.constant dense<0.000000e+00> : vector<128x16xf32>
    %141 = tpu.matmul %140, %138, %cst_111 {dimension_numbers = #tpu.dot_dimension_numbers<[1], [0], [0], [1], [0, 0, 1, 1], [], []>} : vector<128x128xbf16>, vector<128x16xbf16>, vector<128x16xf32> -> vector<128x16xf32>
    %142 = arith.addf %134, %141 : vector<128x16xf32>
    %c5_112 = arith.constant 5 : index
    %c0_113 = arith.constant 0 : index
    %c0_114 = arith.constant 0 : index
    %143 = vector.load %arg7[%c5_112, %c0_113, %c0_114] : memref<16x128x128xbf16, #tpu.memory_space<vmem>>, vector<1x128x128xbf16>
    %144 = vector.shape_cast %143 : vector<1x128x128xbf16> to vector<128x128xbf16>
    %cst_115 = arith.constant dense<0.000000e+00> : vector<128x16xf32>
    %145 = tpu.matmul %144, %138, %cst_115 {dimension_numbers = #tpu.dot_dimension_numbers<[1], [0], [0], [1], [0, 0, 1, 1], [], []>} : vector<128x128xbf16>, vector<128x16xbf16>, vector<128x16xf32> -> vector<128x16xf32>
    %146 = arith.addf %142, %145 : vector<128x16xf32>
    %c9_116 = arith.constant 9 : index
    %c0_117 = arith.constant 0 : index
    %c0_118 = arith.constant 0 : index
    %147 = vector.load %arg7[%c9_116, %c0_117, %c0_118] : memref<16x128x128xbf16, #tpu.memory_space<vmem>>, vector<1x128x128xbf16>
    %148 = vector.shape_cast %147 : vector<1x128x128xbf16> to vector<128x128xbf16>
    %cst_119 = arith.constant dense<0.000000e+00> : vector<128x16xf32>
    %149 = tpu.matmul %148, %138, %cst_119 {dimension_numbers = #tpu.dot_dimension_numbers<[1], [0], [0], [1], [0, 0, 1, 1], [], []>} : vector<128x128xbf16>, vector<128x16xbf16>, vector<128x16xf32> -> vector<128x16xf32>
    %150 = arith.addf %146, %149 : vector<128x16xf32>
    %c13_120 = arith.constant 13 : index
    %c0_121 = arith.constant 0 : index
    %c0_122 = arith.constant 0 : index
    %151 = vector.load %arg7[%c13_120, %c0_121, %c0_122] : memref<16x128x128xbf16, #tpu.memory_space<vmem>>, vector<1x128x128xbf16>
    %152 = vector.shape_cast %151 : vector<1x128x128xbf16> to vector<128x128xbf16>
    %cst_123 = arith.constant dense<0.000000e+00> : vector<128x16xf32>
    %153 = tpu.matmul %152, %138, %cst_123 {dimension_numbers = #tpu.dot_dimension_numbers<[1], [0], [0], [1], [0, 0, 1, 1], [], []>} : vector<128x128xbf16>, vector<128x16xbf16>, vector<128x16xf32> -> vector<128x16xf32>
    %154 = arith.addf %150, %153 : vector<128x16xf32>
    %c2_124 = arith.constant 2 : index
    %c0_125 = arith.constant 0 : index
    %c0_126 = arith.constant 0 : index
    %155 = vector.load %arg8[%c2_124, %c0_125, %c0_126] : memref<4x8x16xbf16, #tpu.memory_space<vmem>>, vector<1x8x16xbf16>
    %156 = vector.shape_cast %155 : vector<1x8x16xbf16> to vector<8x16xbf16>
    %cst_127 = arith.constant dense<0.000000e+00> : vector<128x16xf32>
    %157 = tpu.matmul %115, %156, %cst_127 {dimension_numbers = #tpu.dot_dimension_numbers<[1], [0], [0], [1], [0, 0, 1, 1], [], []>} : vector<128x8xbf16>, vector<8x16xbf16>, vector<128x16xf32> -> vector<128x16xf32>
    %158 = arith.truncf %157 : vector<128x16xf32> to vector<128x16xbf16>
    %c2_128 = arith.constant 2 : index
    %c0_129 = arith.constant 0 : index
    %c0_130 = arith.constant 0 : index
    %159 = vector.load %arg7[%c2_128, %c0_129, %c0_130] : memref<16x128x128xbf16, #tpu.memory_space<vmem>>, vector<1x128x128xbf16>
    %160 = vector.shape_cast %159 : vector<1x128x128xbf16> to vector<128x128xbf16>
    %cst_131 = arith.constant dense<0.000000e+00> : vector<128x16xf32>
    %161 = tpu.matmul %160, %158, %cst_131 {dimension_numbers = #tpu.dot_dimension_numbers<[1], [0], [0], [1], [0, 0, 1, 1], [], []>} : vector<128x128xbf16>, vector<128x16xbf16>, vector<128x16xf32> -> vector<128x16xf32>
    %162 = arith.addf %154, %161 : vector<128x16xf32>
    %c6_132 = arith.constant 6 : index
    %c0_133 = arith.constant 0 : index
    %c0_134 = arith.constant 0 : index
    %163 = vector.load %arg7[%c6_132, %c0_133, %c0_134] : memref<16x128x128xbf16, #tpu.memory_space<vmem>>, vector<1x128x128xbf16>
    %164 = vector.shape_cast %163 : vector<1x128x128xbf16> to vector<128x128xbf16>
    %cst_135 = arith.constant dense<0.000000e+00> : vector<128x16xf32>
    %165 = tpu.matmul %164, %158, %cst_135 {dimension_numbers = #tpu.dot_dimension_numbers<[1], [0], [0], [1], [0, 0, 1, 1], [], []>} : vector<128x128xbf16>, vector<128x16xbf16>, vector<128x16xf32> -> vector<128x16xf32>
    %166 = arith.addf %162, %165 : vector<128x16xf32>
    %c10_136 = arith.constant 10 : index
    %c0_137 = arith.constant 0 : index
    %c0_138 = arith.constant 0 : index
    %167 = vector.load %arg7[%c10_136, %c0_137, %c0_138] : memref<16x128x128xbf16, #tpu.memory_space<vmem>>, vector<1x128x128xbf16>
    %168 = vector.shape_cast %167 : vector<1x128x128xbf16> to vector<128x128xbf16>
    %cst_139 = arith.constant dense<0.000000e+00> : vector<128x16xf32>
    %169 = tpu.matmul %168, %158, %cst_139 {dimension_numbers = #tpu.dot_dimension_numbers<[1], [0], [0], [1], [0, 0, 1, 1], [], []>} : vector<128x128xbf16>, vector<128x16xbf16>, vector<128x16xf32> -> vector<128x16xf32>
    %170 = arith.addf %166, %169 : vector<128x16xf32>
    %c14_140 = arith.constant 14 : index
    %c0_141 = arith.constant 0 : index
    %c0_142 = arith.constant 0 : index
    %171 = vector.load %arg7[%c14_140, %c0_141, %c0_142] : memref<16x128x128xbf16, #tpu.memory_space<vmem>>, vector<1x128x128xbf16>
    %172 = vector.shape_cast %171 : vector<1x128x128xbf16> to vector<128x128xbf16>
    %cst_143 = arith.constant dense<0.000000e+00> : vector<128x16xf32>
    %173 = tpu.matmul %172, %158, %cst_143 {dimension_numbers = #tpu.dot_dimension_numbers<[1], [0], [0], [1], [0, 0, 1, 1], [], []>} : vector<128x128xbf16>, vector<128x16xbf16>, vector<128x16xf32> -> vector<128x16xf32>
    %174 = arith.addf %170, %173 : vector<128x16xf32>
    %c3_144 = arith.constant 3 : index
    %c0_145 = arith.constant 0 : index
    %c0_146 = arith.constant 0 : index
    %175 = vector.load %arg8[%c3_144, %c0_145, %c0_146] : memref<4x8x16xbf16, #tpu.memory_space<vmem>>, vector<1x8x16xbf16>
    %176 = vector.shape_cast %175 : vector<1x8x16xbf16> to vector<8x16xbf16>
    %cst_147 = arith.constant dense<0.000000e+00> : vector<128x16xf32>
    %177 = tpu.matmul %115, %176, %cst_147 {dimension_numbers = #tpu.dot_dimension_numbers<[1], [0], [0], [1], [0, 0, 1, 1], [], []>} : vector<128x8xbf16>, vector<8x16xbf16>, vector<128x16xf32> -> vector<128x16xf32>
    %178 = arith.truncf %177 : vector<128x16xf32> to vector<128x16xbf16>
    %c3_148 = arith.constant 3 : index
    %c0_149 = arith.constant 0 : index
    %c0_150 = arith.constant 0 : index
    %179 = vector.load %arg7[%c3_148, %c0_149, %c0_150] : memref<16x128x128xbf16, #tpu.memory_space<vmem>>, vector<1x128x128xbf16>
    %180 = vector.shape_cast %179 : vector<1x128x128xbf16> to vector<128x128xbf16>
    %cst_151 = arith.constant dense<0.000000e+00> : vector<128x16xf32>
    %181 = tpu.matmul %180, %178, %cst_151 {dimension_numbers = #tpu.dot_dimension_numbers<[1], [0], [0], [1], [0, 0, 1, 1], [], []>} : vector<128x128xbf16>, vector<128x16xbf16>, vector<128x16xf32> -> vector<128x16xf32>
    %182 = arith.addf %174, %181 : vector<128x16xf32>
    %c7_152 = arith.constant 7 : index
    %c0_153 = arith.constant 0 : index
    %c0_154 = arith.constant 0 : index
    %183 = vector.load %arg7[%c7_152, %c0_153, %c0_154] : memref<16x128x128xbf16, #tpu.memory_space<vmem>>, vector<1x128x128xbf16>
    %184 = vector.shape_cast %183 : vector<1x128x128xbf16> to vector<128x128xbf16>
    %cst_155 = arith.constant dense<0.000000e+00> : vector<128x16xf32>
    %185 = tpu.matmul %184, %178, %cst_155 {dimension_numbers = #tpu.dot_dimension_numbers<[1], [0], [0], [1], [0, 0, 1, 1], [], []>} : vector<128x128xbf16>, vector<128x16xbf16>, vector<128x16xf32> -> vector<128x16xf32>
    %186 = arith.addf %182, %185 : vector<128x16xf32>
    %c11_156 = arith.constant 11 : index
    %c0_157 = arith.constant 0 : index
    %c0_158 = arith.constant 0 : index
    %187 = vector.load %arg7[%c11_156, %c0_157, %c0_158] : memref<16x128x128xbf16, #tpu.memory_space<vmem>>, vector<1x128x128xbf16>
    %188 = vector.shape_cast %187 : vector<1x128x128xbf16> to vector<128x128xbf16>
    %cst_159 = arith.constant dense<0.000000e+00> : vector<128x16xf32>
    %189 = tpu.matmul %188, %178, %cst_159 {dimension_numbers = #tpu.dot_dimension_numbers<[1], [0], [0], [1], [0, 0, 1, 1], [], []>} : vector<128x128xbf16>, vector<128x16xbf16>, vector<128x16xf32> -> vector<128x16xf32>
    %190 = arith.addf %186, %189 : vector<128x16xf32>
    %c15_160 = arith.constant 15 : index
    %c0_161 = arith.constant 0 : index
    %c0_162 = arith.constant 0 : index
    %191 = vector.load %arg7[%c15_160, %c0_161, %c0_162] : memref<16x128x128xbf16, #tpu.memory_space<vmem>>, vector<1x128x128xbf16>
    %192 = vector.shape_cast %191 : vector<1x128x128xbf16> to vector<128x128xbf16>
    %cst_163 = arith.constant dense<0.000000e+00> : vector<128x16xf32>
    %193 = tpu.matmul %192, %178, %cst_163 {dimension_numbers = #tpu.dot_dimension_numbers<[1], [0], [0], [1], [0, 0, 1, 1], [], []>} : vector<128x128xbf16>, vector<128x16xbf16>, vector<128x16xf32> -> vector<128x16xf32>
    %194 = arith.addf %190, %193 : vector<128x16xf32>
    %c0_164 = arith.constant 0 : index
    %c0_165 = arith.constant 0 : index
    %195 = vector.load %arg9[%c0_164, %c0_165] : memref<128x1xf32, #tpu.memory_space<vmem>>, vector<128x1xf32>
    %196 = vector.broadcast %195 : vector<128x1xf32> to vector<128x16xf32>
    %197 = arith.addf %194, %196 : vector<128x16xf32>
    %cst_166 = arith.constant dense<0.000000e+00> : vector<128xf32>
    %198 = vector.multi_reduction <add>, %197, %cst_166 [1] : vector<128x16xf32> to vector<128xf32>
    %199 = vector.shape_cast %198 : vector<128xf32> to vector<128x1xf32>
    %cst_167 = arith.constant 6.250000e-02 : f32
    %200 = vector.broadcast %cst_167 : f32 to vector<128x1xf32>
    %201 = arith.mulf %199, %200 : vector<128x1xf32>
    %202 = arith.mulf %197, %197 : vector<128x16xf32>
    %cst_168 = arith.constant dense<0.000000e+00> : vector<128xf32>
    %203 = vector.multi_reduction <add>, %202, %cst_168 [1] : vector<128x16xf32> to vector<128xf32>
    %204 = vector.shape_cast %203 : vector<128xf32> to vector<128x1xf32>
    %cst_169 = arith.constant 6.250000e-02 : f32
    %205 = vector.broadcast %cst_169 : f32 to vector<128x1xf32>
    %206 = arith.mulf %204, %205 : vector<128x1xf32>
    %c0_170 = arith.constant 0 : index
    %c0_171 = arith.constant 0 : index
    %207 = vector.load %arg12[%c0_170, %c0_171] : memref<128x128xf32, #tpu.memory_space<vmem>>, vector<128x128xf32>
    %cst_172 = arith.constant dense<0.000000e+00> : vector<128x1xf32>
    %208 = tpu.matmul %207, %201, %cst_172 {dimension_numbers = #tpu.dot_dimension_numbers<[1], [0], [0], [1], [0, 0, 1, 1], [], []>} : vector<128x128xf32>, vector<128x1xf32>, vector<128x1xf32> -> vector<128x1xf32>
    %c0_173 = arith.constant 0 : index
    %c0_174 = arith.constant 0 : index
    %209 = vector.load %arg12[%c0_173, %c0_174] : memref<128x128xf32, #tpu.memory_space<vmem>>, vector<128x128xf32>
    %cst_175 = arith.constant dense<0.000000e+00> : vector<128x1xf32>
    %210 = tpu.matmul %209, %206, %cst_175 {dimension_numbers = #tpu.dot_dimension_numbers<[1], [0], [0], [1], [0, 0, 1, 1], [], []>} : vector<128x128xf32>, vector<128x1xf32>, vector<128x1xf32> -> vector<128x1xf32>
    %211 = arith.mulf %208, %208 : vector<128x1xf32>
    %212 = arith.subf %210, %211 : vector<128x1xf32>
    %cst_176 = arith.constant 0.000000e+00 : f32
    %213 = vector.broadcast %cst_176 : f32 to vector<128x1xf32>
    %214 = arith.maximumf %212, %213 : vector<128x1xf32>
    %215 = vector.broadcast %208 : vector<128x1xf32> to vector<128x16xf32>
    %216 = arith.subf %197, %215 : vector<128x16xf32>
    %cst_177 = arith.constant 9.99999974E-6 : f32
    %217 = vector.broadcast %cst_177 : f32 to vector<128x1xf32>
    %218 = arith.addf %214, %217 : vector<128x1xf32>
    %219 = math.rsqrt %218 : vector<128x1xf32>
    %220 = vector.broadcast %219 : vector<128x1xf32> to vector<128x16xf32>
    %221 = arith.mulf %216, %220 : vector<128x16xf32>
    %c0_178 = arith.constant 0 : index
    %c0_179 = arith.constant 0 : index
    %222 = vector.load %arg10[%c0_178, %c0_179] : memref<128x1xf32, #tpu.memory_space<vmem>>, vector<128x1xf32>
    %223 = vector.broadcast %222 : vector<128x1xf32> to vector<128x16xf32>
    %224 = arith.mulf %221, %223 : vector<128x16xf32>
    %c0_180 = arith.constant 0 : index
    %c0_181 = arith.constant 0 : index
    %225 = vector.load %arg11[%c0_180, %c0_181] : memref<128x1xf32, #tpu.memory_space<vmem>>, vector<128x1xf32>
    %226 = vector.broadcast %225 : vector<128x1xf32> to vector<128x16xf32>
    %227 = arith.addf %224, %226 : vector<128x16xf32>
    %cst_182 = arith.constant 0.000000e+00 : f32
    %228 = vector.broadcast %cst_182 : f32 to vector<128x16xf32>
    %229 = arith.maximumf %227, %228 : vector<128x16xf32>
    %230 = arith.truncf %229 : vector<128x16xf32> to vector<128x16xbf16>
    %c0_183 = arith.constant 0 : index
    %c0_184 = arith.constant 0 : index
    %c0_185 = arith.constant 0 : index
    %231 = vector.load %arg14[%c0_183, %c0_184, %c0_185] : memref<4x16x32xbf16, #tpu.memory_space<vmem>>, vector<1x16x32xbf16>
    %232 = vector.shape_cast %231 : vector<1x16x32xbf16> to vector<16x32xbf16>
    %cst_186 = arith.constant dense<0.000000e+00> : vector<128x32xf32>
    %233 = tpu.matmul %230, %232, %cst_186 {dimension_numbers = #tpu.dot_dimension_numbers<[1], [0], [0], [1], [0, 0, 1, 1], [], []>} : vector<128x16xbf16>, vector<16x32xbf16>, vector<128x32xf32> -> vector<128x32xf32>
    %234 = arith.truncf %233 : vector<128x32xf32> to vector<128x32xbf16>
    %c0_187 = arith.constant 0 : index
    %c0_188 = arith.constant 0 : index
    %c0_189 = arith.constant 0 : index
    %235 = vector.load %arg13[%c0_187, %c0_188, %c0_189] : memref<16x128x128xbf16, #tpu.memory_space<vmem>>, vector<1x128x128xbf16>
    %236 = vector.shape_cast %235 : vector<1x128x128xbf16> to vector<128x128xbf16>
    %cst_190 = arith.constant dense<0.000000e+00> : vector<128x32xf32>
    %237 = tpu.matmul %236, %234, %cst_190 {dimension_numbers = #tpu.dot_dimension_numbers<[1], [0], [0], [1], [0, 0, 1, 1], [], []>} : vector<128x128xbf16>, vector<128x32xbf16>, vector<128x32xf32> -> vector<128x32xf32>
    %c4_191 = arith.constant 4 : index
    %c0_192 = arith.constant 0 : index
    %c0_193 = arith.constant 0 : index
    %238 = vector.load %arg13[%c4_191, %c0_192, %c0_193] : memref<16x128x128xbf16, #tpu.memory_space<vmem>>, vector<1x128x128xbf16>
    %239 = vector.shape_cast %238 : vector<1x128x128xbf16> to vector<128x128xbf16>
    %cst_194 = arith.constant dense<0.000000e+00> : vector<128x32xf32>
    %240 = tpu.matmul %239, %234, %cst_194 {dimension_numbers = #tpu.dot_dimension_numbers<[1], [0], [0], [1], [0, 0, 1, 1], [], []>} : vector<128x128xbf16>, vector<128x32xbf16>, vector<128x32xf32> -> vector<128x32xf32>
    %241 = arith.addf %237, %240 : vector<128x32xf32>
    %c8_195 = arith.constant 8 : index
    %c0_196 = arith.constant 0 : index
    %c0_197 = arith.constant 0 : index
    %242 = vector.load %arg13[%c8_195, %c0_196, %c0_197] : memref<16x128x128xbf16, #tpu.memory_space<vmem>>, vector<1x128x128xbf16>
    %243 = vector.shape_cast %242 : vector<1x128x128xbf16> to vector<128x128xbf16>
    %cst_198 = arith.constant dense<0.000000e+00> : vector<128x32xf32>
    %244 = tpu.matmul %243, %234, %cst_198 {dimension_numbers = #tpu.dot_dimension_numbers<[1], [0], [0], [1], [0, 0, 1, 1], [], []>} : vector<128x128xbf16>, vector<128x32xbf16>, vector<128x32xf32> -> vector<128x32xf32>
    %245 = arith.addf %241, %244 : vector<128x32xf32>
    %c12_199 = arith.constant 12 : index
    %c0_200 = arith.constant 0 : index
    %c0_201 = arith.constant 0 : index
    %246 = vector.load %arg13[%c12_199, %c0_200, %c0_201] : memref<16x128x128xbf16, #tpu.memory_space<vmem>>, vector<1x128x128xbf16>
    %247 = vector.shape_cast %246 : vector<1x128x128xbf16> to vector<128x128xbf16>
    %cst_202 = arith.constant dense<0.000000e+00> : vector<128x32xf32>
    %248 = tpu.matmul %247, %234, %cst_202 {dimension_numbers = #tpu.dot_dimension_numbers<[1], [0], [0], [1], [0, 0, 1, 1], [], []>} : vector<128x128xbf16>, vector<128x32xbf16>, vector<128x32xf32> -> vector<128x32xf32>
    %249 = arith.addf %245, %248 : vector<128x32xf32>
    %c1_203 = arith.constant 1 : index
    %c0_204 = arith.constant 0 : index
    %c0_205 = arith.constant 0 : index
    %250 = vector.load %arg14[%c1_203, %c0_204, %c0_205] : memref<4x16x32xbf16, #tpu.memory_space<vmem>>, vector<1x16x32xbf16>
    %251 = vector.shape_cast %250 : vector<1x16x32xbf16> to vector<16x32xbf16>
    %cst_206 = arith.constant dense<0.000000e+00> : vector<128x32xf32>
    %252 = tpu.matmul %230, %251, %cst_206 {dimension_numbers = #tpu.dot_dimension_numbers<[1], [0], [0], [1], [0, 0, 1, 1], [], []>} : vector<128x16xbf16>, vector<16x32xbf16>, vector<128x32xf32> -> vector<128x32xf32>
    %253 = arith.truncf %252 : vector<128x32xf32> to vector<128x32xbf16>
    %c1_207 = arith.constant 1 : index
    %c0_208 = arith.constant 0 : index
    %c0_209 = arith.constant 0 : index
    %254 = vector.load %arg13[%c1_207, %c0_208, %c0_209] : memref<16x128x128xbf16, #tpu.memory_space<vmem>>, vector<1x128x128xbf16>
    %255 = vector.shape_cast %254 : vector<1x128x128xbf16> to vector<128x128xbf16>
    %cst_210 = arith.constant dense<0.000000e+00> : vector<128x32xf32>
    %256 = tpu.matmul %255, %253, %cst_210 {dimension_numbers = #tpu.dot_dimension_numbers<[1], [0], [0], [1], [0, 0, 1, 1], [], []>} : vector<128x128xbf16>, vector<128x32xbf16>, vector<128x32xf32> -> vector<128x32xf32>
    %257 = arith.addf %249, %256 : vector<128x32xf32>
    %c5_211 = arith.constant 5 : index
    %c0_212 = arith.constant 0 : index
    %c0_213 = arith.constant 0 : index
    %258 = vector.load %arg13[%c5_211, %c0_212, %c0_213] : memref<16x128x128xbf16, #tpu.memory_space<vmem>>, vector<1x128x128xbf16>
    %259 = vector.shape_cast %258 : vector<1x128x128xbf16> to vector<128x128xbf16>
    %cst_214 = arith.constant dense<0.000000e+00> : vector<128x32xf32>
    %260 = tpu.matmul %259, %253, %cst_214 {dimension_numbers = #tpu.dot_dimension_numbers<[1], [0], [0], [1], [0, 0, 1, 1], [], []>} : vector<128x128xbf16>, vector<128x32xbf16>, vector<128x32xf32> -> vector<128x32xf32>
    %261 = arith.addf %257, %260 : vector<128x32xf32>
    %c9_215 = arith.constant 9 : index
    %c0_216 = arith.constant 0 : index
    %c0_217 = arith.constant 0 : index
    %262 = vector.load %arg13[%c9_215, %c0_216, %c0_217] : memref<16x128x128xbf16, #tpu.memory_space<vmem>>, vector<1x128x128xbf16>
    %263 = vector.shape_cast %262 : vector<1x128x128xbf16> to vector<128x128xbf16>
    %cst_218 = arith.constant dense<0.000000e+00> : vector<128x32xf32>
    %264 = tpu.matmul %263, %253, %cst_218 {dimension_numbers = #tpu.dot_dimension_numbers<[1], [0], [0], [1], [0, 0, 1, 1], [], []>} : vector<128x128xbf16>, vector<128x32xbf16>, vector<128x32xf32> -> vector<128x32xf32>
    %265 = arith.addf %261, %264 : vector<128x32xf32>
    %c13_219 = arith.constant 13 : index
    %c0_220 = arith.constant 0 : index
    %c0_221 = arith.constant 0 : index
    %266 = vector.load %arg13[%c13_219, %c0_220, %c0_221] : memref<16x128x128xbf16, #tpu.memory_space<vmem>>, vector<1x128x128xbf16>
    %267 = vector.shape_cast %266 : vector<1x128x128xbf16> to vector<128x128xbf16>
    %cst_222 = arith.constant dense<0.000000e+00> : vector<128x32xf32>
    %268 = tpu.matmul %267, %253, %cst_222 {dimension_numbers = #tpu.dot_dimension_numbers<[1], [0], [0], [1], [0, 0, 1, 1], [], []>} : vector<128x128xbf16>, vector<128x32xbf16>, vector<128x32xf32> -> vector<128x32xf32>
    %269 = arith.addf %265, %268 : vector<128x32xf32>
    %c2_223 = arith.constant 2 : index
    %c0_224 = arith.constant 0 : index
    %c0_225 = arith.constant 0 : index
    %270 = vector.load %arg14[%c2_223, %c0_224, %c0_225] : memref<4x16x32xbf16, #tpu.memory_space<vmem>>, vector<1x16x32xbf16>
    %271 = vector.shape_cast %270 : vector<1x16x32xbf16> to vector<16x32xbf16>
    %cst_226 = arith.constant dense<0.000000e+00> : vector<128x32xf32>
    %272 = tpu.matmul %230, %271, %cst_226 {dimension_numbers = #tpu.dot_dimension_numbers<[1], [0], [0], [1], [0, 0, 1, 1], [], []>} : vector<128x16xbf16>, vector<16x32xbf16>, vector<128x32xf32> -> vector<128x32xf32>
    %273 = arith.truncf %272 : vector<128x32xf32> to vector<128x32xbf16>
    %c2_227 = arith.constant 2 : index
    %c0_228 = arith.constant 0 : index
    %c0_229 = arith.constant 0 : index
    %274 = vector.load %arg13[%c2_227, %c0_228, %c0_229] : memref<16x128x128xbf16, #tpu.memory_space<vmem>>, vector<1x128x128xbf16>
    %275 = vector.shape_cast %274 : vector<1x128x128xbf16> to vector<128x128xbf16>
    %cst_230 = arith.constant dense<0.000000e+00> : vector<128x32xf32>
    %276 = tpu.matmul %275, %273, %cst_230 {dimension_numbers = #tpu.dot_dimension_numbers<[1], [0], [0], [1], [0, 0, 1, 1], [], []>} : vector<128x128xbf16>, vector<128x32xbf16>, vector<128x32xf32> -> vector<128x32xf32>
    %277 = arith.addf %269, %276 : vector<128x32xf32>
    %c6_231 = arith.constant 6 : index
    %c0_232 = arith.constant 0 : index
    %c0_233 = arith.constant 0 : index
    %278 = vector.load %arg13[%c6_231, %c0_232, %c0_233] : memref<16x128x128xbf16, #tpu.memory_space<vmem>>, vector<1x128x128xbf16>
    %279 = vector.shape_cast %278 : vector<1x128x128xbf16> to vector<128x128xbf16>
    %cst_234 = arith.constant dense<0.000000e+00> : vector<128x32xf32>
    %280 = tpu.matmul %279, %273, %cst_234 {dimension_numbers = #tpu.dot_dimension_numbers<[1], [0], [0], [1], [0, 0, 1, 1], [], []>} : vector<128x128xbf16>, vector<128x32xbf16>, vector<128x32xf32> -> vector<128x32xf32>
    %281 = arith.addf %277, %280 : vector<128x32xf32>
    %c10_235 = arith.constant 10 : index
    %c0_236 = arith.constant 0 : index
    %c0_237 = arith.constant 0 : index
    %282 = vector.load %arg13[%c10_235, %c0_236, %c0_237] : memref<16x128x128xbf16, #tpu.memory_space<vmem>>, vector<1x128x128xbf16>
    %283 = vector.shape_cast %282 : vector<1x128x128xbf16> to vector<128x128xbf16>
    %cst_238 = arith.constant dense<0.000000e+00> : vector<128x32xf32>
    %284 = tpu.matmul %283, %273, %cst_238 {dimension_numbers = #tpu.dot_dimension_numbers<[1], [0], [0], [1], [0, 0, 1, 1], [], []>} : vector<128x128xbf16>, vector<128x32xbf16>, vector<128x32xf32> -> vector<128x32xf32>
    %285 = arith.addf %281, %284 : vector<128x32xf32>
    %c14_239 = arith.constant 14 : index
    %c0_240 = arith.constant 0 : index
    %c0_241 = arith.constant 0 : index
    %286 = vector.load %arg13[%c14_239, %c0_240, %c0_241] : memref<16x128x128xbf16, #tpu.memory_space<vmem>>, vector<1x128x128xbf16>
    %287 = vector.shape_cast %286 : vector<1x128x128xbf16> to vector<128x128xbf16>
    %cst_242 = arith.constant dense<0.000000e+00> : vector<128x32xf32>
    %288 = tpu.matmul %287, %273, %cst_242 {dimension_numbers = #tpu.dot_dimension_numbers<[1], [0], [0], [1], [0, 0, 1, 1], [], []>} : vector<128x128xbf16>, vector<128x32xbf16>, vector<128x32xf32> -> vector<128x32xf32>
    %289 = arith.addf %285, %288 : vector<128x32xf32>
    %c3_243 = arith.constant 3 : index
    %c0_244 = arith.constant 0 : index
    %c0_245 = arith.constant 0 : index
    %290 = vector.load %arg14[%c3_243, %c0_244, %c0_245] : memref<4x16x32xbf16, #tpu.memory_space<vmem>>, vector<1x16x32xbf16>
    %291 = vector.shape_cast %290 : vector<1x16x32xbf16> to vector<16x32xbf16>
    %cst_246 = arith.constant dense<0.000000e+00> : vector<128x32xf32>
    %292 = tpu.matmul %230, %291, %cst_246 {dimension_numbers = #tpu.dot_dimension_numbers<[1], [0], [0], [1], [0, 0, 1, 1], [], []>} : vector<128x16xbf16>, vector<16x32xbf16>, vector<128x32xf32> -> vector<128x32xf32>
    %293 = arith.truncf %292 : vector<128x32xf32> to vector<128x32xbf16>
    %c3_247 = arith.constant 3 : index
    %c0_248 = arith.constant 0 : index
    %c0_249 = arith.constant 0 : index
    %294 = vector.load %arg13[%c3_247, %c0_248, %c0_249] : memref<16x128x128xbf16, #tpu.memory_space<vmem>>, vector<1x128x128xbf16>
    %295 = vector.shape_cast %294 : vector<1x128x128xbf16> to vector<128x128xbf16>
    %cst_250 = arith.constant dense<0.000000e+00> : vector<128x32xf32>
    %296 = tpu.matmul %295, %293, %cst_250 {dimension_numbers = #tpu.dot_dimension_numbers<[1], [0], [0], [1], [0, 0, 1, 1], [], []>} : vector<128x128xbf16>, vector<128x32xbf16>, vector<128x32xf32> -> vector<128x32xf32>
    %297 = arith.addf %289, %296 : vector<128x32xf32>
    %c7_251 = arith.constant 7 : index
    %c0_252 = arith.constant 0 : index
    %c0_253 = arith.constant 0 : index
    %298 = vector.load %arg13[%c7_251, %c0_252, %c0_253] : memref<16x128x128xbf16, #tpu.memory_space<vmem>>, vector<1x128x128xbf16>
    %299 = vector.shape_cast %298 : vector<1x128x128xbf16> to vector<128x128xbf16>
    %cst_254 = arith.constant dense<0.000000e+00> : vector<128x32xf32>
    %300 = tpu.matmul %299, %293, %cst_254 {dimension_numbers = #tpu.dot_dimension_numbers<[1], [0], [0], [1], [0, 0, 1, 1], [], []>} : vector<128x128xbf16>, vector<128x32xbf16>, vector<128x32xf32> -> vector<128x32xf32>
    %301 = arith.addf %297, %300 : vector<128x32xf32>
    %c11_255 = arith.constant 11 : index
    %c0_256 = arith.constant 0 : index
    %c0_257 = arith.constant 0 : index
    %302 = vector.load %arg13[%c11_255, %c0_256, %c0_257] : memref<16x128x128xbf16, #tpu.memory_space<vmem>>, vector<1x128x128xbf16>
    %303 = vector.shape_cast %302 : vector<1x128x128xbf16> to vector<128x128xbf16>
    %cst_258 = arith.constant dense<0.000000e+00> : vector<128x32xf32>
    %304 = tpu.matmul %303, %293, %cst_258 {dimension_numbers = #tpu.dot_dimension_numbers<[1], [0], [0], [1], [0, 0, 1, 1], [], []>} : vector<128x128xbf16>, vector<128x32xbf16>, vector<128x32xf32> -> vector<128x32xf32>
    %305 = arith.addf %301, %304 : vector<128x32xf32>
    %c15_259 = arith.constant 15 : index
    %c0_260 = arith.constant 0 : index
    %c0_261 = arith.constant 0 : index
    %306 = vector.load %arg13[%c15_259, %c0_260, %c0_261] : memref<16x128x128xbf16, #tpu.memory_space<vmem>>, vector<1x128x128xbf16>
    %307 = vector.shape_cast %306 : vector<1x128x128xbf16> to vector<128x128xbf16>
    %cst_262 = arith.constant dense<0.000000e+00> : vector<128x32xf32>
    %308 = tpu.matmul %307, %293, %cst_262 {dimension_numbers = #tpu.dot_dimension_numbers<[1], [0], [0], [1], [0, 0, 1, 1], [], []>} : vector<128x128xbf16>, vector<128x32xbf16>, vector<128x32xf32> -> vector<128x32xf32>
    %309 = arith.addf %305, %308 : vector<128x32xf32>
    %c0_263 = arith.constant 0 : index
    %c0_264 = arith.constant 0 : index
    %310 = vector.load %arg15[%c0_263, %c0_264] : memref<128x1xf32, #tpu.memory_space<vmem>>, vector<128x1xf32>
    %311 = vector.broadcast %310 : vector<128x1xf32> to vector<128x32xf32>
    %312 = arith.addf %309, %311 : vector<128x32xf32>
    %cst_265 = arith.constant dense<0.000000e+00> : vector<128xf32>
    %313 = vector.multi_reduction <add>, %312, %cst_265 [1] : vector<128x32xf32> to vector<128xf32>
    %314 = vector.shape_cast %313 : vector<128xf32> to vector<128x1xf32>
    %cst_266 = arith.constant 3.125000e-02 : f32
    %315 = vector.broadcast %cst_266 : f32 to vector<128x1xf32>
    %316 = arith.mulf %314, %315 : vector<128x1xf32>
    %317 = arith.mulf %312, %312 : vector<128x32xf32>
    %cst_267 = arith.constant dense<0.000000e+00> : vector<128xf32>
    %318 = vector.multi_reduction <add>, %317, %cst_267 [1] : vector<128x32xf32> to vector<128xf32>
    %319 = vector.shape_cast %318 : vector<128xf32> to vector<128x1xf32>
    %cst_268 = arith.constant 3.125000e-02 : f32
    %320 = vector.broadcast %cst_268 : f32 to vector<128x1xf32>
    %321 = arith.mulf %319, %320 : vector<128x1xf32>
    %c0_269 = arith.constant 0 : index
    %c0_270 = arith.constant 0 : index
    %322 = vector.load %arg18[%c0_269, %c0_270] : memref<128x128xf32, #tpu.memory_space<vmem>>, vector<128x128xf32>
    %cst_271 = arith.constant dense<0.000000e+00> : vector<128x1xf32>
    %323 = tpu.matmul %322, %316, %cst_271 {dimension_numbers = #tpu.dot_dimension_numbers<[1], [0], [0], [1], [0, 0, 1, 1], [], []>} : vector<128x128xf32>, vector<128x1xf32>, vector<128x1xf32> -> vector<128x1xf32>
    %c0_272 = arith.constant 0 : index
    %c0_273 = arith.constant 0 : index
    %324 = vector.load %arg18[%c0_272, %c0_273] : memref<128x128xf32, #tpu.memory_space<vmem>>, vector<128x128xf32>
    %cst_274 = arith.constant dense<0.000000e+00> : vector<128x1xf32>
    %325 = tpu.matmul %324, %321, %cst_274 {dimension_numbers = #tpu.dot_dimension_numbers<[1], [0], [0], [1], [0, 0, 1, 1], [], []>} : vector<128x128xf32>, vector<128x1xf32>, vector<128x1xf32> -> vector<128x1xf32>
    %326 = arith.mulf %323, %323 : vector<128x1xf32>
    %327 = arith.subf %325, %326 : vector<128x1xf32>
    %cst_275 = arith.constant 0.000000e+00 : f32
    %328 = vector.broadcast %cst_275 : f32 to vector<128x1xf32>
    %329 = arith.maximumf %327, %328 : vector<128x1xf32>
    %330 = vector.broadcast %323 : vector<128x1xf32> to vector<128x32xf32>
    %331 = arith.subf %312, %330 : vector<128x32xf32>
    %cst_276 = arith.constant 9.99999974E-6 : f32
    %332 = vector.broadcast %cst_276 : f32 to vector<128x1xf32>
    %333 = arith.addf %329, %332 : vector<128x1xf32>
    %334 = math.rsqrt %333 : vector<128x1xf32>
    %335 = vector.broadcast %334 : vector<128x1xf32> to vector<128x32xf32>
    %336 = arith.mulf %331, %335 : vector<128x32xf32>
    %c0_277 = arith.constant 0 : index
    %c0_278 = arith.constant 0 : index
    %337 = vector.load %arg16[%c0_277, %c0_278] : memref<128x1xf32, #tpu.memory_space<vmem>>, vector<128x1xf32>
    %338 = vector.broadcast %337 : vector<128x1xf32> to vector<128x32xf32>
    %339 = arith.mulf %336, %338 : vector<128x32xf32>
    %c0_279 = arith.constant 0 : index
    %c0_280 = arith.constant 0 : index
    %340 = vector.load %arg17[%c0_279, %c0_280] : memref<128x1xf32, #tpu.memory_space<vmem>>, vector<128x1xf32>
    %341 = vector.broadcast %340 : vector<128x1xf32> to vector<128x32xf32>
    %342 = arith.addf %339, %341 : vector<128x32xf32>
    %cst_281 = arith.constant 0.000000e+00 : f32
    %343 = vector.broadcast %cst_281 : f32 to vector<128x32xf32>
    %344 = arith.maximumf %342, %343 : vector<128x32xf32>
    %345 = arith.truncf %344 : vector<128x32xf32> to vector<128x32xbf16>
    %c0_282 = arith.constant 0 : index
    %c0_283 = arith.constant 0 : index
    %c0_284 = arith.constant 0 : index
    %346 = vector.load %arg20[%c0_282, %c0_283, %c0_284] : memref<4x32x64xbf16, #tpu.memory_space<vmem>>, vector<1x32x64xbf16>
    %347 = vector.shape_cast %346 : vector<1x32x64xbf16> to vector<32x64xbf16>
    %cst_285 = arith.constant dense<0.000000e+00> : vector<128x64xf32>
    %348 = tpu.matmul %345, %347, %cst_285 {dimension_numbers = #tpu.dot_dimension_numbers<[1], [0], [0], [1], [0, 0, 1, 1], [], []>} : vector<128x32xbf16>, vector<32x64xbf16>, vector<128x64xf32> -> vector<128x64xf32>
    %349 = arith.truncf %348 : vector<128x64xf32> to vector<128x64xbf16>
    %c0_286 = arith.constant 0 : index
    %c0_287 = arith.constant 0 : index
    %c0_288 = arith.constant 0 : index
    %350 = vector.load %arg19[%c0_286, %c0_287, %c0_288] : memref<16x96x128xbf16, #tpu.memory_space<vmem>>, vector<1x96x128xbf16>
    %351 = vector.shape_cast %350 : vector<1x96x128xbf16> to vector<96x128xbf16>
    %cst_289 = arith.constant dense<0.000000e+00> : vector<96x64xf32>
    %352 = tpu.matmul %351, %349, %cst_289 {dimension_numbers = #tpu.dot_dimension_numbers<[1], [0], [0], [1], [0, 0, 1, 1], [], []>} : vector<96x128xbf16>, vector<128x64xbf16>, vector<96x64xf32> -> vector<96x64xf32>
    %c4_290 = arith.constant 4 : index
    %c0_291 = arith.constant 0 : index
    %c0_292 = arith.constant 0 : index
    %353 = vector.load %arg19[%c4_290, %c0_291, %c0_292] : memref<16x96x128xbf16, #tpu.memory_space<vmem>>, vector<1x96x128xbf16>
    %354 = vector.shape_cast %353 : vector<1x96x128xbf16> to vector<96x128xbf16>
    %cst_293 = arith.constant dense<0.000000e+00> : vector<96x64xf32>
    %355 = tpu.matmul %354, %349, %cst_293 {dimension_numbers = #tpu.dot_dimension_numbers<[1], [0], [0], [1], [0, 0, 1, 1], [], []>} : vector<96x128xbf16>, vector<128x64xbf16>, vector<96x64xf32> -> vector<96x64xf32>
    %356 = arith.addf %352, %355 : vector<96x64xf32>
    %c8_294 = arith.constant 8 : index
    %c0_295 = arith.constant 0 : index
    %c0_296 = arith.constant 0 : index
    %357 = vector.load %arg19[%c8_294, %c0_295, %c0_296] : memref<16x96x128xbf16, #tpu.memory_space<vmem>>, vector<1x96x128xbf16>
    %358 = vector.shape_cast %357 : vector<1x96x128xbf16> to vector<96x128xbf16>
    %cst_297 = arith.constant dense<0.000000e+00> : vector<96x64xf32>
    %359 = tpu.matmul %358, %349, %cst_297 {dimension_numbers = #tpu.dot_dimension_numbers<[1], [0], [0], [1], [0, 0, 1, 1], [], []>} : vector<96x128xbf16>, vector<128x64xbf16>, vector<96x64xf32> -> vector<96x64xf32>
    %360 = arith.addf %356, %359 : vector<96x64xf32>
    %c12_298 = arith.constant 12 : index
    %c0_299 = arith.constant 0 : index
    %c0_300 = arith.constant 0 : index
    %361 = vector.load %arg19[%c12_298, %c0_299, %c0_300] : memref<16x96x128xbf16, #tpu.memory_space<vmem>>, vector<1x96x128xbf16>
    %362 = vector.shape_cast %361 : vector<1x96x128xbf16> to vector<96x128xbf16>
    %cst_301 = arith.constant dense<0.000000e+00> : vector<96x64xf32>
    %363 = tpu.matmul %362, %349, %cst_301 {dimension_numbers = #tpu.dot_dimension_numbers<[1], [0], [0], [1], [0, 0, 1, 1], [], []>} : vector<96x128xbf16>, vector<128x64xbf16>, vector<96x64xf32> -> vector<96x64xf32>
    %364 = arith.addf %360, %363 : vector<96x64xf32>
    %c1_302 = arith.constant 1 : index
    %c0_303 = arith.constant 0 : index
    %c0_304 = arith.constant 0 : index
    %365 = vector.load %arg20[%c1_302, %c0_303, %c0_304] : memref<4x32x64xbf16, #tpu.memory_space<vmem>>, vector<1x32x64xbf16>
    %366 = vector.shape_cast %365 : vector<1x32x64xbf16> to vector<32x64xbf16>
    %cst_305 = arith.constant dense<0.000000e+00> : vector<128x64xf32>
    %367 = tpu.matmul %345, %366, %cst_305 {dimension_numbers = #tpu.dot_dimension_numbers<[1], [0], [0], [1], [0, 0, 1, 1], [], []>} : vector<128x32xbf16>, vector<32x64xbf16>, vector<128x64xf32> -> vector<128x64xf32>
    %368 = arith.truncf %367 : vector<128x64xf32> to vector<128x64xbf16>
    %c1_306 = arith.constant 1 : index
    %c0_307 = arith.constant 0 : index
    %c0_308 = arith.constant 0 : index
    %369 = vector.load %arg19[%c1_306, %c0_307, %c0_308] : memref<16x96x128xbf16, #tpu.memory_space<vmem>>, vector<1x96x128xbf16>
    %370 = vector.shape_cast %369 : vector<1x96x128xbf16> to vector<96x128xbf16>
    %cst_309 = arith.constant dense<0.000000e+00> : vector<96x64xf32>
    %371 = tpu.matmul %370, %368, %cst_309 {dimension_numbers = #tpu.dot_dimension_numbers<[1], [0], [0], [1], [0, 0, 1, 1], [], []>} : vector<96x128xbf16>, vector<128x64xbf16>, vector<96x64xf32> -> vector<96x64xf32>
    %372 = arith.addf %364, %371 : vector<96x64xf32>
    %c5_310 = arith.constant 5 : index
    %c0_311 = arith.constant 0 : index
    %c0_312 = arith.constant 0 : index
    %373 = vector.load %arg19[%c5_310, %c0_311, %c0_312] : memref<16x96x128xbf16, #tpu.memory_space<vmem>>, vector<1x96x128xbf16>
    %374 = vector.shape_cast %373 : vector<1x96x128xbf16> to vector<96x128xbf16>
    %cst_313 = arith.constant dense<0.000000e+00> : vector<96x64xf32>
    %375 = tpu.matmul %374, %368, %cst_313 {dimension_numbers = #tpu.dot_dimension_numbers<[1], [0], [0], [1], [0, 0, 1, 1], [], []>} : vector<96x128xbf16>, vector<128x64xbf16>, vector<96x64xf32> -> vector<96x64xf32>
    %376 = arith.addf %372, %375 : vector<96x64xf32>
    %c9_314 = arith.constant 9 : index
    %c0_315 = arith.constant 0 : index
    %c0_316 = arith.constant 0 : index
    %377 = vector.load %arg19[%c9_314, %c0_315, %c0_316] : memref<16x96x128xbf16, #tpu.memory_space<vmem>>, vector<1x96x128xbf16>
    %378 = vector.shape_cast %377 : vector<1x96x128xbf16> to vector<96x128xbf16>
    %cst_317 = arith.constant dense<0.000000e+00> : vector<96x64xf32>
    %379 = tpu.matmul %378, %368, %cst_317 {dimension_numbers = #tpu.dot_dimension_numbers<[1], [0], [0], [1], [0, 0, 1, 1], [], []>} : vector<96x128xbf16>, vector<128x64xbf16>, vector<96x64xf32> -> vector<96x64xf32>
    %380 = arith.addf %376, %379 : vector<96x64xf32>
    %c13_318 = arith.constant 13 : index
    %c0_319 = arith.constant 0 : index
    %c0_320 = arith.constant 0 : index
    %381 = vector.load %arg19[%c13_318, %c0_319, %c0_320] : memref<16x96x128xbf16, #tpu.memory_space<vmem>>, vector<1x96x128xbf16>
    %382 = vector.shape_cast %381 : vector<1x96x128xbf16> to vector<96x128xbf16>
    %cst_321 = arith.constant dense<0.000000e+00> : vector<96x64xf32>
    %383 = tpu.matmul %382, %368, %cst_321 {dimension_numbers = #tpu.dot_dimension_numbers<[1], [0], [0], [1], [0, 0, 1, 1], [], []>} : vector<96x128xbf16>, vector<128x64xbf16>, vector<96x64xf32> -> vector<96x64xf32>
    %384 = arith.addf %380, %383 : vector<96x64xf32>
    %c2_322 = arith.constant 2 : index
    %c0_323 = arith.constant 0 : index
    %c0_324 = arith.constant 0 : index
    %385 = vector.load %arg20[%c2_322, %c0_323, %c0_324] : memref<4x32x64xbf16, #tpu.memory_space<vmem>>, vector<1x32x64xbf16>
    %386 = vector.shape_cast %385 : vector<1x32x64xbf16> to vector<32x64xbf16>
    %cst_325 = arith.constant dense<0.000000e+00> : vector<128x64xf32>
    %387 = tpu.matmul %345, %386, %cst_325 {dimension_numbers = #tpu.dot_dimension_numbers<[1], [0], [0], [1], [0, 0, 1, 1], [], []>} : vector<128x32xbf16>, vector<32x64xbf16>, vector<128x64xf32> -> vector<128x64xf32>
    %388 = arith.truncf %387 : vector<128x64xf32> to vector<128x64xbf16>
    %c2_326 = arith.constant 2 : index
    %c0_327 = arith.constant 0 : index
    %c0_328 = arith.constant 0 : index
    %389 = vector.load %arg19[%c2_326, %c0_327, %c0_328] : memref<16x96x128xbf16, #tpu.memory_space<vmem>>, vector<1x96x128xbf16>
    %390 = vector.shape_cast %389 : vector<1x96x128xbf16> to vector<96x128xbf16>
    %cst_329 = arith.constant dense<0.000000e+00> : vector<96x64xf32>
    %391 = tpu.matmul %390, %388, %cst_329 {dimension_numbers = #tpu.dot_dimension_numbers<[1], [0], [0], [1], [0, 0, 1, 1], [], []>} : vector<96x128xbf16>, vector<128x64xbf16>, vector<96x64xf32> -> vector<96x64xf32>
    %392 = arith.addf %384, %391 : vector<96x64xf32>
    %c6_330 = arith.constant 6 : index
    %c0_331 = arith.constant 0 : index
    %c0_332 = arith.constant 0 : index
    %393 = vector.load %arg19[%c6_330, %c0_331, %c0_332] : memref<16x96x128xbf16, #tpu.memory_space<vmem>>, vector<1x96x128xbf16>
    %394 = vector.shape_cast %393 : vector<1x96x128xbf16> to vector<96x128xbf16>
    %cst_333 = arith.constant dense<0.000000e+00> : vector<96x64xf32>
    %395 = tpu.matmul %394, %388, %cst_333 {dimension_numbers = #tpu.dot_dimension_numbers<[1], [0], [0], [1], [0, 0, 1, 1], [], []>} : vector<96x128xbf16>, vector<128x64xbf16>, vector<96x64xf32> -> vector<96x64xf32>
    %396 = arith.addf %392, %395 : vector<96x64xf32>
    %c10_334 = arith.constant 10 : index
    %c0_335 = arith.constant 0 : index
    %c0_336 = arith.constant 0 : index
    %397 = vector.load %arg19[%c10_334, %c0_335, %c0_336] : memref<16x96x128xbf16, #tpu.memory_space<vmem>>, vector<1x96x128xbf16>
    %398 = vector.shape_cast %397 : vector<1x96x128xbf16> to vector<96x128xbf16>
    %cst_337 = arith.constant dense<0.000000e+00> : vector<96x64xf32>
    %399 = tpu.matmul %398, %388, %cst_337 {dimension_numbers = #tpu.dot_dimension_numbers<[1], [0], [0], [1], [0, 0, 1, 1], [], []>} : vector<96x128xbf16>, vector<128x64xbf16>, vector<96x64xf32> -> vector<96x64xf32>
    %400 = arith.addf %396, %399 : vector<96x64xf32>
    %c14_338 = arith.constant 14 : index
    %c0_339 = arith.constant 0 : index
    %c0_340 = arith.constant 0 : index
    %401 = vector.load %arg19[%c14_338, %c0_339, %c0_340] : memref<16x96x128xbf16, #tpu.memory_space<vmem>>, vector<1x96x128xbf16>
    %402 = vector.shape_cast %401 : vector<1x96x128xbf16> to vector<96x128xbf16>
    %cst_341 = arith.constant dense<0.000000e+00> : vector<96x64xf32>
    %403 = tpu.matmul %402, %388, %cst_341 {dimension_numbers = #tpu.dot_dimension_numbers<[1], [0], [0], [1], [0, 0, 1, 1], [], []>} : vector<96x128xbf16>, vector<128x64xbf16>, vector<96x64xf32> -> vector<96x64xf32>
    %404 = arith.addf %400, %403 : vector<96x64xf32>
    %c3_342 = arith.constant 3 : index
    %c0_343 = arith.constant 0 : index
    %c0_344 = arith.constant 0 : index
    %405 = vector.load %arg20[%c3_342, %c0_343, %c0_344] : memref<4x32x64xbf16, #tpu.memory_space<vmem>>, vector<1x32x64xbf16>
    %406 = vector.shape_cast %405 : vector<1x32x64xbf16> to vector<32x64xbf16>
    %cst_345 = arith.constant dense<0.000000e+00> : vector<128x64xf32>
    %407 = tpu.matmul %345, %406, %cst_345 {dimension_numbers = #tpu.dot_dimension_numbers<[1], [0], [0], [1], [0, 0, 1, 1], [], []>} : vector<128x32xbf16>, vector<32x64xbf16>, vector<128x64xf32> -> vector<128x64xf32>
    %408 = arith.truncf %407 : vector<128x64xf32> to vector<128x64xbf16>
    %c3_346 = arith.constant 3 : index
    %c0_347 = arith.constant 0 : index
    %c0_348 = arith.constant 0 : index
    %409 = vector.load %arg19[%c3_346, %c0_347, %c0_348] : memref<16x96x128xbf16, #tpu.memory_space<vmem>>, vector<1x96x128xbf16>
    %410 = vector.shape_cast %409 : vector<1x96x128xbf16> to vector<96x128xbf16>
    %cst_349 = arith.constant dense<0.000000e+00> : vector<96x64xf32>
    %411 = tpu.matmul %410, %408, %cst_349 {dimension_numbers = #tpu.dot_dimension_numbers<[1], [0], [0], [1], [0, 0, 1, 1], [], []>} : vector<96x128xbf16>, vector<128x64xbf16>, vector<96x64xf32> -> vector<96x64xf32>
    %412 = arith.addf %404, %411 : vector<96x64xf32>
    %c7_350 = arith.constant 7 : index
    %c0_351 = arith.constant 0 : index
    %c0_352 = arith.constant 0 : index
    %413 = vector.load %arg19[%c7_350, %c0_351, %c0_352] : memref<16x96x128xbf16, #tpu.memory_space<vmem>>, vector<1x96x128xbf16>
    %414 = vector.shape_cast %413 : vector<1x96x128xbf16> to vector<96x128xbf16>
    %cst_353 = arith.constant dense<0.000000e+00> : vector<96x64xf32>
    %415 = tpu.matmul %414, %408, %cst_353 {dimension_numbers = #tpu.dot_dimension_numbers<[1], [0], [0], [1], [0, 0, 1, 1], [], []>} : vector<96x128xbf16>, vector<128x64xbf16>, vector<96x64xf32> -> vector<96x64xf32>
    %416 = arith.addf %412, %415 : vector<96x64xf32>
    %c11_354 = arith.constant 11 : index
    %c0_355 = arith.constant 0 : index
    %c0_356 = arith.constant 0 : index
    %417 = vector.load %arg19[%c11_354, %c0_355, %c0_356] : memref<16x96x128xbf16, #tpu.memory_space<vmem>>, vector<1x96x128xbf16>
    %418 = vector.shape_cast %417 : vector<1x96x128xbf16> to vector<96x128xbf16>
    %cst_357 = arith.constant dense<0.000000e+00> : vector<96x64xf32>
    %419 = tpu.matmul %418, %408, %cst_357 {dimension_numbers = #tpu.dot_dimension_numbers<[1], [0], [0], [1], [0, 0, 1, 1], [], []>} : vector<96x128xbf16>, vector<128x64xbf16>, vector<96x64xf32> -> vector<96x64xf32>
    %420 = arith.addf %416, %419 : vector<96x64xf32>
    %c15_358 = arith.constant 15 : index
    %c0_359 = arith.constant 0 : index
    %c0_360 = arith.constant 0 : index
    %421 = vector.load %arg19[%c15_358, %c0_359, %c0_360] : memref<16x96x128xbf16, #tpu.memory_space<vmem>>, vector<1x96x128xbf16>
    %422 = vector.shape_cast %421 : vector<1x96x128xbf16> to vector<96x128xbf16>
    %cst_361 = arith.constant dense<0.000000e+00> : vector<96x64xf32>
    %423 = tpu.matmul %422, %408, %cst_361 {dimension_numbers = #tpu.dot_dimension_numbers<[1], [0], [0], [1], [0, 0, 1, 1], [], []>} : vector<96x128xbf16>, vector<128x64xbf16>, vector<96x64xf32> -> vector<96x64xf32>
    %424 = arith.addf %420, %423 : vector<96x64xf32>
    %c0_362 = arith.constant 0 : index
    %c0_363 = arith.constant 0 : index
    %425 = vector.load %arg21[%c0_362, %c0_363] : memref<96x1xf32, #tpu.memory_space<vmem>>, vector<96x1xf32>
    %426 = vector.broadcast %425 : vector<96x1xf32> to vector<96x64xf32>
    %427 = arith.addf %424, %426 : vector<96x64xf32>
    %c0_364 = arith.constant 0 : index
    %c0_365 = arith.constant 0 : index
    %428 = vector.load %arg22[%c0_364, %c0_365] : memref<54x96xf32, #tpu.memory_space<vmem>>, vector<54x96xf32>
    %cst_366 = arith.constant dense<0.000000e+00> : vector<54x64xf32>
    %429 = tpu.matmul %428, %427, %cst_366 {dimension_numbers = #tpu.dot_dimension_numbers<[1], [0], [0], [1], [0, 0, 1, 1], [], []>} : vector<54x96xf32>, vector<96x64xf32>, vector<54x64xf32> -> vector<54x64xf32>
    %c0_367 = arith.constant 0 : index
    %c0_368 = arith.constant 0 : index
    %430 = vector.load %arg23[%c0_367, %c0_368] : memref<64x22xf32, #tpu.memory_space<vmem>>, vector<64x22xf32>
    %cst_369 = arith.constant dense<0.000000e+00> : vector<54x22xf32>
    %431 = tpu.matmul %429, %430, %cst_369 {dimension_numbers = #tpu.dot_dimension_numbers<[1], [0], [0], [1], [0, 0, 1, 1], [], []>} : vector<54x64xf32>, vector<64x22xf32>, vector<54x22xf32> -> vector<54x22xf32>
    %432 = math.absf %431 : vector<54x22xf32>
    %cst_370 = arith.constant 0.000000e+00 : f32
    %433 = vector.broadcast %cst_370 : f32 to vector<54x22xf32>
    %434 = arith.subf %433, %432 : vector<54x22xf32>
    %435 = math.exp %434 : vector<54x22xf32>
    %cst_371 = arith.constant 1.000000e+00 : f32
    %436 = vector.broadcast %cst_371 : f32 to vector<54x22xf32>
    %437 = arith.addf %436, %435 : vector<54x22xf32>
    %cst_372 = arith.constant 1.000000e+00 : f32
    %438 = vector.broadcast %cst_372 : f32 to vector<54x22xf32>
    %439 = arith.divf %438, %437 : vector<54x22xf32>
    %cst_373 = arith.constant 0.000000e+00 : f32
    %440 = vector.broadcast %cst_373 : f32 to vector<54x22xf32>
    %441 = arith.cmpf oge, %431, %440 : vector<54x22xf32>
    %442 = arith.mulf %435, %439 : vector<54x22xf32>
    %443 = arith.select %441, %439, %442 : vector<54x22xi1>, vector<54x22xf32>
    %c0_374 = arith.constant 0 : index
    %c0_375 = arith.constant 0 : index
    %444 = vector.load %arg24[%c0_374, %c0_375] : memref<54x22xf32, #tpu.memory_space<vmem>>, vector<54x22xf32>
    tpu.vector_store %arg24[%c0_374, %c0_375], %443 {strides = array<i32>} : memref<54x22xf32, #tpu.memory_space<vmem>>, vector<54x22xf32>,
    return
  }
}

</mosaic_0001>

<bundles_post_ra>
// kernel: generator_forward.1
= control target key start
LH: loop header
LB: loop body
LE: loop exit
PB: predicated region body
PF: predicated region fallthrough
CT: control target
= control target key end

     0   :  { %s27832_s0 = inlined_call_operand.vmem [shape: bf16[16,2], index: 0, kind: input, shape index: {}]   ;;  %s27833_s1 = inlined_call_operand.vmem [shape: bf16[16,128,16], index: 1, kind: input, shape index: {}]   ;;  %s27834_s2 = inlined_call_operand.hbm [shape: bf16[4,2,8], index: 2, kind: input, shape index: {}]   ;;  %s27835_s3 = inlined_call_operand.vmem [shape: f32[128,1], index: 3, kind: input, shape index: {}]   ;;  %s27836_s4 = inlined_call_operand.vmem [shape: f32[128,1], index: 4, kind: input, shape index: {}]   ;;  %s27837_s5 = inlined_call_operand.vmem [shape: f32[128,1], index: 5, kind: input, shape index: {}]   ;;  %s27838_s6 = inlined_call_operand.vmem [shape: f32[128,128], index: 6, kind: input, shape index: {}]   ;;  %s27839_s7 = inlined_call_operand.vmem [shape: bf16[16,128,128], index: 7, kind: input, shape index: {}]   ;;  %s27840_s8 = inlined_call_operand.hbm [shape: bf16[4,8,16], index: 8, kind: input, shape index: {}]   ;;  %s27841_s9 = inlined_call_operand.vmem [shape: f32[128,1], index: 9, kind: input, shape index: {}]   ;;  %s27842_s10 = inlined_call_operand.vmem [shape: f32[128,1], index: 10, kind: input, shape index: {}]   ;;  %s27843_s11 = inlined_call_operand.vmem [shape: f32[128,1], index: 11, kind: input, shape index: {}]   ;;  %s27844_s12 = inlined_call_operand.vmem [shape: f32[128,128], index: 12, kind: input, shape index: {}]   ;;  %s27845_s13 = inlined_call_operand.vmem [shape: bf16[16,128,128], index: 13, kind: input, shape index: {}]   ;;  %s27846_s14 = inlined_call_operand.hbm [shape: bf16[4,16,32], index: 14, kind: input, shape index: {}]   ;;  %s27847_s15 = inlined_call_operand.vmem [shape: f32[128,1], index: 15, kind: input, shape index: {}]   ;;  %s27848_s16 = inlined_call_operand.vmem [shape: f32[128,1], index: 16, kind: input, shape index: {}]   ;;  %s27849_s17 = inlined_call_operand.vmem [shape: f32[128,1], index: 17, kind: input, shape index: {}]   ;;  %s27850_s18 = inlined_call_operand.vmem [shape: f32[128,128], index: 18, kind: input, shape index: {}]   ;;  %s27851_s19 = inlined_call_operand.hbm [shape: bf16[16,96,128], index: 19, kind: input, shape index: {}]   ;;  %s27852_s20 = inlined_call_operand.hbm [shape: bf16[4,32,64], index: 20, kind: input, shape index: {}]   ;;  %s27853_s21 = inlined_call_operand.vmem [shape: f32[96,1], index: 21, kind: input, shape index: {}]   ;;  %s27854_s22 = inlined_call_operand.hbm [shape: f32[54,96], index: 22, kind: input, shape index: {}]   ;;  %s27855_s23 = inlined_call_operand.vmem [shape: f32[64,22], index: 23, kind: input, shape index: {}]   ;;  %s27856_s24 = inlined_call_operand.vmem [shape: f32[54,22], index: 24, kind: output, shape index: {}]  }
   0x1   :  { %27880 = sst [smem:[#allocation29_spill]] %s27832_s0 }
   0x2   :  { %27881 = sst [smem:[#allocation30_spill]] %s27833_s1 }
   0x3   :  { %27882 = sst [smem:[#allocation31_spill]] %s27834_s2 }
   0x4   :  { %27883 = sst [smem:[#allocation32_spill]] %s27835_s3 }
   0x5   :  { %27884 = sst [smem:[#allocation33_spill]] %s27836_s4 }
   0x6   :  { %27885 = sst [smem:[#allocation34_spill]] %s27837_s5 }
   0x7   :  { %27886 = sst [smem:[#allocation35_spill]] %s27838_s6 }
   0x8   :  { %27887 = sst [smem:[#allocation36_spill]] %s27839_s7 }
   0x9   :  { %27888 = sst [smem:[#allocation37_spill]] %s27840_s8 }
   0xa   :  { %27889 = sst [smem:[#allocation38_spill]] %s27855_s23 }
   0xb   :  { %27890 = sst [smem:[#allocation39_spill]] %s27856_s24 }
   0xc   :  { %29 = vsyncpa [#allocation3], 0 }
   0xd   :  { %30 = vsyncpa [#allocation5], 0 }
   0xe   :  { %31 = vsyncpa [#allocation8], 0 }
   0xf   :  { %32 = vsyncpa [#allocation11], 0  ;;  %s23465_s5 = smov [#allocation4]   ;;  %s27891_s6 = sld [smem:[#allocation37_spill]] }
  0x10   :  { %s64_s26 = sshll.u32 %s23465_s5, 4  ;;  %s65_s26 = int_to_ptr.vmem [resolvable:$true] %s64_s26 }
  0x15   :  { %s23325_s2 = scalar_lea.hbm %s27891_s6, 256 }
  0x16   :  { %p23326_p0 = scmp.ne.s32.totalorder %s27891_s6, %s23325_s2  ;;  %p23329_p1 = scmp.lt.u32.totalorder %s23325_s2, %s27891_s6 }
  0x18   :  { %p23331_p2 = pnand %p23329_p1, %p23326_p0 }
  0x1a   :  { %23334 = shalt.err (!%p23331_p2)
}
  0x1b   :  { %s23335_s3 = scalar_lea.vmem %s65_s26, 256  ;;  %p23340_p4 = scmp.lt.s32.totalorder %s65_s26, %s65_s26 }
  0x1c   :  { %p23336_p3 = scmp.ne.s32.totalorder %s65_s26, %s23335_s3  ;;  %p23341_p5 = scmp.lt.s32.totalorder %s23335_s3, %s23335_s3 }
  0x1e   :  { %p23342_p6 = por %p23341_p5, %p23340_p4 }
  0x20   :  { %p23343_p7 = pnand %p23342_p6, %p23336_p3 }
  0x22   :  { %23346 = shalt.err (!%p23343_p7)
}
  0x23   :  { %s27868_s25 = smov 64   ;;  %s23467_s8 = smov 4  }
  0x24   :  { %70 = dma.hbm_to_vmem [thread:$0]  %s27891_s6, 256, %s65_s26, [#allocation5], %s27868_s25, %s27868_s25, %s23467_s8  }
  0x25   :  { %s23468_s5 = smov [#allocation7]   ;;  %s23469_s28 = smov [#allocation2]  }
  0x26   :  { %s106_s27 = sshll.u32 %s23468_s5, 4  ;;  %s42_s2 = sshll.u32 %s23469_s28, 4  ;;  %s107_s27 = int_to_ptr.vmem [resolvable:$true] %s106_s27  ;;  %s43_s2 = int_to_ptr.vmem [resolvable:$true] %s42_s2 }
  0x27   :  { %s23347_s7 = scalar_lea.hbm %s27851_s19, 12288 }
  0x28   :  { %p23348_p8 = scmp.ne.s32.totalorder %s27851_s19, %s23347_s7  ;;  %p23351_p9 = scmp.lt.u32.totalorder %s23347_s7, %s27851_s19 }
  0x2a   :  { %p23353_p10 = pnand %p23351_p9, %p23348_p8 }
  0x2c   :  { %23356 = shalt.err (!%p23353_p10)
}
  0x2d   :  { %s23357_s26 = scalar_lea.vmem %s107_s27, 12288  ;;  %p23362_p12 = scmp.lt.s32.totalorder %s107_s27, %s107_s27 }
  0x2e   :  { %p23358_p11 = scmp.ne.s32.totalorder %s107_s27, %s23357_s26  ;;  %p23363_p13 = scmp.lt.s32.totalorder %s23357_s26, %s23357_s26 }
  0x30   :  { %p23364_p0 = por %p23363_p13, %p23362_p12 }
  0x32   :  { %p23365_p1 = pnand %p23364_p0, %p23358_p11 }
  0x34   :  { %23368 = shalt.err (!%p23365_p1)
}
  0x35   :  { %112 = dma.hbm_to_vmem [thread:$0]  %s27851_s19, 12288, %s107_s27, [#allocation8], %s27868_s25, %s27868_s25, %s23467_s8  }
  0x36   :  { %s27892_s24 = sld [smem:[#allocation31_spill]] }
  0x3c   :  { %s23369_s5 = scalar_lea.hbm %s27892_s24, 64 }
  0x3d   :  { %p23370_p2 = scmp.ne.s32.totalorder %s27892_s24, %s23369_s5  ;;  %p23373_p3 = scmp.lt.u32.totalorder %s23369_s5, %s27892_s24 }
  0x3f   :  { %p23375_p4 = pnand %p23373_p3, %p23370_p2 }
  0x41   :  { %23378 = shalt.err (!%p23375_p4)
}
  0x42   :  { %s23379_s30 = scalar_lea.vmem %s43_s2, 64  ;;  %p23384_p6 = scmp.lt.s32.totalorder %s43_s2, %s43_s2 }
  0x43   :  { %p23380_p5 = scmp.ne.s32.totalorder %s43_s2, %s23379_s30  ;;  %p23385_p7 = scmp.lt.s32.totalorder %s23379_s30, %s23379_s30 }
  0x45   :  { %p23386_p8 = por %p23385_p7, %p23384_p6 }
  0x47   :  { %p23387_p9 = pnand %p23386_p8, %p23380_p5 }
  0x49   :  { %23390 = shalt.err (!%p23387_p9)
}
  0x4a   :  { %s23470_s19 = smov 16   ;;  %s23471_s27 = smov 1  }
  0x4b   :  { %48 = dma.hbm_to_vmem [thread:$0]  %s27892_s24, 64, %s43_s2, [#allocation3], %s23470_s19, %s23470_s19, %s23471_s27  }
  0x4c   :  { %s23472_s6 = smov [#allocation6]   ;;  %s23473_s1 = smov [#allocation9]  }
  0x4d   :  { %s86_s4 = sshll.u32 %s23472_s6, 4  ;;  %s118_s23 = sshll.u32 %s23473_s1, 4  ;;  %s87_s4 = int_to_ptr.vmem [resolvable:$true] %s86_s4  ;;  %s119_s23 = int_to_ptr.vmem [resolvable:$true] %s118_s23 }
  0x4e   :  { %s23391_s29 = scalar_lea.hbm %s27846_s14, 512 }
  0x4f   :  { %p23392_p10 = scmp.ne.s32.totalorder %s27846_s14, %s23391_s29  ;;  %p23395_p11 = scmp.lt.u32.totalorder %s23391_s29, %s27846_s14 }
  0x51   :  { %p23397_p12 = pnand %p23395_p11, %p23392_p10 }
  0x53   :  { %23400 = shalt.err (!%p23397_p12)
}
  0x54   :  { %s23401_s2 = scalar_lea.vmem %s87_s4, 512  ;;  %p23406_p0 = scmp.lt.s32.totalorder %s87_s4, %s87_s4 }
  0x55   :  { %p23402_p13 = scmp.ne.s32.totalorder %s87_s4, %s23401_s2  ;;  %p23407_p1 = scmp.lt.s32.totalorder %s23401_s2, %s23401_s2 }
  0x57   :  { %p23408_p2 = por %p23407_p1, %p23406_p0 }
  0x59   :  { %p23409_p3 = pnand %p23408_p2, %p23402_p13 }
  0x5b   :  { %23412 = shalt.err (!%p23409_p3)
}
  0x5c   :  { %s27893_s24 = smov 64   ;;  %s23413_s26 = scalar_lea.hbm %s27852_s20, 1024 }
  0x5d   :  { %92 = dma.hbm_to_vmem [thread:$0]  %s27846_s14, 512, %s87_s4, [#allocation5], %s27893_s24, %s27893_s24, %s23467_s8  }
  0x5e   :  { %p23414_p4 = scmp.ne.s32.totalorder %s27852_s20, %s23413_s26  ;;  %p23417_p5 = scmp.lt.u32.totalorder %s23413_s26, %s27852_s20 }
  0x60   :  { %p23419_p6 = pnand %p23417_p5, %p23414_p4 }
  0x62   :  { %23422 = shalt.err (!%p23419_p6)
}
  0x63   :  { %s23423_s29 = scalar_lea.vmem %s119_s23, 1024  ;;  %p23428_p8 = scmp.lt.s32.totalorder %s119_s23, %s119_s23 }
  0x64   :  { %p23424_p7 = scmp.ne.s32.totalorder %s119_s23, %s23423_s29  ;;  %p23429_p9 = scmp.lt.s32.totalorder %s23423_s29, %s23423_s29 }
  0x66   :  { %p23430_p10 = por %p23429_p9, %p23428_p8 }
  0x68   :  { %p23431_p11 = pnand %p23430_p10, %p23424_p7 }
  0x6a   :  { %23434 = shalt.err (!%p23431_p11)
}
  0x6b   :  { %124 = dma.hbm_to_vmem [thread:$0]  %s27852_s20, 1024, %s119_s23, [#allocation8], %s27893_s24, %s27893_s24, %s23467_s8  }
  0x6c   :  { %s23474_s0 = smov [#allocation10]   ;;  %s23435_s19 = scalar_lea.hbm %s27854_s22, 896 }
  0x6d   :  { %s132_s7 = sshll.u32 %s23474_s0, 4  ;;  %p23436_p12 = scmp.ne.s32.totalorder %s27854_s22, %s23435_s19  ;;  %s133_s7 = int_to_ptr.vmem [resolvable:$true] %s132_s7 }
  0x6e   :  { %p23439_p13 = scmp.lt.u32.totalorder %s23435_s19, %s27854_s22 }
  0x70   :  { %p23441_p0 = pnand %p23439_p13, %p23436_p12 }
  0x72   :  { %23444 = shalt.err (!%p23441_p0)
}
  0x73   :  { %s23445_s6 = scalar_lea.vmem %s133_s7, 896  ;;  %p23450_p2 = scmp.lt.s32.totalorder %s133_s7, %s133_s7 }
  0x74   :  { %p23446_p1 = scmp.ne.s32.totalorder %s133_s7, %s23445_s6  ;;  %p23451_p3 = scmp.lt.s32.totalorder %s23445_s6, %s23445_s6 }
  0x76   :  { %p23452_p4 = por %p23451_p3, %p23450_p2 }
  0x78   :  { %p23453_p5 = pnand %p23452_p4, %p23446_p1 }
  0x7a   :  { %23456 = shalt.err (!%p23453_p5)
}
  0x7b   :  { %s23475_s20 = smov 128   ;;  %s23476_s8 = smov 8  }
  0x7c   :  { %138 = dma.hbm_to_vmem [thread:$0]  %s27854_s22, 896, %s133_s7, [#allocation11], %s23475_s20, %s23475_s20, %s23476_s8  }
  0x7d   :  { %23457 = dma.done.wait [#allocation3], 64  }
  0x7e   :  { %23458 = vsyncadd [#allocation3], 4294967232 }
  0x7f   :  { %23459 = dma.done.wait [#allocation5], 768  }
  0x80   :  { %23460 = vsyncadd [#allocation5], 4294966528 }
  0x81   :  { %23461 = dma.done.wait [#allocation8], 13312  }
  0x82   :  { %23462 = vsyncadd [#allocation8], 4294953984 }
  0x83   :  { %23463 = dma.done.wait [#allocation11], 896  }
  0x84   :  { %23464 = vsyncadd [#allocation11], 4294966400  ;;  %v27870_v0 = vmov 0.0   ;;  %vm23478_vm0 = vmmov 0   ;;  %vm172_vm1 = vcmask 1040384   ;;  %s27894_s5 = sld [smem:[#allocation29_spill]] }
  0x85   :  { %19121 = vmatprep.subr.bf16.mxu0 %v27870_v0  ;;  %19123 = vmatprep.mubr.msk.bf16.mxu0 %vm23478_vm0, %v27870_v0  ;;  %v162_v1 = vld [vmem:[#allocation2] sm:$0x1]  ;;  %v963_v4 = vld [vmem:[#allocation2 + $0x1] sm:$0x1]  ;;  %vm168_vm2 = vcmask 15360   ;;  %s27895_s14 = sld [smem:[#allocation30_spill]] }
  0x86   :  { %v174_v2 = vsel %vm172_vm1, %v162_v1, 0  ;;  %v965_v5 = vsel %vm172_vm1, %v963_v4, 0  ;;  %vm291_vm3 = vcmask 130048   ;;  %v1786_v7 = vld [vmem:[#allocation2 + $0x2] sm:$0x1]  ;;  %s27896_s1 = sld [smem:[#allocation32_spill]] }
  0x87   :  { %19122 = vmatpush3.bf16.msra.mxu0 %v174_v2  ;;  %v1788_v8 = vsel %vm172_vm1, %v1786_v7, 0  ;;  %v2609_v23 = vld [vmem:[#allocation2 + $0x3] sm:$0x1]  ;;  %vm3543_vm4 = vcmask 64512   ;;  %s27899_s20 = sld [smem:[#allocation35_spill]]  ;;  %s27900_s24 = sld [smem:[#allocation33_spill]] }
  0x88   :  { %19199 = vmatprep.subr.bf16.mxu0 %v27870_v0  ;;  %v2611_v24 = vsel %vm172_vm1, %v2609_v23, 0  ;;  %s27901_s4 = sld [smem:[#allocation34_spill]]  ;;  %vm4539_vm5 = vcmask 1043456   ;;  %s27924_s27 = sld [smem:[#allocation36_spill]]  ;;  %vm12281_vm6 = vcmask 261120   ;;  %vm16101_vm7 = vcmask 785408  }
  0x89   :  { %s27970_s0 = sld [smem:[#allocation38_spill]]  ;;  %vm16231_vm8 = vcmask 523264   ;;  %vm16423_vm9 = vcmask 179200   ;;  %s27971_s6 = sld [smem:[#allocation39_spill]] }
  0x8a   :  { %v22707_v3 = vld [vmem:[%s27894_s5] sm:$0xff]  }
  0x8b   :  { %19124 = vmatmul.mubr.msk.bf16.vlgmr.msra.gmra.mrb[0].mxu0 %vm168_vm2, %v22707_v3  ;;  %v22708_v6 = vld [vmem:[%s27895_s14 + $0x100] sm:$0xff]   ;;  %v22709_v14 = vld [vmem:[%s27895_s14 + $0x108] sm:$0xff]   ;;  %v22710_v15 = vld [vmem:[%s27895_s14 + $0x110] sm:$0xff]  }
  0x8c   :  { %19200 = vmatpush3.bf16.msra.mxu0 %v965_v5  ;;  %19201 = vmatprep.mubr.msk.bf16.mxu0 %vm23478_vm0, %v27870_v0  ;;  %v22711_v19 = vld [vmem:[%s27895_s14 + $0x118] sm:$0xff]   ;;  %v22712_v22 = vld [vmem:[%s27895_s14 + $0x120] sm:$0xff]   ;;  %v22713_v25 = vld [vmem:[%s27895_s14 + $0x128] sm:$0xff]  }
  0x8d   :  { %19277 = vmatprep.subr.bf16.mxu0 %v27870_v0  ;;  %19129 = vmatprep.mubr.msk.bf16.mxu1 %vm291_vm3, %v22708_v6  ;;  %v22714_v26 = vld [vmem:[%s27895_s14 + $0x130] sm:$0xff]   ;;  %v23324_v27 = vld [vmem:[%s27894_s5] sm:$0xff]   ;;  %v22715_v28 = vld [vmem:[%s27895_s14 + $0x138] sm:$0xff]  }
  0x8e   :  { %v22716_v29 = vld [vmem:[%s27895_s14] sm:$0xff]   ;;  %v22717_v30 = vld [vmem:[%s27895_s14 + $0x8] sm:$0xff]   ;;  %v22718_v31 = vld [vmem:[%s27895_s14 + $0x10] sm:$0xff]  }
  0x8f   :  { %v22719_v32 = vld [vmem:[%s27895_s14 + $0x18] sm:$0xff]   ;;  %v22720_v33 = vld [vmem:[%s27895_s14 + $0x20] sm:$0xff]   ;;  %v22721_v34 = vld [vmem:[%s27895_s14 + $0x28] sm:$0xff]  }
  0x90   :  { %v22722_v35 = vld [vmem:[%s27895_s14 + $0x30] sm:$0xff]   ;;  %v22723_v36 = vld [vmem:[%s27895_s14 + $0x38] sm:$0xff]   ;;  %v22724_v37 = vld [vmem:[%s27895_s14 + $0x200] sm:$0xff]  }
  0x91   :  { %v22725_v38 = vld [vmem:[%s27895_s14 + $0x208] sm:$0xff]   ;;  %v22726_v39 = vld [vmem:[%s27895_s14 + $0x210] sm:$0xff]   ;;  %v22727_v40 = vld [vmem:[%s27895_s14 + $0x218] sm:$0xff]  }
  0x92   :  { %v22728_v41 = vld [vmem:[%s27895_s14 + $0x220] sm:$0xff]   ;;  %v22729_v42 = vld [vmem:[%s27895_s14 + $0x228] sm:$0xff]   ;;  %v22730_v43 = vld [vmem:[%s27895_s14 + $0x230] sm:$0xff]  }
  0x93   :  { %19202 = vmatmul.mubr.msk.bf16.vlgmr.msra.gmra.mrb[4].mxu0 %vm168_vm2, %v22707_v3  ;;  %v22731_v44 = vld [vmem:[%s27895_s14 + $0x238] sm:$0xff]   ;;  %v22732_v45 = vld [vmem:[%s27895_s14 + $0x300] sm:$0xff]   ;;  %v22733_v46 = vld [vmem:[%s27895_s14 + $0x308] sm:$0xff]  }
  0x94   :  { %19279 = vmatprep.mubr.msk.bf16.mxu0 %vm23478_vm0, %v27870_v0  ;;  %19278 = vmatpush3.bf16.msra.mxu0 %v1788_v8  ;;  %v22734_v47 = vld [vmem:[%s27895_s14 + $0x310] sm:$0xff]   ;;  %v22735_v50 = vld [vmem:[%s27895_s14 + $0x318] sm:$0xff]   ;;  %v22736_v52 = vld [vmem:[%s27895_s14 + $0x320] sm:$0xff]  }
  0x95   :  { %19355 = vmatprep.subr.bf16.mxu0 %v27870_v0  ;;  %v22737_v55 = vld [vmem:[%s27895_s14 + $0x328] sm:$0xff]   ;;  %v22738_v56 = vld [vmem:[%s27895_s14 + $0x330] sm:$0xff]   ;;  %v22739_v57 = vld [vmem:[%s27895_s14 + $0x338] sm:$0xff]  }
  0x96   :  { %v22740_v58 = vld [vmem:[%s27895_s14 + $0x40] sm:$0xff]   ;;  %v22741_v59 = vld [vmem:[%s27895_s14 + $0x48] sm:$0xff]   ;;  %v22742_v60 = vld [vmem:[%s27895_s14 + $0x50] sm:$0xff]  }
  0x97   :  { %v22743_v61 = vld [vmem:[%s27895_s14 + $0x58] sm:$0xff]   ;;  %v22744_v62 = vld [vmem:[%s27895_s14 + $0x60] sm:$0xff]   ;;  %v22745_v63 = vld [vmem:[%s27895_s14 + $0x68] sm:$0xff]  }
  0x98   :  { %v22746_v1 = vld [vmem:[%s27895_s14 + $0x70] sm:$0xff]   ;;  %v22747_v2 = vld [vmem:[%s27895_s14 + $0x78] sm:$0xff]   ;;  %v22749_v4 = vld [vmem:[%s27895_s14 + $0x148] sm:$0xff]  }
  0x99   :  { %v22750_v5 = vld [vmem:[%s27895_s14 + $0x150] sm:$0xff]   ;;  %v22751_v6 = vld [vmem:[%s27895_s14 + $0x158] sm:$0xff]   ;;  %v22752_v7 = vld [vmem:[%s27895_s14 + $0x160] sm:$0xff]  }
  0x9a   :  { %v22753_v8 = vld [vmem:[%s27895_s14 + $0x168] sm:$0xff]  }
  0x9b   :  { %19280 = vmatmul.mubr.msk.bf16.vlgmr.msra.gmra.mrb[8].mxu0 %vm168_vm2, %v22707_v3  ;;  %v22748_v3 = vld [vmem:[%s27895_s14 + $0x140] sm:$0xff]  }
  0x9c   :  { %19357 = vmatprep.mubr.msk.bf16.mxu0 %vm23478_vm0, %v27870_v0  ;;  %19356 = vmatpush3.bf16.msra.mxu0 %v2611_v24 }
  0xa3   :  { %19358 = vmatmul.mubr.msk.bf16.vlgmr.msra.gmra.mrb[12].mxu0 %vm168_vm2, %v23324_v27  ;;  %v22767_v27 = vld [vmem:[%s27895_s14 + $0x358] sm:$0xff]  }
 0x15e   :  { %v210_v9 = vpop.f32.mrb[0].mxu0 }
 0x15f   :  { %v19125_v10 = vpop.f32.mrb[1].mxu0 }
 0x160   :  { %v213_v11 = vpop.f32.mrb[2].mxu0  ;;  %v22755_v10 = vld [vmem:[%s27895_s14 + $0x178] sm:$0xff]  }
 0x161   :  { %v217_v12 = vpack.c.bf16 %v213_v11, %v210_v9  ;;  %v19126_v13 = vpop.f32.mrb[3].mxu0  ;;  %v22754_v9 = vld [vmem:[%s27895_s14 + $0x170] sm:$0xff]   ;;  %v22756_v11 = vld [vmem:[%s27895_s14 + $0x240] sm:$0xff]  }
 0x162   :  { %v22758_v13 = vld [vmem:[%s27895_s14 + $0x250] sm:$0xff]  }
 0x163   :  { %19127 = vmatprep.subr.bf16.mxu1 %v217_v12 }
 0x164   :  { %19128 = vmatpush3.bf16.msra.mxu1 %v217_v12 }
 0x165   :  { %19145 = vmatprep.subr.bf16.mxu1 %v217_v12 }
 0x166   :  { %v1001_v16 = vpop.f32.mrb[4].mxu0 }
 0x167   :  { %19130 = vmatmul.mubr.msk.bf16.vlgmr.msra.gmra.mrb[0].mxu1 %vm291_vm3, %v22709_v14  ;;  %v19203_v17 = vpop.f32.mrb[5].mxu0  ;;  %v22759_v14 = vld [vmem:[%s27895_s14 + $0x258] sm:$0xff]  }
 0x168   :  { %19146 = vmatpush3.bf16.msra.mxu1 %v217_v12  ;;  %19133 = vmatprep.mubr.msk.bf16.mxu1 %vm291_vm3, %v22710_v15  ;;  %v1004_v18 = vpop.f32.mrb[6].mxu0  ;;  %v22760_v15 = vld [vmem:[%s27895_s14 + $0x260] sm:$0xff]   ;;  %v22762_v17 = vld [vmem:[%s27895_s14 + $0x270] sm:$0xff]  }
 0x169   :  { %19163 = vmatprep.subr.bf16.mxu1 %v217_v12  ;;  %v23726_v20 = vpack.c.bf16 %v1004_v18, %v1001_v16  ;;  %v19204_v21 = vpop.f32.mrb[7].mxu0  ;;  %v22761_v16 = vld [vmem:[%s27895_s14 + $0x268] sm:$0xff]   ;;  %v22763_v18 = vld [vmem:[%s27895_s14 + $0x278] sm:$0xff]  }
 0x16a   :  { %v22766_v21 = vld [vmem:[%s27895_s14 + $0x350] sm:$0xff]  }
 0x16e   :  { %v1824_v48 = vpop.f32.mrb[8].mxu0 }
 0x16f   :  { %19134 = vmatmul.mubr.msk.bf16.gmra.mrb[4].mxu1 %vm291_vm3, %v22711_v19  ;;  %v19281_v49 = vpop.f32.mrb[9].mxu0  ;;  %v22764_v19 = vld [vmem:[%s27895_s14 + $0x340] sm:$0xff]  }
 0x170   :  { %19137 = vmatprep.mubr.msk.bf16.mxu1 %vm291_vm3, %v22712_v22  ;;  %v1827_v51 = vpop.f32.mrb[10].mxu0  ;;  %v22789_v49 = vld [vmem:[%s27895_s14 + $0x288] sm:$0xff]  }
 0x171   :  { %v23835_v53 = vpack.c.bf16 %v1827_v51, %v1824_v48  ;;  %v19282_v54 = vpop.f32.mrb[11].mxu0  ;;  %v22788_v48 = vld [vmem:[%s27895_s14 + $0x280] sm:$0xff]   ;;  %v22791_v51 = vld [vmem:[%s27895_s14 + $0x298] sm:$0xff]  }
 0x172   :  { %v22794_v54 = vld [vmem:[%s27895_s14 + $0x2b0] sm:$0xff]  }
 0x176   :  { %v2647_v22 = vpop.f32.mrb[12].mxu0 }
 0x177   :  { %19138 = vmatmul.mubr.msk.bf16.gmra.mrb[8].mxu1 %vm291_vm3, %v22713_v25  ;;  %v19359_v23 = vpop.f32.mrb[13].mxu0 }
 0x178   :  { %19141 = vmatprep.mubr.msk.bf16.mxu1 %vm291_vm3, %v22714_v26  ;;  %v2650_v24 = vpop.f32.mrb[14].mxu0  ;;  %v3445_v23 = vld [vmem:[%s27896_s1 + $0x70] sm:$0xff] }
 0x179   :  { %v23967_v25 = vpack.c.bf16 %v2650_v24, %v2647_v22  ;;  %v19360_v26 = vpop.f32.mrb[15].mxu0  ;;  %v3444_v22 = vld [vmem:[%s27896_s1 + $0x68] sm:$0xff]  ;;  %v22811_v24 = vld [vmem:[%s27895_s14 + $0xf8] sm:$0xff]  }
 0x17a   :  { %v3446_v26 = vld [vmem:[%s27896_s1 + $0x78] sm:$0xff] }
 0x17f   :  { %19142 = vmatmul.mubr.msk.bf16.gmra.mrb[12].mxu1 %vm291_vm3, %v22715_v28  ;;  %v22768_v28 = vld [vmem:[%s27895_s14 + $0x360] sm:$0xff]  }
 0x180   :  { %19147 = vmatprep.mubr.msk.bf16.mxu1 %vm291_vm3, %v22716_v29  ;;  %v22769_v29 = vld [vmem:[%s27895_s14 + $0x368] sm:$0xff]  }
 0x187   :  { %19148 = vmatmul.mubr.msk.bf16.vlgmr.msra.gmra.mrb[0].mxu1 %vm291_vm3, %v22717_v30  ;;  %v22770_v30 = vld [vmem:[%s27895_s14 + $0x370] sm:$0xff]  }
 0x188   :  { %19164 = vmatpush3.bf16.msra.mxu1 %v217_v12  ;;  %19151 = vmatprep.mubr.msk.bf16.mxu1 %vm291_vm3, %v22718_v31  ;;  %v22771_v31 = vld [vmem:[%s27895_s14 + $0x378] sm:$0xff]  }
 0x189   :  { %19181 = vmatprep.subr.bf16.mxu1 %v217_v12 }
 0x18f   :  { %19152 = vmatmul.mubr.msk.bf16.gmra.mrb[4].mxu1 %vm291_vm3, %v22719_v32  ;;  %v22772_v32 = vld [vmem:[%s27895_s14 + $0x80] sm:$0xff]  }
 0x190   :  { %19155 = vmatprep.mubr.msk.bf16.mxu1 %vm291_vm3, %v22720_v33  ;;  %v22773_v33 = vld [vmem:[%s27895_s14 + $0x88] sm:$0xff]  }
 0x197   :  { %19156 = vmatmul.mubr.msk.bf16.gmra.mrb[8].mxu1 %vm291_vm3, %v22721_v34  ;;  %v22774_v34 = vld [vmem:[%s27895_s14 + $0x90] sm:$0xff]  }
 0x198   :  { %19159 = vmatprep.mubr.msk.bf16.mxu1 %vm291_vm3, %v22722_v35  ;;  %v22775_v35 = vld [vmem:[%s27895_s14 + $0x98] sm:$0xff]  }
 0x19f   :  { %19160 = vmatmul.mubr.msk.bf16.gmra.mrb[12].mxu1 %vm291_vm3, %v22723_v36  ;;  %v22776_v36 = vld [vmem:[%s27895_s14 + $0xa0] sm:$0xff]  }
 0x1a0   :  { %19165 = vmatprep.mubr.msk.bf16.mxu1 %vm291_vm3, %v22724_v37  ;;  %v22777_v37 = vld [vmem:[%s27895_s14 + $0xa8] sm:$0xff]  }
 0x1a7   :  { %19166 = vmatmul.mubr.msk.bf16.vlgmr.msra.gmra.mrb[0].mxu1 %vm291_vm3, %v22725_v38  ;;  %v22778_v38 = vld [vmem:[%s27895_s14 + $0xb0] sm:$0xff]  }
 0x1a8   :  { %19182 = vmatpush3.bf16.msra.mxu1 %v217_v12  ;;  %19169 = vmatprep.mubr.msk.bf16.mxu1 %vm291_vm3, %v22726_v39  ;;  %v22757_v12 = vld [vmem:[%s27895_s14 + $0x248] sm:$0xff]   ;;  %v22779_v39 = vld [vmem:[%s27895_s14 + $0xb8] sm:$0xff]  }
 0x1a9   :  { %19205 = vmatprep.subr.bf16.mxu1 %v23726_v20 }
 0x1af   :  { %19170 = vmatmul.mubr.msk.bf16.gmra.mrb[4].mxu1 %vm291_vm3, %v22727_v40  ;;  %v22780_v40 = vld [vmem:[%s27895_s14 + $0x180] sm:$0xff]  }
 0x1b0   :  { %19173 = vmatprep.mubr.msk.bf16.mxu1 %vm291_vm3, %v22728_v41  ;;  %v22781_v41 = vld [vmem:[%s27895_s14 + $0x188] sm:$0xff]  }
 0x1b7   :  { %19174 = vmatmul.mubr.msk.bf16.gmra.mrb[8].mxu1 %vm291_vm3, %v22729_v42  ;;  %v22782_v42 = vld [vmem:[%s27895_s14 + $0x190] sm:$0xff]  }
 0x1b8   :  { %19177 = vmatprep.mubr.msk.bf16.mxu1 %vm291_vm3, %v22730_v43  ;;  %v22783_v43 = vld [vmem:[%s27895_s14 + $0x198] sm:$0xff]  }
 0x1bf   :  { %19178 = vmatmul.mubr.msk.bf16.gmra.mrb[12].mxu1 %vm291_vm3, %v22731_v44  ;;  %v22784_v44 = vld [vmem:[%s27895_s14 + $0x1a0] sm:$0xff]  }
 0x1c0   :  { %19183 = vmatprep.mubr.msk.bf16.mxu1 %vm291_vm3, %v22732_v45  ;;  %v22785_v45 = vld [vmem:[%s27895_s14 + $0x1a8] sm:$0xff]  }
 0x1c7   :  { %19184 = vmatmul.mubr.msk.bf16.vlgmr.msra.gmra.mrb[0].mxu1 %vm291_vm3, %v22733_v46  ;;  %v22786_v46 = vld [vmem:[%s27895_s14 + $0x1b0] sm:$0xff]  }
 0x1c8   :  { %19206 = vmatpush3.bf16.msra.mxu1 %v23726_v20  ;;  %19187 = vmatprep.mubr.msk.bf16.mxu1 %vm291_vm3, %v22734_v47  ;;  %v22787_v47 = vld [vmem:[%s27895_s14 + $0x1b8] sm:$0xff]  }
 0x1c9   :  { %19223 = vmatprep.subr.bf16.mxu1 %v23726_v20 }
 0x1cf   :  { %19188 = vmatmul.mubr.msk.bf16.gmra.mrb[4].mxu1 %vm291_vm3, %v22735_v50  ;;  %v22790_v50 = vld [vmem:[%s27895_s14 + $0x290] sm:$0xff]  }
 0x1d0   :  { %19191 = vmatprep.mubr.msk.bf16.mxu1 %vm291_vm3, %v22736_v52  ;;  %v22792_v52 = vld [vmem:[%s27895_s14 + $0x2a0] sm:$0xff]  }
 0x1d7   :  { %19192 = vmatmul.mubr.msk.bf16.gmra.mrb[8].mxu1 %vm291_vm3, %v22737_v55  ;;  %v22795_v55 = vld [vmem:[%s27895_s14 + $0x2b8] sm:$0xff]  }
 0x1d8   :  { %19195 = vmatprep.mubr.msk.bf16.mxu1 %vm291_vm3, %v22738_v56  ;;  %v22796_v56 = vld [vmem:[%s27895_s14 + $0x380] sm:$0xff]  }
 0x1df   :  { %19196 = vmatmul.mubr.msk.bf16.gmra.mrb[12].mxu1 %vm291_vm3, %v22739_v57  ;;  %v22797_v57 = vld [vmem:[%s27895_s14 + $0x388] sm:$0xff]  }
 0x1e0   :  { %19207 = vmatprep.mubr.msk.bf16.mxu1 %vm291_vm3, %v22740_v58  ;;  %v22798_v58 = vld [vmem:[%s27895_s14 + $0x390] sm:$0xff]  }
 0x1e7   :  { %19208 = vmatmul.mubr.msk.bf16.vlgmr.msra.gmra.mrb[0].mxu1 %vm291_vm3, %v22741_v59  ;;  %v22799_v59 = vld [vmem:[%s27895_s14 + $0x398] sm:$0xff]  }
 0x1e8   :  { %19224 = vmatpush3.bf16.msra.mxu1 %v23726_v20  ;;  %19211 = vmatprep.mubr.msk.bf16.mxu1 %vm291_vm3, %v22742_v60  ;;  %v22800_v60 = vld [vmem:[%s27895_s14 + $0x3a0] sm:$0xff]  }
 0x1e9   :  { %19241 = vmatprep.subr.bf16.mxu1 %v23726_v20 }
 0x1ef   :  { %19212 = vmatmul.mubr.msk.bf16.gmra.mrb[4].mxu1 %vm291_vm3, %v22743_v61  ;;  %v22801_v61 = vld [vmem:[%s27895_s14 + $0x3a8] sm:$0xff]  }
 0x1f0   :  { %19215 = vmatprep.mubr.msk.bf16.mxu1 %vm291_vm3, %v22744_v62  ;;  %v22802_v62 = vld [vmem:[%s27895_s14 + $0x3b0] sm:$0xff]  }
 0x1f7   :  { %19216 = vmatmul.mubr.msk.bf16.gmra.mrb[8].mxu1 %vm291_vm3, %v22745_v63  ;;  %v22803_v63 = vld [vmem:[%s27895_s14 + $0x3b8] sm:$0xff]  }
 0x1f8   :  { %19219 = vmatprep.mubr.msk.bf16.mxu1 %vm291_vm3, %v22746_v1  ;;  %v22804_v1 = vld [vmem:[%s27895_s14 + $0xc0] sm:$0xff]  }
 0x1ff   :  { %19220 = vmatmul.mubr.msk.bf16.gmra.mrb[12].mxu1 %vm291_vm3, %v22747_v2  ;;  %v3431_v2 = vld [vmem:[%s27896_s1] sm:$0xff] }
 0x200   :  { %19225 = vmatprep.mubr.msk.bf16.mxu1 %vm291_vm3, %v22748_v3  ;;  %v3433_v3 = vld [vmem:[%s27896_s1 + $0x10] sm:$0xff] }
 0x207   :  { %19226 = vmatmul.mubr.msk.bf16.vlgmr.msra.gmra.mrb[0].mxu1 %vm291_vm3, %v22749_v4  ;;  %v23479_v4 = vmov 0  }
 0x208   :  { %19242 = vmatpush3.bf16.msra.mxu1 %v23726_v20  ;;  %19229 = vmatprep.mubr.msk.bf16.mxu1 %vm291_vm3, %v22750_v5  ;;  %v3432_v5 = vld [vmem:[%s27896_s1 + $0x8] sm:$0xff] }
 0x209   :  { %19259 = vmatprep.subr.bf16.mxu1 %v23726_v20  ;;  %22705 = vset.pattern.permute.xlu0 %v23479_v4 }
 0x20a   :  { %3449 = vperm.xlu0 %22705, %v3431_v2   ;;  %22706 = vset.pattern.permute.xlu1 %v23479_v4 }
 0x20b   :  { %3459 = vperm.xlu1 %22706, %v3433_v3  }
 0x20e   :  { %3454 = vperm.xlu0 %22705, %v3432_v5  }
 0x20f   :  { %19230 = vmatmul.mubr.msk.bf16.gmra.mrb[4].mxu1 %vm291_vm3, %v22751_v6  ;;  %v22805_v6 = vld [vmem:[%s27895_s14 + $0xc8] sm:$0xff]  }
 0x210   :  { %19233 = vmatprep.mubr.msk.bf16.mxu1 %vm291_vm3, %v22752_v7  ;;  %v3434_v7 = vld [vmem:[%s27896_s1 + $0x18] sm:$0xff] }
 0x211   :  { %3464 = vperm.xlu1 %22706, %v3434_v7  }
 0x217   :  { %19234 = vmatmul.mubr.msk.bf16.gmra.mrb[8].mxu1 %vm291_vm3, %v22753_v8  ;;  %v22806_v8 = vld [vmem:[%s27895_s14 + $0xd0] sm:$0xff]  }
 0x218   :  { %19237 = vmatprep.mubr.msk.bf16.mxu1 %vm291_vm3, %v22754_v9  ;;  %v3435_v9 = vld [vmem:[%s27896_s1 + $0x20] sm:$0xff] }
 0x219   :  { %3469 = vperm.xlu0 %22705, %v3435_v9  }
 0x21f   :  { %19238 = vmatmul.mubr.msk.bf16.gmra.mrb[12].mxu1 %vm291_vm3, %v22755_v10  ;;  %v3436_v10 = vld [vmem:[%s27896_s1 + $0x28] sm:$0xff] }
 0x220   :  { %19243 = vmatprep.mubr.msk.bf16.mxu1 %vm291_vm3, %v22756_v11  ;;  %3474 = vperm.xlu1 %22706, %v3436_v10   ;;  %v3437_v11 = vld [vmem:[%s27896_s1 + $0x30] sm:$0xff] }
 0x221   :  { %3479 = vperm.xlu0 %22705, %v3437_v11  }
 0x227   :  { %19244 = vmatmul.mubr.msk.bf16.vlgmr.msra.gmra.mrb[0].mxu1 %vm291_vm3, %v22757_v12  ;;  %v22807_v12 = vld [vmem:[%s27895_s14 + $0xd8] sm:$0xff]  }
 0x228   :  { %19260 = vmatpush3.bf16.msra.mxu1 %v23726_v20  ;;  %19247 = vmatprep.mubr.msk.bf16.mxu1 %vm291_vm3, %v22758_v13  ;;  %v22765_v20 = vld [vmem:[%s27895_s14 + $0x348] sm:$0xff]   ;;  %v3438_v13 = vld [vmem:[%s27896_s1 + $0x38] sm:$0xff] }
 0x229   :  { %19283 = vmatprep.subr.bf16.mxu1 %v23835_v53  ;;  %3484 = vperm.xlu1 %22706, %v3438_v13  }
 0x22f   :  { %19248 = vmatmul.mubr.msk.bf16.gmra.mrb[4].mxu1 %vm291_vm3, %v22759_v14  ;;  %v22808_v14 = vld [vmem:[%s27895_s14 + $0xe0] sm:$0xff]  }
 0x230   :  { %19251 = vmatprep.mubr.msk.bf16.mxu1 %vm291_vm3, %v22760_v15  ;;  %v3439_v15 = vld [vmem:[%s27896_s1 + $0x40] sm:$0xff] }
 0x231   :  { %3489 = vperm.xlu0 %22705, %v3439_v15  }
 0x237   :  { %19252 = vmatmul.mubr.msk.bf16.gmra.mrb[8].mxu1 %vm291_vm3, %v22761_v16  ;;  %v3440_v16 = vld [vmem:[%s27896_s1 + $0x48] sm:$0xff] }
 0x238   :  { %19255 = vmatprep.mubr.msk.bf16.mxu1 %vm291_vm3, %v22762_v17  ;;  %3494 = vperm.xlu1 %22706, %v3440_v16   ;;  %v3441_v17 = vld [vmem:[%s27896_s1 + $0x50] sm:$0xff] }
 0x239   :  { %3499 = vperm.xlu0 %22705, %v3441_v17  }
 0x23f   :  { %19256 = vmatmul.mubr.msk.bf16.gmra.mrb[12].mxu1 %vm291_vm3, %v22763_v18  ;;  %v22809_v18 = vld [vmem:[%s27895_s14 + $0xe8] sm:$0xff]  }
 0x240   :  { %19261 = vmatprep.mubr.msk.bf16.mxu1 %vm291_vm3, %v22764_v19  ;;  %v3442_v19 = vld [vmem:[%s27896_s1 + $0x58] sm:$0xff] }
 0x241   :  { %3504 = vperm.xlu1 %22706, %v3442_v19  }
 0x245   :  { %3514 = vperm.xlu1 %22706, %v3444_v22  }
 0x247   :  { %19262 = vmatmul.mubr.msk.bf16.vlgmr.msra.gmra.mrb[0].mxu1 %vm291_vm3, %v22765_v20  ;;  %v22810_v20 = vld [vmem:[%s27895_s14 + $0xf0] sm:$0xff]  }
 0x248   :  { %19284 = vmatpush3.bf16.msra.mxu1 %v23835_v53  ;;  %19265 = vmatprep.mubr.msk.bf16.mxu1 %vm291_vm3, %v22766_v21  ;;  %v3443_v21 = vld [vmem:[%s27896_s1 + $0x60] sm:$0xff] }
 0x249   :  { %19301 = vmatprep.subr.bf16.mxu1 %v23835_v53  ;;  %3509 = vperm.xlu0 %22705, %v3443_v21  }
 0x24a   :  { %3524 = vperm.xlu1 %22706, %v3446_v26  }
 0x24d   :  { %3519 = vperm.xlu0 %22705, %v3445_v23  }
 0x24f   :  { %19266 = vmatmul.mubr.msk.bf16.gmra.mrb[4].mxu1 %vm291_vm3, %v22767_v27  ;;  %v22812_v27 = vld [vmem:[%s27895_s14 + $0x1c0] sm:$0xff]  }
 0x250   :  { %19269 = vmatprep.mubr.msk.bf16.mxu1 %vm291_vm3, %v22768_v28  ;;  %v22813_v28 = vld [vmem:[%s27895_s14 + $0x1c8] sm:$0xff]  }
 0x257   :  { %19270 = vmatmul.mubr.msk.bf16.gmra.mrb[8].mxu1 %vm291_vm3, %v22769_v29  ;;  %v22814_v29 = vld [vmem:[%s27895_s14 + $0x1d0] sm:$0xff]  }
 0x258   :  { %19273 = vmatprep.mubr.msk.bf16.mxu1 %vm291_vm3, %v22770_v30  ;;  %v22815_v30 = vld [vmem:[%s27895_s14 + $0x1d8] sm:$0xff]  }
 0x25f   :  { %19274 = vmatmul.mubr.msk.bf16.gmra.mrb[12].mxu1 %vm291_vm3, %v22771_v31  ;;  %v22816_v31 = vld [vmem:[%s27895_s14 + $0x1e0] sm:$0xff]  }
 0x260   :  { %19285 = vmatprep.mubr.msk.bf16.mxu1 %vm291_vm3, %v22772_v32  ;;  %v22817_v32 = vld [vmem:[%s27895_s14 + $0x1e8] sm:$0xff]  }
 0x267   :  { %19286 = vmatmul.mubr.msk.bf16.vlgmr.msra.gmra.mrb[0].mxu1 %vm291_vm3, %v22773_v33  ;;  %v22818_v33 = vld [vmem:[%s27895_s14 + $0x1f0] sm:$0xff]  }
 0x268   :  { %19302 = vmatpush3.bf16.msra.mxu1 %v23835_v53  ;;  %19289 = vmatprep.mubr.msk.bf16.mxu1 %vm291_vm3, %v22774_v34  ;;  %v22819_v34 = vld [vmem:[%s27895_s14 + $0x1f8] sm:$0xff]  }
 0x269   :  { %19319 = vmatprep.subr.bf16.mxu1 %v23835_v53 }
 0x26f   :  { %19290 = vmatmul.mubr.msk.bf16.gmra.mrb[4].mxu1 %vm291_vm3, %v22775_v35  ;;  %v22820_v35 = vld [vmem:[%s27895_s14 + $0x2c0] sm:$0xff]  }
 0x270   :  { %19293 = vmatprep.mubr.msk.bf16.mxu1 %vm291_vm3, %v22776_v36  ;;  %v22821_v36 = vld [vmem:[%s27895_s14 + $0x2c8] sm:$0xff]  }
 0x277   :  { %19294 = vmatmul.mubr.msk.bf16.gmra.mrb[8].mxu1 %vm291_vm3, %v22777_v37  ;;  %v22822_v37 = vld [vmem:[%s27895_s14 + $0x2d0] sm:$0xff]  }
 0x278   :  { %19297 = vmatprep.mubr.msk.bf16.mxu1 %vm291_vm3, %v22778_v38  ;;  %v22823_v38 = vld [vmem:[%s27895_s14 + $0x2d8] sm:$0xff]  }
 0x27f   :  { %19298 = vmatmul.mubr.msk.bf16.gmra.mrb[12].mxu1 %vm291_vm3, %v22779_v39  ;;  %v22824_v39 = vld [vmem:[%s27895_s14 + $0x2e0] sm:$0xff]  }
 0x280   :  { %19303 = vmatprep.mubr.msk.bf16.mxu1 %vm291_vm3, %v22780_v40  ;;  %v22825_v40 = vld [vmem:[%s27895_s14 + $0x2e8] sm:$0xff]  }
 0x287   :  { %19304 = vmatmul.mubr.msk.bf16.vlgmr.msra.gmra.mrb[0].mxu1 %vm291_vm3, %v22781_v41  ;;  %v22827_v41 = vld [vmem:[%s27895_s14 + $0x2f8] sm:$0xff]  }
 0x288   :  { %19320 = vmatpush3.bf16.msra.mxu1 %v23835_v53  ;;  %19307 = vmatprep.mubr.msk.bf16.mxu1 %vm291_vm3, %v22782_v42  ;;  %v22828_v42 = vld [vmem:[%s27895_s14 + $0x3c0] sm:$0xff]  }
 0x289   :  { %19337 = vmatprep.subr.bf16.mxu1 %v23835_v53 }
 0x28f   :  { %19308 = vmatmul.mubr.msk.bf16.gmra.mrb[4].mxu1 %vm291_vm3, %v22783_v43  ;;  %v22829_v43 = vld [vmem:[%s27895_s14 + $0x3c8] sm:$0xff]  }
 0x290   :  { %19311 = vmatprep.mubr.msk.bf16.mxu1 %vm291_vm3, %v22784_v44  ;;  %v22830_v44 = vld [vmem:[%s27895_s14 + $0x3d0] sm:$0xff]  }
 0x297   :  { %19312 = vmatmul.mubr.msk.bf16.gmra.mrb[8].mxu1 %vm291_vm3, %v22785_v45  ;;  %v22831_v45 = vld [vmem:[%s27895_s14 + $0x3d8] sm:$0xff]  }
 0x298   :  { %19315 = vmatprep.mubr.msk.bf16.mxu1 %vm291_vm3, %v22786_v46  ;;  %v22832_v46 = vld [vmem:[%s27895_s14 + $0x3e0] sm:$0xff]  }
 0x29f   :  { %19316 = vmatmul.mubr.msk.bf16.gmra.mrb[12].mxu1 %vm291_vm3, %v22787_v47  ;;  %v22833_v47 = vld [vmem:[%s27895_s14 + $0x3e8] sm:$0xff]  }
 0x2a0   :  { %19321 = vmatprep.mubr.msk.bf16.mxu1 %vm291_vm3, %v22788_v48  ;;  %v22834_v48 = vld [vmem:[%s27895_s14 + $0x3f0] sm:$0xff]  }
 0x2a7   :  { %19322 = vmatmul.mubr.msk.bf16.vlgmr.msra.gmra.mrb[0].mxu1 %vm291_vm3, %v22789_v49  ;;  %v22835_v49 = vld [vmem:[%s27895_s14 + $0x3f8] sm:$0xff]  }
 0x2a8   :  { %19338 = vmatpush3.bf16.msra.mxu1 %v23835_v53  ;;  %19325 = vmatprep.mubr.msk.bf16.mxu1 %vm291_vm3, %v22790_v50  ;;  %v22793_v53 = vld [vmem:[%s27895_s14 + $0x2a8] sm:$0xff]   ;;  %v3450_v50 = vpop.permute.xlu0 %3449 }
 0x2a9   :  { %19361 = vmatprep.subr.bf16.mxu1 %v23967_v25 }
 0x2af   :  { %19326 = vmatmul.mubr.msk.bf16.gmra.mrb[4].mxu1 %vm291_vm3, %v22791_v51  ;;  %v3460_v51 = vpop.permute.xlu1 %3459 }
 0x2b0   :  { %19329 = vmatprep.mubr.msk.bf16.mxu1 %vm291_vm3, %v22792_v52  ;;  %v3455_v52 = vpop.permute.xlu0 %3454 }
 0x2b7   :  { %19330 = vmatmul.mubr.msk.bf16.gmra.mrb[8].mxu1 %vm291_vm3, %v22793_v53  ;;  %v3465_v53 = vpop.permute.xlu1 %3464 }
 0x2b8   :  { %19333 = vmatprep.mubr.msk.bf16.mxu1 %vm291_vm3, %v22794_v54  ;;  %v3470_v54 = vpop.permute.xlu0 %3469 }
 0x2bf   :  { %19334 = vmatmul.mubr.msk.bf16.gmra.mrb[12].mxu1 %vm291_vm3, %v22795_v55 }
 0x2c0   :  { %19339 = vmatprep.mubr.msk.bf16.mxu1 %vm291_vm3, %v22796_v56  ;;  %v3475_v56 = vpop.permute.xlu1 %3474 }
 0x2c4   :  { %v3485_v3 = vpop.permute.xlu1 %3484 }
 0x2c7   :  { %19340 = vmatmul.mubr.msk.bf16.vlgmr.msra.gmra.mrb[0].mxu1 %vm291_vm3, %v22797_v57 }
 0x2c8   :  { %19362 = vmatpush3.bf16.msra.mxu1 %v23967_v25  ;;  %19343 = vmatprep.mubr.msk.bf16.mxu1 %vm291_vm3, %v22798_v58  ;;  %v3495_v16 = vpop.permute.xlu1 %3494 }
 0x2c9   :  { %19379 = vmatprep.subr.bf16.mxu1 %v23967_v25 }
 0x2cc   :  { %v3505_v26 = vpop.permute.xlu1 %3504 }
 0x2cf   :  { %19344 = vmatmul.mubr.msk.bf16.gmra.mrb[4].mxu1 %vm291_vm3, %v22799_v59 }
 0x2d0   :  { %19347 = vmatprep.mubr.msk.bf16.mxu1 %vm291_vm3, %v22800_v60  ;;  %v3480_v60 = vpop.permute.xlu0 %3479 }
 0x2d4   :  { %v3490_v7 = vpop.permute.xlu0 %3489 }
 0x2d7   :  { %19348 = vmatmul.mubr.msk.bf16.gmra.mrb[8].mxu1 %vm291_vm3, %v22801_v61 }
 0x2d8   :  { %19351 = vmatprep.mubr.msk.bf16.mxu1 %vm291_vm3, %v22802_v62  ;;  %v3500_v17 = vpop.permute.xlu0 %3499 }
 0x2df   :  { %19352 = vmatmul.mubr.msk.bf16.gmra.mrb[12].mxu1 %vm291_vm3, %v22803_v63 }
 0x2e0   :  { %19363 = vmatprep.mubr.msk.bf16.mxu1 %vm291_vm3, %v22804_v1 }
 0x2e7   :  { %19364 = vmatmul.mubr.msk.bf16.vlgmr.msra.gmra.mrb[0].mxu1 %vm291_vm3, %v22805_v6 }
 0x2e8   :  { %19380 = vmatpush3.bf16.msra.mxu1 %v23967_v25  ;;  %19367 = vmatprep.mubr.msk.bf16.mxu1 %vm291_vm3, %v22806_v8 }
 0x2e9   :  { %19397 = vmatprep.subr.bf16.mxu1 %v23967_v25 }
 0x2ef   :  { %19368 = vmatmul.mubr.msk.bf16.gmra.mrb[4].mxu1 %vm291_vm3, %v22807_v12 }
 0x2f0   :  { %19371 = vmatprep.mubr.msk.bf16.mxu1 %vm291_vm3, %v22808_v14 }
 0x2f7   :  { %19372 = vmatmul.mubr.msk.bf16.gmra.mrb[8].mxu1 %vm291_vm3, %v22809_v18 }
 0x2f8   :  { %19375 = vmatprep.mubr.msk.bf16.mxu1 %vm291_vm3, %v22810_v20 }
 0x2ff   :  { %19376 = vmatmul.mubr.msk.bf16.gmra.mrb[12].mxu1 %vm291_vm3, %v22811_v24 }
 0x300   :  { %19381 = vmatprep.mubr.msk.bf16.mxu1 %vm291_vm3, %v22812_v27 }
 0x307   :  { %19382 = vmatmul.mubr.msk.bf16.vlgmr.msra.gmra.mrb[0].mxu1 %vm291_vm3, %v22813_v28 }
 0x308   :  { %19398 = vmatpush3.bf16.msra.mxu1 %v23967_v25  ;;  %19385 = vmatprep.mubr.msk.bf16.mxu1 %vm291_vm3, %v22814_v29 }
 0x309   :  { %19415 = vmatprep.subr.bf16.mxu1 %v23967_v25 }
 0x30f   :  { %19386 = vmatmul.mubr.msk.bf16.gmra.mrb[4].mxu1 %vm291_vm3, %v22815_v30 }
 0x310   :  { %19389 = vmatprep.mubr.msk.bf16.mxu1 %vm291_vm3, %v22816_v31 }
 0x317   :  { %19390 = vmatmul.mubr.msk.bf16.gmra.mrb[8].mxu1 %vm291_vm3, %v22817_v32  ;;  %v3510_v32 = vpop.permute.xlu0 %3509 }
 0x318   :  { %19393 = vmatprep.mubr.msk.bf16.mxu1 %vm291_vm3, %v22818_v33 }
 0x31f   :  { %19394 = vmatmul.mubr.msk.bf16.gmra.mrb[12].mxu1 %vm291_vm3, %v22819_v34 }
 0x320   :  { %19399 = vmatprep.mubr.msk.bf16.mxu1 %vm291_vm3, %v22820_v35 }
 0x327   :  { %19400 = vmatmul.mubr.msk.bf16.vlgmr.msra.gmra.mrb[0].mxu1 %vm291_vm3, %v22821_v36 }
 0x328   :  { %19416 = vmatpush3.bf16.msra.mxu1 %v23967_v25  ;;  %19403 = vmatprep.mubr.msk.bf16.mxu1 %vm291_vm3, %v22822_v37  ;;  %v22826_v25 = vld [vmem:[%s27895_s14 + $0x2f0] sm:$0xff]   ;;  %v3515_v37 = vpop.permute.xlu1 %3514 }
 0x32f   :  { %19404 = vmatmul.mubr.msk.bf16.gmra.mrb[4].mxu1 %vm291_vm3, %v22823_v38 }
 0x330   :  { %19407 = vmatprep.mubr.msk.bf16.mxu1 %vm291_vm3, %v22824_v39 }
 0x337   :  { %19408 = vmatmul.mubr.msk.bf16.gmra.mrb[8].mxu1 %vm291_vm3, %v22825_v40 }
 0x338   :  { %19411 = vmatprep.mubr.msk.bf16.mxu1 %vm291_vm3, %v22826_v25  ;;  %v3520_v25 = vpop.permute.xlu0 %3519 }
 0x33f   :  { %19412 = vmatmul.mubr.msk.bf16.gmra.mrb[12].mxu1 %vm291_vm3, %v22827_v41 }
 0x340   :  { %19417 = vmatprep.mubr.msk.bf16.mxu1 %vm291_vm3, %v22828_v42 }
 0x347   :  { %19418 = vmatmul.mubr.msk.bf16.vlgmr.msra.gmra.mrb[0].mxu1 %vm291_vm3, %v22829_v43 }
 0x348   :  { %19421 = vmatprep.mubr.msk.bf16.mxu1 %vm291_vm3, %v22830_v44 }
 0x34f   :  { %19422 = vmatmul.mubr.msk.bf16.gmra.mrb[4].mxu1 %vm291_vm3, %v22831_v45 }
 0x350   :  { %19425 = vmatprep.mubr.msk.bf16.mxu1 %vm291_vm3, %v22832_v46  ;;  %v3525_v46 = vpop.permute.xlu1 %3524 }
 0x357   :  { %19426 = vmatmul.mubr.msk.bf16.gmra.mrb[8].mxu1 %vm291_vm3, %v22833_v47 }
 0x358   :  { %19429 = vmatprep.mubr.msk.bf16.mxu1 %vm291_vm3, %v22834_v48 }
 0x35f   :  { %19430 = vmatmul.mubr.msk.bf16.gmra.mrb[12].mxu1 %vm291_vm3, %v22835_v49 }
 0x41a   :  { %v19419_v55 = vpop.f32.mrb[0].mxu1 }
 0x41b   :  { %v3352_v57 = vpop.f32.mrb[1].mxu1  ;;  %v24308_v62 = vadd.f32 %v19419_v55, %v3460_v51 }
 0x41c   :  { %v24306_v58 = vadd.f32 %v3450_v50, %v3352_v57  ;;  %v19420_v59 = vpop.f32.mrb[2].mxu1 }
 0x41d   :  { %v3355_v61 = vpop.f32.mrb[3].mxu1  ;;  %v24316_v4 = vadd.f32 %v19420_v59, %v3465_v53  ;;  %v3550_v6 = vsel %vm3543_vm4, %v24308_v62, 0.0  ;;  %v3610_v53 = vmul.f32 %v24308_v62, %v24308_v62 }
 0x41e   :  { %v24310_v63 = vadd.f32 %v3455_v52, %v3355_v61  ;;  %v3544_v1 = vsel %vm3543_vm4, %v24306_v58, 0.0  ;;  %v3608_v50 = vmul.f32 %v24306_v58, %v24306_v58 }
 0x41f   :  { %3545 = vadd.xlane.f32.xlu0 %v3544_v1  ;;  %v3553_v14 = vsel %vm3543_vm4, %v24316_v4, 0.0  ;;  %v3630_v55 = vsel %vm3543_vm4, %v3610_v53, 0.0  ;;  %v3611_v59 = vmul.f32 %v24316_v4, %v24316_v4  ;;  %v4277_v53 = vld [vmem:[%s27900_s24 + $0x58] sm:$0xff] }
 0x420   :  { %v3547_v2 = vsel %vm3543_vm4, %v24310_v63, 0.0  ;;  %v3624_v51 = vsel %vm3543_vm4, %v3608_v50, 0.0  ;;  %v4272_v50 = vld [vmem:[%s27900_s24 + $0x30] sm:$0xff] }
 0x421   :  { %3548 = vadd.xlane.f32.xlu1 %v3547_v2  ;;  %v3633_v61 = vsel %vm3543_vm4, %v3611_v59, 0.0  ;;  %v4276_v59 = vld [vmem:[%s27900_s24 + $0x50] sm:$0xff] }
 0x422   :  { %v19423_v5 = vpop.f32.mrb[4].mxu1 }
 0x423   :  { %3551 = vadd.xlane.f32.xlu0 %v3550_v6  ;;  %v3368_v8 = vpop.f32.mrb[5].mxu1  ;;  %v24322_v12 = vadd.f32 %v19423_v5, %v3480_v60 }
 0x424   :  { %v24320_v9 = vadd.f32 %v3470_v54, %v3368_v8  ;;  %v19424_v10 = vpop.f32.mrb[6].mxu1  ;;  %v3609_v54 = vmul.f32 %v24310_v63, %v24310_v63 }
 0x425   :  { %v3371_v11 = vpop.f32.mrb[7].mxu1  ;;  %v24330_v18 = vadd.f32 %v19424_v10, %v3485_v3  ;;  %v3562_v20 = vsel %vm3543_vm4, %v24322_v12, 0.0  ;;  %v3614_v1 = vmul.f32 %v24322_v12, %v24322_v12 }
 0x426   :  { %v24324_v13 = vadd.f32 %v3475_v56, %v3371_v11  ;;  %v3556_v15 = vsel %vm3543_vm4, %v24320_v9, 0.0  ;;  %v3627_v56 = vsel %vm3543_vm4, %v3609_v54, 0.0  ;;  %v3612_v57 = vmul.f32 %v24320_v9, %v24320_v9  ;;  %v4384_v54 = vld [vmem:[%s27901_s4 + $0x30] sm:$0xff] }
 0x427   :  { %3554 = vadd.xlane.f32.xlu0 %v3553_v14  ;;  %3557 = vadd.xlane.f32.xlu1 %v3556_v15  ;;  %v3565_v30 = vsel %vm3543_vm4, %v24330_v18, 0.0  ;;  %v3642_v3 = vsel %vm3543_vm4, %v3614_v1, 0.0  ;;  %v4281_v1 = vld [vmem:[%s27900_s24 + $0x78] sm:$0xff] }
 0x428   :  { %v3559_v21 = vsel %vm3543_vm4, %v24324_v13, 0.0  ;;  %v3636_v60 = vsel %vm3543_vm4, %v3612_v57, 0.0  ;;  %v3613_v2 = vmul.f32 %v24324_v13, %v24324_v13  ;;  %v4389_v57 = vld [vmem:[%s27901_s4 + $0x58] sm:$0xff] }
 0x42a   :  { %v19427_v19 = vpop.f32.mrb[8].mxu1  ;;  %v3639_v5 = vsel %vm3543_vm4, %v3613_v2, 0.0  ;;  %v4388_v2 = vld [vmem:[%s27901_s4 + $0x50] sm:$0xff] }
 0x42b   :  { %3563 = vadd.xlane.f32.xlu1 %v3562_v20  ;;  %3560 = vadd.xlane.f32.xlu0 %v3559_v21  ;;  %v3384_v22 = vpop.f32.mrb[9].mxu1  ;;  %v24338_v28 = vadd.f32 %v19427_v19, %v3500_v17  ;;  %v24410_v20 = vld [vmem:[%s27899_s20] sm:$0xff] }
 0x42c   :  { %v24336_v23 = vadd.f32 %v3490_v7, %v3384_v22  ;;  %v19428_v24 = vpop.f32.mrb[10].mxu1  ;;  %v3615_v7 = vmul.f32 %v24330_v18, %v24330_v18  ;;  %19465 = vmatprep.mubr.f32.mxu1 %v24410_v20 }
 0x42d   :  { %v3387_v27 = vpop.f32.mrb[11].mxu1  ;;  %v24346_v33 = vadd.f32 %v19428_v24, %v3505_v26  ;;  %v3574_v35 = vsel %vm3543_vm4, %v24338_v28, 0.0  ;;  %v3618_v11 = vmul.f32 %v24338_v28, %v24338_v28 }
 0x42e   :  { %v24340_v29 = vadd.f32 %v3495_v16, %v3387_v27  ;;  %v3568_v31 = vsel %vm3543_vm4, %v24336_v23, 0.0  ;;  %v3616_v6 = vmul.f32 %v24336_v23, %v24336_v23  ;;  %v3645_v10 = vsel %vm3543_vm4, %v3615_v7, 0.0  ;;  %v4390_v7 = vld [vmem:[%s27901_s4 + $0x60] sm:$0xff] }
 0x42f   :  { %3566 = vadd.xlane.f32.xlu0 %v3565_v30  ;;  %3569 = vadd.xlane.f32.xlu1 %v3568_v31  ;;  %v3577_v44 = vsel %vm3543_vm4, %v24346_v33, 0.0  ;;  %v3654_v15 = vsel %vm3543_vm4, %v3618_v11, 0.0  ;;  %v3619_v19 = vmul.f32 %v24346_v33, %v24346_v33 }
 0x430   :  { %v3571_v36 = vsel %vm3543_vm4, %v24340_v29, 0.0  ;;  %v3648_v8 = vsel %vm3543_vm4, %v3616_v6, 0.0  ;;  %v3617_v14 = vmul.f32 %v24340_v29, %v24340_v29  ;;  %v4280_v6 = vld [vmem:[%s27900_s24 + $0x70] sm:$0xff] }
 0x431   :  { %v3657_v22 = vsel %vm3543_vm4, %v3619_v19, 0.0 }
 0x432   :  { %v19431_v34 = vpop.f32.mrb[12].mxu1  ;;  %v3651_v16 = vsel %vm3543_vm4, %v3617_v14, 0.0 }
 0x433   :  { %3575 = vadd.xlane.f32.xlu1 %v3574_v35  ;;  %3572 = vadd.xlane.f32.xlu0 %v3571_v36  ;;  %v3400_v38 = vpop.f32.mrb[13].mxu1  ;;  %v24354_v42 = vadd.f32 %v19431_v34, %v3520_v25  ;;  %v4267_v34 = vld [vmem:[%s27900_s24 + $0x8] sm:$0xff]  ;;  %v4269_v35 = vld [vmem:[%s27900_s24 + $0x18] sm:$0xff] }
 0x434   :  { %v24352_v39 = vadd.f32 %v3510_v32, %v3400_v38  ;;  %v19432_v40 = vpop.f32.mrb[14].mxu1  ;;  %v4379_v36 = vld [vmem:[%s27901_s4 + $0x8] sm:$0xff]  ;;  %v4381_v38 = vld [vmem:[%s27901_s4 + $0x18] sm:$0xff] }
 0x435   :  { %v3403_v41 = vpop.f32.mrb[15].mxu1  ;;  %27897 = vst [vmem:[#allocation16_spill] sm:$0xff] %v24354_v42  ;;  %v24362_v47 = vadd.f32 %v19432_v40, %v3525_v46  ;;  %v3586_v48 = vsel %vm3543_vm4, %v24354_v42, 0.0  ;;  %v3622_v24 = vmul.f32 %v24354_v42, %v24354_v42  ;;  %v4268_v40 = vld [vmem:[%s27900_s24 + $0x10] sm:$0xff]  ;;  %v4271_v25 = vld [vmem:[%s27900_s24 + $0x28] sm:$0xff] }
 0x436   :  { %v24356_v43 = vadd.f32 %v3515_v37, %v3403_v41  ;;  %v3580_v45 = vsel %vm3543_vm4, %v24352_v39, 0.0  ;;  %v3620_v17 = vmul.f32 %v24352_v39, %v24352_v39  ;;  %v4266_v37 = vld [vmem:[%s27900_s24] sm:$0xff]  ;;  %v4383_v46 = vld [vmem:[%s27901_s4 + $0x28] sm:$0xff] }
 0x437   :  { %3578 = vadd.xlane.f32.xlu0 %v3577_v44  ;;  %3581 = vadd.xlane.f32.xlu1 %v3580_v45  ;;  %27898 = vst [vmem:[#allocation17_spill] sm:$0xff] %v24362_v47  ;;  %v3589_v52 = vsel %vm3543_vm4, %v24362_v47, 0.0  ;;  %v3666_v27 = vsel %vm3543_vm4, %v3622_v24, 0.0  ;;  %v3623_v31 = vmul.f32 %v24362_v47, %v24362_v47  ;;  %v4378_v41 = vld [vmem:[%s27901_s4] sm:$0xff]  ;;  %v4273_v44 = vld [vmem:[%s27900_s24 + $0x38] sm:$0xff]  ;;  %v4380_v45 = vld [vmem:[%s27901_s4 + $0x10] sm:$0xff] }
 0x438   :  { %v3583_v49 = vsel %vm3543_vm4, %v24356_v43, 0.0  ;;  %v3660_v21 = vsel %vm3543_vm4, %v3620_v17, 0.0  ;;  %v3621_v26 = vmul.f32 %v24356_v43, %v24356_v43 }
 0x439   :  { %v3669_v32 = vsel %vm3543_vm4, %v3623_v31, 0.0 }
 0x43a   :  { %v3663_v30 = vsel %vm3543_vm4, %v3621_v26, 0.0 }
 0x43b   :  { %3587 = vadd.xlane.f32.xlu1 %v3586_v48  ;;  %3584 = vadd.xlane.f32.xlu0 %v3583_v49  ;;  %v4270_v48 = vld [vmem:[%s27900_s24 + $0x20] sm:$0xff]  ;;  %v4385_v49 = vld [vmem:[%s27901_s4 + $0x38] sm:$0xff] }
 0x43f   :  { %3625 = vadd.xlane.f32.xlu1 %v3624_v51  ;;  %3590 = vadd.xlane.f32.xlu0 %v3589_v52  ;;  %v4275_v51 = vld [vmem:[%s27900_s24 + $0x48] sm:$0xff]  ;;  %v4382_v52 = vld [vmem:[%s27901_s4 + $0x20] sm:$0xff] }
 0x443   :  { %3631 = vadd.xlane.f32.xlu1 %v3630_v55  ;;  %3628 = vadd.xlane.f32.xlu0 %v3627_v56  ;;  %v4387_v55 = vld [vmem:[%s27901_s4 + $0x48] sm:$0xff]  ;;  %v4274_v56 = vld [vmem:[%s27900_s24 + $0x40] sm:$0xff] }
 0x447   :  { %3637 = vadd.xlane.f32.xlu1 %v3636_v60  ;;  %3634 = vadd.xlane.f32.xlu0 %v3633_v61  ;;  %v4279_v60 = vld [vmem:[%s27900_s24 + $0x68] sm:$0xff]  ;;  %v4386_v61 = vld [vmem:[%s27901_s4 + $0x40] sm:$0xff] }
 0x44b   :  { %3643 = vadd.xlane.f32.xlu1 %v3642_v3  ;;  %3640 = vadd.xlane.f32.xlu0 %v3639_v5  ;;  %v4391_v3 = vld [vmem:[%s27901_s4 + $0x68] sm:$0xff]  ;;  %v4278_v5 = vld [vmem:[%s27900_s24 + $0x60] sm:$0xff] }
 0x44f   :  { %3649 = vadd.xlane.f32.xlu1 %v3648_v8  ;;  %3646 = vadd.xlane.f32.xlu0 %v3645_v10 }
 0x453   :  { %3655 = vadd.xlane.f32.xlu1 %v3654_v15  ;;  %3652 = vadd.xlane.f32.xlu0 %v3651_v16 }
 0x457   :  { %3661 = vadd.xlane.f32.xlu1 %v3660_v21  ;;  %3658 = vadd.xlane.f32.xlu0 %v3657_v22 }
 0x45b   :  { %3667 = vadd.xlane.f32.xlu1 %v3666_v27  ;;  %3664 = vadd.xlane.f32.xlu0 %v3663_v30 }
 0x45f   :  { %3670 = vadd.xlane.f32.xlu0 %v3669_v32 }
 0x46c   :  { %4289 = vperm.xlu1 %22706, %v4267_v34  }
 0x470   :  { %4299 = vperm.xlu1 %22706, %v4269_v35  }
 0x474   :  { %4401 = vperm.xlu1 %22706, %v4379_v36  }
 0x475   :  { %4284 = vperm.xlu0 %22705, %v4266_v37  }
 0x478   :  { %4411 = vperm.xlu1 %22706, %v4381_v38  }
 0x479   :  { %4294 = vperm.xlu0 %22705, %v4268_v40  }
 0x47c   :  { %4309 = vperm.xlu1 %22706, %v4271_v25  }
 0x47d   :  { %4396 = vperm.xlu0 %22705, %v4378_v41  }
 0x480   :  { %4319 = vperm.xlu1 %22706, %v4273_v44  }
 0x481   :  { %4406 = vperm.xlu0 %22705, %v4380_v45  }
 0x484   :  { %4421 = vperm.xlu1 %22706, %v4383_v46  }
 0x485   :  { %4304 = vperm.xlu0 %22705, %v4270_v48  }
 0x488   :  { %4431 = vperm.xlu1 %22706, %v4385_v49  }
 0x489   :  { %4314 = vperm.xlu0 %22705, %v4272_v50  }
 0x48c   :  { %4329 = vperm.xlu1 %22706, %v4275_v51  }
 0x48d   :  { %4416 = vperm.xlu0 %22705, %v4382_v52  }
 0x490   :  { %4339 = vperm.xlu1 %22706, %v4277_v53  }
 0x491   :  { %4426 = vperm.xlu0 %22705, %v4384_v54  }
 0x494   :  { %4441 = vperm.xlu1 %22706, %v4387_v55  }
 0x495   :  { %4324 = vperm.xlu0 %22705, %v4274_v56  }
 0x498   :  { %4451 = vperm.xlu1 %22706, %v4389_v57  }
 0x499   :  { %4334 = vperm.xlu0 %22705, %v4276_v59  }
 0x49c   :  { %4349 = vperm.xlu1 %22706, %v4279_v60  }
 0x49d   :  { %4436 = vperm.xlu0 %22705, %v4386_v61  }
 0x4a0   :  { %4359 = vperm.xlu1 %22706, %v4281_v1  }
 0x4a1   :  { %4446 = vperm.xlu0 %22705, %v4388_v2  }
 0x4a4   :  { %4461 = vperm.xlu1 %22706, %v4391_v3  }
 0x4a5   :  { %4344 = vperm.xlu0 %22705, %v4278_v5  }
 0x4a9   :  { %4354 = vperm.xlu0 %22705, %v4280_v6  }
 0x4ac   :  { %v3546_v8 = vpop.xlane.xlu0 %3545 }
 0x4ad   :  { %4456 = vperm.xlu0 %22705, %v4390_v7   ;;  %v3592_v11 = vmul.f32 0.125, %v3546_v8  ;;  %v24517_v7 = vld [vmem:[%s27899_s20 + $0x8] sm:$0xff] }
 0x4ae   :  { %v3549_v10 = vpop.xlane.xlu1 %3548 }
 0x4af   :  { %v3593_v14 = vmul.f32 0.125, %v3549_v10  ;;  %v24522_v10 = vld [vmem:[%s27899_s20 + $0x10] sm:$0xff] }
 0x4b0   :  { %v3552_v15 = vpop.xlane.xlu0 %3551 }
 0x4b1   :  { %v21547_v16 = vpack.c.bf16 %v3593_v14, %v3592_v11  ;;  %v3594_v21 = vmul.f32 0.125, %v3552_v15 }
 0x4b3   :  { %21548 = vmatprep.subr.bf16.mxu1 %v21547_v16 }
 0x4b4   :  { %v3555_v17 = vpop.xlane.xlu0 %3554  ;;  %21550 = vmatpush3.bf16.msra.mxu1 %v21547_v16  ;;  %v3558_v19 = vpop.xlane.xlu1 %3557 }
 0x4b5   :  { %v3595_v22 = vmul.f32 0.125, %v3555_v17  ;;  %v3596_v30 = vmul.f32 0.125, %v3558_v19  ;;  %v24529_v17 = vld [vmem:[%s27899_s20 + $0x18] sm:$0xff] }
 0x4b7   :  { %v21551_v24 = vpack.c.bf16 %v3595_v22, %v3594_v21  ;;  %v24534_v21 = vld [vmem:[%s27899_s20 + $0x20] sm:$0xff] }
 0x4b8   :  { %v3564_v26 = vpop.xlane.xlu1 %3563  ;;  %v3561_v27 = vpop.xlane.xlu0 %3560 }
 0x4b9   :  { %v3597_v31 = vmul.f32 0.125, %v3561_v27  ;;  %21552 = vmatprep.subr.bf16.mxu1 %v21551_v24  ;;  %v3598_v36 = vmul.f32 0.125, %v3564_v26 }
 0x4ba   :  { %21554 = vmatpush3.bf16.msra.mxu1 %v21551_v24 }
 0x4bb   :  { %v21555_v32 = vpack.c.bf16 %v3597_v31, %v3596_v30  ;;  %v24541_v30 = vld [vmem:[%s27899_s20 + $0x28] sm:$0xff] }
 0x4bc   :  { %v3567_v34 = vpop.xlane.xlu0 %3566  ;;  %v3570_v35 = vpop.xlane.xlu1 %3569 }
 0x4bd   :  { %v3599_v37 = vmul.f32 0.125, %v3567_v34  ;;  %21556 = vmatprep.subr.bf16.mxu1 %v21555_v32  ;;  %v3600_v41 = vmul.f32 0.125, %v3570_v35 }
 0x4be   :  { %21558 = vmatpush3.bf16.msra.mxu1 %v21555_v32  ;;  %v3694_v32 = vld [vmem:[%s27899_s20 + $0x30] sm:$0xff] }
 0x4bf   :  { %v21559_v38 = vpack.c.bf16 %v3599_v37, %v3598_v36 }
 0x4c0   :  { %v3576_v40 = vpop.xlane.xlu1 %3575  ;;  %v3573_v25 = vpop.xlane.xlu0 %3572 }
 0x4c1   :  { %v3601_v44 = vmul.f32 0.125, %v3573_v25  ;;  %21560 = vmatprep.subr.bf16.mxu1 %v21559_v38  ;;  %v3602_v49 = vmul.f32 0.125, %v3576_v40  ;;  %v3696_v25 = vld [vmem:[%s27899_s20 + $0x40] sm:$0xff] }
 0x4c2   :  { %21562 = vmatpush3.bf16.msra.mxu1 %v21559_v38  ;;  %v3695_v38 = vld [vmem:[%s27899_s20 + $0x38] sm:$0xff] }
 0x4c3   :  { %v21563_v45 = vpack.c.bf16 %v3601_v44, %v3600_v41 }
 0x4c4   :  { %v3579_v46 = vpop.xlane.xlu0 %3578  ;;  %v3582_v48 = vpop.xlane.xlu1 %3581 }
 0x4c5   :  { %v3603_v50 = vmul.f32 0.125, %v3579_v46  ;;  %21564 = vmatprep.subr.bf16.mxu1 %v21563_v45  ;;  %v3604_v54 = vmul.f32 0.125, %v3582_v48  ;;  %v3697_v48 = vld [vmem:[%s27899_s20 + $0x48] sm:$0xff] }
 0x4c6   :  { %21566 = vmatpush3.bf16.msra.mxu1 %v21563_v45 }
 0x4c7   :  { %v21567_v51 = vpack.c.bf16 %v3603_v50, %v3602_v49  ;;  %v3698_v50 = vld [vmem:[%s27899_s20 + $0x50] sm:$0xff] }
 0x4c8   :  { %v3588_v52 = vpop.xlane.xlu1 %3587  ;;  %v3585_v53 = vpop.xlane.xlu0 %3584 }
 0x4c9   :  { %v3605_v55 = vmul.f32 0.125, %v3585_v53  ;;  %21568 = vmatprep.subr.bf16.mxu1 %v21567_v51  ;;  %v3606_v60 = vmul.f32 0.125, %v3588_v52 }
 0x4ca   :  { %21570 = vmatpush3.bf16.msra.mxu1 %v21567_v51 }
 0x4cb   :  { %v21571_v56 = vpack.c.bf16 %v3605_v55, %v3604_v54  ;;  %v3699_v55 = vld [vmem:[%s27899_s20 + $0x58] sm:$0xff] }
 0x4cc   :  { %v3626_v57 = vpop.xlane.xlu1 %3625  ;;  %v3591_v59 = vpop.xlane.xlu0 %3590 }
 0x4cd   :  { %v3607_v61 = vmul.f32 0.125, %v3591_v59  ;;  %21572 = vmatprep.subr.bf16.mxu1 %v21571_v56  ;;  %v3672_v5 = vmul.f32 0.125, %v3626_v57  ;;  %v3700_v57 = vld [vmem:[%s27899_s20 + $0x60] sm:$0xff] }
 0x4ce   :  { %21574 = vmatpush3.bf16.msra.mxu1 %v21571_v56 }
 0x4cf   :  { %v21575_v1 = vpack.c.bf16 %v3607_v61, %v3606_v60 }
 0x4d0   :  { %v3632_v2 = vpop.xlane.xlu1 %3631  ;;  %v3629_v3 = vpop.xlane.xlu0 %3628 }
 0x4d1   :  { %v3673_v6 = vmul.f32 0.125, %v3629_v3  ;;  %21576 = vmatprep.subr.bf16.mxu1 %v21575_v1  ;;  %v3674_v15 = vmul.f32 0.125, %v3632_v2  ;;  %v3701_v2 = vld [vmem:[%s27899_s20 + $0x68] sm:$0xff] }
 0x4d2   :  { %21578 = vmatpush3.bf16.msra.mxu1 %v21575_v1 }
 0x4d3   :  { %v21579_v8 = vpack.c.bf16 %v3673_v6, %v3672_v5  ;;  %v3702_v5 = vld [vmem:[%s27899_s20 + $0x70] sm:$0xff] }
 0x4d4   :  { %v3638_v11 = vpop.xlane.xlu1 %3637  ;;  %v3635_v14 = vpop.xlane.xlu0 %3634 }
 0x4d5   :  { %v3675_v16 = vmul.f32 0.125, %v3635_v14  ;;  %19466 = vmatmul.mubr.f32.vlgmr.msra.gmra.mrb[16].mxu1 %v24517_v7  ;;  %21580 = vmatprep.subr.bf16.mxu1 %v21579_v8  ;;  %v3676_v26 = vmul.f32 0.125, %v3638_v11  ;;  %v3703_v14 = vld [vmem:[%s27899_s20 + $0x78] sm:$0xff] }
 0x4d6   :  { %21582 = vmatpush3.bf16.msra.mxu1 %v21579_v8  ;;  %19468 = vmatprep.mubr.f32.mxu1 %v24522_v10 }
 0x4d7   :  { %v21583_v19 = vpack.c.bf16 %v3675_v16, %v3674_v15 }
 0x4d8   :  { %v3644_v22 = vpop.xlane.xlu1 %3643  ;;  %v3641_v24 = vpop.xlane.xlu0 %3640 }
 0x4d9   :  { %v3677_v27 = vmul.f32 0.125, %v3641_v24  ;;  %19469 = vmatmul.mubr.f32.gmra.mrb[18].mxu1 %v24529_v17  ;;  %21584 = vmatprep.subr.bf16.mxu1 %v21583_v19  ;;  %v3678_v36 = vmul.f32 0.125, %v3644_v22 }
 0x4da   :  { %21586 = vmatpush3.bf16.msra.mxu1 %v21583_v19  ;;  %19471 = vmatprep.mubr.f32.mxu1 %v24534_v21 }
 0x4db   :  { %v21587_v31 = vpack.c.bf16 %v3677_v27, %v3676_v26 }
 0x4dc   :  { %v3650_v34 = vpop.xlane.xlu1 %3649  ;;  %v3647_v35 = vpop.xlane.xlu0 %3646 }
 0x4dd   :  { %v3679_v37 = vmul.f32 0.125, %v3647_v35  ;;  %19472 = vmatmul.mubr.f32.gmra.mrb[20].mxu1 %v24541_v30  ;;  %21588 = vmatprep.subr.bf16.mxu1 %v21587_v31  ;;  %v3680_v45 = vmul.f32 0.125, %v3650_v34 }
 0x4de   :  { %21590 = vmatpush3.bf16.msra.mxu1 %v21587_v31  ;;  %19474 = vmatprep.mubr.f32.mxu1 %v3694_v32 }
 0x4df   :  { %v21591_v40 = vpack.c.bf16 %v3679_v37, %v3678_v36 }
 0x4e0   :  { %v3656_v41 = vpop.xlane.xlu1 %3655  ;;  %v3653_v44 = vpop.xlane.xlu0 %3652 }
 0x4e1   :  { %v3681_v46 = vmul.f32 0.125, %v3653_v44  ;;  %19475 = vmatmul.mubr.f32.gmra.mrb[22].mxu1 %v3695_v38  ;;  %21592 = vmatprep.subr.bf16.mxu1 %v21591_v40  ;;  %v3682_v53 = vmul.f32 0.125, %v3656_v41 }
 0x4e2   :  { %21594 = vmatpush3.bf16.msra.mxu1 %v21591_v40  ;;  %19477 = vmatprep.mubr.f32.mxu1 %v3696_v25 }
 0x4e3   :  { %v21595_v49 = vpack.c.bf16 %v3681_v46, %v3680_v45 }
 0x4e4   :  { %v3662_v51 = vpop.xlane.xlu1 %3661  ;;  %v3659_v52 = vpop.xlane.xlu0 %3658 }
 0x4e5   :  { %v3683_v54 = vmul.f32 0.125, %v3659_v52  ;;  %19478 = vmatmul.mubr.f32.gmra.mrb[24].mxu1 %v3697_v48  ;;  %21596 = vmatprep.subr.bf16.mxu1 %v21595_v49  ;;  %v3684_v60 = vmul.f32 0.125, %v3662_v51 }
 0x4e6   :  { %21598 = vmatpush3.bf16.msra.mxu1 %v21595_v49  ;;  %19480 = vmatprep.mubr.f32.mxu1 %v3698_v50 }
 0x4e7   :  { %v21599_v56 = vpack.c.bf16 %v3683_v54, %v3682_v53 }
 0x4e8   :  { %v3665_v59 = vpop.xlane.xlu0 %3664  ;;  %v3668_v1 = vpop.xlane.xlu1 %3667 }
 0x4e9   :  { %v3685_v61 = vmul.f32 0.125, %v3665_v59  ;;  %19481 = vmatmul.mubr.f32.gmra.mrb[26].mxu1 %v3699_v55  ;;  %21600 = vmatprep.subr.bf16.mxu1 %v21599_v56  ;;  %v3686_v8 = vmul.f32 0.125, %v3668_v1 }
 0x4ea   :  { %21602 = vmatpush3.bf16.msra.mxu1 %v21599_v56  ;;  %19483 = vmatprep.mubr.f32.mxu1 %v3700_v57 }
 0x4eb   :  { %v21603_v3 = vpack.c.bf16 %v3685_v61, %v3684_v60 }
 0x4ec   :  { %v3671_v6 = vpop.xlane.xlu0 %3670  ;;  %v24598_v61 = vpop.permute.xlu1 %4289 }
 0x4ed   :  { %v3687_v11 = vmul.f32 0.125, %v3671_v6  ;;  %19484 = vmatmul.mubr.f32.gmra.mrb[28].mxu1 %v3701_v2  ;;  %21604 = vmatprep.subr.bf16.mxu1 %v21603_v3 }
 0x4ee   :  { %21606 = vmatpush3.bf16.msra.mxu1 %v21603_v3  ;;  %19486 = vmatprep.mubr.f32.mxu1 %v3702_v5 }
 0x4ef   :  { %v21607_v15 = vpack.c.bf16 %v3687_v11, %v3686_v8 }
 0x4f1   :  { %19487 = vmatmul.mubr.f32.gmra.mrb[30].mxu1 %v3703_v14  ;;  %21608 = vmatprep.subr.bf16.mxu1 %v21607_v15 }
 0x4f2   :  { %21610 = vmatpush3.bf16.msra.mxu1 %v21607_v15  ;;  %19521 = vmatprep.mubr.f32.mxu1 %v24410_v20 }
 0x4f5   :  { %19522 = vmatmul.mubr.f32.vlgmr.msra.gmra.mrb[32].mxu1 %v24517_v7 }
 0x4f6   :  { %19524 = vmatprep.mubr.f32.mxu1 %v24522_v10 }
 0x4f9   :  { %19525 = vmatmul.mubr.f32.gmra.mrb[34].mxu1 %v24529_v17 }
 0x4fa   :  { %19527 = vmatprep.mubr.f32.mxu1 %v24534_v21 }
 0x4fd   :  { %19528 = vmatmul.mubr.f32.gmra.mrb[36].mxu1 %v24541_v30 }
 0x4fe   :  { %19530 = vmatprep.mubr.f32.mxu1 %v3694_v32 }
 0x501   :  { %19531 = vmatmul.mubr.f32.gmra.mrb[38].mxu1 %v3695_v38 }
 0x502   :  { %19533 = vmatprep.mubr.f32.mxu1 %v3696_v25 }
 0x505   :  { %19534 = vmatmul.mubr.f32.gmra.mrb[40].mxu1 %v3697_v48 }
 0x506   :  { %19536 = vmatprep.mubr.f32.mxu1 %v3698_v50 }
 0x509   :  { %19537 = vmatmul.mubr.f32.gmra.mrb[42].mxu1 %v3699_v55 }
 0x50a   :  { %19539 = vmatprep.mubr.f32.mxu1 %v3700_v57 }
 0x50d   :  { %19540 = vmatmul.mubr.f32.gmra.mrb[44].mxu1 %v3701_v2 }
 0x50e   :  { %19542 = vmatprep.mubr.f32.mxu1 %v3702_v5 }
 0x511   :  { %19543 = vmatmul.mubr.f32.gmra.mrb[46].mxu1 %v3703_v14 }
 0x5a8   :  { %v19467_v20 = vpop.f32.mrb[16].mxu1 }
 0x5a9   :  { %4049 = vperm.xlu0 %22705, %v19467_v20   ;;  %v3770_v7 = vpop.f32.mrb[17].mxu1  ;;  %v3995_v36 = vmul.f32 %v19467_v20, %v19467_v20 }
 0x5aa   :  { %4044 = vperm.xlu1 %22706, %v3770_v7   ;;  %v3994_v37 = vmul.f32 %v3770_v7, %v3770_v7 }
 0x5ac   :  { %v19470_v10 = vpop.f32.mrb[18].mxu1 }
 0x5ad   :  { %v3780_v16 = vpop.f32.mrb[19].mxu1  ;;  %v3997_v44 = vmul.f32 %v19470_v10, %v19470_v10 }
 0x5ae   :  { %4059 = vperm.xlu1 %22706, %v19470_v10   ;;  %v3996_v46 = vmul.f32 %v3780_v16, %v3780_v16 }
 0x5b0   :  { %v19473_v17 = vpop.f32.mrb[20].mxu1 }
 0x5b1   :  { %v3790_v19 = vpop.f32.mrb[21].mxu1  ;;  %v3999_v55 = vmul.f32 %v19473_v17, %v19473_v17 }
 0x5b2   :  { %4054 = vperm.xlu1 %22706, %v3780_v16   ;;  %4064 = vperm.xlu0 %22705, %v3790_v19   ;;  %v3998_v57 = vmul.f32 %v3790_v19, %v3790_v19 }
 0x5b4   :  { %v19476_v21 = vpop.f32.mrb[22].mxu1 }
 0x5b5   :  { %v3800_v22 = vpop.f32.mrb[23].mxu1  ;;  %v4001_v8 = vmul.f32 %v19476_v21, %v19476_v21 }
 0x5b6   :  { %4069 = vperm.xlu1 %22706, %v19473_v17   ;;  %4074 = vperm.xlu0 %22705, %v3800_v22   ;;  %v4000_v14 = vmul.f32 %v3800_v22, %v3800_v22 }
 0x5b8   :  { %v19479_v24 = vpop.f32.mrb[24].mxu1 }
 0x5b9   :  { %v3810_v26 = vpop.f32.mrb[25].mxu1 }
 0x5ba   :  { %4079 = vperm.xlu1 %22706, %v19476_v21   ;;  %4084 = vperm.xlu0 %22705, %v3810_v26  }
 0x5bc   :  { %v24580_v27 = vpop.f32.mrb[26].mxu1 }
 0x5bd   :  { %v24582_v30 = vpop.f32.mrb[27].mxu1 }
 0x5be   :  { %4089 = vperm.xlu1 %22706, %v19479_v24   ;;  %4094 = vperm.xlu0 %22705, %v24582_v30  }
 0x5c0   :  { %v24585_v31 = vpop.f32.mrb[28].mxu1 }
 0x5c1   :  { %v24587_v32 = vpop.f32.mrb[29].mxu1 }
 0x5c2   :  { %4099 = vperm.xlu1 %22706, %v24580_v27   ;;  %4104 = vperm.xlu0 %22705, %v24587_v32  }
 0x5c4   :  { %v24591_v34 = vpop.f32.mrb[30].mxu1 }
 0x5c5   :  { %v24593_v35 = vpop.f32.mrb[31].mxu1 }
 0x5c6   :  { %4109 = vperm.xlu1 %22706, %v24585_v31   ;;  %4114 = vperm.xlu0 %22705, %v24593_v35  }
 0x5c8   :  { %v19523_v38 = vpop.f32.mrb[32].mxu1 }
 0x5c9   :  { %v4011_v40 = vsub.f32 %v19523_v38, %v3995_v36  ;;  %v3915_v25 = vpop.f32.mrb[33].mxu1  ;;  %v24600_v36 = vpop.permute.xlu1 %4299 }
 0x5ca   :  { %v4010_v41 = vsub.f32 %v3915_v25, %v3994_v37  ;;  %4119 = vperm.xlu1 %22706, %v24591_v34   ;;  %v4003_v37 = vmul.f32 %v19479_v24, %v19479_v24  ;;  %v24604_v24 = vpop.permute.xlu0 %4284 }
 0x5cb   :  { %v4027_v45 = vmax.f32 %v4011_v40, 0.0  ;;  %v4002_v40 = vmul.f32 %v3810_v26, %v3810_v26  ;;  %v4004_v26 = vmul.f32 %v24582_v30, %v24582_v30  ;;  %v4006_v30 = vmul.f32 %v24587_v32, %v24587_v32 }
 0x5cc   :  { %v4026_v48 = vmax.f32 %v4010_v41, 0.0  ;;  %v19526_v49 = vpop.f32.mrb[34].mxu1 }
 0x5cd   :  { %v4139_v50 = vadd.f32 1e-05, %v4027_v45  ;;  %v4013_v51 = vsub.f32 %v19526_v49, %v3997_v44  ;;  %v3925_v52 = vpop.f32.mrb[35].mxu1 }
 0x5ce   :  { %v4138_v53 = vadd.f32 1e-05, %v4026_v48  ;;  %v4012_v54 = vsub.f32 %v3925_v52, %v3996_v46 }
 0x5cf   :  { %23200 = vrsqrt.f32 %v4139_v50  ;;  %v4029_v56 = vmax.f32 %v4013_v51, 0.0  ;;  %v4005_v50 = vmul.f32 %v24580_v27, %v24580_v27 }
 0x5d0   :  { %23202 = vrsqrt.f32 %v4138_v53  ;;  %v4028_v59 = vmax.f32 %v4012_v54, 0.0  ;;  %v19529_v60 = vpop.f32.mrb[36].mxu1 }
 0x5d1   :  { %v4141_v1 = vadd.f32 1e-05, %v4029_v56  ;;  %v4015_v2 = vsub.f32 %v19529_v60, %v3999_v55  ;;  %v3935_v3 = vpop.f32.mrb[37].mxu1  ;;  %v24608_v55 = vpop.permute.xlu1 %4401 }
 0x5d2   :  { %v4140_v5 = vadd.f32 1e-05, %v4028_v59  ;;  %v4014_v6 = vsub.f32 %v3935_v3, %v3998_v57 }
 0x5d3   :  { %23204 = vrsqrt.f32 %v4141_v1  ;;  %v4031_v11 = vmax.f32 %v4015_v2, 0.0  ;;  %v4007_v2 = vmul.f32 %v24585_v31, %v24585_v31 }
 0x5d4   :  { %23206 = vrsqrt.f32 %v4140_v5  ;;  %v4030_v15 = vmax.f32 %v4014_v6, 0.0  ;;  %v19532_v20 = vpop.f32.mrb[38].mxu1 }
 0x5d5   :  { %v4143_v7 = vadd.f32 1e-05, %v4031_v11  ;;  %v4017_v10 = vsub.f32 %v19532_v20, %v4001_v8  ;;  %v3945_v16 = vpop.f32.mrb[39].mxu1  ;;  %v24616_v31 = vpop.permute.xlu1 %4411 }
 0x5d6   :  { %v4142_v17 = vadd.f32 1e-05, %v4030_v15  ;;  %v4016_v19 = vsub.f32 %v3945_v16, %v4000_v14 }
 0x5d7   :  { %23208 = vrsqrt.f32 %v4143_v7  ;;  %v4033_v38 = vmax.f32 %v4017_v10, 0.0  ;;  %v24614_v7 = vpop.permute.xlu0 %4294 }
 0x5d8   :  { %23210 = vrsqrt.f32 %v4142_v17  ;;  %v4032_v25 = vmax.f32 %v4016_v19, 0.0  ;;  %v19535_v21 = vpop.f32.mrb[40].mxu1  ;;  %v4009_v17 = vmul.f32 %v24591_v34, %v24591_v34  ;;  %v4008_v19 = vmul.f32 %v24593_v35, %v24593_v35  ;;  %v6972_v34 = vld [vmem:[#allocation4 + $0xc] sm:$0xf] }
 0x5d9   :  { %v23201_v41 = vpop.eup %23200  ;;  %v4145_v44 = vadd.f32 1e-05, %v4033_v38  ;;  %v4019_v22 = vsub.f32 %v19535_v21, %v4003_v37  ;;  %v3955_v45 = vpop.f32.mrb[41].mxu1  ;;  %22688 = vmatprep.subr.msk.bf16.mxu1 %vm4539_vm5, %v6972_v34 }
 0x5da   :  { %v23203_v46 = vpop.eup %23202  ;;  %v4144_v48 = vadd.f32 1e-05, %v4032_v25  ;;  %v4018_v49 = vsub.f32 %v3955_v45, %v4002_v40  ;;  %4177 = vperm.xlu1 %22706, %v23201_v41  }
 0x5db   :  { %23212 = vrsqrt.f32 %v4145_v44  ;;  %v4035_v51 = vmax.f32 %v4019_v22, 0.0  ;;  %4172 = vperm.xlu0 %22705, %v23203_v46   ;;  %v4514_v44 = vld [vmem:[#allocation4] sm:$0xf] }
 0x5dc   :  { %23214 = vrsqrt.f32 %v4144_v48  ;;  %v4034_v52 = vmax.f32 %v4018_v49, 0.0  ;;  %v19538_v53 = vpop.f32.mrb[42].mxu1  ;;  %22685 = vmatprep.subr.msk.bf16.mxu0 %vm4539_vm5, %v4514_v44  ;;  %v4541_v48 = vsel %vm4539_vm5, %v4514_v44, 0  ;;  %v6974_v49 = vsel %vm4539_vm5, %v6972_v34, 0  ;;  %v7802_v44 = vld [vmem:[%s27841_s9 + $0x48] sm:$0xff]  ;;  %v7804_v34 = vld [vmem:[%s27841_s9 + $0x58] sm:$0xff] }
 0x5dd   :  { %v23205_v54 = vpop.eup %23204  ;;  %v4147_v56 = vadd.f32 1e-05, %v4035_v51  ;;  %v4021_v57 = vsub.f32 %v19538_v53, %v4005_v50  ;;  %v3965_v59 = vpop.f32.mrb[43].mxu1  ;;  %19546 = vmatpush3.bf16.msra.mxu0 %v4541_v48  ;;  %19984 = vmatpush3.bf16.msra.mxu1 %v6974_v49  ;;  %v7803_v48 = vld [vmem:[%s27841_s9 + $0x50] sm:$0xff] }
 0x5de   :  { %v23207_v60 = vpop.eup %23206  ;;  %v4146_v1 = vadd.f32 1e-05, %v4034_v52  ;;  %v4020_v27 = vsub.f32 %v3965_v59, %v4004_v26  ;;  %4187 = vperm.xlu1 %22706, %v23205_v54   ;;  %v24626_v50 = vpop.permute.xlu0 %4396 }
 0x5df   :  { %23216 = vrsqrt.f32 %v4147_v56  ;;  %v4037_v3 = vmax.f32 %v4021_v57, 0.0  ;;  %4182 = vperm.xlu0 %22705, %v23207_v60   ;;  %v24628_v52 = vpop.permute.xlu1 %4309 }
 0x5e0   :  { %23218 = vrsqrt.f32 %v4146_v1  ;;  %v4036_v5 = vmax.f32 %v4020_v27, 0.0  ;;  %v19541_v6 = vpop.f32.mrb[44].mxu1 }
 0x5e1   :  { %v23209_v8 = vpop.eup %23208  ;;  %v4149_v11 = vadd.f32 1e-05, %v4037_v3  ;;  %v4023_v14 = vsub.f32 %v19541_v6, %v4007_v2  ;;  %v3975_v15 = vpop.f32.mrb[45].mxu1 }
 0x5e2   :  { %v23211_v20 = vpop.eup %23210  ;;  %v4148_v10 = vadd.f32 1e-05, %v4036_v5  ;;  %v4022_v16 = vsub.f32 %v3975_v15, %v4006_v30  ;;  %4197 = vperm.xlu1 %22706, %v23209_v8   ;;  %v24630_v60 = vpop.permute.xlu0 %4406  ;;  %v4393_v8 = vld [vmem:[%s27901_s4 + $0x78] sm:$0xff] }
 0x5e3   :  { %23220 = vrsqrt.f32 %v4149_v11  ;;  %v4039_v32 = vmax.f32 %v4023_v14, 0.0  ;;  %4192 = vperm.xlu0 %22705, %v23211_v20   ;;  %v24632_v1 = vpop.permute.xlu1 %4319  ;;  %v4392_v11 = vld [vmem:[%s27901_s4 + $0x70] sm:$0xff]  ;;  %v7794_v20 = vld [vmem:[%s27841_s9 + $0x8] sm:$0xff] }
 0x5e4   :  { %23222 = vrsqrt.f32 %v4148_v10  ;;  %v4038_v37 = vmax.f32 %v4022_v16, 0.0  ;;  %v19544_v38 = vpop.f32.mrb[46].mxu1  ;;  %v7793_v10 = vld [vmem:[%s27841_s9] sm:$0xff]  ;;  %v7796_v16 = vld [vmem:[%s27841_s9 + $0x18] sm:$0xff] }
 0x5e5   :  { %v23213_v40 = vpop.eup %23212  ;;  %v4151_v25 = vadd.f32 1e-05, %v4039_v32  ;;  %v4025_v21 = vsub.f32 %v19544_v38, %v4009_v17  ;;  %v3985_v41 = vpop.f32.mrb[47].mxu1  ;;  %v7795_v32 = vld [vmem:[%s27841_s9 + $0x10] sm:$0xff]  ;;  %v7797_v38 = vld [vmem:[%s27841_s9 + $0x20] sm:$0xff] }
 0x5e6   :  { %v23215_v22 = vpop.eup %23214  ;;  %v4150_v45 = vadd.f32 1e-05, %v4038_v37  ;;  %v4024_v46 = vsub.f32 %v3985_v41, %v4008_v19  ;;  %4207 = vperm.xlu1 %22706, %v23213_v40   ;;  %v24634_v3 = vpop.permute.xlu0 %4304  ;;  %v7798_v37 = vld [vmem:[%s27841_s9 + $0x28] sm:$0xff]  ;;  %v7799_v41 = vld [vmem:[%s27841_s9 + $0x30] sm:$0xff] }
 0x5e7   :  { %23224 = vrsqrt.f32 %v4151_v25  ;;  %v4041_v35 = vmax.f32 %v4025_v21, 0.0  ;;  %4202 = vperm.xlu0 %22705, %v23215_v22   ;;  %v24636_v5 = vpop.permute.xlu1 %4421  ;;  %v7800_v21 = vld [vmem:[%s27841_s9 + $0x38] sm:$0xff] }
 0x5e8   :  { %23226 = vrsqrt.f32 %v4150_v45  ;;  %v4040_v51 = vmax.f32 %v4024_v46, 0.0  ;;  %v7801_v45 = vld [vmem:[%s27841_s9 + $0x40] sm:$0xff] }
 0x5e9   :  { %v23217_v26 = vpop.eup %23216  ;;  %v4153_v53 = vadd.f32 1e-05, %v4041_v35 }
 0x5ea   :  { %v23219_v54 = vpop.eup %23218  ;;  %v4152_v56 = vadd.f32 1e-05, %v4040_v51  ;;  %4217 = vperm.xlu1 %22706, %v23217_v26   ;;  %v24644_v14 = vpop.permute.xlu0 %4314  ;;  %v7806_v51 = vld [vmem:[%s27841_s9 + $0x68] sm:$0xff]  ;;  %v7805_v26 = vld [vmem:[%s27841_s9 + $0x60] sm:$0xff] }
 0x5eb   :  { %23228 = vrsqrt.f32 %v4153_v53  ;;  %4212 = vperm.xlu0 %22705, %v23219_v54   ;;  %v24646_v15 = vpop.permute.xlu1 %4431  ;;  %v7808_v53 = vld [vmem:[%s27841_s9 + $0x78] sm:$0xff] }
 0x5ec   :  { %23230 = vrsqrt.f32 %v4152_v56  ;;  %v7807_v56 = vld [vmem:[%s27841_s9 + $0x70] sm:$0xff] }
 0x5ed   :  { %v23221_v57 = vpop.eup %23220 }
 0x5ee   :  { %v23223_v59 = vpop.eup %23222  ;;  %4227 = vperm.xlu1 %22706, %v23221_v57   ;;  %v24657_v17 = vpop.permute.xlu0 %4416 }
 0x5ef   :  { %4222 = vperm.xlu0 %22705, %v23223_v59   ;;  %v24662_v19 = vpop.permute.xlu1 %4329 }
 0x5f1   :  { %v23225_v27 = vpop.eup %23224 }
 0x5f2   :  { %v23227_v2 = vpop.eup %23226  ;;  %4237 = vperm.xlu1 %22706, %v23225_v27   ;;  %v24670_v40 = vpop.permute.xlu0 %4426 }
 0x5f3   :  { %4232 = vperm.xlu0 %22705, %v23227_v2   ;;  %v24672_v25 = vpop.permute.xlu1 %4339 }
 0x5f5   :  { %v23229_v30 = vpop.eup %23228 }
 0x5f6   :  { %v23231_v6 = vpop.eup %23230  ;;  %4247 = vperm.xlu1 %22706, %v23229_v30   ;;  %v24683_v22 = vpop.permute.xlu0 %4324 }
 0x5f7   :  { %4242 = vperm.xlu0 %22705, %v23231_v6   ;;  %v24688_v46 = vpop.permute.xlu1 %4441 }
 0x5fa   :  { %4471 = vperm.xlu1 %22706, %v4393_v8   ;;  %v24696_v35 = vpop.permute.xlu0 %4334 }
 0x5fb   :  { %4466 = vperm.xlu0 %22705, %v4392_v11   ;;  %v24698_v49 = vpop.permute.xlu1 %4451 }
 0x5fc   :  { %27902 = vst [vmem:[#allocation18_spill] sm:$0xff] %v24698_v49 }
 0x5fe   :  { %7816 = vperm.xlu1 %22706, %v7794_v20   ;;  %v24709_v54 = vpop.permute.xlu0 %4436 }
 0x5ff   :  { %7811 = vperm.xlu0 %22705, %v7793_v10   ;;  %v24714_v57 = vpop.permute.xlu1 %4349 }
 0x600   :  { %27903 = vst [vmem:[#allocation19_spill] sm:$0xff] %v24714_v57 }
 0x602   :  { %7826 = vperm.xlu1 %22706, %v7796_v16   ;;  %v24716_v59 = vpop.permute.xlu0 %4446 }
 0x603   :  { %7821 = vperm.xlu0 %22705, %v7795_v32   ;;  %27904 = vst [vmem:[#allocation20_spill] sm:$0xff] %v24716_v59  ;;  %v24718_v27 = vpop.permute.xlu1 %4359 }
 0x604   :  { %27905 = vst [vmem:[#allocation21_spill] sm:$0xff] %v24718_v27 }
 0x606   :  { %7836 = vperm.xlu1 %22706, %v7798_v37   ;;  %v24720_v2 = vpop.permute.xlu0 %4344 }
 0x607   :  { %7831 = vperm.xlu0 %22705, %v7797_v38   ;;  %27906 = vst [vmem:[#allocation22_spill] sm:$0xff] %v24720_v2  ;;  %v24722_v30 = vpop.permute.xlu1 %4461 }
 0x608   :  { %27907 = vst [vmem:[#allocation23_spill] sm:$0xff] %v24722_v30 }
 0x60a   :  { %7846 = vperm.xlu1 %22706, %v7800_v21   ;;  %v24724_v8 = vpop.permute.xlu0 %4354 }
 0x60b   :  { %7841 = vperm.xlu0 %22705, %v7799_v41   ;;  %27908 = vst [vmem:[#allocation24_spill] sm:$0xff] %v24724_v8 }
 0x60e   :  { %7856 = vperm.xlu1 %22706, %v7802_v44   ;;  %v24726_v20 = vpop.permute.xlu0 %4456 }
 0x60f   :  { %7851 = vperm.xlu0 %22705, %v7801_v45   ;;  %27909 = vst [vmem:[#allocation25_spill] sm:$0xff] %v24726_v20 }
 0x612   :  { %7866 = vperm.xlu1 %22706, %v7804_v34  }
 0x613   :  { %7861 = vperm.xlu0 %22705, %v7803_v48  }
 0x616   :  { %7876 = vperm.xlu1 %22706, %v7806_v51  }
 0x617   :  { %7871 = vperm.xlu0 %22705, %v7805_v26  }
 0x61a   :  { %7886 = vperm.xlu1 %22706, %v7808_v53  }
 0x61b   :  { %7881 = vperm.xlu0 %22705, %v7807_v56  }
 0x628   :  { %v4050_v16 = vpop.permute.xlu0 %4049 }
 0x629   :  { %v4045_v6 = vpop.permute.xlu1 %4044  ;;  %v4123_v56 = vsub.f32 %v24310_v63, %v4050_v16 }
 0x62a   :  { %v4122_v0 = vsub.f32 %v24306_v58, %v4045_v6 }
 0x62d   :  { %v4060_v11 = vpop.permute.xlu1 %4059 }
 0x62e   :  { %v4125_v2 = vsub.f32 %v24316_v4, %v4060_v11 }
 0x631   :  { %v4055_v10 = vpop.permute.xlu1 %4054  ;;  %v4065_v37 = vpop.permute.xlu0 %4064 }
 0x632   :  { %v4124_v57 = vsub.f32 %v24308_v62, %v4055_v10  ;;  %v4126_v4 = vsub.f32 %v24320_v9, %v4065_v37 }
 0x635   :  { %v4070_v32 = vpop.permute.xlu1 %4069  ;;  %v4075_v21 = vpop.permute.xlu0 %4074 }
 0x636   :  { %v4127_v6 = vsub.f32 %v24324_v13, %v4070_v32  ;;  %v4128_v9 = vsub.f32 %v24322_v12, %v4075_v21 }
 0x639   :  { %v4080_v38 = vpop.permute.xlu1 %4079  ;;  %v24730_v44 = vpop.permute.xlu0 %4084 }
 0x63a   :  { %v4129_v13 = vsub.f32 %v24330_v18, %v4080_v38  ;;  %v4130_v10 = vsub.f32 %v24336_v23, %v24730_v44 }
 0x63d   :  { %v24728_v41 = vpop.permute.xlu1 %4089  ;;  %v24734_v34 = vpop.permute.xlu0 %4094 }
 0x63e   :  { %v4131_v12 = vsub.f32 %v24340_v29, %v24728_v41  ;;  %v4132_v44 = vsub.f32 %v24338_v28, %v24734_v34 }
 0x641   :  { %v24732_v45 = vpop.permute.xlu1 %4099  ;;  %v24738_v51 = vpop.permute.xlu0 %4104 }
 0x642   :  { %v4133_v23 = vsub.f32 %v24346_v33, %v24732_v45 }
 0x645   :  { %v24736_v48 = vpop.permute.xlu1 %4109  ;;  %v24742_v53 = vpop.permute.xlu0 %4114 }
 0x646   :  { %27911 = vst [vmem:[#allocation27_spill] sm:$0xff] %v24742_v53  ;;  %v4135_v28 = vsub.f32 %v24356_v43, %v24736_v48  ;;  %v27913_v48 = vld [vmem:[#allocation20_spill] sm:$0xff] }
 0x649   :  { %v24740_v26 = vpop.permute.xlu1 %4119 }
 0x64a   :  { %27910 = vst [vmem:[#allocation26_spill] sm:$0xff] %v24740_v26 }
 0x659   :  { %v4178_v8 = vpop.permute.xlu1 %4177 }
 0x65a   :  { %v4251_v27 = vmul.f32 %v4178_v8, %v4123_v56  ;;  %v4173_v20 = vpop.permute.xlu0 %4172 }
 0x65b   :  { %v4250_v30 = vmul.f32 %v4173_v20, %v4122_v0 }
 0x65c   :  { %v4363_v42 = vmul.f32 %v24598_v61, %v4251_v27 }
 0x65d   :  { %v4362_v47 = vmul.f32 %v24604_v24, %v4250_v30  ;;  %v4188_v59 = vpop.permute.xlu1 %4187 }
 0x65e   :  { %v4475_v26 = vadd.f32 %v24608_v55, %v4363_v42  ;;  %v4253_v53 = vmul.f32 %v4188_v59, %v4125_v2  ;;  %v4183_v49 = vpop.permute.xlu0 %4182 }
 0x65f   :  { %v4474_v63 = vadd.f32 %v24626_v50, %v4362_v47  ;;  %v4252_v58 = vmul.f32 %v4183_v49, %v4124_v57 }
 0x660   :  { %v4491_v8 = vmax.f32 %v4475_v26, 0.0  ;;  %v4365_v0 = vmul.f32 %v24600_v36, %v4253_v53 }
 0x661   :  { %v4490_v61 = vmax.f32 %v4474_v63, 0.0  ;;  %v4364_v62 = vmul.f32 %v24614_v7, %v4252_v58  ;;  %v4198_v27 = vpop.permute.xlu1 %4197  ;;  %v4134_v58 = vsub.f32 %v24352_v39, %v24738_v51  ;;  %v27914_v39 = vld [vmem:[#allocation26_spill] sm:$0xff]  ;;  %v27915_v51 = vld [vmem:[#allocation17_spill] sm:$0xff] }
 0x662   :  { %v4477_v24 = vadd.f32 %v24616_v31, %v4365_v0  ;;  %v4255_v30 = vmul.f32 %v4198_v27, %v4127_v6  ;;  %v4193_v42 = vpop.permute.xlu0 %4192  ;;  %v4137_v27 = vsub.f32 %v27915_v51, %v27914_v39 }
 0x663   :  { %v4476_v55 = vadd.f32 %v24630_v60, %v4364_v62  ;;  %v4254_v59 = vmul.f32 %v4193_v42, %v4126_v4  ;;  %v24758_v47 = vpack.c.bf16 %v4491_v8, %v4490_v61  ;;  %v27917_v42 = vld [vmem:[#allocation27_spill] sm:$0xff] }
 0x664   :  { %v4493_v50 = vmax.f32 %v4477_v24, 0.0  ;;  %v4367_v36 = vmul.f32 %v24628_v52, %v4255_v30  ;;  %v27916_v24 = vld [vmem:[#allocation19_spill] sm:$0xff] }
 0x665   :  { %v4492_v49 = vmax.f32 %v4476_v55, 0.0  ;;  %v4366_v7 = vmul.f32 %v24634_v3, %v4254_v59  ;;  %v4208_v57 = vpop.permute.xlu1 %4207  ;;  %19547 = vmatprep.mubr.msk.bf16.mxu0 %vm3543_vm4, %v24758_v47  ;;  %19985 = vmatprep.mubr.msk.bf16.mxu1 %vm3543_vm4, %v24758_v47  ;;  %v27918_v55 = vld [vmem:[#allocation16_spill] sm:$0xff] }
 0x666   :  { %v4479_v31 = vadd.f32 %v24636_v5, %v4367_v36  ;;  %v4257_v60 = vmul.f32 %v4208_v57, %v4129_v13  ;;  %v4203_v2 = vpop.permute.xlu0 %4202  ;;  %v4136_v59 = vsub.f32 %v27918_v55, %v27917_v42 }
 0x667   :  { %v24769_v18 = vpack.c.bf16 %v4493_v50, %v4492_v49  ;;  %v4478_v52 = vadd.f32 %v24657_v17, %v4366_v7  ;;  %v4256_v11 = vmul.f32 %v4203_v2, %v4128_v9  ;;  %v27919_v50 = vld [vmem:[#allocation22_spill] sm:$0xff]  ;;  %v27920_v49 = vld [vmem:[#allocation23_spill] sm:$0xff] }
 0x668   :  { %v4495_v3 = vmax.f32 %v4479_v31, 0.0  ;;  %v4369_v20 = vmul.f32 %v24632_v1, %v4257_v60  ;;  %v27921_v60 = vld [vmem:[#allocation25_spill] sm:$0xff] }
 0x669   :  { %v4494_v16 = vmax.f32 %v4478_v52, 0.0  ;;  %v4368_v32 = vmul.f32 %v24644_v14, %v4256_v11  ;;  %v4218_v5 = vpop.permute.xlu1 %4217  ;;  %19548 = vmatmul.mubr.msk.bf16.vlgmr.msra.gmra.mrb[16].mxu0 %vm3543_vm4, %v24769_v18  ;;  %19986 = vmatmul.mubr.msk.bf16.vlgmr.msra.gmra.mrb[48].mxu1 %vm3543_vm4, %v24769_v18 }
 0x66a   :  { %v4481_v17 = vadd.f32 %v24646_v15, %v4369_v20  ;;  %v4259_v37 = vmul.f32 %v4218_v5, %v4131_v12  ;;  %v4213_v29 = vpop.permute.xlu0 %4212 }
 0x66b   :  { %v4480_v38 = vadd.f32 %v24670_v40, %v4368_v32  ;;  %v4258_v1 = vmul.f32 %v4213_v29, %v4130_v10  ;;  %v24784_v21 = vpack.c.bf16 %v4495_v3, %v4494_v16  ;;  %v27922_v3 = vld [vmem:[#allocation21_spill] sm:$0xff]  ;;  %v27923_v32 = vld [vmem:[#allocation24_spill] sm:$0xff] }
 0x66c   :  { %v4497_v14 = vmax.f32 %v4481_v17, 0.0  ;;  %v4371_v41 = vmul.f32 %v24662_v19, %v4259_v37 }
 0x66d   :  { %v4496_v26 = vmax.f32 %v4480_v38, 0.0  ;;  %v4370_v53 = vmul.f32 %v24683_v22, %v4258_v1  ;;  %v4228_v15 = vpop.permute.xlu1 %4227  ;;  %19551 = vmatprep.mubr.msk.bf16.mxu0 %vm3543_vm4, %v24784_v21  ;;  %19989 = vmatprep.mubr.msk.bf16.mxu1 %vm3543_vm4, %v24784_v21 }
 0x66e   :  { %v4483_v40 = vadd.f32 %v24688_v46, %v4371_v41  ;;  %v4261_v56 = vmul.f32 %v4228_v15, %v4133_v23  ;;  %v4223_v33 = vpop.permute.xlu0 %4222  ;;  %v22836_v41 = vld [vmem:[%s27924_s27 + $0x100] sm:$0xff]  }
 0x66f   :  { %v4482_v45 = vadd.f32 %v24709_v54, %v4370_v53  ;;  %v4260_v19 = vmul.f32 %v4223_v33, %v4132_v44  ;;  %v24798_v63 = vpack.c.bf16 %v4497_v14, %v4496_v26  ;;  %v27912_v54 = vld [vmem:[#allocation18_spill] sm:$0xff] }
 0x670   :  { %v4499_v22 = vmax.f32 %v4483_v40, 0.0  ;;  %v4373_v34 = vmul.f32 %v24672_v25, %v4261_v56 }
 0x671   :  { %v4498_v6 = vmax.f32 %v4482_v45, 0.0  ;;  %v4372_v8 = vmul.f32 %v24696_v35, %v4260_v19  ;;  %v4238_v46 = vpop.permute.xlu1 %4237  ;;  %19552 = vmatmul.mubr.msk.bf16.gmra.mrb[20].mxu0 %vm3543_vm4, %v24798_v63  ;;  %19990 = vmatmul.mubr.msk.bf16.gmra.mrb[52].mxu1 %vm3543_vm4, %v24798_v63 }
 0x672   :  { %v4485_v0 = vadd.f32 %v27912_v54, %v4373_v34  ;;  %v4263_v4 = vmul.f32 %v4238_v46, %v4135_v28  ;;  %v4233_v43 = vpop.permute.xlu0 %4232 }
 0x673   :  { %v4484_v61 = vadd.f32 %v27913_v48, %v4372_v8  ;;  %v4262_v25 = vmul.f32 %v4233_v43, %v4134_v58  ;;  %v24812_v62 = vpack.c.bf16 %v4499_v22, %v4498_v6 }
 0x674   :  { %v4501_v35 = vmax.f32 %v4485_v0, 0.0  ;;  %v4375_v30 = vmul.f32 %v27916_v24, %v4263_v4 }
 0x675   :  { %v4500_v13 = vmax.f32 %v4484_v61, 0.0  ;;  %v4374_v36 = vmul.f32 %v27919_v50, %v4262_v25  ;;  %v4248_v9 = vpop.permute.xlu1 %4247  ;;  %19555 = vmatprep.mubr.msk.bf16.mxu0 %vm3543_vm4, %v24812_v62  ;;  %19993 = vmatprep.mubr.msk.bf16.mxu1 %vm3543_vm4, %v24812_v62 }
 0x676   :  { %v4487_v7 = vadd.f32 %v27920_v49, %v4375_v30  ;;  %v4265_v57 = vmul.f32 %v4248_v9, %v4137_v27  ;;  %v4243_v31 = vpop.permute.xlu0 %4242 }
 0x677   :  { %v4486_v2 = vadd.f32 %v27921_v60, %v4374_v36  ;;  %v4264_v52 = vmul.f32 %v4243_v31, %v4136_v59  ;;  %v24826_v11 = vpack.c.bf16 %v4501_v35, %v4500_v13 }
 0x678   :  { %v4503_v12 = vmax.f32 %v4487_v7, 0.0  ;;  %v4377_v20 = vmul.f32 %v27922_v3, %v4265_v57 }
 0x679   :  { %v4502_v10 = vmax.f32 %v4486_v2, 0.0  ;;  %v4472_v16 = vpop.permute.xlu1 %4471  ;;  %19556 = vmatmul.mubr.msk.bf16.gmra.mrb[24].mxu0 %vm3543_vm4, %v24826_v11  ;;  %19994 = vmatmul.mubr.msk.bf16.gmra.mrb[56].mxu1 %vm3543_vm4, %v24826_v11  ;;  %v4376_v5 = vmul.f32 %v27923_v32, %v4264_v52  ;;  %v22837_v32 = vld [vmem:[%s27924_s27 + $0x108] sm:$0xff]  }
 0x67a   :  { %v4489_v17 = vadd.f32 %v4472_v16, %v4377_v20  ;;  %v4467_v37 = vpop.permute.xlu0 %4466 }
 0x67b   :  { %v4488_v29 = vadd.f32 %v4467_v37, %v4376_v5  ;;  %v24834_v38 = vpack.c.bf16 %v4503_v12, %v4502_v10  ;;  %v22838_v5 = vld [vmem:[%s27924_s27 + $0x110] sm:$0xff]   ;;  %v22840_v37 = vld [vmem:[%s27924_s27 + $0x120] sm:$0xff]  }
 0x67c   :  { %v4505_v1 = vmax.f32 %v4489_v17, 0.0  ;;  %v22839_v17 = vld [vmem:[%s27924_s27 + $0x118] sm:$0xff]  }
 0x67d   :  { %v4504_v23 = vmax.f32 %v4488_v29, 0.0  ;;  %19559 = vmatprep.mubr.msk.bf16.mxu0 %vm3543_vm4, %v24834_v38  ;;  %19997 = vmatprep.mubr.msk.bf16.mxu1 %vm3543_vm4, %v24834_v38  ;;  %v22841_v29 = vld [vmem:[%s27924_s27 + $0x128] sm:$0xff]  }
 0x67f   :  { %v24840_v14 = vpack.c.bf16 %v4505_v1, %v4504_v23  ;;  %v22842_v1 = vld [vmem:[%s27924_s27 + $0x130] sm:$0xff]   ;;  %v22843_v23 = vld [vmem:[%s27924_s27 + $0x138] sm:$0xff]  }
 0x681   :  { %19560 = vmatmul.mubr.msk.bf16.gmra.mrb[28].mxu0 %vm3543_vm4, %v24840_v14  ;;  %19998 = vmatmul.mubr.msk.bf16.gmra.mrb[60].mxu1 %vm3543_vm4, %v24840_v14 }
 0x682   :  { %19579 = vmatprep.mubr.bf16.mxu0 %v22836_v41  ;;  %v22844_v41 = vld [vmem:[%s27924_s27] sm:$0xff]  }
 0x73c   :  { %v19549_v44 = vpop.f32.mrb[16].mxu0  ;;  %v19987_v26 = vpop.f32.mrb[48].mxu1 }
 0x73d   :  { %v4577_v53 = vpop.f32.mrb[17].mxu0  ;;  %v7010_v15 = vpop.f32.mrb[49].mxu1 }
 0x73e   :  { %v19550_v40 = vpop.f32.mrb[18].mxu0  ;;  %v19988_v56 = vpop.f32.mrb[50].mxu1 }
 0x73f   :  { %v24849_v33 = vpack.c.bf16 %v19550_v40, %v19549_v44  ;;  %v24851_v45 = vpack.c.bf16 %v19988_v56, %v19987_v26  ;;  %v4580_v19 = vpop.f32.mrb[19].mxu0  ;;  %v7013_v28 = vpop.f32.mrb[51].mxu1  ;;  %v22845_v44 = vld [vmem:[%s27924_s27 + $0x8] sm:$0xff]   ;;  %v22846_v26 = vld [vmem:[%s27924_s27 + $0x10] sm:$0xff]  }
 0x740   :  { %v24853_v22 = vpack.c.bf16 %v4580_v19, %v4577_v53  ;;  %v24855_v34 = vpack.c.bf16 %v7013_v28, %v7010_v15  ;;  %v22847_v53 = vld [vmem:[%s27924_s27 + $0x18] sm:$0xff]   ;;  %v22848_v15 = vld [vmem:[%s27924_s27 + $0x20] sm:$0xff]   ;;  %v22849_v40 = vld [vmem:[%s27924_s27 + $0x28] sm:$0xff]  }
 0x741   :  { %v22850_v56 = vld [vmem:[%s27924_s27 + $0x30] sm:$0xff]   ;;  %v22851_v19 = vld [vmem:[%s27924_s27 + $0x38] sm:$0xff]   ;;  %v22852_v28 = vld [vmem:[%s27924_s27 + $0x200] sm:$0xff]  }
 0x742   :  { %19563 = vmatprep.subr.bf16.mxu0 %v24853_v22 }
 0x743   :  { %19564 = vmatpush3.bf16.msra.mxu0 %v24853_v22 }
 0x744   :  { %v19553_v58 = vpop.f32.mrb[20].mxu0  ;;  %19565 = vmatprep.subr.bf16.mxu0 %v24849_v33  ;;  %v19991_v6 = vpop.f32.mrb[52].mxu1 }
 0x745   :  { %v4593_v8 = vpop.f32.mrb[21].mxu0  ;;  %v7026_v46 = vpop.f32.mrb[53].mxu1 }
 0x746   :  { %v19554_v54 = vpop.f32.mrb[22].mxu0  ;;  %v19992_v0 = vpop.f32.mrb[54].mxu1 }
 0x747   :  { %v24860_v4 = vpack.c.bf16 %v19554_v54, %v19553_v58  ;;  %v24862_v43 = vpack.c.bf16 %v19992_v0, %v19991_v6  ;;  %v4596_v48 = vpop.f32.mrb[23].mxu0  ;;  %19566 = vmatpush3.bf16.msra.mxu0 %v24849_v33  ;;  %v7029_v61 = vpop.f32.mrb[55].mxu1  ;;  %v22853_v58 = vld [vmem:[%s27924_s27 + $0x208] sm:$0xff]   ;;  %v22854_v6 = vld [vmem:[%s27924_s27 + $0x210] sm:$0xff]   ;;  %v22859_v54 = vld [vmem:[%s27924_s27 + $0x238] sm:$0xff]  }
 0x748   :  { %v24865_v25 = vpack.c.bf16 %v4596_v48, %v4593_v8  ;;  %v24867_v39 = vpack.c.bf16 %v7029_v61, %v7026_v46  ;;  %v22855_v8 = vld [vmem:[%s27924_s27 + $0x218] sm:$0xff]   ;;  %v22856_v46 = vld [vmem:[%s27924_s27 + $0x220] sm:$0xff]   ;;  %v22861_v48 = vld [vmem:[%s27924_s27 + $0x308] sm:$0xff]  }
 0x749   :  { %v22860_v0 = vld [vmem:[%s27924_s27 + $0x300] sm:$0xff]   ;;  %v22862_v61 = vld [vmem:[%s27924_s27 + $0x310] sm:$0xff]  }
 0x74a   :  { %19567 = vmatprep.subr.bf16.mxu0 %v24865_v25 }
 0x74b   :  { %19568 = vmatpush3.bf16.msra.mxu0 %v24865_v25 }
 0x74c   :  { %v19557_v51 = vpop.f32.mrb[24].mxu0  ;;  %19569 = vmatprep.subr.bf16.mxu0 %v24860_v4  ;;  %v19995_v27 = vpop.f32.mrb[56].mxu1 }
 0x74d   :  { %v4609_v35 = vpop.f32.mrb[25].mxu0  ;;  %v7042_v24 = vpop.f32.mrb[57].mxu1 }
 0x74e   :  { %v19558_v30 = vpop.f32.mrb[26].mxu0  ;;  %v19996_v42 = vpop.f32.mrb[58].mxu1 }
 0x74f   :  { %v24872_v55 = vpack.c.bf16 %v19558_v30, %v19557_v51  ;;  %v24874_v59 = vpack.c.bf16 %v19996_v42, %v19995_v27  ;;  %v4612_v13 = vpop.f32.mrb[27].mxu0  ;;  %19570 = vmatpush3.bf16.msra.mxu0 %v24860_v4  ;;  %v7045_v50 = vpop.f32.mrb[59].mxu1  ;;  %v22863_v51 = vld [vmem:[%s27924_s27 + $0x318] sm:$0xff]   ;;  %v22864_v27 = vld [vmem:[%s27924_s27 + $0x320] sm:$0xff]  }
 0x750   :  { %v24877_v36 = vpack.c.bf16 %v4612_v13, %v4609_v35  ;;  %v24879_v9 = vpack.c.bf16 %v7045_v50, %v7042_v24  ;;  %v22865_v35 = vld [vmem:[%s27924_s27 + $0x328] sm:$0xff]   ;;  %v22866_v24 = vld [vmem:[%s27924_s27 + $0x330] sm:$0xff]   ;;  %v22867_v30 = vld [vmem:[%s27924_s27 + $0x338] sm:$0xff]  }
 0x751   :  { %v22868_v42 = vld [vmem:[%s27924_s27 + $0x40] sm:$0xff]  }
 0x752   :  { %19571 = vmatprep.subr.bf16.mxu0 %v24877_v36 }
 0x753   :  { %19572 = vmatpush3.bf16.msra.mxu0 %v24877_v36 }
 0x754   :  { %v19561_v49 = vpop.f32.mrb[28].mxu0  ;;  %19573 = vmatprep.subr.bf16.mxu0 %v24872_v55  ;;  %v19999_v7 = vpop.f32.mrb[60].mxu1 }
 0x755   :  { %v4625_v57 = vpop.f32.mrb[29].mxu0  ;;  %v7058_v31 = vpop.f32.mrb[61].mxu1 }
 0x756   :  { %v19562_v60 = vpop.f32.mrb[30].mxu0  ;;  %v20000_v2 = vpop.f32.mrb[62].mxu1 }
 0x757   :  { %v24884_v52 = vpack.c.bf16 %v19562_v60, %v19561_v49  ;;  %v24886_v12 = vpack.c.bf16 %v20000_v2, %v19999_v7  ;;  %v4628_v3 = vpop.f32.mrb[31].mxu0  ;;  %19574 = vmatpush3.bf16.msra.mxu0 %v24872_v55  ;;  %v7061_v20 = vpop.f32.mrb[63].mxu1 }
 0x758   :  { %v24889_v10 = vpack.c.bf16 %v4628_v3, %v4625_v57  ;;  %v24891_v16 = vpack.c.bf16 %v7061_v20, %v7058_v31 }
 0x75a   :  { %19575 = vmatprep.subr.bf16.mxu0 %v24889_v10 }
 0x75b   :  { %19576 = vmatpush3.bf16.msra.mxu0 %v24889_v10 }
 0x75c   :  { %19577 = vmatprep.subr.bf16.mxu0 %v24884_v52 }
 0x75f   :  { %19578 = vmatpush3.bf16.msra.mxu0 %v24884_v52 }
 0x760   :  { %19595 = vmatprep.subr.bf16.mxu0 %v24853_v22 }
 0x762   :  { %19580 = vmatmul.mubr.bf16.vlgmr.msra.gmra.mrb[32].mxu0 %v22837_v32 }
 0x763   :  { %19596 = vmatpush3.bf16.msra.mxu0 %v24853_v22  ;;  %19583 = vmatprep.mubr.bf16.mxu0 %v22838_v5 }
 0x764   :  { %19597 = vmatprep.subr.bf16.mxu0 %v24849_v33 }
 0x767   :  { %19598 = vmatpush3.bf16.msra.mxu0 %v24849_v33 }
 0x768   :  { %19599 = vmatprep.subr.bf16.mxu0 %v24865_v25 }
 0x76a   :  { %19584 = vmatmul.mubr.bf16.gmra.mrb[36].mxu0 %v22839_v17 }
 0x76b   :  { %19600 = vmatpush3.bf16.msra.mxu0 %v24865_v25  ;;  %19587 = vmatprep.mubr.bf16.mxu0 %v22840_v37 }
 0x76c   :  { %19601 = vmatprep.subr.bf16.mxu0 %v24860_v4 }
 0x76f   :  { %19602 = vmatpush3.bf16.msra.mxu0 %v24860_v4 }
 0x770   :  { %19603 = vmatprep.subr.bf16.mxu0 %v24877_v36 }
 0x772   :  { %19588 = vmatmul.mubr.bf16.gmra.mrb[40].mxu0 %v22841_v29 }
 0x773   :  { %19604 = vmatpush3.bf16.msra.mxu0 %v24877_v36  ;;  %19591 = vmatprep.mubr.bf16.mxu0 %v22842_v1 }
 0x774   :  { %19605 = vmatprep.subr.bf16.mxu0 %v24872_v55 }
 0x777   :  { %19606 = vmatpush3.bf16.msra.mxu0 %v24872_v55 }
 0x778   :  { %19607 = vmatprep.subr.bf16.mxu0 %v24889_v10 }
 0x77a   :  { %19592 = vmatmul.mubr.bf16.gmra.mrb[44].mxu0 %v22843_v23 }
 0x77b   :  { %19608 = vmatpush3.bf16.msra.mxu0 %v24889_v10  ;;  %19611 = vmatprep.mubr.bf16.mxu0 %v22844_v41 }
 0x77c   :  { %19609 = vmatprep.subr.bf16.mxu0 %v24884_v52 }
 0x77f   :  { %19610 = vmatpush3.bf16.msra.mxu0 %v24884_v52 }
 0x780   :  { %19627 = vmatprep.subr.bf16.mxu0 %v24853_v22 }
 0x782   :  { %19612 = vmatmul.mubr.bf16.vlgmr.msra.gmra.mrb[32].mxu0 %v22845_v44 }
 0x783   :  { %19628 = vmatpush3.bf16.msra.mxu0 %v24853_v22  ;;  %19615 = vmatprep.mubr.bf16.mxu0 %v22846_v26 }
 0x784   :  { %19629 = vmatprep.subr.bf16.mxu0 %v24849_v33 }
 0x787   :  { %19630 = vmatpush3.bf16.msra.mxu0 %v24849_v33 }
 0x788   :  { %19631 = vmatprep.subr.bf16.mxu0 %v24865_v25 }
 0x78a   :  { %19616 = vmatmul.mubr.bf16.gmra.mrb[36].mxu0 %v22847_v53  ;;  %v22869_v53 = vld [vmem:[%s27924_s27 + $0x48] sm:$0xff]  }
 0x78b   :  { %19632 = vmatpush3.bf16.msra.mxu0 %v24865_v25  ;;  %19619 = vmatprep.mubr.bf16.mxu0 %v22848_v15  ;;  %v22870_v15 = vld [vmem:[%s27924_s27 + $0x50] sm:$0xff]  }
 0x78c   :  { %19633 = vmatprep.subr.bf16.mxu0 %v24860_v4 }
 0x78f   :  { %19634 = vmatpush3.bf16.msra.mxu0 %v24860_v4 }
 0x790   :  { %19635 = vmatprep.subr.bf16.mxu0 %v24877_v36 }
 0x792   :  { %19620 = vmatmul.mubr.bf16.gmra.mrb[40].mxu0 %v22849_v40  ;;  %v22871_v40 = vld [vmem:[%s27924_s27 + $0x58] sm:$0xff]  }
 0x793   :  { %19636 = vmatpush3.bf16.msra.mxu0 %v24877_v36  ;;  %19623 = vmatprep.mubr.bf16.mxu0 %v22850_v56  ;;  %v22872_v56 = vld [vmem:[%s27924_s27 + $0x60] sm:$0xff]  }
 0x794   :  { %19637 = vmatprep.subr.bf16.mxu0 %v24872_v55 }
 0x797   :  { %19638 = vmatpush3.bf16.msra.mxu0 %v24872_v55 }
 0x798   :  { %19639 = vmatprep.subr.bf16.mxu0 %v24889_v10 }
 0x79a   :  { %19624 = vmatmul.mubr.bf16.gmra.mrb[44].mxu0 %v22851_v19  ;;  %v22873_v19 = vld [vmem:[%s27924_s27 + $0x68] sm:$0xff]  }
 0x79b   :  { %19640 = vmatpush3.bf16.msra.mxu0 %v24889_v10  ;;  %19643 = vmatprep.mubr.bf16.mxu0 %v22852_v28  ;;  %v22874_v28 = vld [vmem:[%s27924_s27 + $0x70] sm:$0xff]  }
 0x79c   :  { %19641 = vmatprep.subr.bf16.mxu0 %v24884_v52 }
 0x79f   :  { %19642 = vmatpush3.bf16.msra.mxu0 %v24884_v52 }
 0x7a0   :  { %19659 = vmatprep.subr.bf16.mxu0 %v24853_v22 }
 0x7a2   :  { %19644 = vmatmul.mubr.bf16.vlgmr.msra.gmra.mrb[32].mxu0 %v22853_v58  ;;  %v22875_v58 = vld [vmem:[%s27924_s27 + $0x78] sm:$0xff]  }
 0x7a3   :  { %19660 = vmatpush3.bf16.msra.mxu0 %v24853_v22  ;;  %19647 = vmatprep.mubr.bf16.mxu0 %v22854_v6  ;;  %v22857_v22 = vld [vmem:[%s27924_s27 + $0x228] sm:$0xff]   ;;  %v22876_v6 = vld [vmem:[%s27924_s27 + $0x140] sm:$0xff]  }
 0x7a4   :  { %19661 = vmatprep.subr.bf16.mxu0 %v24849_v33 }
 0x7a7   :  { %19662 = vmatpush3.bf16.msra.mxu0 %v24849_v33  ;;  %v22858_v33 = vld [vmem:[%s27924_s27 + $0x230] sm:$0xff]  }
 0x7a8   :  { %19663 = vmatprep.subr.bf16.mxu0 %v24865_v25 }
 0x7aa   :  { %19648 = vmatmul.mubr.bf16.gmra.mrb[36].mxu0 %v22855_v8  ;;  %v22877_v8 = vld [vmem:[%s27924_s27 + $0x148] sm:$0xff]  }
 0x7ab   :  { %19664 = vmatpush3.bf16.msra.mxu0 %v24865_v25  ;;  %19651 = vmatprep.mubr.bf16.mxu0 %v22856_v46  ;;  %v22878_v46 = vld [vmem:[%s27924_s27 + $0x150] sm:$0xff]  }
 0x7ac   :  { %19665 = vmatprep.subr.bf16.mxu0 %v24860_v4 }
 0x7af   :  { %19666 = vmatpush3.bf16.msra.mxu0 %v24860_v4  ;;  %v5328_v4 = vld [vmem:[#allocation4 + $0x4] sm:$0xf] }
 0x7b0   :  { %19667 = vmatprep.subr.bf16.mxu0 %v24877_v36  ;;  %v5330_v25 = vsel %vm4539_vm5, %v5328_v4, 0 }
 0x7b2   :  { %19652 = vmatmul.mubr.bf16.gmra.mrb[40].mxu0 %v22857_v22  ;;  %v22879_v22 = vld [vmem:[%s27924_s27 + $0x158] sm:$0xff]  }
 0x7b3   :  { %19668 = vmatpush3.bf16.msra.mxu0 %v24877_v36  ;;  %19655 = vmatprep.mubr.bf16.mxu0 %v22858_v33  ;;  %v22880_v33 = vld [vmem:[%s27924_s27 + $0x160] sm:$0xff]  }
 0x7b4   :  { %19669 = vmatprep.subr.bf16.mxu0 %v24872_v55 }
 0x7b7   :  { %19670 = vmatpush3.bf16.msra.mxu0 %v24872_v55 }
 0x7b8   :  { %19671 = vmatprep.subr.bf16.mxu0 %v24889_v10 }
 0x7ba   :  { %19656 = vmatmul.mubr.bf16.gmra.mrb[44].mxu0 %v22859_v54  ;;  %v22881_v54 = vld [vmem:[%s27924_s27 + $0x168] sm:$0xff]  }
 0x7bb   :  { %19672 = vmatpush3.bf16.msra.mxu0 %v24889_v10  ;;  %19675 = vmatprep.mubr.bf16.mxu0 %v22860_v0  ;;  %v22882_v0 = vld [vmem:[%s27924_s27 + $0x170] sm:$0xff]  }
 0x7bc   :  { %19673 = vmatprep.subr.bf16.mxu0 %v24884_v52 }
 0x7bf   :  { %19674 = vmatpush3.bf16.msra.mxu0 %v24884_v52 }
 0x7c0   :  { %22686 = vmatprep.subr.msk.bf16.mxu0 %vm4539_vm5, %v5328_v4  ;;  %v22883_v4 = vld [vmem:[%s27924_s27 + $0x178] sm:$0xff]  }
 0x7c2   :  { %19676 = vmatmul.mubr.bf16.vlgmr.msra.gmra.mrb[32].mxu0 %v22861_v48  ;;  %v22884_v48 = vld [vmem:[%s27924_s27 + $0x240] sm:$0xff]  }
 0x7c3   :  { %19679 = vmatprep.mubr.bf16.mxu0 %v22862_v61  ;;  %19692 = vmatpush3.bf16.msra.mxu0 %v5330_v25  ;;  %v22885_v61 = vld [vmem:[%s27924_s27 + $0x248] sm:$0xff]   ;;  %v22886_v25 = vld [vmem:[%s27924_s27 + $0x250] sm:$0xff]  }
 0x7ca   :  { %19680 = vmatmul.mubr.bf16.gmra.mrb[36].mxu0 %v22863_v51  ;;  %v22887_v51 = vld [vmem:[%s27924_s27 + $0x258] sm:$0xff]  }
 0x7cb   :  { %19683 = vmatprep.mubr.bf16.mxu0 %v22864_v27  ;;  %v22888_v27 = vld [vmem:[%s27924_s27 + $0x260] sm:$0xff]  }
 0x7d2   :  { %19684 = vmatmul.mubr.bf16.gmra.mrb[40].mxu0 %v22865_v35  ;;  %v22889_v35 = vld [vmem:[%s27924_s27 + $0x268] sm:$0xff]  }
 0x7d3   :  { %19687 = vmatprep.mubr.bf16.mxu0 %v22866_v24  ;;  %v22890_v24 = vld [vmem:[%s27924_s27 + $0x270] sm:$0xff]  }
 0x7da   :  { %19688 = vmatmul.mubr.bf16.gmra.mrb[44].mxu0 %v22867_v30  ;;  %v22891_v30 = vld [vmem:[%s27924_s27 + $0x278] sm:$0xff]  }
 0x7db   :  { %19693 = vmatprep.mubr.msk.bf16.mxu0 %vm3543_vm4, %v24758_v47 }
 0x7e2   :  { %19694 = vmatmul.mubr.msk.bf16.vlgmr.msra.gmra.mrb[48].mxu0 %vm3543_vm4, %v24769_v18 }
 0x7e3   :  { %19697 = vmatprep.mubr.msk.bf16.mxu0 %vm3543_vm4, %v24784_v21 }
 0x7ea   :  { %19698 = vmatmul.mubr.msk.bf16.gmra.mrb[52].mxu0 %vm3543_vm4, %v24798_v63 }
 0x7eb   :  { %19701 = vmatprep.mubr.msk.bf16.mxu0 %vm3543_vm4, %v24812_v62 }
 0x7f2   :  { %19702 = vmatmul.mubr.msk.bf16.gmra.mrb[56].mxu0 %vm3543_vm4, %v24826_v11 }
 0x7f3   :  { %19705 = vmatprep.mubr.msk.bf16.mxu0 %vm3543_vm4, %v24834_v38 }
 0x7fa   :  { %19706 = vmatmul.mubr.msk.bf16.gmra.mrb[60].mxu0 %vm3543_vm4, %v24840_v14 }
 0x7fb   :  { %19725 = vmatprep.mubr.bf16.mxu0 %v22868_v42  ;;  %v22892_v42 = vld [vmem:[%s27924_s27 + $0x340] sm:$0xff]  }
 0x8b5   :  { %v19695_v55 = vpop.f32.mrb[48].mxu0 }
 0x8b6   :  { %v5366_v13 = vpop.f32.mrb[49].mxu0 }
 0x8b7   :  { %v19696_v50 = vpop.f32.mrb[50].mxu0 }
 0x8b8   :  { %v25059_v36 = vpack.c.bf16 %v19696_v50, %v19695_v55  ;;  %v5369_v49 = vpop.f32.mrb[51].mxu0  ;;  %v6150_v55 = vld [vmem:[#allocation4 + $0x8] sm:$0xf]  ;;  %v22894_v50 = vld [vmem:[%s27924_s27 + $0x350] sm:$0xff]  }
 0x8b9   :  { %v25061_v7 = vpack.c.bf16 %v5369_v49, %v5366_v13  ;;  %v22893_v13 = vld [vmem:[%s27924_s27 + $0x348] sm:$0xff]   ;;  %v22895_v49 = vld [vmem:[%s27924_s27 + $0x358] sm:$0xff]  }
 0x8bb   :  { %19709 = vmatprep.subr.bf16.mxu0 %v25061_v7 }
 0x8bc   :  { %19710 = vmatpush3.bf16.msra.mxu0 %v25061_v7 }
 0x8bd   :  { %v19699_v57 = vpop.f32.mrb[52].mxu0  ;;  %19711 = vmatprep.subr.bf16.mxu0 %v25059_v36 }
 0x8be   :  { %v5382_v31 = vpop.f32.mrb[53].mxu0 }
 0x8bf   :  { %v19700_v60 = vpop.f32.mrb[54].mxu0 }
 0x8c0   :  { %v25066_v2 = vpack.c.bf16 %v19700_v60, %v19699_v57  ;;  %v5385_v52 = vpop.f32.mrb[55].mxu0  ;;  %19712 = vmatpush3.bf16.msra.mxu0 %v25059_v36  ;;  %v22897_v57 = vld [vmem:[%s27924_s27 + $0x368] sm:$0xff]   ;;  %v22899_v60 = vld [vmem:[%s27924_s27 + $0x378] sm:$0xff]  }
 0x8c1   :  { %v25069_v3 = vpack.c.bf16 %v5385_v52, %v5382_v31  ;;  %v22898_v31 = vld [vmem:[%s27924_s27 + $0x370] sm:$0xff]  }
 0x8c3   :  { %19713 = vmatprep.subr.bf16.mxu0 %v25069_v3 }
 0x8c4   :  { %19714 = vmatpush3.bf16.msra.mxu0 %v25069_v3 }
 0x8c5   :  { %v19703_v20 = vpop.f32.mrb[56].mxu0  ;;  %19715 = vmatprep.subr.bf16.mxu0 %v25066_v2 }
 0x8c6   :  { %v5398_v10 = vpop.f32.mrb[57].mxu0 }
 0x8c7   :  { %v19704_v32 = vpop.f32.mrb[58].mxu0 }
 0x8c8   :  { %v25074_v5 = vpack.c.bf16 %v19704_v32, %v19703_v20  ;;  %v5401_v17 = vpop.f32.mrb[59].mxu0  ;;  %19716 = vmatpush3.bf16.msra.mxu0 %v25066_v2 }
 0x8c9   :  { %v25077_v37 = vpack.c.bf16 %v5401_v17, %v5398_v10 }
 0x8cb   :  { %19717 = vmatprep.subr.bf16.mxu0 %v25077_v37 }
 0x8cc   :  { %19718 = vmatpush3.bf16.msra.mxu0 %v25077_v37 }
 0x8cd   :  { %v19707_v29 = vpop.f32.mrb[60].mxu0  ;;  %19719 = vmatprep.subr.bf16.mxu0 %v25074_v5 }
 0x8ce   :  { %v5414_v1 = vpop.f32.mrb[61].mxu0 }
 0x8cf   :  { %v19708_v23 = vpop.f32.mrb[62].mxu0 }
 0x8d0   :  { %v25082_v41 = vpack.c.bf16 %v19708_v23, %v19707_v29  ;;  %v5417_v44 = vpop.f32.mrb[63].mxu0  ;;  %19720 = vmatpush3.bf16.msra.mxu0 %v25074_v5 }
 0x8d1   :  { %v25085_v26 = vpack.c.bf16 %v5417_v44, %v5414_v1 }
 0x8d3   :  { %19721 = vmatprep.subr.bf16.mxu0 %v25085_v26 }
 0x8d4   :  { %19722 = vmatpush3.bf16.msra.mxu0 %v25085_v26 }
 0x8d5   :  { %19723 = vmatprep.subr.bf16.mxu0 %v25082_v41 }
 0x8d8   :  { %19724 = vmatpush3.bf16.msra.mxu0 %v25082_v41 }
 0x8d9   :  { %19741 = vmatprep.subr.bf16.mxu0 %v25061_v7 }
 0x8db   :  { %19726 = vmatmul.mubr.bf16.vlgmr.msra.gmra.mrb[32].mxu0 %v22869_v53 }
 0x8dc   :  { %19742 = vmatpush3.bf16.msra.mxu0 %v25061_v7  ;;  %19729 = vmatprep.mubr.bf16.mxu0 %v22870_v15 }
 0x8dd   :  { %19743 = vmatprep.subr.bf16.mxu0 %v25059_v36 }
 0x8e0   :  { %19744 = vmatpush3.bf16.msra.mxu0 %v25059_v36 }
 0x8e1   :  { %19745 = vmatprep.subr.bf16.mxu0 %v25069_v3 }
 0x8e3   :  { %19730 = vmatmul.mubr.bf16.gmra.mrb[36].mxu0 %v22871_v40  ;;  %v22901_v40 = vld [vmem:[%s27924_s27 + $0x88] sm:$0xff]  }
 0x8e4   :  { %19746 = vmatpush3.bf16.msra.mxu0 %v25069_v3  ;;  %19733 = vmatprep.mubr.bf16.mxu0 %v22872_v56  ;;  %v22902_v56 = vld [vmem:[%s27924_s27 + $0x90] sm:$0xff]  }
 0x8e5   :  { %19747 = vmatprep.subr.bf16.mxu0 %v25066_v2 }
 0x8e8   :  { %19748 = vmatpush3.bf16.msra.mxu0 %v25066_v2 }
 0x8e9   :  { %19749 = vmatprep.subr.bf16.mxu0 %v25077_v37 }
 0x8eb   :  { %19734 = vmatmul.mubr.bf16.gmra.mrb[40].mxu0 %v22873_v19  ;;  %v22903_v19 = vld [vmem:[%s27924_s27 + $0x98] sm:$0xff]  }
 0x8ec   :  { %19750 = vmatpush3.bf16.msra.mxu0 %v25077_v37  ;;  %19737 = vmatprep.mubr.bf16.mxu0 %v22874_v28  ;;  %v22904_v28 = vld [vmem:[%s27924_s27 + $0xa0] sm:$0xff]  }
 0x8ed   :  { %19751 = vmatprep.subr.bf16.mxu0 %v25074_v5 }
 0x8f0   :  { %19752 = vmatpush3.bf16.msra.mxu0 %v25074_v5 }
 0x8f1   :  { %19753 = vmatprep.subr.bf16.mxu0 %v25085_v26 }
 0x8f3   :  { %19738 = vmatmul.mubr.bf16.gmra.mrb[44].mxu0 %v22875_v58  ;;  %v22905_v58 = vld [vmem:[%s27924_s27 + $0xa8] sm:$0xff]  }
 0x8f4   :  { %19754 = vmatpush3.bf16.msra.mxu0 %v25085_v26  ;;  %19757 = vmatprep.mubr.bf16.mxu0 %v22876_v6  ;;  %v22906_v6 = vld [vmem:[%s27924_s27 + $0xb0] sm:$0xff]  }
 0x8f5   :  { %19755 = vmatprep.subr.bf16.mxu0 %v25082_v41 }
 0x8f8   :  { %19756 = vmatpush3.bf16.msra.mxu0 %v25082_v41 }
 0x8f9   :  { %19773 = vmatprep.subr.bf16.mxu0 %v25061_v7 }
 0x8fb   :  { %19758 = vmatmul.mubr.bf16.vlgmr.msra.gmra.mrb[32].mxu0 %v22877_v8  ;;  %v22907_v8 = vld [vmem:[%s27924_s27 + $0xb8] sm:$0xff]  }
 0x8fc   :  { %19774 = vmatpush3.bf16.msra.mxu0 %v25061_v7  ;;  %19761 = vmatprep.mubr.bf16.mxu0 %v22878_v46  ;;  %v22908_v46 = vld [vmem:[%s27924_s27 + $0x180] sm:$0xff]  }
 0x8fd   :  { %19775 = vmatprep.subr.bf16.mxu0 %v25059_v36 }
 0x900   :  { %19776 = vmatpush3.bf16.msra.mxu0 %v25059_v36 }
 0x901   :  { %19777 = vmatprep.subr.bf16.mxu0 %v25069_v3 }
 0x903   :  { %19762 = vmatmul.mubr.bf16.gmra.mrb[36].mxu0 %v22879_v22  ;;  %v22909_v22 = vld [vmem:[%s27924_s27 + $0x188] sm:$0xff]  }
 0x904   :  { %19778 = vmatpush3.bf16.msra.mxu0 %v25069_v3  ;;  %19765 = vmatprep.mubr.bf16.mxu0 %v22880_v33  ;;  %v22910_v33 = vld [vmem:[%s27924_s27 + $0x190] sm:$0xff]  }
 0x905   :  { %19779 = vmatprep.subr.bf16.mxu0 %v25066_v2 }
 0x908   :  { %19780 = vmatpush3.bf16.msra.mxu0 %v25066_v2 }
 0x909   :  { %19781 = vmatprep.subr.bf16.mxu0 %v25077_v37 }
 0x90b   :  { %19766 = vmatmul.mubr.bf16.gmra.mrb[40].mxu0 %v22881_v54  ;;  %v22911_v54 = vld [vmem:[%s27924_s27 + $0x198] sm:$0xff]  }
 0x90c   :  { %19782 = vmatpush3.bf16.msra.mxu0 %v25077_v37  ;;  %19769 = vmatprep.mubr.bf16.mxu0 %v22882_v0  ;;  %v22912_v0 = vld [vmem:[%s27924_s27 + $0x1a0] sm:$0xff]  }
 0x90d   :  { %19783 = vmatprep.subr.bf16.mxu0 %v25074_v5 }
 0x910   :  { %19784 = vmatpush3.bf16.msra.mxu0 %v25074_v5 }
 0x911   :  { %19785 = vmatprep.subr.bf16.mxu0 %v25085_v26 }
 0x913   :  { %19770 = vmatmul.mubr.bf16.gmra.mrb[44].mxu0 %v22883_v4  ;;  %v22913_v4 = vld [vmem:[%s27924_s27 + $0x1a8] sm:$0xff]  }
 0x914   :  { %19786 = vmatpush3.bf16.msra.mxu0 %v25085_v26  ;;  %19789 = vmatprep.mubr.bf16.mxu0 %v22884_v48  ;;  %v22914_v48 = vld [vmem:[%s27924_s27 + $0x1b0] sm:$0xff]  }
 0x915   :  { %19787 = vmatprep.subr.bf16.mxu0 %v25082_v41 }
 0x918   :  { %19788 = vmatpush3.bf16.msra.mxu0 %v25082_v41 }
 0x919   :  { %19805 = vmatprep.subr.bf16.mxu0 %v25061_v7 }
 0x91b   :  { %19790 = vmatmul.mubr.bf16.vlgmr.msra.gmra.mrb[32].mxu0 %v22885_v61  ;;  %v22915_v61 = vld [vmem:[%s27924_s27 + $0x1b8] sm:$0xff]  }
 0x91c   :  { %19806 = vmatpush3.bf16.msra.mxu0 %v25061_v7  ;;  %19793 = vmatprep.mubr.bf16.mxu0 %v22886_v25  ;;  %v22896_v7 = vld [vmem:[%s27924_s27 + $0x360] sm:$0xff]  }
 0x91d   :  { %19807 = vmatprep.subr.bf16.mxu0 %v25059_v36  ;;  %v22916_v25 = vld [vmem:[%s27924_s27 + $0x280] sm:$0xff]  }
 0x920   :  { %19808 = vmatpush3.bf16.msra.mxu0 %v25059_v36  ;;  %v6152_v36 = vsel %vm4539_vm5, %v6150_v55, 0 }
 0x921   :  { %19809 = vmatprep.subr.bf16.mxu0 %v25069_v3 }
 0x923   :  { %19794 = vmatmul.mubr.bf16.gmra.mrb[36].mxu0 %v22887_v51  ;;  %v22917_v51 = vld [vmem:[%s27924_s27 + $0x288] sm:$0xff]  }
 0x924   :  { %19810 = vmatpush3.bf16.msra.mxu0 %v25069_v3  ;;  %19797 = vmatprep.mubr.bf16.mxu0 %v22888_v27  ;;  %v22918_v27 = vld [vmem:[%s27924_s27 + $0x290] sm:$0xff]  }
 0x925   :  { %19811 = vmatprep.subr.bf16.mxu0 %v25066_v2 }
 0x928   :  { %19812 = vmatpush3.bf16.msra.mxu0 %v25066_v2 }
 0x929   :  { %19813 = vmatprep.subr.bf16.mxu0 %v25077_v37 }
 0x92b   :  { %19798 = vmatmul.mubr.bf16.gmra.mrb[40].mxu0 %v22889_v35  ;;  %v22919_v35 = vld [vmem:[%s27924_s27 + $0x298] sm:$0xff]  }
 0x92c   :  { %19814 = vmatpush3.bf16.msra.mxu0 %v25077_v37  ;;  %19801 = vmatprep.mubr.bf16.mxu0 %v22890_v24  ;;  %v22920_v24 = vld [vmem:[%s27924_s27 + $0x2a0] sm:$0xff]  }
 0x92d   :  { %19815 = vmatprep.subr.bf16.mxu0 %v25074_v5 }
 0x930   :  { %19816 = vmatpush3.bf16.msra.mxu0 %v25074_v5 }
 0x931   :  { %19817 = vmatprep.subr.bf16.mxu0 %v25085_v26 }
 0x933   :  { %19802 = vmatmul.mubr.bf16.gmra.mrb[44].mxu0 %v22891_v30  ;;  %v22921_v30 = vld [vmem:[%s27924_s27 + $0x2a8] sm:$0xff]  }
 0x934   :  { %19818 = vmatpush3.bf16.msra.mxu0 %v25085_v26  ;;  %19821 = vmatprep.mubr.bf16.mxu0 %v22892_v42  ;;  %v22922_v42 = vld [vmem:[%s27924_s27 + $0x2b0] sm:$0xff]  }
 0x935   :  { %19819 = vmatprep.subr.bf16.mxu0 %v25082_v41 }
 0x938   :  { %19820 = vmatpush3.bf16.msra.mxu0 %v25082_v41 }
 0x939   :  { %22687 = vmatprep.subr.msk.bf16.mxu0 %vm4539_vm5, %v6150_v55  ;;  %v22923_v55 = vld [vmem:[%s27924_s27 + $0x2b8] sm:$0xff]  }
 0x93b   :  { %19822 = vmatmul.mubr.bf16.vlgmr.msra.gmra.mrb[32].mxu0 %v22893_v13  ;;  %v22924_v13 = vld [vmem:[%s27924_s27 + $0x380] sm:$0xff]  }
 0x93c   :  { %19825 = vmatprep.mubr.bf16.mxu0 %v22894_v50  ;;  %19838 = vmatpush3.bf16.msra.mxu0 %v6152_v36  ;;  %v22925_v50 = vld [vmem:[%s27924_s27 + $0x388] sm:$0xff]   ;;  %v22926_v36 = vld [vmem:[%s27924_s27 + $0x390] sm:$0xff]  }
 0x943   :  { %19826 = vmatmul.mubr.bf16.gmra.mrb[36].mxu0 %v22895_v49  ;;  %v22927_v49 = vld [vmem:[%s27924_s27 + $0x398] sm:$0xff]  }
 0x944   :  { %19829 = vmatprep.mubr.bf16.mxu0 %v22896_v7  ;;  %v22928_v7 = vld [vmem:[%s27924_s27 + $0x3a0] sm:$0xff]  }
 0x94b   :  { %19830 = vmatmul.mubr.bf16.gmra.mrb[40].mxu0 %v22897_v57  ;;  %v22929_v57 = vld [vmem:[%s27924_s27 + $0x3a8] sm:$0xff]  }
 0x94c   :  { %19833 = vmatprep.mubr.bf16.mxu0 %v22898_v31  ;;  %v22930_v31 = vld [vmem:[%s27924_s27 + $0x3b0] sm:$0xff]  }
 0x953   :  { %19834 = vmatmul.mubr.bf16.gmra.mrb[44].mxu0 %v22899_v60  ;;  %v22931_v60 = vld [vmem:[%s27924_s27 + $0x3b8] sm:$0xff]  }
 0x954   :  { %19839 = vmatprep.mubr.msk.bf16.mxu0 %vm3543_vm4, %v24758_v47  ;;  %v22900_v47 = vld [vmem:[%s27924_s27 + $0x80] sm:$0xff]  }
 0x95b   :  { %19840 = vmatmul.mubr.msk.bf16.vlgmr.msra.gmra.mrb[64].mxu0 %vm3543_vm4, %v24769_v18 }
 0x95c   :  { %19843 = vmatprep.mubr.msk.bf16.mxu0 %vm3543_vm4, %v24784_v21 }
 0x963   :  { %19844 = vmatmul.mubr.msk.bf16.gmra.mrb[68].mxu0 %vm3543_vm4, %v24798_v63 }
 0x964   :  { %19847 = vmatprep.mubr.msk.bf16.mxu0 %vm3543_vm4, %v24812_v62 }
 0x96b   :  { %19848 = vmatmul.mubr.msk.bf16.gmra.mrb[72].mxu0 %vm3543_vm4, %v24826_v11 }
 0x96c   :  { %19851 = vmatprep.mubr.msk.bf16.mxu0 %vm3543_vm4, %v24834_v38 }
 0x973   :  { %19852 = vmatmul.mubr.msk.bf16.gmra.mrb[76].mxu0 %vm3543_vm4, %v24840_v14 }
 0x974   :  { %19871 = vmatprep.mubr.bf16.mxu0 %v22900_v47  ;;  %v22932_v47 = vld [vmem:[%s27924_s27 + $0xc0] sm:$0xff]  }
 0xa2e   :  { %v19841_v18 = vpop.f32.mrb[64].mxu0 }
 0xa2f   :  { %v6188_v21 = vpop.f32.mrb[65].mxu0 }
 0xa30   :  { %v19842_v63 = vpop.f32.mrb[66].mxu0 }
 0xa31   :  { %v25253_v2 = vpack.c.bf16 %v19842_v63, %v19841_v18  ;;  %v6191_v62 = vpop.f32.mrb[67].mxu0  ;;  %v22933_v18 = vld [vmem:[%s27924_s27 + $0xc8] sm:$0xff]   ;;  %v22935_v63 = vld [vmem:[%s27924_s27 + $0xd8] sm:$0xff]  }
 0xa32   :  { %v25255_v52 = vpack.c.bf16 %v6191_v62, %v6188_v21  ;;  %v22934_v21 = vld [vmem:[%s27924_s27 + $0xd0] sm:$0xff]   ;;  %v22937_v62 = vld [vmem:[%s27924_s27 + $0xe8] sm:$0xff]  }
 0xa34   :  { %19855 = vmatprep.subr.bf16.mxu0 %v25255_v52 }
 0xa35   :  { %19856 = vmatpush3.bf16.msra.mxu0 %v25255_v52 }
 0xa36   :  { %v19845_v11 = vpop.f32.mrb[68].mxu0  ;;  %19857 = vmatprep.subr.bf16.mxu0 %v25253_v2 }
 0xa37   :  { %v6204_v38 = vpop.f32.mrb[69].mxu0 }
 0xa38   :  { %v19846_v14 = vpop.f32.mrb[70].mxu0 }
 0xa39   :  { %v25260_v3 = vpack.c.bf16 %v19846_v14, %v19845_v11  ;;  %v6207_v20 = vpop.f32.mrb[71].mxu0  ;;  %19858 = vmatpush3.bf16.msra.mxu0 %v25253_v2  ;;  %v22939_v11 = vld [vmem:[%s27924_s27 + $0xf8] sm:$0xff]   ;;  %v22941_v14 = vld [vmem:[%s27924_s27 + $0x1c8] sm:$0xff]  }
 0xa3a   :  { %v25263_v10 = vpack.c.bf16 %v6207_v20, %v6204_v38  ;;  %v22940_v38 = vld [vmem:[%s27924_s27 + $0x1c0] sm:$0xff]   ;;  %v22943_v20 = vld [vmem:[%s27924_s27 + $0x1d8] sm:$0xff]  }
 0xa3c   :  { %19859 = vmatprep.subr.bf16.mxu0 %v25263_v10 }
 0xa3d   :  { %19860 = vmatpush3.bf16.msra.mxu0 %v25263_v10 }
 0xa3e   :  { %v19849_v32 = vpop.f32.mrb[72].mxu0  ;;  %19861 = vmatprep.subr.bf16.mxu0 %v25260_v3 }
 0xa3f   :  { %v6220_v5 = vpop.f32.mrb[73].mxu0 }
 0xa40   :  { %v19850_v17 = vpop.f32.mrb[74].mxu0 }
 0xa41   :  { %v25268_v37 = vpack.c.bf16 %v19850_v17, %v19849_v32  ;;  %v6223_v29 = vpop.f32.mrb[75].mxu0  ;;  %19862 = vmatpush3.bf16.msra.mxu0 %v25260_v3  ;;  %v22945_v32 = vld [vmem:[%s27924_s27 + $0x1e8] sm:$0xff]   ;;  %v22947_v17 = vld [vmem:[%s27924_s27 + $0x1f8] sm:$0xff]  }
 0xa42   :  { %v25271_v1 = vpack.c.bf16 %v6223_v29, %v6220_v5  ;;  %v22946_v5 = vld [vmem:[%s27924_s27 + $0x1f0] sm:$0xff]   ;;  %v22949_v29 = vld [vmem:[%s27924_s27 + $0x2c8] sm:$0xff]  }
 0xa44   :  { %19863 = vmatprep.subr.bf16.mxu0 %v25271_v1 }
 0xa45   :  { %19864 = vmatpush3.bf16.msra.mxu0 %v25271_v1 }
 0xa46   :  { %v19853_v23 = vpop.f32.mrb[76].mxu0  ;;  %19865 = vmatprep.subr.bf16.mxu0 %v25268_v37 }
 0xa47   :  { %v6236_v41 = vpop.f32.mrb[77].mxu0 }
 0xa48   :  { %v19854_v44 = vpop.f32.mrb[78].mxu0 }
 0xa49   :  { %v25276_v26 = vpack.c.bf16 %v19854_v44, %v19853_v23  ;;  %v6239_v53 = vpop.f32.mrb[79].mxu0  ;;  %19866 = vmatpush3.bf16.msra.mxu0 %v25268_v37  ;;  %v22951_v23 = vld [vmem:[%s27924_s27 + $0x2d8] sm:$0xff]  }
 0xa4a   :  { %v25279_v15 = vpack.c.bf16 %v6239_v53, %v6236_v41  ;;  %v22952_v41 = vld [vmem:[%s27924_s27 + $0x2e0] sm:$0xff]   ;;  %v22959_v44 = vld [vmem:[%s27924_s27 + $0x3d8] sm:$0xff]  }
 0xa4b   :  { %v22963_v53 = vld [vmem:[%s27924_s27 + $0x3f8] sm:$0xff]  }
 0xa4c   :  { %19867 = vmatprep.subr.bf16.mxu0 %v25279_v15 }
 0xa4d   :  { %19868 = vmatpush3.bf16.msra.mxu0 %v25279_v15 }
 0xa4e   :  { %19869 = vmatprep.subr.bf16.mxu0 %v25276_v26 }
 0xa51   :  { %19870 = vmatpush3.bf16.msra.mxu0 %v25276_v26 }
 0xa52   :  { %19887 = vmatprep.subr.bf16.mxu0 %v25255_v52 }
 0xa54   :  { %19872 = vmatmul.mubr.bf16.vlgmr.msra.gmra.mrb[32].mxu0 %v22901_v40  ;;  %v7817_v40 = vpop.permute.xlu1 %7816 }
 0xa55   :  { %19888 = vmatpush3.bf16.msra.mxu0 %v25255_v52  ;;  %19875 = vmatprep.mubr.bf16.mxu0 %v22902_v56 }
 0xa56   :  { %19889 = vmatprep.subr.bf16.mxu0 %v25253_v2 }
 0xa59   :  { %19890 = vmatpush3.bf16.msra.mxu0 %v25253_v2 }
 0xa5a   :  { %19891 = vmatprep.subr.bf16.mxu0 %v25263_v10 }
 0xa5c   :  { %19876 = vmatmul.mubr.bf16.gmra.mrb[36].mxu0 %v22903_v19  ;;  %v7827_v19 = vpop.permute.xlu1 %7826 }
 0xa5d   :  { %19892 = vmatpush3.bf16.msra.mxu0 %v25263_v10  ;;  %19879 = vmatprep.mubr.bf16.mxu0 %v22904_v28 }
 0xa5e   :  { %19893 = vmatprep.subr.bf16.mxu0 %v25260_v3 }
 0xa61   :  { %19894 = vmatpush3.bf16.msra.mxu0 %v25260_v3 }
 0xa62   :  { %19895 = vmatprep.subr.bf16.mxu0 %v25271_v1 }
 0xa64   :  { %19880 = vmatmul.mubr.bf16.gmra.mrb[40].mxu0 %v22905_v58 }
 0xa65   :  { %19896 = vmatpush3.bf16.msra.mxu0 %v25271_v1  ;;  %19883 = vmatprep.mubr.bf16.mxu0 %v22906_v6  ;;  %v7837_v6 = vpop.permute.xlu1 %7836 }
 0xa66   :  { %19897 = vmatprep.subr.bf16.mxu0 %v25268_v37 }
 0xa69   :  { %19898 = vmatpush3.bf16.msra.mxu0 %v25268_v37 }
 0xa6a   :  { %19899 = vmatprep.subr.bf16.mxu0 %v25279_v15 }
 0xa6c   :  { %19884 = vmatmul.mubr.bf16.gmra.mrb[44].mxu0 %v22907_v8 }
 0xa6d   :  { %19900 = vmatpush3.bf16.msra.mxu0 %v25279_v15  ;;  %19903 = vmatprep.mubr.bf16.mxu0 %v22908_v46 }
 0xa6e   :  { %19901 = vmatprep.subr.bf16.mxu0 %v25276_v26 }
 0xa71   :  { %19902 = vmatpush3.bf16.msra.mxu0 %v25276_v26 }
 0xa72   :  { %19919 = vmatprep.subr.bf16.mxu0 %v25255_v52 }
 0xa74   :  { %19904 = vmatmul.mubr.bf16.vlgmr.msra.gmra.mrb[32].mxu0 %v22909_v22 }
 0xa75   :  { %19920 = vmatpush3.bf16.msra.mxu0 %v25255_v52  ;;  %19907 = vmatprep.mubr.bf16.mxu0 %v22910_v33 }
 0xa76   :  { %19921 = vmatprep.subr.bf16.mxu0 %v25253_v2 }
 0xa79   :  { %19922 = vmatpush3.bf16.msra.mxu0 %v25253_v2 }
 0xa7a   :  { %19923 = vmatprep.subr.bf16.mxu0 %v25263_v10 }
 0xa7c   :  { %19908 = vmatmul.mubr.bf16.gmra.mrb[36].mxu0 %v22911_v54 }
 0xa7d   :  { %19924 = vmatpush3.bf16.msra.mxu0 %v25263_v10  ;;  %19911 = vmatprep.mubr.bf16.mxu0 %v22912_v0 }
 0xa7e   :  { %19925 = vmatprep.subr.bf16.mxu0 %v25260_v3 }
 0xa81   :  { %19926 = vmatpush3.bf16.msra.mxu0 %v25260_v3 }
 0xa82   :  { %19927 = vmatprep.subr.bf16.mxu0 %v25271_v1 }
 0xa84   :  { %19912 = vmatmul.mubr.bf16.gmra.mrb[40].mxu0 %v22913_v4 }
 0xa85   :  { %19928 = vmatpush3.bf16.msra.mxu0 %v25271_v1  ;;  %19915 = vmatprep.mubr.bf16.mxu0 %v22914_v48 }
 0xa86   :  { %19929 = vmatprep.subr.bf16.mxu0 %v25268_v37 }
 0xa89   :  { %19930 = vmatpush3.bf16.msra.mxu0 %v25268_v37 }
 0xa8a   :  { %19931 = vmatprep.subr.bf16.mxu0 %v25279_v15 }
 0xa8c   :  { %19916 = vmatmul.mubr.bf16.gmra.mrb[44].mxu0 %v22915_v61 }
 0xa8d   :  { %19932 = vmatpush3.bf16.msra.mxu0 %v25279_v15  ;;  %19935 = vmatprep.mubr.bf16.mxu0 %v22916_v25  ;;  %v7847_v25 = vpop.permute.xlu1 %7846 }
 0xa8e   :  { %19933 = vmatprep.subr.bf16.mxu0 %v25276_v26 }
 0xa91   :  { %19934 = vmatpush3.bf16.msra.mxu0 %v25276_v26 }
 0xa92   :  { %19951 = vmatprep.subr.bf16.mxu0 %v25255_v52 }
 0xa94   :  { %19936 = vmatmul.mubr.bf16.vlgmr.msra.gmra.mrb[32].mxu0 %v22917_v51 }
 0xa95   :  { %19952 = vmatpush3.bf16.msra.mxu0 %v25255_v52  ;;  %19939 = vmatprep.mubr.bf16.mxu0 %v22918_v27  ;;  %v22938_v52 = vld [vmem:[%s27924_s27 + $0xf0] sm:$0xff]  }
 0xa96   :  { %19953 = vmatprep.subr.bf16.mxu0 %v25253_v2 }
 0xa99   :  { %19954 = vmatpush3.bf16.msra.mxu0 %v25253_v2  ;;  %v22936_v2 = vld [vmem:[%s27924_s27 + $0xe0] sm:$0xff]  }
 0xa9a   :  { %19955 = vmatprep.subr.bf16.mxu0 %v25263_v10 }
 0xa9c   :  { %19940 = vmatmul.mubr.bf16.gmra.mrb[36].mxu0 %v22919_v35 }
 0xa9d   :  { %19956 = vmatpush3.bf16.msra.mxu0 %v25263_v10  ;;  %19943 = vmatprep.mubr.bf16.mxu0 %v22920_v24  ;;  %v22944_v10 = vld [vmem:[%s27924_s27 + $0x1e0] sm:$0xff]  }
 0xa9e   :  { %19957 = vmatprep.subr.bf16.mxu0 %v25260_v3 }
 0xaa1   :  { %19958 = vmatpush3.bf16.msra.mxu0 %v25260_v3  ;;  %v22942_v3 = vld [vmem:[%s27924_s27 + $0x1d0] sm:$0xff]  }
 0xaa2   :  { %19959 = vmatprep.subr.bf16.mxu0 %v25271_v1 }
 0xaa4   :  { %19944 = vmatmul.mubr.bf16.gmra.mrb[40].mxu0 %v22921_v30 }
 0xaa5   :  { %19960 = vmatpush3.bf16.msra.mxu0 %v25271_v1  ;;  %19947 = vmatprep.mubr.bf16.mxu0 %v22922_v42  ;;  %v22950_v1 = vld [vmem:[%s27924_s27 + $0x2d0] sm:$0xff]  }
 0xaa6   :  { %19961 = vmatprep.subr.bf16.mxu0 %v25268_v37 }
 0xaa9   :  { %19962 = vmatpush3.bf16.msra.mxu0 %v25268_v37  ;;  %v22948_v37 = vld [vmem:[%s27924_s27 + $0x2c0] sm:$0xff]  }
 0xaaa   :  { %19963 = vmatprep.subr.bf16.mxu0 %v25279_v15 }
 0xaac   :  { %19948 = vmatmul.mubr.bf16.gmra.mrb[44].mxu0 %v22923_v55 }
 0xaad   :  { %19964 = vmatpush3.bf16.msra.mxu0 %v25279_v15  ;;  %19967 = vmatprep.mubr.bf16.mxu0 %v22924_v13  ;;  %v7812_v15 = vpop.permute.xlu0 %7811 }
 0xaae   :  { %19965 = vmatprep.subr.bf16.mxu0 %v25276_v26 }
 0xab1   :  { %19966 = vmatpush3.bf16.msra.mxu0 %v25276_v26  ;;  %v22962_v26 = vld [vmem:[%s27924_s27 + $0x3f0] sm:$0xff]   ;;  %v7822_v56 = vpop.permute.xlu0 %7821 }
 0xab2   :  { %20001 = vmatprep.subr.bf16.mxu0 %v24855_v34 }
 0xab4   :  { %19968 = vmatmul.mubr.bf16.vlgmr.msra.gmra.mrb[32].mxu0 %v22925_v50 }
 0xab5   :  { %20002 = vmatpush3.bf16.msra.mxu0 %v24855_v34  ;;  %19971 = vmatprep.mubr.bf16.mxu0 %v22926_v36  ;;  %v7832_v28 = vpop.permute.xlu0 %7831 }
 0xab6   :  { %20003 = vmatprep.subr.bf16.mxu0 %v24851_v45 }
 0xab9   :  { %20004 = vmatpush3.bf16.msra.mxu0 %v24851_v45  ;;  %v7842_v33 = vpop.permute.xlu0 %7841 }
 0xaba   :  { %20005 = vmatprep.subr.bf16.mxu0 %v24867_v39 }
 0xabc   :  { %19972 = vmatmul.mubr.bf16.gmra.mrb[36].mxu0 %v22927_v49 }
 0xabd   :  { %20006 = vmatpush3.bf16.msra.mxu0 %v24867_v39  ;;  %19975 = vmatprep.mubr.bf16.mxu0 %v22928_v7  ;;  %v7852_v24 = vpop.permute.xlu0 %7851 }
 0xabe   :  { %20007 = vmatprep.subr.bf16.mxu0 %v24862_v43 }
 0xac1   :  { %20008 = vmatpush3.bf16.msra.mxu0 %v24862_v43 }
 0xac2   :  { %20009 = vmatprep.subr.bf16.mxu0 %v24879_v9 }
 0xac4   :  { %19976 = vmatmul.mubr.bf16.gmra.mrb[40].mxu0 %v22929_v57  ;;  %v7857_v57 = vpop.permute.xlu1 %7856 }
 0xac5   :  { %20010 = vmatpush3.bf16.msra.mxu0 %v24879_v9  ;;  %19979 = vmatprep.mubr.bf16.mxu0 %v22930_v31  ;;  %v7862_v31 = vpop.permute.xlu0 %7861 }
 0xac6   :  { %20011 = vmatprep.subr.bf16.mxu0 %v24874_v59 }
 0xac9   :  { %20012 = vmatpush3.bf16.msra.mxu0 %v24874_v59 }
 0xaca   :  { %20013 = vmatprep.subr.bf16.mxu0 %v24891_v16 }
 0xacc   :  { %19980 = vmatmul.mubr.bf16.gmra.mrb[44].mxu0 %v22931_v60 }
 0xacd   :  { %20014 = vmatpush3.bf16.msra.mxu0 %v24891_v16  ;;  %20017 = vmatprep.mubr.bf16.mxu0 %v22932_v47 }
 0xace   :  { %20015 = vmatprep.subr.bf16.mxu0 %v24886_v12 }
 0xad1   :  { %20016 = vmatpush3.bf16.msra.mxu0 %v24886_v12 }
 0xad2   :  { %20033 = vmatprep.subr.bf16.mxu0 %v24855_v34 }
 0xad4   :  { %20018 = vmatmul.mubr.bf16.vlgmr.msra.gmra.mrb[32].mxu0 %v22933_v18 }
 0xad5   :  { %20034 = vmatpush3.bf16.msra.mxu0 %v24855_v34  ;;  %20021 = vmatprep.mubr.bf16.mxu0 %v22934_v21 }
 0xad6   :  { %20035 = vmatprep.subr.bf16.mxu0 %v24851_v45 }
 0xad9   :  { %20036 = vmatpush3.bf16.msra.mxu0 %v24851_v45 }
 0xada   :  { %20037 = vmatprep.subr.bf16.mxu0 %v24867_v39 }
 0xadc   :  { %20022 = vmatmul.mubr.bf16.gmra.mrb[36].mxu0 %v22935_v63 }
 0xadd   :  { %20038 = vmatpush3.bf16.msra.mxu0 %v24867_v39  ;;  %20025 = vmatprep.mubr.bf16.mxu0 %v22936_v2 }
 0xade   :  { %20039 = vmatprep.subr.bf16.mxu0 %v24862_v43 }
 0xae1   :  { %20040 = vmatpush3.bf16.msra.mxu0 %v24862_v43 }
 0xae2   :  { %20041 = vmatprep.subr.bf16.mxu0 %v24879_v9 }
 0xae4   :  { %20026 = vmatmul.mubr.bf16.gmra.mrb[40].mxu0 %v22937_v62 }
 0xae5   :  { %20042 = vmatpush3.bf16.msra.mxu0 %v24879_v9  ;;  %20029 = vmatprep.mubr.bf16.mxu0 %v22938_v52  ;;  %v7867_v52 = vpop.permute.xlu1 %7866 }
 0xae6   :  { %20043 = vmatprep.subr.bf16.mxu0 %v24874_v59 }
 0xae9   :  { %20044 = vmatpush3.bf16.msra.mxu0 %v24874_v59 }
 0xaea   :  { %20045 = vmatprep.subr.bf16.mxu0 %v24891_v16 }
 0xaec   :  { %20030 = vmatmul.mubr.bf16.gmra.mrb[44].mxu0 %v22939_v11 }
 0xaed   :  { %20046 = vmatpush3.bf16.msra.mxu0 %v24891_v16  ;;  %20049 = vmatprep.mubr.bf16.mxu0 %v22940_v38 }
 0xaee   :  { %20047 = vmatprep.subr.bf16.mxu0 %v24886_v12 }
 0xaf1   :  { %20048 = vmatpush3.bf16.msra.mxu0 %v24886_v12 }
 0xaf2   :  { %20065 = vmatprep.subr.bf16.mxu0 %v24855_v34 }
 0xaf4   :  { %20050 = vmatmul.mubr.bf16.vlgmr.msra.gmra.mrb[32].mxu0 %v22941_v14 }
 0xaf5   :  { %20066 = vmatpush3.bf16.msra.mxu0 %v24855_v34  ;;  %20053 = vmatprep.mubr.bf16.mxu0 %v22942_v3 }
 0xaf6   :  { %20067 = vmatprep.subr.bf16.mxu0 %v24851_v45 }
 0xaf9   :  { %20068 = vmatpush3.bf16.msra.mxu0 %v24851_v45 }
 0xafa   :  { %20069 = vmatprep.subr.bf16.mxu0 %v24867_v39 }
 0xafc   :  { %20054 = vmatmul.mubr.bf16.gmra.mrb[36].mxu0 %v22943_v20 }
 0xafd   :  { %20070 = vmatpush3.bf16.msra.mxu0 %v24867_v39  ;;  %20057 = vmatprep.mubr.bf16.mxu0 %v22944_v10  ;;  %v7872_v10 = vpop.permute.xlu0 %7871 }
 0xafe   :  { %20071 = vmatprep.subr.bf16.mxu0 %v24862_v43 }
 0xb01   :  { %20072 = vmatpush3.bf16.msra.mxu0 %v24862_v43 }
 0xb02   :  { %20073 = vmatprep.subr.bf16.mxu0 %v24879_v9 }
 0xb04   :  { %20058 = vmatmul.mubr.bf16.gmra.mrb[40].mxu0 %v22945_v32 }
 0xb05   :  { %20074 = vmatpush3.bf16.msra.mxu0 %v24879_v9  ;;  %20061 = vmatprep.mubr.bf16.mxu0 %v22946_v5 }
 0xb06   :  { %20075 = vmatprep.subr.bf16.mxu0 %v24874_v59 }
 0xb09   :  { %20076 = vmatpush3.bf16.msra.mxu0 %v24874_v59 }
 0xb0a   :  { %20077 = vmatprep.subr.bf16.mxu0 %v24891_v16 }
 0xb0c   :  { %20062 = vmatmul.mubr.bf16.gmra.mrb[44].mxu0 %v22947_v17 }
 0xb0d   :  { %20078 = vmatpush3.bf16.msra.mxu0 %v24891_v16  ;;  %20081 = vmatprep.mubr.bf16.mxu0 %v22948_v37 }
 0xb0e   :  { %20079 = vmatprep.subr.bf16.mxu0 %v24886_v12 }
 0xb11   :  { %20080 = vmatpush3.bf16.msra.mxu0 %v24886_v12 }
 0xb12   :  { %20097 = vmatprep.subr.bf16.mxu0 %v24855_v34 }
 0xb14   :  { %20082 = vmatmul.mubr.bf16.vlgmr.msra.gmra.mrb[32].mxu0 %v22949_v29  ;;  %v7877_v29 = vpop.permute.xlu1 %7876 }
 0xb15   :  { %20098 = vmatpush3.bf16.msra.mxu0 %v24855_v34  ;;  %20085 = vmatprep.mubr.bf16.mxu0 %v22950_v1  ;;  %v22953_v34 = vld [vmem:[%s27924_s27 + $0x2e8] sm:$0xff]  }
 0xb16   :  { %20099 = vmatprep.subr.bf16.mxu0 %v24851_v45 }
 0xb19   :  { %20100 = vmatpush3.bf16.msra.mxu0 %v24851_v45  ;;  %v22954_v45 = vld [vmem:[%s27924_s27 + $0x2f0] sm:$0xff]  }
 0xb1a   :  { %20101 = vmatprep.subr.bf16.mxu0 %v24867_v39 }
 0xb1c   :  { %20086 = vmatmul.mubr.bf16.gmra.mrb[36].mxu0 %v22951_v23 }
 0xb1d   :  { %20102 = vmatpush3.bf16.msra.mxu0 %v24867_v39  ;;  %20089 = vmatprep.mubr.bf16.mxu0 %v22952_v41  ;;  %v22955_v39 = vld [vmem:[%s27924_s27 + $0x2f8] sm:$0xff]  }
 0xb1e   :  { %20103 = vmatprep.subr.bf16.mxu0 %v24862_v43 }
 0xb21   :  { %20104 = vmatpush3.bf16.msra.mxu0 %v24862_v43  ;;  %v22956_v43 = vld [vmem:[%s27924_s27 + $0x3c0] sm:$0xff]  }
 0xb22   :  { %20105 = vmatprep.subr.bf16.mxu0 %v24879_v9 }
 0xb24   :  { %20090 = vmatmul.mubr.bf16.gmra.mrb[40].mxu0 %v22953_v34  ;;  %v7882_v34 = vpop.permute.xlu0 %7881 }
 0xb25   :  { %20106 = vmatpush3.bf16.msra.mxu0 %v24879_v9  ;;  %20093 = vmatprep.mubr.bf16.mxu0 %v22954_v45  ;;  %v22957_v9 = vld [vmem:[%s27924_s27 + $0x3c8] sm:$0xff]  }
 0xb26   :  { %20107 = vmatprep.subr.bf16.mxu0 %v24874_v59 }
 0xb29   :  { %20108 = vmatpush3.bf16.msra.mxu0 %v24874_v59  ;;  %v22958_v59 = vld [vmem:[%s27924_s27 + $0x3d0] sm:$0xff]  }
 0xb2a   :  { %20109 = vmatprep.subr.bf16.mxu0 %v24891_v16 }
 0xb2c   :  { %20094 = vmatmul.mubr.bf16.gmra.mrb[44].mxu0 %v22955_v39 }
 0xb2d   :  { %20110 = vmatpush3.bf16.msra.mxu0 %v24891_v16  ;;  %20113 = vmatprep.mubr.bf16.mxu0 %v22956_v43  ;;  %v22960_v16 = vld [vmem:[%s27924_s27 + $0x3e0] sm:$0xff]  }
 0xb2e   :  { %20111 = vmatprep.subr.bf16.mxu0 %v24886_v12 }
 0xb31   :  { %20112 = vmatpush3.bf16.msra.mxu0 %v24886_v12  ;;  %v22961_v12 = vld [vmem:[%s27924_s27 + $0x3e8] sm:$0xff]  }
 0xb34   :  { %20114 = vmatmul.mubr.bf16.vlgmr.msra.gmra.mrb[32].mxu0 %v22957_v9 }
 0xb35   :  { %20117 = vmatprep.mubr.bf16.mxu0 %v22958_v59 }
 0xb3c   :  { %20118 = vmatmul.mubr.bf16.gmra.mrb[36].mxu0 %v22959_v44  ;;  %v7887_v44 = vpop.permute.xlu1 %7886 }
 0xb3d   :  { %20121 = vmatprep.mubr.bf16.mxu0 %v22960_v16 }
 0xb44   :  { %20122 = vmatmul.mubr.bf16.gmra.mrb[40].mxu0 %v22961_v12 }
 0xb45   :  { %20125 = vmatprep.mubr.bf16.mxu0 %v22962_v26 }
 0xb4c   :  { %20126 = vmatmul.mubr.bf16.gmra.mrb[44].mxu0 %v22963_v53 }
 0xc07   :  { %v20115_v58 = vpop.f32.mrb[32].mxu0 }
 0xc08   :  { %v7714_v8 = vpop.f32.mrb[33].mxu0  ;;  %v25588_v0 = vadd.f32 %v20115_v58, %v7822_v56 }
 0xc09   :  { %v25586_v46 = vadd.f32 %v7812_v15, %v7714_v8  ;;  %v20116_v22 = vpop.f32.mrb[34].mxu0 }
 0xc0a   :  { %v7717_v54 = vpop.f32.mrb[35].mxu0  ;;  %v25596_v51 = vadd.f32 %v20116_v22, %v7827_v19  ;;  %v7911_v35 = vsel %vm291_vm3, %v25588_v0, 0.0  ;;  %v7971_v56 = vmul.f32 %v25588_v0, %v25588_v0 }
 0xc0b   :  { %v25590_v4 = vadd.f32 %v7817_v40, %v7717_v54  ;;  %v7905_v48 = vsel %vm291_vm3, %v25586_v46, 0.0  ;;  %v7969_v53 = vmul.f32 %v25586_v46, %v25586_v46 }
 0xc0c   :  { %7906 = vadd.xlane.f32.xlu0 %v7905_v48  ;;  %v7914_v49 = vsel %vm291_vm3, %v25596_v51, 0.0  ;;  %v7972_v8 = vmul.f32 %v25596_v51, %v25596_v51 }
 0xc0d   :  { %v7908_v61 = vsel %vm291_vm3, %v25590_v4, 0.0  ;;  %v7985_v15 = vsel %vm291_vm3, %v7969_v53, 0.0  ;;  %v7970_v19 = vmul.f32 %v25590_v4, %v25590_v4  ;;  %v8636_v53 = vld [vmem:[%s27842_s10 + $0x48] sm:$0xff] }
 0xc0e   :  { %7909 = vadd.xlane.f32.xlu1 %v7908_v61 }
 0xc0f   :  { %v20119_v27 = vpop.f32.mrb[36].mxu0  ;;  %v7988_v58 = vsel %vm291_vm3, %v7970_v19, 0.0  ;;  %v8748_v19 = vld [vmem:[%s27843_s11 + $0x48] sm:$0xff] }
 0xc10   :  { %7912 = vadd.xlane.f32.xlu0 %v7911_v35  ;;  %v7730_v30 = vpop.f32.mrb[37].mxu0  ;;  %v25602_v50 = vadd.f32 %v20119_v27, %v7842_v33  ;;  %v7994_v33 = vsel %vm291_vm3, %v7972_v8, 0.0  ;;  %v8640_v8 = vld [vmem:[%s27842_s10 + $0x68] sm:$0xff] }
 0xc11   :  { %v25600_v42 = vadd.f32 %v7832_v28, %v7730_v30  ;;  %v20120_v55 = vpop.f32.mrb[38].mxu0  ;;  %v7991_v28 = vsel %vm291_vm3, %v7971_v56, 0.0  ;;  %v8745_v56 = vld [vmem:[%s27843_s11 + $0x30] sm:$0xff] }
 0xc12   :  { %v7733_v13 = vpop.f32.mrb[39].mxu0  ;;  %v25610_v60 = vadd.f32 %v20120_v55, %v7847_v25  ;;  %v7923_v18 = vsel %vm291_vm3, %v25602_v50, 0.0  ;;  %v7975_v54 = vmul.f32 %v25602_v50, %v25602_v50 }
 0xc13   :  { %v25604_v36 = vadd.f32 %v7837_v6, %v7733_v13  ;;  %v7917_v7 = vsel %vm291_vm3, %v25600_v42, 0.0  ;;  %v7973_v6 = vmul.f32 %v25600_v42, %v25600_v42 }
 0xc14   :  { %7915 = vadd.xlane.f32.xlu0 %v7914_v49  ;;  %7918 = vadd.xlane.f32.xlu1 %v7917_v7  ;;  %v7926_v3 = vsel %vm291_vm3, %v25610_v60, 0.0  ;;  %v8003_v61 = vsel %vm291_vm3, %v7975_v54, 0.0  ;;  %v7976_v35 = vmul.f32 %v25610_v60, %v25610_v60  ;;  %v8749_v54 = vld [vmem:[%s27843_s11 + $0x50] sm:$0xff] }
 0xc15   :  { %v7920_v21 = vsel %vm291_vm3, %v25604_v36, 0.0  ;;  %v7997_v22 = vsel %vm291_vm3, %v7973_v6, 0.0  ;;  %v7974_v48 = vmul.f32 %v25604_v36, %v25604_v36  ;;  %v8637_v6 = vld [vmem:[%s27842_s10 + $0x50] sm:$0xff] }
 0xc16   :  { %v8006_v30 = vsel %vm291_vm3, %v7976_v35, 0.0 }
 0xc17   :  { %v20123_v47 = vpop.f32.mrb[40].mxu0  ;;  %v8000_v25 = vsel %vm291_vm3, %v7974_v48, 0.0  ;;  %v8752_v48 = vld [vmem:[%s27843_s11 + $0x68] sm:$0xff] }
 0xc18   :  { %7924 = vadd.xlane.f32.xlu1 %v7923_v18  ;;  %7921 = vadd.xlane.f32.xlu0 %v7920_v21  ;;  %v7746_v63 = vpop.f32.mrb[41].mxu0  ;;  %v25618_v38 = vadd.f32 %v20123_v47, %v7862_v31  ;;  %v25690_v47 = vld [vmem:[%s27844_s12] sm:$0xff] }
 0xc19   :  { %v25616_v2 = vadd.f32 %v7852_v24, %v7746_v63  ;;  %v20124_v62 = vpop.f32.mrb[42].mxu0  ;;  %20161 = vmatprep.mubr.f32.mxu1 %v25690_v47 }
 0xc1a   :  { %v7749_v11 = vpop.f32.mrb[43].mxu0  ;;  %v25626_v32 = vadd.f32 %v20124_v62, %v7867_v52  ;;  %v7935_v17 = vsel %vm291_vm3, %v25618_v38, 0.0  ;;  %v7979_v55 = vmul.f32 %v25618_v38, %v25618_v38 }
 0xc1b   :  { %v25620_v14 = vadd.f32 %v7857_v57, %v7749_v11  ;;  %v7929_v20 = vsel %vm291_vm3, %v25616_v2, 0.0  ;;  %v7977_v27 = vmul.f32 %v25616_v2, %v25616_v2 }
 0xc1c   :  { %7927 = vadd.xlane.f32.xlu0 %v7926_v3  ;;  %7930 = vadd.xlane.f32.xlu1 %v7929_v20  ;;  %v7938_v9 = vsel %vm291_vm3, %v25626_v32, 0.0  ;;  %v8015_v49 = vsel %vm291_vm3, %v7979_v55, 0.0  ;;  %v7980_v31 = vmul.f32 %v25626_v32, %v25626_v32 }
 0xc1d   :  { %v7932_v37 = vsel %vm291_vm3, %v25620_v14, 0.0  ;;  %v8009_v24 = vsel %vm291_vm3, %v7977_v27, 0.0  ;;  %v7978_v13 = vmul.f32 %v25620_v14, %v25620_v14  ;;  %v8751_v27 = vld [vmem:[%s27843_s11 + $0x60] sm:$0xff] }
 0xc1e   :  { %v8018_v21 = vsel %vm291_vm3, %v7980_v31, 0.0 }
 0xc1f   :  { %v20127_v5 = vpop.f32.mrb[44].mxu0  ;;  %v8012_v7 = vsel %vm291_vm3, %v7978_v13, 0.0 }
 0xc20   :  { %7936 = vadd.xlane.f32.xlu1 %v7935_v17  ;;  %7933 = vadd.xlane.f32.xlu0 %v7932_v37  ;;  %v7762_v1 = vpop.f32.mrb[45].mxu0  ;;  %v25634_v39 = vadd.f32 %v20127_v5, %v7882_v34  ;;  %v8630_v5 = vld [vmem:[%s27842_s10 + $0x18] sm:$0xff]  ;;  %v8740_v17 = vld [vmem:[%s27843_s11 + $0x8] sm:$0xff]  ;;  %v8627_v37 = vld [vmem:[%s27842_s10] sm:$0xff] }
 0xc21   :  { %v25632_v23 = vadd.f32 %v7872_v10, %v7762_v1  ;;  %v20128_v41 = vpop.f32.mrb[46].mxu0  ;;  %v8628_v10 = vld [vmem:[%s27842_s10 + $0x8] sm:$0xff]  ;;  %v8629_v1 = vld [vmem:[%s27842_s10 + $0x10] sm:$0xff]  ;;  %v8739_v34 = vld [vmem:[%s27843_s11] sm:$0xff] }
 0xc22   :  { %v7765_v45 = vpop.f32.mrb[47].mxu0  ;;  %27925 = vst [vmem:[#allocation18_spill] sm:$0xff] %v25634_v39  ;;  %v25642_v16 = vadd.f32 %v20128_v41, %v7887_v44  ;;  %v7947_v12 = vsel %vm291_vm3, %v25634_v39, 0.0  ;;  %v7983_v63 = vmul.f32 %v25634_v39, %v25634_v39  ;;  %v8632_v41 = vld [vmem:[%s27842_s10 + $0x28] sm:$0xff]  ;;  %v8631_v44 = vld [vmem:[%s27842_s10 + $0x20] sm:$0xff] }
 0xc23   :  { %v25636_v43 = vadd.f32 %v7877_v29, %v7765_v45  ;;  %v7941_v59 = vsel %vm291_vm3, %v25632_v23, 0.0  ;;  %v7981_v57 = vmul.f32 %v25632_v23, %v25632_v23  ;;  %v8742_v29 = vld [vmem:[%s27843_s11 + $0x18] sm:$0xff] }
 0xc24   :  { %7939 = vadd.xlane.f32.xlu0 %v7938_v9  ;;  %7942 = vadd.xlane.f32.xlu1 %v7941_v59  ;;  %27926 = vst [vmem:[#allocation20_spill] sm:$0xff] %v25642_v16  ;;  %v7950_v40 = vsel %vm291_vm3, %v25642_v16, 0.0  ;;  %v8027_v52 = vsel %vm291_vm3, %v7983_v63, 0.0  ;;  %v7984_v3 = vmul.f32 %v25642_v16, %v25642_v16  ;;  %v8634_v45 = vld [vmem:[%s27842_s10 + $0x38] sm:$0xff]  ;;  %v8741_v9 = vld [vmem:[%s27843_s11 + $0x10] sm:$0xff]  ;;  %v8744_v59 = vld [vmem:[%s27843_s11 + $0x28] sm:$0xff] }
 0xc25   :  { %v7944_v26 = vsel %vm291_vm3, %v25636_v43, 0.0  ;;  %v8021_v18 = vsel %vm291_vm3, %v7981_v57, 0.0  ;;  %v7982_v62 = vmul.f32 %v25636_v43, %v25636_v43 }
 0xc26   :  { %v8030_v20 = vsel %vm291_vm3, %v7984_v3, 0.0 }
 0xc27   :  { %v8024_v11 = vsel %vm291_vm3, %v7982_v62, 0.0 }
 0xc28   :  { %7948 = vadd.xlane.f32.xlu1 %v7947_v12  ;;  %7945 = vadd.xlane.f32.xlu0 %v7944_v26  ;;  %v8746_v12 = vld [vmem:[%s27843_s11 + $0x38] sm:$0xff]  ;;  %v8633_v26 = vld [vmem:[%s27842_s10 + $0x30] sm:$0xff] }
 0xc2c   :  { %7986 = vadd.xlane.f32.xlu1 %v7985_v15  ;;  %7951 = vadd.xlane.f32.xlu0 %v7950_v40  ;;  %v8743_v15 = vld [vmem:[%s27843_s11 + $0x20] sm:$0xff]  ;;  %v8638_v40 = vld [vmem:[%s27842_s10 + $0x58] sm:$0xff] }
 0xc30   :  { %7992 = vadd.xlane.f32.xlu1 %v7991_v28  ;;  %7989 = vadd.xlane.f32.xlu0 %v7988_v58  ;;  %v8635_v28 = vld [vmem:[%s27842_s10 + $0x40] sm:$0xff]  ;;  %v8750_v58 = vld [vmem:[%s27843_s11 + $0x58] sm:$0xff] }
 0xc34   :  { %7998 = vadd.xlane.f32.xlu1 %v7997_v22  ;;  %7995 = vadd.xlane.f32.xlu0 %v7994_v33  ;;  %v8747_v22 = vld [vmem:[%s27843_s11 + $0x40] sm:$0xff]  ;;  %v8642_v33 = vld [vmem:[%s27842_s10 + $0x78] sm:$0xff] }
 0xc38   :  { %8004 = vadd.xlane.f32.xlu1 %v8003_v61  ;;  %8001 = vadd.xlane.f32.xlu0 %v8000_v25  ;;  %v8639_v61 = vld [vmem:[%s27842_s10 + $0x60] sm:$0xff]  ;;  %v8641_v25 = vld [vmem:[%s27842_s10 + $0x70] sm:$0xff] }
 0xc3c   :  { %8010 = vadd.xlane.f32.xlu1 %v8009_v24  ;;  %8007 = vadd.xlane.f32.xlu0 %v8006_v30 }
 0xc40   :  { %8016 = vadd.xlane.f32.xlu1 %v8015_v49  ;;  %8013 = vadd.xlane.f32.xlu0 %v8012_v7 }
 0xc44   :  { %8022 = vadd.xlane.f32.xlu1 %v8021_v18  ;;  %8019 = vadd.xlane.f32.xlu0 %v8018_v21 }
 0xc48   :  { %8028 = vadd.xlane.f32.xlu1 %v8027_v52  ;;  %8025 = vadd.xlane.f32.xlu0 %v8024_v11 }
 0xc4c   :  { %8031 = vadd.xlane.f32.xlu0 %v8030_v20 }
 0xc59   :  { %8650 = vperm.xlu1 %22706, %v8628_v10  }
 0xc5d   :  { %8660 = vperm.xlu1 %22706, %v8630_v5  }
 0xc61   :  { %8762 = vperm.xlu1 %22706, %v8740_v17  }
 0xc62   :  { %8645 = vperm.xlu0 %22705, %v8627_v37  }
 0xc65   :  { %8772 = vperm.xlu1 %22706, %v8742_v29  }
 0xc66   :  { %8655 = vperm.xlu0 %22705, %v8629_v1  }
 0xc69   :  { %8670 = vperm.xlu1 %22706, %v8632_v41  }
 0xc6a   :  { %8757 = vperm.xlu0 %22705, %v8739_v34  }
 0xc6d   :  { %8680 = vperm.xlu1 %22706, %v8634_v45  }
 0xc6e   :  { %8767 = vperm.xlu0 %22705, %v8741_v9  }
 0xc71   :  { %8782 = vperm.xlu1 %22706, %v8744_v59  }
 0xc72   :  { %8665 = vperm.xlu0 %22705, %v8631_v44  }
 0xc75   :  { %8792 = vperm.xlu1 %22706, %v8746_v12  }
 0xc76   :  { %8675 = vperm.xlu0 %22705, %v8633_v26  }
 0xc79   :  { %8690 = vperm.xlu1 %22706, %v8636_v53  }
 0xc7a   :  { %8777 = vperm.xlu0 %22705, %v8743_v15  }
 0xc7d   :  { %8700 = vperm.xlu1 %22706, %v8638_v40  }
 0xc7e   :  { %8787 = vperm.xlu0 %22705, %v8745_v56  }
 0xc81   :  { %8802 = vperm.xlu1 %22706, %v8748_v19  }
 0xc82   :  { %8685 = vperm.xlu0 %22705, %v8635_v28  }
 0xc85   :  { %8812 = vperm.xlu1 %22706, %v8750_v58  }
 0xc86   :  { %8695 = vperm.xlu0 %22705, %v8637_v6  }
 0xc89   :  { %8710 = vperm.xlu1 %22706, %v8640_v8  }
 0xc8a   :  { %8797 = vperm.xlu0 %22705, %v8747_v22  }
 0xc8d   :  { %8720 = vperm.xlu1 %22706, %v8642_v33  }
 0xc8e   :  { %8807 = vperm.xlu0 %22705, %v8749_v54  }
 0xc91   :  { %8822 = vperm.xlu1 %22706, %v8752_v48  }
 0xc92   :  { %8705 = vperm.xlu0 %22705, %v8639_v61  }
 0xc96   :  { %8715 = vperm.xlu0 %22705, %v8641_v25   ;;  %v25797_v25 = vld [vmem:[%s27844_s12 + $0x8] sm:$0xff] }
 0xc99   :  { %v7907_v35 = vpop.xlane.xlu0 %7906 }
 0xc9a   :  { %8817 = vperm.xlu0 %22705, %v8751_v27   ;;  %v7953_v30 = vmul.f32 0.0625, %v7907_v35  ;;  %v25802_v35 = vld [vmem:[%s27844_s12 + $0x10] sm:$0xff] }
 0xc9b   :  { %v7910_v24 = vpop.xlane.xlu1 %7909 }
 0xc9c   :  { %v7954_v55 = vmul.f32 0.0625, %v7910_v24 }
 0xc9d   :  { %v7913_v13 = vpop.xlane.xlu0 %7912 }
 0xc9e   :  { %v21611_v49 = vpack.c.bf16 %v7954_v55, %v7953_v30  ;;  %v7955_v31 = vmul.f32 0.0625, %v7913_v13 }
 0xca0   :  { %21612 = vmatprep.subr.bf16.mxu1 %v21611_v49 }
 0xca1   :  { %v7916_v7 = vpop.xlane.xlu0 %7915  ;;  %21614 = vmatpush3.bf16.msra.mxu1 %v21611_v49  ;;  %v7919_v57 = vpop.xlane.xlu1 %7918  ;;  %v25809_v49 = vld [vmem:[%s27844_s12 + $0x18] sm:$0xff] }
 0xca2   :  { %v7956_v18 = vmul.f32 0.0625, %v7916_v7  ;;  %v7957_v52 = vmul.f32 0.0625, %v7919_v57  ;;  %v25814_v57 = vld [vmem:[%s27844_s12 + $0x20] sm:$0xff] }
 0xca4   :  { %v21615_v21 = vpack.c.bf16 %v7956_v18, %v7955_v31 }
 0xca5   :  { %v7925_v63 = vpop.xlane.xlu1 %7924  ;;  %v7922_v62 = vpop.xlane.xlu0 %7921 }
 0xca6   :  { %v7958_v11 = vmul.f32 0.0625, %v7922_v62  ;;  %21616 = vmatprep.subr.bf16.mxu1 %v21615_v21  ;;  %v7959_v5 = vmul.f32 0.0625, %v7925_v63  ;;  %v25821_v62 = vld [vmem:[%s27844_s12 + $0x28] sm:$0xff] }
 0xca7   :  { %21618 = vmatpush3.bf16.msra.mxu1 %v21615_v21 }
 0xca8   :  { %v21619_v3 = vpack.c.bf16 %v7958_v11, %v7957_v52  ;;  %v8055_v11 = vld [vmem:[%s27844_s12 + $0x30] sm:$0xff] }
 0xca9   :  { %v7928_v20 = vpop.xlane.xlu0 %7927  ;;  %v7931_v10 = vpop.xlane.xlu1 %7930 }
 0xcaa   :  { %v7960_v17 = vmul.f32 0.0625, %v7928_v20  ;;  %21620 = vmatprep.subr.bf16.mxu1 %v21619_v3  ;;  %v7961_v41 = vmul.f32 0.0625, %v7931_v10 }
 0xcab   :  { %21622 = vmatpush3.bf16.msra.mxu1 %v21619_v3 }
 0xcac   :  { %v21623_v37 = vpack.c.bf16 %v7960_v17, %v7959_v5  ;;  %v8056_v17 = vld [vmem:[%s27844_s12 + $0x38] sm:$0xff] }
 0xcad   :  { %v7937_v29 = vpop.xlane.xlu1 %7936  ;;  %v7934_v1 = vpop.xlane.xlu0 %7933 }
 0xcae   :  { %v7962_v34 = vmul.f32 0.0625, %v7934_v1  ;;  %21624 = vmatprep.subr.bf16.mxu1 %v21623_v37  ;;  %v7963_v44 = vmul.f32 0.0625, %v7937_v29  ;;  %v8057_v29 = vld [vmem:[%s27844_s12 + $0x40] sm:$0xff] }
 0xcaf   :  { %21626 = vmatpush3.bf16.msra.mxu1 %v21623_v37 }
 0xcb0   :  { %v21627_v45 = vpack.c.bf16 %v7962_v34, %v7961_v41 }
 0xcb1   :  { %v7940_v9 = vpop.xlane.xlu0 %7939  ;;  %v7943_v59 = vpop.xlane.xlu1 %7942 }
 0xcb2   :  { %v7964_v12 = vmul.f32 0.0625, %v7940_v9  ;;  %21628 = vmatprep.subr.bf16.mxu1 %v21627_v45  ;;  %v7965_v40 = vmul.f32 0.0625, %v7943_v59  ;;  %v8058_v9 = vld [vmem:[%s27844_s12 + $0x48] sm:$0xff] }
 0xcb3   :  { %21630 = vmatpush3.bf16.msra.mxu1 %v21627_v45 }
 0xcb4   :  { %v21631_v26 = vpack.c.bf16 %v7964_v12, %v7963_v44  ;;  %v8059_v44 = vld [vmem:[%s27844_s12 + $0x50] sm:$0xff] }
 0xcb5   :  { %v7949_v53 = vpop.xlane.xlu1 %7948  ;;  %v7946_v15 = vpop.xlane.xlu0 %7945 }
 0xcb6   :  { %v7966_v56 = vmul.f32 0.0625, %v7946_v15  ;;  %21632 = vmatprep.subr.bf16.mxu1 %v21631_v26  ;;  %v7967_v6 = vmul.f32 0.0625, %v7949_v53 }
 0xcb7   :  { %21634 = vmatpush3.bf16.msra.mxu1 %v21631_v26 }
 0xcb8   :  { %v21635_v19 = vpack.c.bf16 %v7966_v56, %v7965_v40  ;;  %v8060_v40 = vld [vmem:[%s27844_s12 + $0x58] sm:$0xff] }
 0xcb9   :  { %v7987_v28 = vpop.xlane.xlu1 %7986  ;;  %v7952_v58 = vpop.xlane.xlu0 %7951 }
 0xcba   :  { %v7968_v8 = vmul.f32 0.0625, %v7952_v58  ;;  %21636 = vmatprep.subr.bf16.mxu1 %v21635_v19  ;;  %v8033_v48 = vmul.f32 0.0625, %v7987_v28 }
 0xcbb   :  { %21638 = vmatpush3.bf16.msra.mxu1 %v21635_v19  ;;  %v8061_v19 = vld [vmem:[%s27844_s12 + $0x60] sm:$0xff] }
 0xcbc   :  { %v21639_v22 = vpack.c.bf16 %v7968_v8, %v7967_v6 }
 0xcbd   :  { %v7993_v33 = vpop.xlane.xlu1 %7992  ;;  %v7990_v54 = vpop.xlane.xlu0 %7989 }
 0xcbe   :  { %v8034_v61 = vmul.f32 0.0625, %v7990_v54  ;;  %21640 = vmatprep.subr.bf16.mxu1 %v21639_v22  ;;  %v8035_v55 = vmul.f32 0.0625, %v7993_v33  ;;  %v8063_v54 = vld [vmem:[%s27844_s12 + $0x70] sm:$0xff] }
 0xcbf   :  { %21642 = vmatpush3.bf16.msra.mxu1 %v21639_v22  ;;  %v8062_v22 = vld [vmem:[%s27844_s12 + $0x68] sm:$0xff] }
 0xcc0   :  { %v21643_v27 = vpack.c.bf16 %v8034_v61, %v8033_v48 }
 0xcc1   :  { %v7999_v24 = vpop.xlane.xlu1 %7998  ;;  %v7996_v30 = vpop.xlane.xlu0 %7995 }
 0xcc2   :  { %v8036_v13 = vmul.f32 0.0625, %v7996_v30  ;;  %20162 = vmatmul.mubr.f32.vlgmr.msra.gmra.mrb[64].mxu1 %v25797_v25  ;;  %21644 = vmatprep.subr.bf16.mxu1 %v21643_v27  ;;  %v8037_v21 = vmul.f32 0.0625, %v7999_v24  ;;  %v8064_v24 = vld [vmem:[%s27844_s12 + $0x78] sm:$0xff] }
 0xcc3   :  { %21646 = vmatpush3.bf16.msra.mxu1 %v21643_v27  ;;  %20164 = vmatprep.mubr.f32.mxu1 %v25802_v35 }
 0xcc4   :  { %v21647_v7 = vpack.c.bf16 %v8036_v13, %v8035_v55 }
 0xcc5   :  { %v8005_v31 = vpop.xlane.xlu1 %8004  ;;  %v8002_v18 = vpop.xlane.xlu0 %8001 }
 0xcc6   :  { %v8038_v63 = vmul.f32 0.0625, %v8002_v18  ;;  %20165 = vmatmul.mubr.f32.gmra.mrb[66].mxu1 %v25809_v49  ;;  %21648 = vmatprep.subr.bf16.mxu1 %v21647_v7  ;;  %v8039_v10 = vmul.f32 0.0625, %v8005_v31 }
 0xcc7   :  { %21650 = vmatpush3.bf16.msra.mxu1 %v21647_v7  ;;  %20167 = vmatprep.mubr.f32.mxu1 %v25814_v57 }
 0xcc8   :  { %v21651_v52 = vpack.c.bf16 %v8038_v63, %v8037_v21 }
 0xcc9   :  { %v8011_v3 = vpop.xlane.xlu1 %8010  ;;  %v8008_v20 = vpop.xlane.xlu0 %8007 }
 0xcca   :  { %v8040_v5 = vmul.f32 0.0625, %v8008_v20  ;;  %20168 = vmatmul.mubr.f32.gmra.mrb[68].mxu1 %v25821_v62  ;;  %21652 = vmatprep.subr.bf16.mxu1 %v21651_v52  ;;  %v8041_v34 = vmul.f32 0.0625, %v8011_v3 }
 0xccb   :  { %21654 = vmatpush3.bf16.msra.mxu1 %v21651_v52  ;;  %20170 = vmatprep.mubr.f32.mxu1 %v8055_v11 }
 0xccc   :  { %v21655_v37 = vpack.c.bf16 %v8040_v5, %v8039_v10 }
 0xccd   :  { %v8017_v1 = vpop.xlane.xlu1 %8016  ;;  %v8014_v41 = vpop.xlane.xlu0 %8013 }
 0xcce   :  { %v8042_v45 = vmul.f32 0.0625, %v8014_v41  ;;  %20171 = vmatmul.mubr.f32.gmra.mrb[70].mxu1 %v8056_v17  ;;  %21656 = vmatprep.subr.bf16.mxu1 %v21655_v37  ;;  %v8043_v53 = vmul.f32 0.0625, %v8017_v1  ;;  %v22964_v1 = vld [vmem:[#allocation6] sm:$0xff]  }
 0xccf   :  { %21658 = vmatpush3.bf16.msra.mxu1 %v21655_v37  ;;  %20173 = vmatprep.mubr.f32.mxu1 %v8057_v29 }
 0xcd0   :  { %v21659_v59 = vpack.c.bf16 %v8042_v45, %v8041_v34 }
 0xcd1   :  { %v8023_v12 = vpop.xlane.xlu1 %8022  ;;  %v8020_v26 = vpop.xlane.xlu0 %8019 }
 0xcd2   :  { %v8044_v15 = vmul.f32 0.0625, %v8020_v26  ;;  %20174 = vmatmul.mubr.f32.gmra.mrb[72].mxu1 %v8058_v9  ;;  %21660 = vmatprep.subr.bf16.mxu1 %v21659_v59  ;;  %v8045_v58 = vmul.f32 0.0625, %v8023_v12 }
 0xcd3   :  { %21662 = vmatpush3.bf16.msra.mxu1 %v21659_v59  ;;  %20176 = vmatprep.mubr.f32.mxu1 %v8059_v44 }
 0xcd4   :  { %v21663_v56 = vpack.c.bf16 %v8044_v15, %v8043_v53 }
 0xcd5   :  { %v8026_v28 = vpop.xlane.xlu0 %8025  ;;  %v8029_v8 = vpop.xlane.xlu1 %8028 }
 0xcd6   :  { %v8046_v6 = vmul.f32 0.0625, %v8026_v28  ;;  %20177 = vmatmul.mubr.f32.gmra.mrb[74].mxu1 %v8060_v40  ;;  %21664 = vmatprep.subr.bf16.mxu1 %v21663_v56  ;;  %v8047_v61 = vmul.f32 0.0625, %v8029_v8 }
 0xcd7   :  { %21666 = vmatpush3.bf16.msra.mxu1 %v21663_v56  ;;  %20179 = vmatprep.mubr.f32.mxu1 %v8061_v19 }
 0xcd8   :  { %v21667_v33 = vpack.c.bf16 %v8046_v6, %v8045_v58 }
 0xcd9   :  { %v8032_v48 = vpop.xlane.xlu0 %8031  ;;  %v25881_v6 = vpop.permute.xlu1 %8650 }
 0xcda   :  { %v8048_v27 = vmul.f32 0.0625, %v8032_v48  ;;  %20180 = vmatmul.mubr.f32.gmra.mrb[76].mxu1 %v8062_v22  ;;  %21668 = vmatprep.subr.bf16.mxu1 %v21667_v33 }
 0xcdb   :  { %21670 = vmatpush3.bf16.msra.mxu1 %v21667_v33  ;;  %20182 = vmatprep.mubr.f32.mxu1 %v8063_v54 }
 0xcdc   :  { %v21671_v30 = vpack.c.bf16 %v8048_v27, %v8047_v61 }
 0xcde   :  { %20183 = vmatmul.mubr.f32.gmra.mrb[78].mxu1 %v8064_v24  ;;  %21672 = vmatprep.subr.bf16.mxu1 %v21671_v30 }
 0xcdf   :  { %21674 = vmatpush3.bf16.msra.mxu1 %v21671_v30  ;;  %20217 = vmatprep.mubr.f32.mxu1 %v25690_v47 }
 0xce0   :  { %20241 = vmatprep.subr.bf16.mxu1 %v22964_v1 }
 0xce2   :  { %20218 = vmatmul.mubr.f32.vlgmr.msra.gmra.mrb[80].mxu1 %v25797_v25 }
 0xce3   :  { %20220 = vmatprep.mubr.f32.mxu1 %v25802_v35  ;;  %20242 = vmatpush3.bf16.msra.mxu1 %v22964_v1 }
 0xce6   :  { %20221 = vmatmul.mubr.f32.gmra.mrb[82].mxu1 %v25809_v49 }
 0xce7   :  { %20223 = vmatprep.mubr.f32.mxu1 %v25814_v57 }
 0xcea   :  { %20224 = vmatmul.mubr.f32.gmra.mrb[84].mxu1 %v25821_v62 }
 0xceb   :  { %20226 = vmatprep.mubr.f32.mxu1 %v8055_v11 }
 0xcee   :  { %20227 = vmatmul.mubr.f32.gmra.mrb[86].mxu1 %v8056_v17 }
 0xcef   :  { %20229 = vmatprep.mubr.f32.mxu1 %v8057_v29 }
 0xcf2   :  { %20230 = vmatmul.mubr.f32.gmra.mrb[88].mxu1 %v8058_v9 }
 0xcf3   :  { %20232 = vmatprep.mubr.f32.mxu1 %v8059_v44 }
 0xcf6   :  { %20233 = vmatmul.mubr.f32.gmra.mrb[90].mxu1 %v8060_v40 }
 0xcf7   :  { %20235 = vmatprep.mubr.f32.mxu1 %v8061_v19 }
 0xcfa   :  { %20236 = vmatmul.mubr.f32.gmra.mrb[92].mxu1 %v8062_v22 }
 0xcfb   :  { %20238 = vmatprep.mubr.f32.mxu1 %v8063_v54 }
 0xcfe   :  { %20239 = vmatmul.mubr.f32.gmra.mrb[94].mxu1 %v8064_v24 }
 0xd95   :  { %v20163_v47 = vpop.f32.mrb[64].mxu1 }
 0xd96   :  { %8410 = vperm.xlu0 %22705, %v20163_v47   ;;  %v8131_v25 = vpop.f32.mrb[65].mxu1  ;;  %v8356_v20 = vmul.f32 %v20163_v47, %v20163_v47 }
 0xd97   :  { %8405 = vperm.xlu1 %22706, %v8131_v25   ;;  %v8355_v10 = vmul.f32 %v8131_v25, %v8131_v25 }
 0xd99   :  { %v20166_v35 = vpop.f32.mrb[66].mxu1 }
 0xd9a   :  { %v8141_v55 = vpop.f32.mrb[67].mxu1  ;;  %v8358_v41 = vmul.f32 %v20166_v35, %v20166_v35 }
 0xd9b   :  { %8420 = vperm.xlu1 %22706, %v20166_v35   ;;  %v8357_v45 = vmul.f32 %v8141_v55, %v8141_v55 }
 0xd9d   :  { %v20169_v13 = vpop.f32.mrb[68].mxu1 }
 0xd9e   :  { %v8151_v49 = vpop.f32.mrb[69].mxu1  ;;  %v8360_v40 = vmul.f32 %v20169_v13, %v20169_v13 }
 0xd9f   :  { %8415 = vperm.xlu1 %22706, %v8141_v55   ;;  %8425 = vperm.xlu0 %22705, %v8151_v49   ;;  %v8359_v19 = vmul.f32 %v8151_v49, %v8151_v49 }
 0xda1   :  { %v20172_v7 = vpop.f32.mrb[70].mxu1 }
 0xda2   :  { %v8161_v57 = vpop.f32.mrb[71].mxu1  ;;  %v8362_v61 = vmul.f32 %v20172_v7, %v20172_v7 }
 0xda3   :  { %8430 = vperm.xlu1 %22706, %v20169_v13   ;;  %8435 = vperm.xlu0 %22705, %v8161_v57   ;;  %v8361_v24 = vmul.f32 %v8161_v57, %v8161_v57 }
 0xda5   :  { %v20175_v31 = vpop.f32.mrb[72].mxu1 }
 0xda6   :  { %v25860_v18 = vpop.f32.mrb[73].mxu1 }
 0xda7   :  { %8440 = vperm.xlu1 %22706, %v20172_v7   ;;  %8445 = vperm.xlu0 %22705, %v25860_v18  }
 0xda9   :  { %v25863_v21 = vpop.f32.mrb[74].mxu1 }
 0xdaa   :  { %v25865_v63 = vpop.f32.mrb[75].mxu1 }
 0xdab   :  { %8450 = vperm.xlu1 %22706, %v20175_v31   ;;  %8455 = vperm.xlu0 %22705, %v25865_v63  }
 0xdad   :  { %v25868_v62 = vpop.f32.mrb[76].mxu1 }
 0xdae   :  { %v25870_v52 = vpop.f32.mrb[77].mxu1 }
 0xdaf   :  { %8460 = vperm.xlu1 %22706, %v25863_v21   ;;  %8465 = vperm.xlu0 %22705, %v25870_v52  }
 0xdb1   :  { %v25874_v11 = vpop.f32.mrb[78].mxu1 }
 0xdb2   :  { %v25876_v3 = vpop.f32.mrb[79].mxu1 }
 0xdb3   :  { %8470 = vperm.xlu1 %22706, %v25868_v62   ;;  %8475 = vperm.xlu0 %22705, %v25876_v3  }
 0xdb5   :  { %v20219_v5 = vpop.f32.mrb[80].mxu1 }
 0xdb6   :  { %v8372_v17 = vsub.f32 %v20219_v5, %v8356_v20  ;;  %v8276_v37 = vpop.f32.mrb[81].mxu1  ;;  %v25883_v20 = vpop.permute.xlu1 %8660 }
 0xdb7   :  { %v8371_v29 = vsub.f32 %v8276_v37, %v8355_v10  ;;  %8480 = vperm.xlu1 %22706, %v25874_v11   ;;  %v8364_v10 = vmul.f32 %v20175_v31, %v20175_v31 }
 0xdb8   :  { %v8388_v34 = vmax.f32 %v8372_v17, 0.0  ;;  %v8363_v17 = vmul.f32 %v25860_v18, %v25860_v18  ;;  %v8365_v18 = vmul.f32 %v25865_v63, %v25865_v63  ;;  %v8367_v63 = vmul.f32 %v25870_v52, %v25870_v52 }
 0xdb9   :  { %v8387_v9 = vmax.f32 %v8371_v29, 0.0  ;;  %v20222_v59 = vpop.f32.mrb[82].mxu1 }
 0xdba   :  { %v8500_v44 = vadd.f32 1e-05, %v8388_v34  ;;  %v8374_v12 = vsub.f32 %v20222_v59, %v8358_v41  ;;  %v8286_v26 = vpop.f32.mrb[83].mxu1  ;;  %v8366_v59 = vmul.f32 %v25863_v21, %v25863_v21 }
 0xdbb   :  { %v8499_v53 = vadd.f32 1e-05, %v8387_v9  ;;  %v8373_v15 = vsub.f32 %v8286_v26, %v8357_v45 }
 0xdbc   :  { %23232 = vrsqrt.f32 %v8500_v44  ;;  %v8390_v56 = vmax.f32 %v8374_v12, 0.0  ;;  %v25889_v44 = vpop.permute.xlu0 %8645 }
 0xdbd   :  { %23234 = vrsqrt.f32 %v8499_v53  ;;  %v8389_v28 = vmax.f32 %v8373_v15, 0.0  ;;  %v20225_v58 = vpop.f32.mrb[84].mxu1  ;;  %v25893_v15 = vpop.permute.xlu1 %8762 }
 0xdbe   :  { %v8502_v8 = vadd.f32 1e-05, %v8390_v56  ;;  %v8376_v22 = vsub.f32 %v20225_v58, %v8360_v40  ;;  %v8296_v33 = vpop.f32.mrb[85].mxu1 }
 0xdbf   :  { %v8501_v54 = vadd.f32 1e-05, %v8389_v28  ;;  %v8375_v48 = vsub.f32 %v8296_v33, %v8359_v19 }
 0xdc0   :  { %23236 = vrsqrt.f32 %v8502_v8  ;;  %v8392_v27 = vmax.f32 %v8376_v22, 0.0  ;;  %v8368_v8 = vmul.f32 %v25868_v62, %v25868_v62 }
 0xdc1   :  { %23238 = vrsqrt.f32 %v8501_v54  ;;  %v8391_v30 = vmax.f32 %v8375_v48, 0.0  ;;  %v20228_v47 = vpop.f32.mrb[86].mxu1  ;;  %v25901_v62 = vpop.permute.xlu1 %8772 }
 0xdc2   :  { %v8504_v25 = vadd.f32 1e-05, %v8392_v27  ;;  %v8378_v35 = vsub.f32 %v20228_v47, %v8362_v61  ;;  %v8306_v55 = vpop.f32.mrb[87].mxu1  ;;  %v25899_v47 = vpop.permute.xlu0 %8655 }
 0xdc3   :  { %v8503_v13 = vadd.f32 1e-05, %v8391_v30  ;;  %v8377_v49 = vsub.f32 %v8306_v55, %v8361_v24  ;;  %v8370_v55 = vmul.f32 %v25874_v11, %v25874_v11 }
 0xdc4   :  { %23240 = vrsqrt.f32 %v8504_v25  ;;  %v8394_v5 = vmax.f32 %v8378_v35, 0.0 }
 0xdc5   :  { %23242 = vrsqrt.f32 %v8503_v13  ;;  %v8393_v7 = vmax.f32 %v8377_v49, 0.0  ;;  %v20231_v37 = vpop.f32.mrb[88].mxu1  ;;  %v8369_v13 = vmul.f32 %v25876_v3, %v25876_v3 }
 0xdc6   :  { %v23233_v57 = vpop.eup %23232  ;;  %v8506_v29 = vadd.f32 1e-05, %v8394_v5  ;;  %v8380_v1 = vsub.f32 %v20231_v37, %v8364_v10  ;;  %v8316_v41 = vpop.f32.mrb[89].mxu1  ;;  %v22965_v5 = vld [vmem:[#allocation6 + $0x8] sm:$0xff]  }
 0xdc7   :  { %v23235_v34 = vpop.eup %23234  ;;  %v8505_v45 = vadd.f32 1e-05, %v8393_v7  ;;  %v8379_v9 = vsub.f32 %v8316_v41, %v8363_v17  ;;  %8538 = vperm.xlu1 %22706, %v23233_v57   ;;  %20387 = vmatprep.subr.bf16.mxu0 %v22965_v5 }
 0xdc8   :  { %23244 = vrsqrt.f32 %v8506_v29  ;;  %v8396_v31 = vmax.f32 %v8380_v1, 0.0  ;;  %8533 = vperm.xlu0 %22705, %v23235_v34   ;;  %20388 = vmatpush3.bf16.msra.mxu0 %v22965_v5  ;;  %v25907_v34 = vpop.permute.xlu0 %8757  ;;  %v12175_v5 = vld [vmem:[%s27847_s15 + $0x30] sm:$0xff] }
 0xdc9   :  { %23246 = vrsqrt.f32 %v8505_v45  ;;  %v8395_v12 = vmax.f32 %v8379_v9, 0.0  ;;  %v20234_v26 = vpop.f32.mrb[90].mxu1  ;;  %v25909_v9 = vpop.permute.xlu1 %8670 }
 0xdca   :  { %v23237_v53 = vpop.eup %23236  ;;  %v8508_v40 = vadd.f32 1e-05, %v8396_v31  ;;  %v8382_v56 = vsub.f32 %v20234_v26, %v8366_v59  ;;  %v8326_v19 = vpop.f32.mrb[91].mxu1 }
 0xdcb   :  { %v23239_v28 = vpop.eup %23238  ;;  %v8507_v58 = vadd.f32 1e-05, %v8395_v12  ;;  %v8381_v21 = vsub.f32 %v8326_v19, %v8365_v18  ;;  %8548 = vperm.xlu1 %22706, %v23237_v53  }
 0xdcc   :  { %23248 = vrsqrt.f32 %v8508_v40  ;;  %v8398_v22 = vmax.f32 %v8382_v56, 0.0  ;;  %8543 = vperm.xlu0 %22705, %v23239_v28   ;;  %v25911_v53 = vpop.permute.xlu0 %8767 }
 0xdcd   :  { %23250 = vrsqrt.f32 %v8507_v58  ;;  %v8397_v33 = vmax.f32 %v8381_v21, 0.0  ;;  %v20237_v54 = vpop.f32.mrb[92].mxu1  ;;  %v25913_v40 = vpop.permute.xlu1 %8680 }
 0xdce   :  { %v23241_v48 = vpop.eup %23240  ;;  %v8510_v61 = vadd.f32 1e-05, %v8398_v22  ;;  %v8384_v27 = vsub.f32 %v20237_v54, %v8368_v8  ;;  %v8336_v24 = vpop.f32.mrb[93].mxu1  ;;  %v8754_v22 = vld [vmem:[%s27843_s11 + $0x78] sm:$0xff] }
 0xdcf   :  { %v23243_v30 = vpop.eup %23242  ;;  %v8509_v25 = vadd.f32 1e-05, %v8397_v33  ;;  %v8383_v35 = vsub.f32 %v8336_v24, %v8367_v63  ;;  %8558 = vperm.xlu1 %22706, %v23241_v48   ;;  %v8753_v63 = vld [vmem:[%s27843_s11 + $0x70] sm:$0xff]  ;;  %v12170_v48 = vld [vmem:[%s27847_s15 + $0x8] sm:$0xff] }
 0xdd0   :  { %23252 = vrsqrt.f32 %v8510_v61  ;;  %v8400_v52 = vmax.f32 %v8384_v27, 0.0  ;;  %8553 = vperm.xlu0 %22705, %v23243_v30   ;;  %v25915_v28 = vpop.permute.xlu0 %8665  ;;  %v12169_v61 = vld [vmem:[%s27847_s15] sm:$0xff]  ;;  %v12172_v27 = vld [vmem:[%s27847_s15 + $0x18] sm:$0xff]  ;;  %v12171_v30 = vld [vmem:[%s27847_s15 + $0x10] sm:$0xff] }
 0xdd1   :  { %23254 = vrsqrt.f32 %v8509_v25  ;;  %v8399_v49 = vmax.f32 %v8383_v35, 0.0  ;;  %v20240_v10 = vpop.f32.mrb[94].mxu1  ;;  %v25917_v21 = vpop.permute.xlu1 %8782  ;;  %v25945_v35 = vld [vmem:[#allocation6 + $0x10] sm:$0xff]  }
 0xdd2   :  { %v23245_v17 = vpop.eup %23244  ;;  %v8512_v7 = vadd.f32 1e-05, %v8400_v52  ;;  %v8386_v37 = vsub.f32 %v20240_v10, %v8370_v55  ;;  %v8346_v57 = vpop.f32.mrb[95].mxu1  ;;  %v12174_v55 = vld [vmem:[%s27847_s15 + $0x28] sm:$0xff]  ;;  %v12173_v52 = vld [vmem:[%s27847_s15 + $0x20] sm:$0xff]  ;;  %20533 = vmatprep.subr.bf16.mxu0 %v25945_v35  ;;  %v12176_v10 = vld [vmem:[%s27847_s15 + $0x38] sm:$0xff] }
 0xdd3   :  { %v23247_v29 = vpop.eup %23246  ;;  %v8511_v1 = vadd.f32 1e-05, %v8399_v49  ;;  %v8385_v41 = vsub.f32 %v8346_v57, %v8369_v13  ;;  %8568 = vperm.xlu1 %22706, %v23245_v17   ;;  %v12178_v17 = vld [vmem:[%s27847_s15 + $0x48] sm:$0xff] }
 0xdd4   :  { %23256 = vrsqrt.f32 %v8512_v7  ;;  %v8402_v11 = vmax.f32 %v8386_v37, 0.0  ;;  %8563 = vperm.xlu0 %22705, %v23247_v29   ;;  %v25925_v33 = vpop.permute.xlu0 %8675  ;;  %v12177_v37 = vld [vmem:[%s27847_s15 + $0x40] sm:$0xff]  ;;  %v12180_v29 = vld [vmem:[%s27847_s15 + $0x58] sm:$0xff] }
 0xdd5   :  { %23258 = vrsqrt.f32 %v8511_v1  ;;  %v8401_v3 = vmax.f32 %v8385_v41, 0.0  ;;  %v25927_v54 = vpop.permute.xlu1 %8792  ;;  %v12179_v1 = vld [vmem:[%s27847_s15 + $0x50] sm:$0xff] }
 0xdd6   :  { %v23249_v45 = vpop.eup %23248  ;;  %v8514_v59 = vadd.f32 1e-05, %v8402_v11 }
 0xdd7   :  { %v23251_v31 = vpop.eup %23250  ;;  %v8513_v18 = vadd.f32 1e-05, %v8401_v3  ;;  %8578 = vperm.xlu1 %22706, %v23249_v45   ;;  %v12182_v3 = vld [vmem:[%s27847_s15 + $0x68] sm:$0xff]  ;;  %v12181_v45 = vld [vmem:[%s27847_s15 + $0x60] sm:$0xff] }
 0xdd8   :  { %23260 = vrsqrt.f32 %v8514_v59  ;;  %8573 = vperm.xlu0 %22705, %v23251_v31   ;;  %v25938_v24 = vpop.permute.xlu0 %8777  ;;  %v12184_v59 = vld [vmem:[%s27847_s15 + $0x78] sm:$0xff] }
 0xdd9   :  { %23262 = vrsqrt.f32 %v8513_v18  ;;  %v25943_v25 = vpop.permute.xlu1 %8690  ;;  %v12183_v18 = vld [vmem:[%s27847_s15 + $0x70] sm:$0xff] }
 0xdda   :  { %v23253_v12 = vpop.eup %23252 }
 0xddb   :  { %v23255_v26 = vpop.eup %23254  ;;  %8588 = vperm.xlu1 %22706, %v23253_v12  }
 0xddc   :  { %8583 = vperm.xlu0 %22705, %v23255_v26   ;;  %v25954_v13 = vpop.permute.xlu0 %8787 }
 0xddd   :  { %v25956_v49 = vpop.permute.xlu1 %8700 }
 0xdde   :  { %v23257_v56 = vpop.eup %23256 }
 0xddf   :  { %v23259_v19 = vpop.eup %23258  ;;  %8598 = vperm.xlu1 %22706, %v23257_v56  }
 0xde0   :  { %8593 = vperm.xlu0 %22705, %v23259_v19   ;;  %v25967_v7 = vpop.permute.xlu0 %8685 }
 0xde1   :  { %v25972_v57 = vpop.permute.xlu1 %8802 }
 0xde2   :  { %v23261_v58 = vpop.eup %23260 }
 0xde3   :  { %v23263_v8 = vpop.eup %23262  ;;  %8608 = vperm.xlu1 %22706, %v23261_v58  }
 0xde4   :  { %8603 = vperm.xlu0 %22705, %v23263_v8   ;;  %v25980_v41 = vpop.permute.xlu0 %8695 }
 0xde5   :  { %27927 = vst [vmem:[#allocation26_spill] sm:$0xff] %v25980_v41  ;;  %v25982_v11 = vpop.permute.xlu1 %8812 }
 0xde6   :  { %27928 = vst [vmem:[#allocation17_spill] sm:$0xff] %v25982_v11 }
 0xde7   :  { %8832 = vperm.xlu1 %22706, %v8754_v22  }
 0xde8   :  { %8827 = vperm.xlu0 %22705, %v8753_v63   ;;  %v25993_v31 = vpop.permute.xlu0 %8797 }
 0xde9   :  { %v25998_v12 = vpop.permute.xlu1 %8710 }
 0xdea   :  { %27929 = vst [vmem:[#allocation19_spill] sm:$0xff] %v25998_v12 }
 0xdeb   :  { %12192 = vperm.xlu1 %22706, %v12170_v48  }
 0xdec   :  { %12187 = vperm.xlu0 %22705, %v12169_v61   ;;  %v26000_v26 = vpop.permute.xlu0 %8807 }
 0xded   :  { %27930 = vst [vmem:[#allocation27_spill] sm:$0xff] %v26000_v26  ;;  %v26002_v56 = vpop.permute.xlu1 %8720 }
 0xdee   :  { %27931 = vst [vmem:[#allocation16_spill] sm:$0xff] %v26002_v56 }
 0xdef   :  { %12202 = vperm.xlu1 %22706, %v12172_v27  }
 0xdf0   :  { %12197 = vperm.xlu0 %22705, %v12171_v30   ;;  %v26004_v19 = vpop.permute.xlu0 %8705 }
 0xdf1   :  { %27932 = vst [vmem:[#allocation22_spill] sm:$0xff] %v26004_v19  ;;  %v26006_v58 = vpop.permute.xlu1 %8822 }
 0xdf2   :  { %27933 = vst [vmem:[#allocation23_spill] sm:$0xff] %v26006_v58 }
 0xdf3   :  { %12212 = vperm.xlu1 %22706, %v12174_v55  }
 0xdf4   :  { %12207 = vperm.xlu0 %22705, %v12173_v52   ;;  %v26008_v22 = vpop.permute.xlu0 %8715 }
 0xdf5   :  { %27934 = vst [vmem:[#allocation25_spill] sm:$0xff] %v26008_v22 }
 0xdf7   :  { %12222 = vperm.xlu1 %22706, %v12176_v10  }
 0xdf8   :  { %12217 = vperm.xlu0 %22705, %v12175_v5   ;;  %v26010_v48 = vpop.permute.xlu0 %8817 }
 0xdf9   :  { %27935 = vst [vmem:[#allocation21_spill] sm:$0xff] %v26010_v48 }
 0xdfb   :  { %12232 = vperm.xlu1 %22706, %v12178_v17  }
 0xdfc   :  { %12227 = vperm.xlu0 %22705, %v12177_v37  }
 0xdff   :  { %12242 = vperm.xlu1 %22706, %v12180_v29  }
 0xe00   :  { %12237 = vperm.xlu0 %22705, %v12179_v1  }
 0xe03   :  { %12252 = vperm.xlu1 %22706, %v12182_v3  }
 0xe04   :  { %12247 = vperm.xlu0 %22705, %v12181_v45  }
 0xe07   :  { %12262 = vperm.xlu1 %22706, %v12184_v59  }
 0xe08   :  { %12257 = vperm.xlu0 %22705, %v12183_v18  }
 0xe15   :  { %v8411_v27 = vpop.permute.xlu0 %8410 }
 0xe16   :  { %v8406_v8 = vpop.permute.xlu1 %8405  ;;  %v8484_v18 = vsub.f32 %v25590_v4, %v8411_v27 }
 0xe17   :  { %v8483_v22 = vsub.f32 %v25586_v46, %v8406_v8 }
 0xe1a   :  { %v8421_v63 = vpop.permute.xlu1 %8420 }
 0xe1b   :  { %v8486_v39 = vsub.f32 %v25596_v51, %v8421_v63 }
 0xe1e   :  { %v8416_v61 = vpop.permute.xlu1 %8415  ;;  %v8426_v55 = vpop.permute.xlu0 %8425 }
 0xe1f   :  { %v8485_v16 = vsub.f32 %v25588_v0, %v8416_v61  ;;  %v8487_v51 = vsub.f32 %v25600_v42, %v8426_v55 }
 0xe22   :  { %v8431_v30 = vpop.permute.xlu1 %8430  ;;  %v8436_v10 = vpop.permute.xlu0 %8435 }
 0xe23   :  { %v8489_v42 = vsub.f32 %v25602_v50, %v8436_v10  ;;  %v26056_v50 = vld [vmem:[#allocation6 + $0x18] sm:$0xff]  }
 0xe26   :  { %v8441_v52 = vpop.permute.xlu1 %8440  ;;  %v26014_v17 = vpop.permute.xlu0 %8445 }
 0xe27   :  { %v8491_v27 = vsub.f32 %v25616_v2, %v26014_v17 }
 0xe2a   :  { %v26012_v5 = vpop.permute.xlu1 %8450  ;;  %v26018_v29 = vpop.permute.xlu0 %8455 }
 0xe2e   :  { %v26016_v37 = vpop.permute.xlu1 %8460  ;;  %v26022_v3 = vpop.permute.xlu0 %8465 }
 0xe32   :  { %v26020_v1 = vpop.permute.xlu1 %8470  ;;  %v26026_v59 = vpop.permute.xlu0 %8475 }
 0xe33   :  { %27937 = vst [vmem:[#allocation28_spill] sm:$0xff] %v26026_v59 }
 0xe36   :  { %v26024_v45 = vpop.permute.xlu1 %8480 }
 0xe37   :  { %27936 = vst [vmem:[#allocation24_spill] sm:$0xff] %v26024_v45 }
 0xe46   :  { %v8539_v56 = vpop.permute.xlu1 %8538 }
 0xe47   :  { %v8612_v48 = vmul.f32 %v8539_v56, %v8484_v18  ;;  %v8534_v58 = vpop.permute.xlu0 %8533  ;;  %v8488_v56 = vsub.f32 %v25604_v36, %v8431_v30  ;;  %v8490_v36 = vsub.f32 %v25610_v60, %v8441_v52 }
 0xe48   :  { %v8611_v19 = vmul.f32 %v8534_v58, %v8483_v22 }
 0xe49   :  { %v8724_v12 = vmul.f32 %v25881_v6, %v8612_v48 }
 0xe4a   :  { %v8723_v26 = vmul.f32 %v25889_v44, %v8611_v19  ;;  %v8549_v11 = vpop.permute.xlu1 %8548 }
 0xe4b   :  { %v8836_v45 = vadd.f32 %v25893_v15, %v8724_v12  ;;  %v8614_v59 = vmul.f32 %v8549_v11, %v8486_v39  ;;  %v8544_v41 = vpop.permute.xlu0 %8543 }
 0xe4c   :  { %v8835_v4 = vadd.f32 %v25907_v34, %v8723_v26  ;;  %v8613_v46 = vmul.f32 %v8544_v41, %v8485_v16 }
 0xe4d   :  { %v8852_v8 = vmax.f32 %v8836_v45, 0.0  ;;  %v8726_v58 = vmul.f32 %v25883_v20, %v8614_v59 }
 0xe4e   :  { %v8851_v6 = vmax.f32 %v8835_v4, 0.0  ;;  %v8725_v0 = vmul.f32 %v25899_v47, %v8613_v46  ;;  %v8559_v22 = vpop.permute.xlu1 %8558  ;;  %v8495_v46 = vsub.f32 %v25632_v23, %v26022_v3  ;;  %v27943_v3 = vld [vmem:[#allocation19_spill] sm:$0xff] }
 0xe4f   :  { %v8838_v44 = vadd.f32 %v25901_v62, %v8726_v58  ;;  %v8616_v19 = vmul.f32 %v8559_v22, %v8488_v56  ;;  %v8554_v15 = vpop.permute.xlu0 %8553  ;;  %v27940_v22 = vld [vmem:[#allocation27_spill] sm:$0xff] }
 0xe50   :  { %v8837_v39 = vadd.f32 %v25911_v53, %v8725_v0  ;;  %v8615_v11 = vmul.f32 %v8554_v15, %v8487_v51  ;;  %v26042_v34 = vpack.c.bf16 %v8852_v8, %v8851_v6  ;;  %v27938_v8 = vld [vmem:[#allocation26_spill] sm:$0xff] }
 0xe51   :  { %v8854_v16 = vmax.f32 %v8838_v44, 0.0  ;;  %v8728_v20 = vmul.f32 %v25909_v9, %v8616_v19  ;;  %v27942_v19 = vld [vmem:[#allocation20_spill] sm:$0xff] }
 0xe52   :  { %v8853_v41 = vmax.f32 %v8837_v39, 0.0  ;;  %v8727_v47 = vmul.f32 %v25915_v28, %v8615_v11  ;;  %v8569_v12 = vpop.permute.xlu1 %8568  ;;  %20243 = vmatprep.mubr.msk.bf16.mxu1 %vm291_vm3, %v26042_v34  ;;  %20389 = vmatprep.mubr.msk.bf16.mxu0 %vm291_vm3, %v26042_v34  ;;  %v8492_v28 = vsub.f32 %v25620_v14, %v26012_v5  ;;  %v27944_v11 = vld [vmem:[#allocation28_spill] sm:$0xff] }
 0xe53   :  { %v8840_v62 = vadd.f32 %v25917_v21, %v8728_v20  ;;  %v8618_v53 = vmul.f32 %v8569_v12, %v8490_v36  ;;  %v8564_v26 = vpop.permute.xlu0 %8563  ;;  %v27945_v36 = vld [vmem:[#allocation18_spill] sm:$0xff]  ;;  %v27947_v12 = vld [vmem:[#allocation23_spill] sm:$0xff] }
 0xe54   :  { %v26053_v60 = vpack.c.bf16 %v8854_v16, %v8853_v41  ;;  %v8839_v9 = vadd.f32 %v25938_v24, %v8727_v47  ;;  %v8617_v63 = vmul.f32 %v8564_v26, %v8489_v42  ;;  %v8497_v16 = vsub.f32 %v27945_v36, %v27944_v11  ;;  %v27946_v42 = vld [vmem:[#allocation22_spill] sm:$0xff] }
 0xe55   :  { %v8856_v48 = vmax.f32 %v8840_v62, 0.0  ;;  %v8730_v61 = vmul.f32 %v25913_v40, %v8618_v53 }
 0xe56   :  { %v8855_v30 = vmax.f32 %v8839_v9, 0.0  ;;  %v8729_v21 = vmul.f32 %v25925_v33, %v8617_v63  ;;  %v8579_v55 = vpop.permute.xlu1 %8578  ;;  %20244 = vmatmul.mubr.msk.bf16.vlgmr.msra.gmra.mrb[96].mxu1 %vm291_vm3, %v26053_v60  ;;  %20390 = vmatmul.mubr.msk.bf16.vlgmr.msra.gmra.mrb[80].mxu0 %vm291_vm3, %v26053_v60  ;;  %v8494_v33 = vsub.f32 %v25626_v32, %v26016_v37  ;;  %v27948_v9 = vld [vmem:[#allocation21_spill] sm:$0xff] }
 0xe57   :  { %v8842_v24 = vadd.f32 %v25927_v54, %v8730_v61  ;;  %v8620_v52 = vmul.f32 %v8579_v55, %v8492_v28  ;;  %v8574_v14 = vpop.permute.xlu0 %8573  ;;  %20534 = vmatpush3.bf16.msra.mxu0 %v25945_v35  ;;  %v8493_v54 = vsub.f32 %v25618_v38, %v26018_v29  ;;  %v8496_v38 = vsub.f32 %v25636_v43, %v26020_v1 }
 0xe58   :  { %v8841_v40 = vadd.f32 %v25954_v13, %v8729_v21  ;;  %v8619_v10 = vmul.f32 %v8574_v14, %v8491_v27  ;;  %v26071_v2 = vpack.c.bf16 %v8856_v48, %v8855_v30  ;;  %20679 = vmatprep.subr.bf16.mxu0 %v26056_v50  ;;  %v27949_v27 = vld [vmem:[#allocation16_spill] sm:$0xff] }
 0xe59   :  { %v8858_v5 = vmax.f32 %v8842_v24, 0.0  ;;  %v8732_v17 = vmul.f32 %v25943_v25, %v8620_v52  ;;  %v27950_v24 = vld [vmem:[#allocation25_spill] sm:$0xff] }
 0xe5a   :  { %v8857_v45 = vmax.f32 %v8841_v40, 0.0  ;;  %v8731_v59 = vmul.f32 %v25967_v7, %v8619_v10  ;;  %v8589_v35 = vpop.permute.xlu1 %8588  ;;  %20247 = vmatprep.mubr.msk.bf16.mxu1 %vm291_vm3, %v26071_v2  ;;  %20393 = vmatprep.mubr.msk.bf16.mxu0 %vm291_vm3, %v26071_v2 }
 0xe5b   :  { %v8844_v13 = vadd.f32 %v25972_v57, %v8732_v17  ;;  %v8622_v18 = vmul.f32 %v8589_v35, %v8494_v33  ;;  %v8584_v32 = vpop.permute.xlu0 %8583  ;;  %v27939_v57 = vld [vmem:[#allocation17_spill] sm:$0xff] }
 0xe5c   :  { %v8843_v37 = vadd.f32 %v25993_v31, %v8731_v59  ;;  %v8621_v25 = vmul.f32 %v8584_v32, %v8493_v54  ;;  %v8870_v4 = vpack.c.bf16 %v8858_v5, %v8857_v45 }
 0xe5d   :  { %v8860_v29 = vmax.f32 %v8844_v13, 0.0  ;;  %v8734_v7 = vmul.f32 %v25956_v49, %v8622_v18  ;;  %v27941_v49 = vld [vmem:[#allocation24_spill] sm:$0xff] }
 0xe5e   :  { %v8859_v56 = vmax.f32 %v8843_v37, 0.0  ;;  %v8733_v58 = vmul.f32 %v27938_v8, %v8621_v25  ;;  %v8599_v51 = vpop.permute.xlu1 %8598  ;;  %20248 = vmatmul.mubr.msk.bf16.gmra.mrb[100].mxu1 %vm291_vm3, %v8870_v4  ;;  %20394 = vmatmul.mubr.msk.bf16.gmra.mrb[84].mxu0 %vm291_vm3, %v8870_v4  ;;  %v8498_v15 = vsub.f32 %v27942_v19, %v27941_v49 }
 0xe5f   :  { %v8846_v31 = vadd.f32 %v27939_v57, %v8734_v7  ;;  %v8624_v6 = vmul.f32 %v8599_v51, %v8496_v38  ;;  %v8594_v0 = vpop.permute.xlu0 %8593 }
 0xe60   :  { %v8845_v43 = vadd.f32 %v27940_v22, %v8733_v58  ;;  %v8623_v1 = vmul.f32 %v8594_v0, %v8495_v46  ;;  %v8871_v44 = vpack.c.bf16 %v8860_v29, %v8859_v56 }
 0xe61   :  { %v8862_v23 = vmax.f32 %v8846_v31, 0.0  ;;  %v8736_v39 = vmul.f32 %v27943_v3, %v8624_v6 }
 0xe62   :  { %v8861_v20 = vmax.f32 %v8845_v43, 0.0  ;;  %v8735_v41 = vmul.f32 %v27946_v42, %v8623_v1  ;;  %v8609_v47 = vpop.permute.xlu1 %8608  ;;  %20251 = vmatprep.mubr.msk.bf16.mxu1 %vm291_vm3, %v8871_v44  ;;  %20397 = vmatprep.mubr.msk.bf16.mxu0 %vm291_vm3, %v8871_v44 }
 0xe63   :  { %v8848_v62 = vadd.f32 %v27947_v12, %v8736_v39  ;;  %v8626_v53 = vmul.f32 %v8609_v47, %v8498_v15  ;;  %v8604_v26 = vpop.permute.xlu0 %8603 }
 0xe64   :  { %v8847_v63 = vadd.f32 %v27948_v9, %v8735_v41  ;;  %v8625_v28 = vmul.f32 %v8604_v26, %v8497_v16  ;;  %v8872_v48 = vpack.c.bf16 %v8862_v23, %v8861_v20 }
 0xe65   :  { %v8864_v61 = vmax.f32 %v8848_v62, 0.0  ;;  %v8738_v30 = vmul.f32 %v27949_v27, %v8626_v53 }
 0xe66   :  { %v8863_v21 = vmax.f32 %v8847_v63, 0.0  ;;  %v8833_v55 = vpop.permute.xlu1 %8832  ;;  %20252 = vmatmul.mubr.msk.bf16.gmra.mrb[104].mxu1 %vm291_vm3, %v8872_v48  ;;  %20398 = vmatmul.mubr.msk.bf16.gmra.mrb[88].mxu0 %vm291_vm3, %v8872_v48  ;;  %v8737_v52 = vmul.f32 %v27950_v24, %v8625_v28  ;;  %v22970_v24 = vld [vmem:[%s27845_s13 + $0x110] sm:$0xff]  }
 0xe67   :  { %v8850_v14 = vadd.f32 %v8833_v55, %v8738_v30  ;;  %v8828_v40 = vpop.permute.xlu0 %8827  ;;  %v22969_v30 = vld [vmem:[%s27845_s13 + $0x108] sm:$0xff]  }
 0xe68   :  { %v8849_v10 = vadd.f32 %v8828_v40, %v8737_v52  ;;  %v8873_v33 = vpack.c.bf16 %v8864_v61, %v8863_v21 }
 0xe69   :  { %v8866_v5 = vmax.f32 %v8850_v14, 0.0 }
 0xe6a   :  { %v8865_v17 = vmax.f32 %v8849_v10, 0.0  ;;  %20255 = vmatprep.mubr.msk.bf16.mxu1 %vm291_vm3, %v8873_v33  ;;  %20401 = vmatprep.mubr.msk.bf16.mxu0 %vm291_vm3, %v8873_v33 }
 0xe6c   :  { %v8874_v54 = vpack.c.bf16 %v8866_v5, %v8865_v17 }
 0xe6e   :  { %20256 = vmatmul.mubr.msk.bf16.gmra.mrb[108].mxu1 %vm291_vm3, %v8874_v54  ;;  %20402 = vmatmul.mubr.msk.bf16.gmra.mrb[92].mxu0 %vm291_vm3, %v8874_v54 }
 0xe6f   :  { %20535 = vmatprep.mubr.msk.bf16.mxu0 %vm291_vm3, %v26042_v34 }
 0xe76   :  { %20536 = vmatmul.mubr.msk.bf16.vlgmr.msra.gmra.mrb[96].mxu0 %vm291_vm3, %v26053_v60 }
 0xe77   :  { %20539 = vmatprep.mubr.msk.bf16.mxu0 %vm291_vm3, %v26071_v2  ;;  %20680 = vmatpush3.bf16.msra.mxu0 %v26056_v50 }
 0xe7e   :  { %20540 = vmatmul.mubr.msk.bf16.gmra.mrb[100].mxu0 %vm291_vm3, %v8870_v4 }
 0xe7f   :  { %20543 = vmatprep.mubr.msk.bf16.mxu0 %vm291_vm3, %v8871_v44 }
 0xe86   :  { %20544 = vmatmul.mubr.msk.bf16.gmra.mrb[104].mxu0 %vm291_vm3, %v8872_v48 }
 0xe87   :  { %20547 = vmatprep.mubr.msk.bf16.mxu0 %vm291_vm3, %v8873_v33 }
 0xe8e   :  { %20548 = vmatmul.mubr.msk.bf16.gmra.mrb[108].mxu0 %vm291_vm3, %v8874_v54 }
 0xe8f   :  { %20681 = vmatprep.mubr.msk.bf16.mxu0 %vm291_vm3, %v26042_v34  ;;  %v22968_v34 = vld [vmem:[%s27845_s13 + $0x100] sm:$0xff]  }
 0xe90   :  { %20275 = vmatprep.mubr.bf16.mxu1 %v22968_v34 }
 0xe96   :  { %20682 = vmatmul.mubr.msk.bf16.vlgmr.msra.gmra.mrb[112].mxu0 %vm291_vm3, %v26053_v60 }
 0xe97   :  { %20685 = vmatprep.mubr.msk.bf16.mxu0 %vm291_vm3, %v26071_v2 }
 0xe9e   :  { %20686 = vmatmul.mubr.msk.bf16.gmra.mrb[116].mxu0 %vm291_vm3, %v8870_v4 }
 0xe9f   :  { %20689 = vmatprep.mubr.msk.bf16.mxu0 %vm291_vm3, %v8871_v44 }
 0xea6   :  { %20690 = vmatmul.mubr.msk.bf16.gmra.mrb[120].mxu0 %vm291_vm3, %v8872_v48 }
 0xea7   :  { %20693 = vmatprep.mubr.msk.bf16.mxu0 %vm291_vm3, %v8873_v33  ;;  %v22971_v33 = vld [vmem:[%s27845_s13 + $0x118] sm:$0xff]  }
 0xeae   :  { %20694 = vmatmul.mubr.msk.bf16.gmra.mrb[124].mxu0 %vm291_vm3, %v8874_v54  ;;  %v22972_v54 = vld [vmem:[%s27845_s13 + $0x120] sm:$0xff]  }
 0xf29   :  { %v20245_v50 = vpop.f32.mrb[96].mxu1  ;;  %v20391_v60 = vpop.f32.mrb[80].mxu0 }
 0xf2a   :  { %v8941_v45 = vpop.f32.mrb[97].mxu1  ;;  %v9734_v59 = vpop.f32.mrb[81].mxu0 }
 0xf2b   :  { %v20246_v2 = vpop.f32.mrb[98].mxu1  ;;  %v20392_v35 = vpop.f32.mrb[82].mxu0 }
 0xf2c   :  { %v26140_v13 = vpack.c.bf16 %v20246_v2, %v20245_v50  ;;  %v26142_v18 = vpack.c.bf16 %v20392_v35, %v20391_v60  ;;  %v8944_v32 = vpop.f32.mrb[99].mxu1  ;;  %v9737_v37 = vpop.f32.mrb[83].mxu0 }
 0xf2d   :  { %v26144_v25 = vpack.c.bf16 %v8944_v32, %v8941_v45  ;;  %v26146_v4 = vpack.c.bf16 %v9737_v37, %v9734_v59  ;;  %v22973_v59 = vld [vmem:[%s27845_s13 + $0x128] sm:$0xff]   ;;  %v22974_v32 = vld [vmem:[%s27845_s13 + $0x130] sm:$0xff]  }
 0xf2f   :  { %20259 = vmatprep.subr.bf16.mxu1 %v26144_v25 }
 0xf30   :  { %20260 = vmatpush3.bf16.msra.mxu1 %v26144_v25 }
 0xf31   :  { %v20249_v38 = vpop.f32.mrb[100].mxu1  ;;  %20261 = vmatprep.subr.bf16.mxu1 %v26140_v13  ;;  %v20395_v29 = vpop.f32.mrb[84].mxu0 }
 0xf32   :  { %v8957_v7 = vpop.f32.mrb[101].mxu1  ;;  %v9750_v46 = vpop.f32.mrb[85].mxu0 }
 0xf33   :  { %v20250_v56 = vpop.f32.mrb[102].mxu1  ;;  %v20396_v8 = vpop.f32.mrb[86].mxu0 }
 0xf34   :  { %v26151_v58 = vpack.c.bf16 %v20250_v56, %v20249_v38  ;;  %v26153_v51 = vpack.c.bf16 %v20396_v8, %v20395_v29  ;;  %v8960_v57 = vpop.f32.mrb[103].mxu1  ;;  %20262 = vmatpush3.bf16.msra.mxu1 %v26140_v13  ;;  %v9753_v31 = vpop.f32.mrb[87].mxu0 }
 0xf35   :  { %v26156_v6 = vpack.c.bf16 %v8960_v57, %v8957_v7  ;;  %v26158_v0 = vpack.c.bf16 %v9753_v31, %v9750_v46  ;;  %v22975_v46 = vld [vmem:[%s27845_s13 + $0x138] sm:$0xff]   ;;  %v22976_v57 = vld [vmem:[%s27845_s13] sm:$0xff]  }
 0xf37   :  { %20263 = vmatprep.subr.bf16.mxu1 %v26156_v6 }
 0xf38   :  { %20264 = vmatpush3.bf16.msra.mxu1 %v26156_v6 }
 0xf39   :  { %v20253_v22 = vpop.f32.mrb[104].mxu1  ;;  %20265 = vmatprep.subr.bf16.mxu1 %v26151_v58  ;;  %v20399_v43 = vpop.f32.mrb[88].mxu0 }
 0xf3a   :  { %v8973_v1 = vpop.f32.mrb[105].mxu1  ;;  %v9766_v44 = vpop.f32.mrb[89].mxu0 }
 0xf3b   :  { %v20254_v49 = vpop.f32.mrb[106].mxu1  ;;  %v20400_v19 = vpop.f32.mrb[90].mxu0 }
 0xf3c   :  { %v26163_v15 = vpack.c.bf16 %v20254_v49, %v20253_v22  ;;  %v26165_v23 = vpack.c.bf16 %v20400_v19, %v20399_v43  ;;  %v8976_v3 = vpop.f32.mrb[107].mxu1  ;;  %20266 = vmatpush3.bf16.msra.mxu1 %v26151_v58  ;;  %v9769_v39 = vpop.f32.mrb[91].mxu0 }
 0xf3d   :  { %v26168_v11 = vpack.c.bf16 %v8976_v3, %v8973_v1  ;;  %v26170_v36 = vpack.c.bf16 %v9769_v39, %v9766_v44  ;;  %v22977_v44 = vld [vmem:[%s27845_s13 + $0x8] sm:$0xff]   ;;  %v22978_v3 = vld [vmem:[%s27845_s13 + $0x10] sm:$0xff]  }
 0xf3f   :  { %20267 = vmatprep.subr.bf16.mxu1 %v26168_v11 }
 0xf40   :  { %20268 = vmatpush3.bf16.msra.mxu1 %v26168_v11 }
 0xf41   :  { %v20257_v16 = vpop.f32.mrb[108].mxu1  ;;  %20269 = vmatprep.subr.bf16.mxu1 %v26163_v15  ;;  %v20403_v20 = vpop.f32.mrb[92].mxu0 }
 0xf42   :  { %v8989_v42 = vpop.f32.mrb[109].mxu1  ;;  %v9782_v41 = vpop.f32.mrb[93].mxu0 }
 0xf43   :  { %v20258_v47 = vpop.f32.mrb[110].mxu1  ;;  %v20404_v12 = vpop.f32.mrb[94].mxu0 }
 0xf44   :  { %v26175_v62 = vpack.c.bf16 %v20258_v47, %v20257_v16  ;;  %v26177_v53 = vpack.c.bf16 %v20404_v12, %v20403_v20  ;;  %v8992_v26 = vpop.f32.mrb[111].mxu1  ;;  %20270 = vmatpush3.bf16.msra.mxu1 %v26163_v15  ;;  %v9785_v9 = vpop.f32.mrb[95].mxu0 }
 0xf45   :  { %v26180_v63 = vpack.c.bf16 %v8992_v26, %v8989_v42  ;;  %v26182_v28 = vpack.c.bf16 %v9785_v9, %v9782_v41  ;;  %v22979_v41 = vld [vmem:[%s27845_s13 + $0x18] sm:$0xff]   ;;  %v22980_v26 = vld [vmem:[%s27845_s13 + $0x20] sm:$0xff]  }
 0xf47   :  { %20271 = vmatprep.subr.bf16.mxu1 %v26180_v63 }
 0xf48   :  { %20272 = vmatpush3.bf16.msra.mxu1 %v26180_v63 }
 0xf49   :  { %20273 = vmatprep.subr.bf16.mxu1 %v26175_v62  ;;  %v20537_v48 = vpop.f32.mrb[96].mxu0 }
 0xf4a   :  { %v10560_v61 = vpop.f32.mrb[97].mxu0 }
 0xf4b   :  { %v20538_v27 = vpop.f32.mrb[98].mxu0 }
 0xf4c   :  { %v26190_v21 = vpack.c.bf16 %v20538_v27, %v20537_v48  ;;  %20274 = vmatpush3.bf16.msra.mxu1 %v26175_v62  ;;  %v10563_v55 = vpop.f32.mrb[99].mxu0 }
 0xf4d   :  { %v26196_v52 = vpack.c.bf16 %v10563_v55, %v10560_v61  ;;  %20291 = vmatprep.subr.bf16.mxu1 %v26144_v25 }
 0xf4f   :  { %20276 = vmatmul.mubr.bf16.vlgmr.msra.gmra.mrb[112].mxu1 %v22969_v30  ;;  %v22981_v30 = vld [vmem:[%s27845_s13 + $0x28] sm:$0xff]  }
 0xf50   :  { %20292 = vmatpush3.bf16.msra.mxu1 %v26144_v25  ;;  %20279 = vmatprep.mubr.bf16.mxu1 %v22970_v24 }
 0xf51   :  { %20293 = vmatprep.subr.bf16.mxu1 %v26140_v13  ;;  %v20541_v14 = vpop.f32.mrb[100].mxu0 }
 0xf52   :  { %v10576_v40 = vpop.f32.mrb[101].mxu0 }
 0xf53   :  { %v20542_v10 = vpop.f32.mrb[102].mxu0 }
 0xf54   :  { %v26204_v5 = vpack.c.bf16 %v20542_v10, %v20541_v14  ;;  %20294 = vmatpush3.bf16.msra.mxu1 %v26140_v13  ;;  %v10579_v17 = vpop.f32.mrb[103].mxu0  ;;  %v22982_v14 = vld [vmem:[%s27845_s13 + $0x30] sm:$0xff]  }
 0xf55   :  { %v26210_v34 = vpack.c.bf16 %v10579_v17, %v10576_v40  ;;  %20295 = vmatprep.subr.bf16.mxu1 %v26156_v6 }
 0xf57   :  { %20280 = vmatmul.mubr.bf16.gmra.mrb[116].mxu1 %v22971_v33 }
 0xf58   :  { %20296 = vmatpush3.bf16.msra.mxu1 %v26156_v6  ;;  %20283 = vmatprep.mubr.bf16.mxu1 %v22972_v54  ;;  %v22983_v54 = vld [vmem:[%s27845_s13 + $0x38] sm:$0xff]  }
 0xf59   :  { %20297 = vmatprep.subr.bf16.mxu1 %v26151_v58  ;;  %v20545_v50 = vpop.f32.mrb[104].mxu0 }
 0xf5a   :  { %v10592_v60 = vpop.f32.mrb[105].mxu0 }
 0xf5b   :  { %v20546_v45 = vpop.f32.mrb[106].mxu0 }
 0xf5c   :  { %v26218_v2 = vpack.c.bf16 %v20546_v45, %v20545_v50  ;;  %20298 = vmatpush3.bf16.msra.mxu1 %v26151_v58  ;;  %v10595_v35 = vpop.f32.mrb[107].mxu0  ;;  %v22984_v45 = vld [vmem:[%s27845_s13 + $0x200] sm:$0xff]  }
 0xf5d   :  { %v26224_v37 = vpack.c.bf16 %v10595_v35, %v10592_v60  ;;  %20299 = vmatprep.subr.bf16.mxu1 %v26168_v11  ;;  %v22985_v35 = vld [vmem:[%s27845_s13 + $0x208] sm:$0xff]  }
 0xf5f   :  { %20284 = vmatmul.mubr.bf16.gmra.mrb[120].mxu1 %v22973_v59 }
 0xf60   :  { %20300 = vmatpush3.bf16.msra.mxu1 %v26168_v11  ;;  %20287 = vmatprep.mubr.bf16.mxu1 %v22974_v32  ;;  %v22986_v32 = vld [vmem:[%s27845_s13 + $0x210] sm:$0xff]  }
 0xf61   :  { %20301 = vmatprep.subr.bf16.mxu1 %v26163_v15  ;;  %v20549_v38 = vpop.f32.mrb[108].mxu0 }
 0xf62   :  { %v10608_v29 = vpop.f32.mrb[109].mxu0 }
 0xf63   :  { %v20550_v7 = vpop.f32.mrb[110].mxu0 }
 0xf64   :  { %v26232_v56 = vpack.c.bf16 %v20550_v7, %v20549_v38  ;;  %20302 = vmatpush3.bf16.msra.mxu1 %v26163_v15  ;;  %v10611_v8 = vpop.f32.mrb[111].mxu0  ;;  %v22987_v38 = vld [vmem:[%s27845_s13 + $0x218] sm:$0xff]   ;;  %v22997_v7 = vld [vmem:[%s27845_s13 + $0x328] sm:$0xff]  }
 0xf65   :  { %v26238_v31 = vpack.c.bf16 %v10611_v8, %v10608_v29  ;;  %20303 = vmatprep.subr.bf16.mxu1 %v26180_v63  ;;  %v22988_v29 = vld [vmem:[%s27845_s13 + $0x220] sm:$0xff]   ;;  %v22999_v8 = vld [vmem:[%s27845_s13 + $0x338] sm:$0xff]  }
 0xf67   :  { %20288 = vmatmul.mubr.bf16.gmra.mrb[124].mxu1 %v22975_v46  ;;  %v22998_v46 = vld [vmem:[%s27845_s13 + $0x330] sm:$0xff]  }
 0xf68   :  { %20304 = vmatpush3.bf16.msra.mxu1 %v26180_v63  ;;  %20307 = vmatprep.mubr.bf16.mxu1 %v22976_v57  ;;  %v23000_v57 = vld [vmem:[%s27845_s13 + $0x40] sm:$0xff]  }
 0xf69   :  { %20305 = vmatprep.subr.bf16.mxu1 %v26175_v62  ;;  %v20683_v22 = vpop.f32.mrb[112].mxu0 }
 0xf6a   :  { %v11386_v43 = vpop.f32.mrb[113].mxu0 }
 0xf6b   :  { %v20684_v1 = vpop.f32.mrb[114].mxu0 }
 0xf6c   :  { %v26246_v49 = vpack.c.bf16 %v20684_v1, %v20683_v22  ;;  %20306 = vmatpush3.bf16.msra.mxu1 %v26175_v62  ;;  %v11389_v19 = vpop.f32.mrb[115].mxu0  ;;  %v23001_v22 = vld [vmem:[%s27845_s13 + $0x48] sm:$0xff]   ;;  %v23003_v1 = vld [vmem:[%s27845_s13 + $0x58] sm:$0xff]  }
 0xf6d   :  { %v26252_v39 = vpack.c.bf16 %v11389_v19, %v11386_v43  ;;  %20323 = vmatprep.subr.bf16.mxu1 %v26144_v25  ;;  %v23002_v43 = vld [vmem:[%s27845_s13 + $0x50] sm:$0xff]   ;;  %v23005_v19 = vld [vmem:[%s27845_s13 + $0x68] sm:$0xff]  }
 0xf6f   :  { %20308 = vmatmul.mubr.bf16.vlgmr.msra.gmra.mrb[112].mxu1 %v22977_v44  ;;  %v23004_v44 = vld [vmem:[%s27845_s13 + $0x60] sm:$0xff]  }
 0xf70   :  { %20324 = vmatpush3.bf16.msra.mxu1 %v26144_v25  ;;  %20311 = vmatprep.mubr.bf16.mxu1 %v22978_v3  ;;  %v23006_v3 = vld [vmem:[%s27845_s13 + $0x70] sm:$0xff]  }
 0xf71   :  { %20325 = vmatprep.subr.bf16.mxu1 %v26140_v13  ;;  %v20687_v16 = vpop.f32.mrb[116].mxu0 }
 0xf72   :  { %v11402_v20 = vpop.f32.mrb[117].mxu0 }
 0xf73   :  { %v20688_v42 = vpop.f32.mrb[118].mxu0 }
 0xf74   :  { %v26260_v47 = vpack.c.bf16 %v20688_v42, %v20687_v16  ;;  %20326 = vmatpush3.bf16.msra.mxu1 %v26140_v13  ;;  %v11405_v12 = vpop.f32.mrb[119].mxu0  ;;  %v23007_v16 = vld [vmem:[%s27845_s13 + $0x78] sm:$0xff]   ;;  %v23009_v42 = vld [vmem:[%s27845_s13 + $0x148] sm:$0xff]  }
 0xf75   :  { %v26266_v9 = vpack.c.bf16 %v11405_v12, %v11402_v20  ;;  %20327 = vmatprep.subr.bf16.mxu1 %v26156_v6  ;;  %v23008_v20 = vld [vmem:[%s27845_s13 + $0x140] sm:$0xff]   ;;  %v23011_v12 = vld [vmem:[%s27845_s13 + $0x158] sm:$0xff]  }
 0xf77   :  { %20312 = vmatmul.mubr.bf16.gmra.mrb[116].mxu1 %v22979_v41  ;;  %v23010_v41 = vld [vmem:[%s27845_s13 + $0x150] sm:$0xff]  }
 0xf78   :  { %20328 = vmatpush3.bf16.msra.mxu1 %v26156_v6  ;;  %20315 = vmatprep.mubr.bf16.mxu1 %v22980_v26  ;;  %v23012_v26 = vld [vmem:[%s27845_s13 + $0x160] sm:$0xff]  }
 0xf79   :  { %20329 = vmatprep.subr.bf16.mxu1 %v26151_v58  ;;  %v20691_v48 = vpop.f32.mrb[120].mxu0 }
 0xf7a   :  { %v11418_v61 = vpop.f32.mrb[121].mxu0 }
 0xf7b   :  { %v20692_v27 = vpop.f32.mrb[122].mxu0 }
 0xf7c   :  { %v26274_v55 = vpack.c.bf16 %v20692_v27, %v20691_v48  ;;  %20330 = vmatpush3.bf16.msra.mxu1 %v26151_v58  ;;  %v11421_v24 = vpop.f32.mrb[123].mxu0  ;;  %v23013_v48 = vld [vmem:[%s27845_s13 + $0x168] sm:$0xff]   ;;  %v23015_v27 = vld [vmem:[%s27845_s13 + $0x178] sm:$0xff]  }
 0xf7d   :  { %v26280_v40 = vpack.c.bf16 %v11421_v24, %v11418_v61  ;;  %20331 = vmatprep.subr.bf16.mxu1 %v26168_v11  ;;  %v23014_v61 = vld [vmem:[%s27845_s13 + $0x170] sm:$0xff]   ;;  %v23017_v24 = vld [vmem:[%s27845_s13 + $0x248] sm:$0xff]  }
 0xf7f   :  { %20316 = vmatmul.mubr.bf16.gmra.mrb[120].mxu1 %v22981_v30  ;;  %v23016_v30 = vld [vmem:[%s27845_s13 + $0x240] sm:$0xff]  }
 0xf80   :  { %20332 = vmatpush3.bf16.msra.mxu1 %v26168_v11  ;;  %20319 = vmatprep.mubr.bf16.mxu1 %v22982_v14  ;;  %v23018_v14 = vld [vmem:[%s27845_s13 + $0x250] sm:$0xff]  }
 0xf81   :  { %20333 = vmatprep.subr.bf16.mxu1 %v26163_v15  ;;  %v20695_v10 = vpop.f32.mrb[124].mxu0 }
 0xf82   :  { %v11434_v33 = vpop.f32.mrb[125].mxu0 }
 0xf83   :  { %v20696_v17 = vpop.f32.mrb[126].mxu0 }
 0xf84   :  { %v26288_v50 = vpack.c.bf16 %v20696_v17, %v20695_v10  ;;  %20334 = vmatpush3.bf16.msra.mxu1 %v26163_v15  ;;  %v11437_v60 = vpop.f32.mrb[127].mxu0  ;;  %v23019_v10 = vld [vmem:[%s27845_s13 + $0x258] sm:$0xff]   ;;  %v23029_v17 = vld [vmem:[%s27845_s13 + $0x368] sm:$0xff]  }
 0xf85   :  { %v26294_v59 = vpack.c.bf16 %v11437_v60, %v11434_v33  ;;  %20335 = vmatprep.subr.bf16.mxu1 %v26180_v63  ;;  %v23020_v33 = vld [vmem:[%s27845_s13 + $0x260] sm:$0xff]   ;;  %v23031_v60 = vld [vmem:[%s27845_s13 + $0x378] sm:$0xff]  }
 0xf87   :  { %20320 = vmatmul.mubr.bf16.gmra.mrb[124].mxu1 %v22983_v54  ;;  %v23030_v54 = vld [vmem:[%s27845_s13 + $0x370] sm:$0xff]  }
 0xf88   :  { %20336 = vmatpush3.bf16.msra.mxu1 %v26180_v63  ;;  %20339 = vmatprep.mubr.bf16.mxu1 %v22984_v45  ;;  %v23032_v45 = vld [vmem:[%s27845_s13 + $0x80] sm:$0xff]  }
 0xf89   :  { %20337 = vmatprep.subr.bf16.mxu1 %v26175_v62 }
 0xf8c   :  { %20338 = vmatpush3.bf16.msra.mxu1 %v26175_v62 }
 0xf8d   :  { %20355 = vmatprep.subr.bf16.mxu1 %v26144_v25 }
 0xf8f   :  { %20340 = vmatmul.mubr.bf16.vlgmr.msra.gmra.mrb[112].mxu1 %v22985_v35  ;;  %v23033_v35 = vld [vmem:[%s27845_s13 + $0x88] sm:$0xff]  }
 0xf90   :  { %20356 = vmatpush3.bf16.msra.mxu1 %v26144_v25  ;;  %20343 = vmatprep.mubr.bf16.mxu1 %v22986_v32  ;;  %v22989_v25 = vld [vmem:[%s27845_s13 + $0x228] sm:$0xff]   ;;  %v23034_v32 = vld [vmem:[%s27845_s13 + $0x90] sm:$0xff]  }
 0xf91   :  { %20357 = vmatprep.subr.bf16.mxu1 %v26140_v13 }
 0xf94   :  { %20358 = vmatpush3.bf16.msra.mxu1 %v26140_v13  ;;  %v22990_v13 = vld [vmem:[%s27845_s13 + $0x230] sm:$0xff]  }
 0xf95   :  { %20359 = vmatprep.subr.bf16.mxu1 %v26156_v6 }
 0xf97   :  { %20344 = vmatmul.mubr.bf16.gmra.mrb[116].mxu1 %v22987_v38  ;;  %v23035_v38 = vld [vmem:[%s27845_s13 + $0x98] sm:$0xff]  }
 0xf98   :  { %20360 = vmatpush3.bf16.msra.mxu1 %v26156_v6  ;;  %20347 = vmatprep.mubr.bf16.mxu1 %v22988_v29  ;;  %v22991_v6 = vld [vmem:[%s27845_s13 + $0x238] sm:$0xff]   ;;  %v23036_v29 = vld [vmem:[%s27845_s13 + $0xa0] sm:$0xff]  }
 0xf99   :  { %20361 = vmatprep.subr.bf16.mxu1 %v26151_v58 }
 0xf9c   :  { %20362 = vmatpush3.bf16.msra.mxu1 %v26151_v58  ;;  %v22992_v58 = vld [vmem:[%s27845_s13 + $0x300] sm:$0xff]  }
 0xf9d   :  { %20363 = vmatprep.subr.bf16.mxu1 %v26168_v11 }
 0xf9f   :  { %20348 = vmatmul.mubr.bf16.gmra.mrb[120].mxu1 %v22989_v25  ;;  %v23037_v25 = vld [vmem:[%s27845_s13 + $0xa8] sm:$0xff]  }
 0xfa0   :  { %20364 = vmatpush3.bf16.msra.mxu1 %v26168_v11  ;;  %20351 = vmatprep.mubr.bf16.mxu1 %v22990_v13  ;;  %v22993_v11 = vld [vmem:[%s27845_s13 + $0x308] sm:$0xff]   ;;  %v23038_v13 = vld [vmem:[%s27845_s13 + $0xb0] sm:$0xff]  }
 0xfa1   :  { %20365 = vmatprep.subr.bf16.mxu1 %v26163_v15 }
 0xfa4   :  { %20366 = vmatpush3.bf16.msra.mxu1 %v26163_v15  ;;  %v22994_v15 = vld [vmem:[%s27845_s13 + $0x310] sm:$0xff]  }
 0xfa5   :  { %20367 = vmatprep.subr.bf16.mxu1 %v26180_v63 }
 0xfa7   :  { %20352 = vmatmul.mubr.bf16.gmra.mrb[124].mxu1 %v22991_v6  ;;  %v23039_v6 = vld [vmem:[%s27845_s13 + $0xb8] sm:$0xff]  }
 0xfa8   :  { %20368 = vmatpush3.bf16.msra.mxu1 %v26180_v63  ;;  %20371 = vmatprep.mubr.bf16.mxu1 %v22992_v58  ;;  %v22995_v63 = vld [vmem:[%s27845_s13 + $0x318] sm:$0xff]   ;;  %v23040_v58 = vld [vmem:[%s27845_s13 + $0x180] sm:$0xff]  }
 0xfa9   :  { %20369 = vmatprep.subr.bf16.mxu1 %v26175_v62 }
 0xfac   :  { %20370 = vmatpush3.bf16.msra.mxu1 %v26175_v62  ;;  %v22996_v62 = vld [vmem:[%s27845_s13 + $0x320] sm:$0xff]  }
 0xfad   :  { %20405 = vmatprep.subr.bf16.mxu1 %v26146_v4 }
 0xfaf   :  { %20372 = vmatmul.mubr.bf16.vlgmr.msra.gmra.mrb[112].mxu1 %v22993_v11  ;;  %v23041_v11 = vld [vmem:[%s27845_s13 + $0x188] sm:$0xff]  }
 0xfb0   :  { %20406 = vmatpush3.bf16.msra.mxu1 %v26146_v4  ;;  %20375 = vmatprep.mubr.bf16.mxu1 %v22994_v15  ;;  %v23042_v15 = vld [vmem:[%s27845_s13 + $0x190] sm:$0xff]  }
 0xfb1   :  { %20407 = vmatprep.subr.bf16.mxu1 %v26142_v18 }
 0xfb4   :  { %20408 = vmatpush3.bf16.msra.mxu1 %v26142_v18 }
 0xfb5   :  { %20409 = vmatprep.subr.bf16.mxu1 %v26158_v0 }
 0xfb7   :  { %20376 = vmatmul.mubr.bf16.gmra.mrb[116].mxu1 %v22995_v63  ;;  %v23043_v63 = vld [vmem:[%s27845_s13 + $0x198] sm:$0xff]  }
 0xfb8   :  { %20410 = vmatpush3.bf16.msra.mxu1 %v26158_v0  ;;  %20379 = vmatprep.mubr.bf16.mxu1 %v22996_v62  ;;  %v23044_v62 = vld [vmem:[%s27845_s13 + $0x1a0] sm:$0xff]  }
 0xfb9   :  { %20411 = vmatprep.subr.bf16.mxu1 %v26153_v51 }
 0xfbc   :  { %20412 = vmatpush3.bf16.msra.mxu1 %v26153_v51 }
 0xfbd   :  { %20413 = vmatprep.subr.bf16.mxu1 %v26170_v36 }
 0xfbf   :  { %20380 = vmatmul.mubr.bf16.gmra.mrb[120].mxu1 %v22997_v7  ;;  %v23045_v7 = vld [vmem:[%s27845_s13 + $0x1a8] sm:$0xff]  }
 0xfc0   :  { %20414 = vmatpush3.bf16.msra.mxu1 %v26170_v36  ;;  %20383 = vmatprep.mubr.bf16.mxu1 %v22998_v46  ;;  %v23046_v46 = vld [vmem:[%s27845_s13 + $0x1b0] sm:$0xff]  }
 0xfc1   :  { %20415 = vmatprep.subr.bf16.mxu1 %v26165_v23 }
 0xfc4   :  { %20416 = vmatpush3.bf16.msra.mxu1 %v26165_v23 }
 0xfc5   :  { %20417 = vmatprep.subr.bf16.mxu1 %v26182_v28 }
 0xfc7   :  { %20384 = vmatmul.mubr.bf16.gmra.mrb[124].mxu1 %v22999_v8  ;;  %v23047_v8 = vld [vmem:[%s27845_s13 + $0x1b8] sm:$0xff]  }
 0xfc8   :  { %20418 = vmatpush3.bf16.msra.mxu1 %v26182_v28  ;;  %20421 = vmatprep.mubr.bf16.mxu1 %v23000_v57  ;;  %v23048_v57 = vld [vmem:[%s27845_s13 + $0x280] sm:$0xff]  }
 0xfc9   :  { %20419 = vmatprep.subr.bf16.mxu1 %v26177_v53 }
 0xfcc   :  { %20420 = vmatpush3.bf16.msra.mxu1 %v26177_v53 }
 0xfcd   :  { %20437 = vmatprep.subr.bf16.mxu1 %v26146_v4 }
 0xfcf   :  { %20422 = vmatmul.mubr.bf16.vlgmr.msra.gmra.mrb[112].mxu1 %v23001_v22  ;;  %v23049_v22 = vld [vmem:[%s27845_s13 + $0x288] sm:$0xff]  }
 0xfd0   :  { %20438 = vmatpush3.bf16.msra.mxu1 %v26146_v4  ;;  %20425 = vmatprep.mubr.bf16.mxu1 %v23002_v43  ;;  %v23050_v43 = vld [vmem:[%s27845_s13 + $0x290] sm:$0xff]  }
 0xfd1   :  { %20439 = vmatprep.subr.bf16.mxu1 %v26142_v18 }
 0xfd4   :  { %20440 = vmatpush3.bf16.msra.mxu1 %v26142_v18 }
 0xfd5   :  { %20441 = vmatprep.subr.bf16.mxu1 %v26158_v0 }
 0xfd7   :  { %20426 = vmatmul.mubr.bf16.gmra.mrb[116].mxu1 %v23003_v1  ;;  %v23051_v1 = vld [vmem:[%s27845_s13 + $0x298] sm:$0xff]  }
 0xfd8   :  { %20442 = vmatpush3.bf16.msra.mxu1 %v26158_v0  ;;  %20429 = vmatprep.mubr.bf16.mxu1 %v23004_v44  ;;  %v23052_v44 = vld [vmem:[%s27845_s13 + $0x2a0] sm:$0xff]  }
 0xfd9   :  { %20443 = vmatprep.subr.bf16.mxu1 %v26153_v51 }
 0xfdc   :  { %20444 = vmatpush3.bf16.msra.mxu1 %v26153_v51 }
 0xfdd   :  { %20445 = vmatprep.subr.bf16.mxu1 %v26170_v36 }
 0xfdf   :  { %20430 = vmatmul.mubr.bf16.gmra.mrb[120].mxu1 %v23005_v19  ;;  %v23061_v19 = vld [vmem:[%s27845_s13 + $0x3a8] sm:$0xff]  }
 0xfe0   :  { %20446 = vmatpush3.bf16.msra.mxu1 %v26170_v36  ;;  %20433 = vmatprep.mubr.bf16.mxu1 %v23006_v3  ;;  %v23062_v3 = vld [vmem:[%s27845_s13 + $0x3b0] sm:$0xff]  }
 0xfe1   :  { %20447 = vmatprep.subr.bf16.mxu1 %v26165_v23 }
 0xfe4   :  { %20448 = vmatpush3.bf16.msra.mxu1 %v26165_v23 }
 0xfe5   :  { %20449 = vmatprep.subr.bf16.mxu1 %v26182_v28 }
 0xfe7   :  { %20434 = vmatmul.mubr.bf16.gmra.mrb[124].mxu1 %v23007_v16  ;;  %v23063_v16 = vld [vmem:[%s27845_s13 + $0x3b8] sm:$0xff]  }
 0xfe8   :  { %20450 = vmatpush3.bf16.msra.mxu1 %v26182_v28  ;;  %20453 = vmatprep.mubr.bf16.mxu1 %v23008_v20  ;;  %v23064_v20 = vld [vmem:[%s27845_s13 + $0xc0] sm:$0xff]  }
 0xfe9   :  { %20451 = vmatprep.subr.bf16.mxu1 %v26177_v53 }
 0xfec   :  { %20452 = vmatpush3.bf16.msra.mxu1 %v26177_v53 }
 0xfed   :  { %20469 = vmatprep.subr.bf16.mxu1 %v26146_v4 }
 0xfef   :  { %20454 = vmatmul.mubr.bf16.vlgmr.msra.gmra.mrb[112].mxu1 %v23009_v42  ;;  %v23065_v42 = vld [vmem:[%s27845_s13 + $0xc8] sm:$0xff]  }
 0xff0   :  { %20470 = vmatpush3.bf16.msra.mxu1 %v26146_v4  ;;  %20457 = vmatprep.mubr.bf16.mxu1 %v23010_v41  ;;  %v23066_v41 = vld [vmem:[%s27845_s13 + $0xd0] sm:$0xff]  }
 0xff1   :  { %20471 = vmatprep.subr.bf16.mxu1 %v26142_v18 }
 0xff4   :  { %20472 = vmatpush3.bf16.msra.mxu1 %v26142_v18 }
 0xff5   :  { %20473 = vmatprep.subr.bf16.mxu1 %v26158_v0 }
 0xff7   :  { %20458 = vmatmul.mubr.bf16.gmra.mrb[116].mxu1 %v23011_v12  ;;  %v23067_v12 = vld [vmem:[%s27845_s13 + $0xd8] sm:$0xff]  }
 0xff8   :  { %20474 = vmatpush3.bf16.msra.mxu1 %v26158_v0  ;;  %20461 = vmatprep.mubr.bf16.mxu1 %v23012_v26  ;;  %v23068_v26 = vld [vmem:[%s27845_s13 + $0xe0] sm:$0xff]  }
 0xff9   :  { %20475 = vmatprep.subr.bf16.mxu1 %v26153_v51 }
 0xffc   :  { %20476 = vmatpush3.bf16.msra.mxu1 %v26153_v51 }
 0xffd   :  { %20477 = vmatprep.subr.bf16.mxu1 %v26170_v36 }
 0xfff   :  { %20462 = vmatmul.mubr.bf16.gmra.mrb[120].mxu1 %v23013_v48  ;;  %v23069_v48 = vld [vmem:[%s27845_s13 + $0xe8] sm:$0xff]  }
0x1000   :  { %20478 = vmatpush3.bf16.msra.mxu1 %v26170_v36  ;;  %20465 = vmatprep.mubr.bf16.mxu1 %v23014_v61  ;;  %v23070_v61 = vld [vmem:[%s27845_s13 + $0xf0] sm:$0xff]  }
0x1001   :  { %20479 = vmatprep.subr.bf16.mxu1 %v26165_v23 }
0x1004   :  { %20480 = vmatpush3.bf16.msra.mxu1 %v26165_v23 }
0x1005   :  { %20481 = vmatprep.subr.bf16.mxu1 %v26182_v28 }
0x1007   :  { %20466 = vmatmul.mubr.bf16.gmra.mrb[124].mxu1 %v23015_v27  ;;  %v23071_v27 = vld [vmem:[%s27845_s13 + $0xf8] sm:$0xff]  }
0x1008   :  { %20482 = vmatpush3.bf16.msra.mxu1 %v26182_v28  ;;  %20485 = vmatprep.mubr.bf16.mxu1 %v23016_v30  ;;  %v23072_v30 = vld [vmem:[%s27845_s13 + $0x1c0] sm:$0xff]  }
0x1009   :  { %20483 = vmatprep.subr.bf16.mxu1 %v26177_v53 }
0x100c   :  { %20484 = vmatpush3.bf16.msra.mxu1 %v26177_v53 }
0x100d   :  { %20501 = vmatprep.subr.bf16.mxu1 %v26146_v4 }
0x100f   :  { %20486 = vmatmul.mubr.bf16.vlgmr.msra.gmra.mrb[112].mxu1 %v23017_v24  ;;  %v23073_v24 = vld [vmem:[%s27845_s13 + $0x1c8] sm:$0xff]  }
0x1010   :  { %20502 = vmatpush3.bf16.msra.mxu1 %v26146_v4  ;;  %20489 = vmatprep.mubr.bf16.mxu1 %v23018_v14  ;;  %v23021_v4 = vld [vmem:[%s27845_s13 + $0x268] sm:$0xff]   ;;  %v23074_v14 = vld [vmem:[%s27845_s13 + $0x1d0] sm:$0xff]  }
0x1011   :  { %20503 = vmatprep.subr.bf16.mxu1 %v26142_v18 }
0x1014   :  { %20504 = vmatpush3.bf16.msra.mxu1 %v26142_v18  ;;  %v23022_v18 = vld [vmem:[%s27845_s13 + $0x270] sm:$0xff]  }
0x1015   :  { %20505 = vmatprep.subr.bf16.mxu1 %v26158_v0 }
0x1017   :  { %20490 = vmatmul.mubr.bf16.gmra.mrb[116].mxu1 %v23019_v10  ;;  %v23075_v10 = vld [vmem:[%s27845_s13 + $0x1d8] sm:$0xff]  }
0x1018   :  { %20506 = vmatpush3.bf16.msra.mxu1 %v26158_v0  ;;  %20493 = vmatprep.mubr.bf16.mxu1 %v23020_v33  ;;  %v23023_v0 = vld [vmem:[%s27845_s13 + $0x278] sm:$0xff]   ;;  %v23076_v33 = vld [vmem:[%s27845_s13 + $0x1e0] sm:$0xff]  }
0x1019   :  { %20507 = vmatprep.subr.bf16.mxu1 %v26153_v51 }
0x101c   :  { %20508 = vmatpush3.bf16.msra.mxu1 %v26153_v51  ;;  %v23024_v51 = vld [vmem:[%s27845_s13 + $0x340] sm:$0xff]  }
0x101d   :  { %20509 = vmatprep.subr.bf16.mxu1 %v26170_v36 }
0x101f   :  { %20494 = vmatmul.mubr.bf16.gmra.mrb[120].mxu1 %v23021_v4  ;;  %v23077_v4 = vld [vmem:[%s27845_s13 + $0x1e8] sm:$0xff]  }
0x1020   :  { %20510 = vmatpush3.bf16.msra.mxu1 %v26170_v36  ;;  %20497 = vmatprep.mubr.bf16.mxu1 %v23022_v18  ;;  %v23025_v36 = vld [vmem:[%s27845_s13 + $0x348] sm:$0xff]   ;;  %v23078_v18 = vld [vmem:[%s27845_s13 + $0x1f0] sm:$0xff]  }
0x1021   :  { %20511 = vmatprep.subr.bf16.mxu1 %v26165_v23 }
0x1024   :  { %20512 = vmatpush3.bf16.msra.mxu1 %v26165_v23  ;;  %v23026_v23 = vld [vmem:[%s27845_s13 + $0x350] sm:$0xff]  }
0x1025   :  { %20513 = vmatprep.subr.bf16.mxu1 %v26182_v28 }
0x1027   :  { %20498 = vmatmul.mubr.bf16.gmra.mrb[124].mxu1 %v23023_v0  ;;  %v23079_v0 = vld [vmem:[%s27845_s13 + $0x1f8] sm:$0xff]  }
0x1028   :  { %20514 = vmatpush3.bf16.msra.mxu1 %v26182_v28  ;;  %20517 = vmatprep.mubr.bf16.mxu1 %v23024_v51  ;;  %v23027_v28 = vld [vmem:[%s27845_s13 + $0x358] sm:$0xff]   ;;  %v23080_v51 = vld [vmem:[%s27845_s13 + $0x2c0] sm:$0xff]  }
0x1029   :  { %20515 = vmatprep.subr.bf16.mxu1 %v26177_v53 }
0x102c   :  { %20516 = vmatpush3.bf16.msra.mxu1 %v26177_v53  ;;  %v23028_v53 = vld [vmem:[%s27845_s13 + $0x360] sm:$0xff]  }
0x102d   :  { %20551 = vmatprep.subr.bf16.mxu1 %v26196_v52 }
0x102f   :  { %20518 = vmatmul.mubr.bf16.vlgmr.msra.gmra.mrb[112].mxu1 %v23025_v36  ;;  %v23081_v36 = vld [vmem:[%s27845_s13 + $0x2c8] sm:$0xff]  }
0x1030   :  { %20552 = vmatpush3.bf16.msra.mxu1 %v26196_v52  ;;  %20521 = vmatprep.mubr.bf16.mxu1 %v23026_v23  ;;  %v23082_v23 = vld [vmem:[%s27845_s13 + $0x2d0] sm:$0xff]  }
0x1031   :  { %20553 = vmatprep.subr.bf16.mxu1 %v26190_v21 }
0x1034   :  { %20554 = vmatpush3.bf16.msra.mxu1 %v26190_v21 }
0x1035   :  { %20555 = vmatprep.subr.bf16.mxu1 %v26210_v34 }
0x1037   :  { %20522 = vmatmul.mubr.bf16.gmra.mrb[116].mxu1 %v23027_v28  ;;  %v23083_v28 = vld [vmem:[%s27845_s13 + $0x2d8] sm:$0xff]  }
0x1038   :  { %20556 = vmatpush3.bf16.msra.mxu1 %v26210_v34  ;;  %20525 = vmatprep.mubr.bf16.mxu1 %v23028_v53  ;;  %v23084_v53 = vld [vmem:[%s27845_s13 + $0x2e0] sm:$0xff]  }
0x1039   :  { %20557 = vmatprep.subr.bf16.mxu1 %v26204_v5 }
0x103c   :  { %20558 = vmatpush3.bf16.msra.mxu1 %v26204_v5 }
0x103d   :  { %20559 = vmatprep.subr.bf16.mxu1 %v26224_v37 }
0x103f   :  { %20526 = vmatmul.mubr.bf16.gmra.mrb[120].mxu1 %v23029_v17  ;;  %v23091_v17 = vld [vmem:[%s27845_s13 + $0x3d8] sm:$0xff]  }
0x1040   :  { %20560 = vmatpush3.bf16.msra.mxu1 %v26224_v37  ;;  %20529 = vmatprep.mubr.bf16.mxu1 %v23030_v54  ;;  %v23094_v54 = vld [vmem:[%s27845_s13 + $0x3f0] sm:$0xff]  }
0x1041   :  { %20561 = vmatprep.subr.bf16.mxu1 %v26218_v2 }
0x1044   :  { %20562 = vmatpush3.bf16.msra.mxu1 %v26218_v2 }
0x1045   :  { %20563 = vmatprep.subr.bf16.mxu1 %v26238_v31 }
0x1047   :  { %20530 = vmatmul.mubr.bf16.gmra.mrb[124].mxu1 %v23031_v60  ;;  %v23095_v60 = vld [vmem:[%s27845_s13 + $0x3f8] sm:$0xff]  }
0x1048   :  { %20564 = vmatpush3.bf16.msra.mxu1 %v26238_v31  ;;  %20567 = vmatprep.mubr.bf16.mxu1 %v23032_v45  ;;  %v12188_v45 = vpop.permute.xlu0 %12187 }
0x1049   :  { %20565 = vmatprep.subr.bf16.mxu1 %v26232_v56 }
0x104c   :  { %20566 = vmatpush3.bf16.msra.mxu1 %v26232_v56 }
0x104d   :  { %20583 = vmatprep.subr.bf16.mxu1 %v26196_v52 }
0x104f   :  { %20568 = vmatmul.mubr.bf16.vlgmr.msra.gmra.mrb[112].mxu1 %v23033_v35  ;;  %v12193_v35 = vpop.permute.xlu1 %12192 }
0x1050   :  { %20584 = vmatpush3.bf16.msra.mxu1 %v26196_v52  ;;  %20571 = vmatprep.mubr.bf16.mxu1 %v23034_v32  ;;  %v12198_v32 = vpop.permute.xlu0 %12197 }
0x1051   :  { %20585 = vmatprep.subr.bf16.mxu1 %v26190_v21 }
0x1054   :  { %20586 = vmatpush3.bf16.msra.mxu1 %v26190_v21 }
0x1055   :  { %20587 = vmatprep.subr.bf16.mxu1 %v26210_v34 }
0x1057   :  { %20572 = vmatmul.mubr.bf16.gmra.mrb[116].mxu1 %v23035_v38  ;;  %v12203_v38 = vpop.permute.xlu1 %12202 }
0x1058   :  { %20588 = vmatpush3.bf16.msra.mxu1 %v26210_v34  ;;  %20575 = vmatprep.mubr.bf16.mxu1 %v23036_v29  ;;  %v12208_v29 = vpop.permute.xlu0 %12207 }
0x1059   :  { %20589 = vmatprep.subr.bf16.mxu1 %v26204_v5 }
0x105c   :  { %20590 = vmatpush3.bf16.msra.mxu1 %v26204_v5 }
0x105d   :  { %20591 = vmatprep.subr.bf16.mxu1 %v26224_v37 }
0x105f   :  { %20576 = vmatmul.mubr.bf16.gmra.mrb[120].mxu1 %v23037_v25 }
0x1060   :  { %20592 = vmatpush3.bf16.msra.mxu1 %v26224_v37  ;;  %20579 = vmatprep.mubr.bf16.mxu1 %v23038_v13  ;;  %v12213_v13 = vpop.permute.xlu1 %12212 }
0x1061   :  { %20593 = vmatprep.subr.bf16.mxu1 %v26218_v2 }
0x1064   :  { %20594 = vmatpush3.bf16.msra.mxu1 %v26218_v2 }
0x1065   :  { %20595 = vmatprep.subr.bf16.mxu1 %v26238_v31 }
0x1067   :  { %20580 = vmatmul.mubr.bf16.gmra.mrb[124].mxu1 %v23039_v6 }
0x1068   :  { %20596 = vmatpush3.bf16.msra.mxu1 %v26238_v31  ;;  %20599 = vmatprep.mubr.bf16.mxu1 %v23040_v58 }
0x1069   :  { %20597 = vmatprep.subr.bf16.mxu1 %v26232_v56 }
0x106c   :  { %20598 = vmatpush3.bf16.msra.mxu1 %v26232_v56 }
0x106d   :  { %20615 = vmatprep.subr.bf16.mxu1 %v26196_v52 }
0x106f   :  { %20600 = vmatmul.mubr.bf16.vlgmr.msra.gmra.mrb[112].mxu1 %v23041_v11 }
0x1070   :  { %20616 = vmatpush3.bf16.msra.mxu1 %v26196_v52  ;;  %20603 = vmatprep.mubr.bf16.mxu1 %v23042_v15  ;;  %v12218_v15 = vpop.permute.xlu0 %12217 }
0x1071   :  { %20617 = vmatprep.subr.bf16.mxu1 %v26190_v21 }
0x1074   :  { %20618 = vmatpush3.bf16.msra.mxu1 %v26190_v21 }
0x1075   :  { %20619 = vmatprep.subr.bf16.mxu1 %v26210_v34 }
0x1077   :  { %20604 = vmatmul.mubr.bf16.gmra.mrb[116].mxu1 %v23043_v63 }
0x1078   :  { %20620 = vmatpush3.bf16.msra.mxu1 %v26210_v34  ;;  %20607 = vmatprep.mubr.bf16.mxu1 %v23044_v62 }
0x1079   :  { %20621 = vmatprep.subr.bf16.mxu1 %v26204_v5 }
0x107c   :  { %20622 = vmatpush3.bf16.msra.mxu1 %v26204_v5 }
0x107d   :  { %20623 = vmatprep.subr.bf16.mxu1 %v26224_v37 }
0x107f   :  { %20608 = vmatmul.mubr.bf16.gmra.mrb[120].mxu1 %v23045_v7 }
0x1080   :  { %20624 = vmatpush3.bf16.msra.mxu1 %v26224_v37  ;;  %20611 = vmatprep.mubr.bf16.mxu1 %v23046_v46 }
0x1081   :  { %20625 = vmatprep.subr.bf16.mxu1 %v26218_v2 }
0x1084   :  { %20626 = vmatpush3.bf16.msra.mxu1 %v26218_v2 }
0x1085   :  { %20627 = vmatprep.subr.bf16.mxu1 %v26238_v31 }
0x1087   :  { %20612 = vmatmul.mubr.bf16.gmra.mrb[124].mxu1 %v23047_v8 }
0x1088   :  { %20628 = vmatpush3.bf16.msra.mxu1 %v26238_v31  ;;  %20631 = vmatprep.mubr.bf16.mxu1 %v23048_v57  ;;  %v12223_v57 = vpop.permute.xlu1 %12222 }
0x1089   :  { %20629 = vmatprep.subr.bf16.mxu1 %v26232_v56 }
0x108c   :  { %20630 = vmatpush3.bf16.msra.mxu1 %v26232_v56 }
0x108d   :  { %20647 = vmatprep.subr.bf16.mxu1 %v26196_v52 }
0x108f   :  { %20632 = vmatmul.mubr.bf16.vlgmr.msra.gmra.mrb[112].mxu1 %v23049_v22 }
0x1090   :  { %20648 = vmatpush3.bf16.msra.mxu1 %v26196_v52  ;;  %20635 = vmatprep.mubr.bf16.mxu1 %v23050_v43  ;;  %v23053_v52 = vld [vmem:[%s27845_s13 + $0x2a8] sm:$0xff]  }
0x1091   :  { %20649 = vmatprep.subr.bf16.mxu1 %v26190_v21 }
0x1094   :  { %20650 = vmatpush3.bf16.msra.mxu1 %v26190_v21  ;;  %v23054_v21 = vld [vmem:[%s27845_s13 + $0x2b0] sm:$0xff]  }
0x1095   :  { %20651 = vmatprep.subr.bf16.mxu1 %v26210_v34 }
0x1097   :  { %20636 = vmatmul.mubr.bf16.gmra.mrb[116].mxu1 %v23051_v1 }
0x1098   :  { %20652 = vmatpush3.bf16.msra.mxu1 %v26210_v34  ;;  %20639 = vmatprep.mubr.bf16.mxu1 %v23052_v44  ;;  %v23055_v34 = vld [vmem:[%s27845_s13 + $0x2b8] sm:$0xff]   ;;  %v12228_v44 = vpop.permute.xlu0 %12227 }
0x1099   :  { %20653 = vmatprep.subr.bf16.mxu1 %v26204_v5 }
0x109c   :  { %20654 = vmatpush3.bf16.msra.mxu1 %v26204_v5  ;;  %v23056_v5 = vld [vmem:[%s27845_s13 + $0x380] sm:$0xff]  }
0x109d   :  { %20655 = vmatprep.subr.bf16.mxu1 %v26224_v37 }
0x109f   :  { %20640 = vmatmul.mubr.bf16.gmra.mrb[120].mxu1 %v23053_v52 }
0x10a0   :  { %20656 = vmatpush3.bf16.msra.mxu1 %v26224_v37  ;;  %20643 = vmatprep.mubr.bf16.mxu1 %v23054_v21  ;;  %v23057_v37 = vld [vmem:[%s27845_s13 + $0x388] sm:$0xff]  }
0x10a1   :  { %20657 = vmatprep.subr.bf16.mxu1 %v26218_v2 }
0x10a4   :  { %20658 = vmatpush3.bf16.msra.mxu1 %v26218_v2  ;;  %v23058_v2 = vld [vmem:[%s27845_s13 + $0x390] sm:$0xff]  }
0x10a5   :  { %20659 = vmatprep.subr.bf16.mxu1 %v26238_v31 }
0x10a7   :  { %20644 = vmatmul.mubr.bf16.gmra.mrb[124].mxu1 %v23055_v34 }
0x10a8   :  { %20660 = vmatpush3.bf16.msra.mxu1 %v26238_v31  ;;  %20663 = vmatprep.mubr.bf16.mxu1 %v23056_v5  ;;  %v23059_v31 = vld [vmem:[%s27845_s13 + $0x398] sm:$0xff]  }
0x10a9   :  { %20661 = vmatprep.subr.bf16.mxu1 %v26232_v56 }
0x10ac   :  { %20662 = vmatpush3.bf16.msra.mxu1 %v26232_v56  ;;  %v23060_v56 = vld [vmem:[%s27845_s13 + $0x3a0] sm:$0xff]  }
0x10ad   :  { %20697 = vmatprep.subr.bf16.mxu1 %v26252_v39 }
0x10af   :  { %20664 = vmatmul.mubr.bf16.vlgmr.msra.gmra.mrb[112].mxu1 %v23057_v37 }
0x10b0   :  { %20698 = vmatpush3.bf16.msra.mxu1 %v26252_v39  ;;  %20667 = vmatprep.mubr.bf16.mxu1 %v23058_v2 }
0x10b1   :  { %20699 = vmatprep.subr.bf16.mxu1 %v26246_v49 }
0x10b4   :  { %20700 = vmatpush3.bf16.msra.mxu1 %v26246_v49 }
0x10b5   :  { %20701 = vmatprep.subr.bf16.mxu1 %v26266_v9 }
0x10b7   :  { %20668 = vmatmul.mubr.bf16.gmra.mrb[116].mxu1 %v23059_v31 }
0x10b8   :  { %20702 = vmatpush3.bf16.msra.mxu1 %v26266_v9  ;;  %20671 = vmatprep.mubr.bf16.mxu1 %v23060_v56 }
0x10b9   :  { %20703 = vmatprep.subr.bf16.mxu1 %v26260_v47 }
0x10bc   :  { %20704 = vmatpush3.bf16.msra.mxu1 %v26260_v47 }
0x10bd   :  { %20705 = vmatprep.subr.bf16.mxu1 %v26280_v40 }
0x10bf   :  { %20672 = vmatmul.mubr.bf16.gmra.mrb[120].mxu1 %v23061_v19  ;;  %v12233_v19 = vpop.permute.xlu1 %12232 }
0x10c0   :  { %20706 = vmatpush3.bf16.msra.mxu1 %v26280_v40  ;;  %20675 = vmatprep.mubr.bf16.mxu1 %v23062_v3  ;;  %v12238_v3 = vpop.permute.xlu0 %12237 }
0x10c1   :  { %20707 = vmatprep.subr.bf16.mxu1 %v26274_v55 }
0x10c4   :  { %20708 = vmatpush3.bf16.msra.mxu1 %v26274_v55 }
0x10c5   :  { %20709 = vmatprep.subr.bf16.mxu1 %v26294_v59 }
0x10c7   :  { %20676 = vmatmul.mubr.bf16.gmra.mrb[124].mxu1 %v23063_v16 }
0x10c8   :  { %20710 = vmatpush3.bf16.msra.mxu1 %v26294_v59  ;;  %20713 = vmatprep.mubr.bf16.mxu1 %v23064_v20 }
0x10c9   :  { %20711 = vmatprep.subr.bf16.mxu1 %v26288_v50 }
0x10cc   :  { %20712 = vmatpush3.bf16.msra.mxu1 %v26288_v50 }
0x10cd   :  { %20729 = vmatprep.subr.bf16.mxu1 %v26252_v39 }
0x10cf   :  { %20714 = vmatmul.mubr.bf16.vlgmr.msra.gmra.mrb[112].mxu1 %v23065_v42 }
0x10d0   :  { %20730 = vmatpush3.bf16.msra.mxu1 %v26252_v39  ;;  %20717 = vmatprep.mubr.bf16.mxu1 %v23066_v41 }
0x10d1   :  { %20731 = vmatprep.subr.bf16.mxu1 %v26246_v49 }
0x10d4   :  { %20732 = vmatpush3.bf16.msra.mxu1 %v26246_v49 }
0x10d5   :  { %20733 = vmatprep.subr.bf16.mxu1 %v26266_v9 }
0x10d7   :  { %20718 = vmatmul.mubr.bf16.gmra.mrb[116].mxu1 %v23067_v12 }
0x10d8   :  { %20734 = vmatpush3.bf16.msra.mxu1 %v26266_v9  ;;  %20721 = vmatprep.mubr.bf16.mxu1 %v23068_v26 }
0x10d9   :  { %20735 = vmatprep.subr.bf16.mxu1 %v26260_v47 }
0x10dc   :  { %20736 = vmatpush3.bf16.msra.mxu1 %v26260_v47 }
0x10dd   :  { %20737 = vmatprep.subr.bf16.mxu1 %v26280_v40 }
0x10df   :  { %20722 = vmatmul.mubr.bf16.gmra.mrb[120].mxu1 %v23069_v48 }
0x10e0   :  { %20738 = vmatpush3.bf16.msra.mxu1 %v26280_v40  ;;  %20725 = vmatprep.mubr.bf16.mxu1 %v23070_v61  ;;  %v12243_v61 = vpop.permute.xlu1 %12242 }
0x10e1   :  { %20739 = vmatprep.subr.bf16.mxu1 %v26274_v55 }
0x10e4   :  { %20740 = vmatpush3.bf16.msra.mxu1 %v26274_v55 }
0x10e5   :  { %20741 = vmatprep.subr.bf16.mxu1 %v26294_v59 }
0x10e7   :  { %20726 = vmatmul.mubr.bf16.gmra.mrb[124].mxu1 %v23071_v27 }
0x10e8   :  { %20742 = vmatpush3.bf16.msra.mxu1 %v26294_v59  ;;  %20745 = vmatprep.mubr.bf16.mxu1 %v23072_v30 }
0x10e9   :  { %20743 = vmatprep.subr.bf16.mxu1 %v26288_v50 }
0x10ec   :  { %20744 = vmatpush3.bf16.msra.mxu1 %v26288_v50 }
0x10ed   :  { %20761 = vmatprep.subr.bf16.mxu1 %v26252_v39 }
0x10ef   :  { %20746 = vmatmul.mubr.bf16.vlgmr.msra.gmra.mrb[112].mxu1 %v23073_v24 }
0x10f0   :  { %20762 = vmatpush3.bf16.msra.mxu1 %v26252_v39  ;;  %20749 = vmatprep.mubr.bf16.mxu1 %v23074_v14 }
0x10f1   :  { %20763 = vmatprep.subr.bf16.mxu1 %v26246_v49 }
0x10f4   :  { %20764 = vmatpush3.bf16.msra.mxu1 %v26246_v49 }
0x10f5   :  { %20765 = vmatprep.subr.bf16.mxu1 %v26266_v9 }
0x10f7   :  { %20750 = vmatmul.mubr.bf16.gmra.mrb[116].mxu1 %v23075_v10 }
0x10f8   :  { %20766 = vmatpush3.bf16.msra.mxu1 %v26266_v9  ;;  %20753 = vmatprep.mubr.bf16.mxu1 %v23076_v33  ;;  %v12248_v33 = vpop.permute.xlu0 %12247 }
0x10f9   :  { %20767 = vmatprep.subr.bf16.mxu1 %v26260_v47 }
0x10fc   :  { %20768 = vmatpush3.bf16.msra.mxu1 %v26260_v47 }
0x10fd   :  { %20769 = vmatprep.subr.bf16.mxu1 %v26280_v40 }
0x10ff   :  { %20754 = vmatmul.mubr.bf16.gmra.mrb[120].mxu1 %v23077_v4 }
0x1100   :  { %20770 = vmatpush3.bf16.msra.mxu1 %v26280_v40  ;;  %20757 = vmatprep.mubr.bf16.mxu1 %v23078_v18 }
0x1101   :  { %20771 = vmatprep.subr.bf16.mxu1 %v26274_v55 }
0x1104   :  { %20772 = vmatpush3.bf16.msra.mxu1 %v26274_v55 }
0x1105   :  { %20773 = vmatprep.subr.bf16.mxu1 %v26294_v59 }
0x1107   :  { %20758 = vmatmul.mubr.bf16.gmra.mrb[124].mxu1 %v23079_v0 }
0x1108   :  { %20774 = vmatpush3.bf16.msra.mxu1 %v26294_v59  ;;  %20777 = vmatprep.mubr.bf16.mxu1 %v23080_v51 }
0x1109   :  { %20775 = vmatprep.subr.bf16.mxu1 %v26288_v50 }
0x110c   :  { %20776 = vmatpush3.bf16.msra.mxu1 %v26288_v50 }
0x110d   :  { %20793 = vmatprep.subr.bf16.mxu1 %v26252_v39 }
0x110f   :  { %20778 = vmatmul.mubr.bf16.vlgmr.msra.gmra.mrb[112].mxu1 %v23081_v36  ;;  %v12253_v36 = vpop.permute.xlu1 %12252 }
0x1110   :  { %20794 = vmatpush3.bf16.msra.mxu1 %v26252_v39  ;;  %20781 = vmatprep.mubr.bf16.mxu1 %v23082_v23  ;;  %v23085_v39 = vld [vmem:[%s27845_s13 + $0x2e8] sm:$0xff]  }
0x1111   :  { %20795 = vmatprep.subr.bf16.mxu1 %v26246_v49 }
0x1114   :  { %20796 = vmatpush3.bf16.msra.mxu1 %v26246_v49  ;;  %v23086_v49 = vld [vmem:[%s27845_s13 + $0x2f0] sm:$0xff]  }
0x1115   :  { %20797 = vmatprep.subr.bf16.mxu1 %v26266_v9 }
0x1117   :  { %20782 = vmatmul.mubr.bf16.gmra.mrb[116].mxu1 %v23083_v28 }
0x1118   :  { %20798 = vmatpush3.bf16.msra.mxu1 %v26266_v9  ;;  %20785 = vmatprep.mubr.bf16.mxu1 %v23084_v53  ;;  %v23087_v9 = vld [vmem:[%s27845_s13 + $0x2f8] sm:$0xff]  }
0x1119   :  { %20799 = vmatprep.subr.bf16.mxu1 %v26260_v47 }
0x111c   :  { %20800 = vmatpush3.bf16.msra.mxu1 %v26260_v47  ;;  %v23088_v47 = vld [vmem:[%s27845_s13 + $0x3c0] sm:$0xff]  }
0x111d   :  { %20801 = vmatprep.subr.bf16.mxu1 %v26280_v40 }
0x111f   :  { %20786 = vmatmul.mubr.bf16.gmra.mrb[120].mxu1 %v23085_v39  ;;  %v12258_v39 = vpop.permute.xlu0 %12257 }
0x1120   :  { %20802 = vmatpush3.bf16.msra.mxu1 %v26280_v40  ;;  %20789 = vmatprep.mubr.bf16.mxu1 %v23086_v49  ;;  %v23089_v40 = vld [vmem:[%s27845_s13 + $0x3c8] sm:$0xff]  }
0x1121   :  { %20803 = vmatprep.subr.bf16.mxu1 %v26274_v55 }
0x1124   :  { %20804 = vmatpush3.bf16.msra.mxu1 %v26274_v55  ;;  %v23090_v55 = vld [vmem:[%s27845_s13 + $0x3d0] sm:$0xff]  }
0x1125   :  { %20805 = vmatprep.subr.bf16.mxu1 %v26294_v59 }
0x1127   :  { %20790 = vmatmul.mubr.bf16.gmra.mrb[124].mxu1 %v23087_v9 }
0x1128   :  { %20806 = vmatpush3.bf16.msra.mxu1 %v26294_v59  ;;  %20809 = vmatprep.mubr.bf16.mxu1 %v23088_v47  ;;  %v23092_v59 = vld [vmem:[%s27845_s13 + $0x3e0] sm:$0xff]  }
0x1129   :  { %20807 = vmatprep.subr.bf16.mxu1 %v26288_v50 }
0x112c   :  { %20808 = vmatpush3.bf16.msra.mxu1 %v26288_v50  ;;  %v23093_v50 = vld [vmem:[%s27845_s13 + $0x3e8] sm:$0xff]  }
0x112f   :  { %20810 = vmatmul.mubr.bf16.vlgmr.msra.gmra.mrb[112].mxu1 %v23089_v40 }
0x1130   :  { %20813 = vmatprep.mubr.bf16.mxu1 %v23090_v55 }
0x1137   :  { %20814 = vmatmul.mubr.bf16.gmra.mrb[116].mxu1 %v23091_v17  ;;  %v12263_v17 = vpop.permute.xlu1 %12262 }
0x1138   :  { %20817 = vmatprep.mubr.bf16.mxu1 %v23092_v59 }
0x113f   :  { %20818 = vmatmul.mubr.bf16.gmra.mrb[120].mxu1 %v23093_v50 }
0x1140   :  { %20821 = vmatprep.mubr.bf16.mxu1 %v23094_v54 }
0x1147   :  { %20822 = vmatmul.mubr.bf16.gmra.mrb[124].mxu1 %v23095_v60 }
0x1202   :  { %v20811_v25 = vpop.f32.mrb[112].mxu1 }
0x1203   :  { %v12090_v6 = vpop.f32.mrb[113].mxu1  ;;  %v26843_v62 = vadd.f32 %v20811_v25, %v12198_v32 }
0x1204   :  { %v26841_v58 = vadd.f32 %v12188_v45, %v12090_v6  ;;  %v20812_v11 = vpop.f32.mrb[114].mxu1 }
0x1205   :  { %v12093_v63 = vpop.f32.mrb[115].mxu1  ;;  %v26851_v22 = vadd.f32 %v20812_v11, %v12203_v38  ;;  %v12288_v1 = vsel %vm12281_vm6, %v26843_v62, 0.0  ;;  %v12348_v38 = vmul.f32 %v26843_v62, %v26843_v62 }
0x1206   :  { %v26845_v7 = vadd.f32 %v12193_v35, %v12093_v63  ;;  %v12282_v46 = vsel %vm12281_vm6, %v26841_v58, 0.0  ;;  %v12346_v60 = vmul.f32 %v26841_v58, %v26841_v58 }
0x1207   :  { %12283 = vadd.xlane.f32.xlu0 %v12282_v46  ;;  %v12291_v31 = vsel %vm12281_vm6, %v26851_v22, 0.0  ;;  %v12368_v25 = vsel %vm12281_vm6, %v12348_v38, 0.0  ;;  %v13122_v38 = vld [vmem:[%s27849_s17 + $0x30] sm:$0xff] }
0x1208   :  { %v12285_v8 = vsel %vm12281_vm6, %v26845_v7, 0.0  ;;  %v12362_v35 = vsel %vm12281_vm6, %v12346_v60, 0.0  ;;  %v12347_v32 = vmul.f32 %v26845_v7, %v26845_v7  ;;  %v13010_v60 = vld [vmem:[%s27848_s16 + $0x30] sm:$0xff] }
0x1209   :  { %12286 = vadd.xlane.f32.xlu1 %v12285_v8 }
0x120a   :  { %v20815_v43 = vpop.f32.mrb[116].mxu1 }
0x120b   :  { %v12106_v52 = vpop.f32.mrb[117].mxu1  ;;  %12289 = vadd.xlane.f32.xlu0 %v12288_v1  ;;  %v26857_v37 = vadd.f32 %v20815_v43, %v12218_v15 }
0x120c   :  { %v26855_v21 = vadd.f32 %v12208_v29, %v12106_v52  ;;  %v20816_v34 = vpop.f32.mrb[118].mxu1  ;;  %v12365_v29 = vsel %vm12281_vm6, %v12347_v32, 0.0  ;;  %v13015_v32 = vld [vmem:[%s27848_s16 + $0x58] sm:$0xff] }
0x120d   :  { %v12109_v5 = vpop.f32.mrb[119].mxu1  ;;  %v26865_v16 = vadd.f32 %v20816_v34, %v12223_v57  ;;  %v12300_v41 = vsel %vm12281_vm6, %v26857_v37, 0.0  ;;  %v12352_v46 = vmul.f32 %v26857_v37, %v26857_v37 }
0x120e   :  { %v26859_v2 = vadd.f32 %v12213_v13, %v12109_v5  ;;  %v12294_v56 = vsel %vm12281_vm6, %v26855_v21, 0.0  ;;  %v12349_v13 = vmul.f32 %v26851_v22, %v26851_v22  ;;  %v12350_v6 = vmul.f32 %v26855_v21, %v26855_v21 }
0x120f   :  { %12292 = vadd.xlane.f32.xlu0 %v12291_v31  ;;  %12295 = vadd.xlane.f32.xlu1 %v12294_v56  ;;  %v12303_v14 = vsel %vm12281_vm6, %v26865_v16, 0.0  ;;  %v12380_v57 = vsel %vm12281_vm6, %v12352_v46, 0.0  ;;  %v12353_v43 = vmul.f32 %v26865_v16, %v26865_v16 }
0x1210   :  { %v12297_v42 = vsel %vm12281_vm6, %v26859_v2, 0.0  ;;  %v12371_v11 = vsel %vm12281_vm6, %v12349_v13, 0.0  ;;  %v12374_v15 = vsel %vm12281_vm6, %v12350_v6, 0.0  ;;  %v12351_v63 = vmul.f32 %v26859_v2, %v26859_v2  ;;  %v13127_v13 = vld [vmem:[%s27849_s17 + $0x58] sm:$0xff]  ;;  %v13014_v6 = vld [vmem:[%s27848_s16 + $0x50] sm:$0xff] }
0x1212   :  { %v20819_v20 = vpop.f32.mrb[120].mxu1  ;;  %v12377_v8 = vsel %vm12281_vm6, %v12351_v63, 0.0 }
0x1213   :  { %v12122_v12 = vpop.f32.mrb[121].mxu1  ;;  %12298 = vadd.xlane.f32.xlu0 %v12297_v42  ;;  %12301 = vadd.xlane.f32.xlu1 %v12300_v41  ;;  %v26873_v30 = vadd.f32 %v20819_v20, %v12238_v3  ;;  %v26945_v20 = vld [vmem:[%s27850_s18] sm:$0xff] }
0x1214   :  { %v26871_v26 = vadd.f32 %v12228_v44, %v12122_v12  ;;  %v20820_v48 = vpop.f32.mrb[122].mxu1  ;;  %v12383_v44 = vsel %vm12281_vm6, %v12353_v43, 0.0  ;;  %20857 = vmatprep.mubr.f32.mxu0 %v26945_v20 }
0x1215   :  { %v12125_v27 = vpop.f32.mrb[123].mxu1  ;;  %v26881_v4 = vadd.f32 %v20820_v48, %v12243_v61  ;;  %v12312_v51 = vsel %vm12281_vm6, %v26873_v30, 0.0  ;;  %v12356_v5 = vmul.f32 %v26873_v30, %v26873_v30 }
0x1216   :  { %v26875_v24 = vadd.f32 %v12233_v19, %v12125_v27  ;;  %v12306_v10 = vsel %vm12281_vm6, %v26871_v26, 0.0  ;;  %v12354_v1 = vmul.f32 %v26871_v26, %v26871_v26 }
0x1217   :  { %12304 = vadd.xlane.f32.xlu0 %v12303_v14  ;;  %12307 = vadd.xlane.f32.xlu1 %v12306_v10  ;;  %v12315_v40 = vsel %vm12281_vm6, %v26881_v4, 0.0  ;;  %v12392_v56 = vsel %vm12281_vm6, %v12356_v5, 0.0  ;;  %v12357_v19 = vmul.f32 %v26881_v4, %v26881_v4 }
0x1218   :  { %v12309_v0 = vsel %vm12281_vm6, %v26875_v24, 0.0  ;;  %v12386_v52 = vsel %vm12281_vm6, %v12354_v1, 0.0  ;;  %v12355_v34 = vmul.f32 %v26875_v24, %v26875_v24 }
0x1219   :  { %v12395_v42 = vsel %vm12281_vm6, %v12357_v19, 0.0 }
0x121a   :  { %v20823_v18 = vpop.f32.mrb[124].mxu1  ;;  %v12389_v31 = vsel %vm12281_vm6, %v12355_v34, 0.0 }
0x121b   :  { %v12138_v23 = vpop.f32.mrb[125].mxu1  ;;  %12310 = vadd.xlane.f32.xlu0 %v12309_v0  ;;  %12313 = vadd.xlane.f32.xlu1 %v12312_v51  ;;  %v26889_v9 = vadd.f32 %v20823_v18, %v12258_v39  ;;  %v13005_v18 = vld [vmem:[%s27848_s16 + $0x8] sm:$0xff]  ;;  %v13007_v0 = vld [vmem:[%s27848_s16 + $0x18] sm:$0xff] }
0x121c   :  { %v26887_v28 = vadd.f32 %v12248_v33, %v12138_v23  ;;  %v20824_v53 = vpop.f32.mrb[126].mxu1  ;;  %v26962_v33 = vld [vmem:[%s27850_s18 + $0x50] sm:$0xff]  ;;  %v13117_v51 = vld [vmem:[%s27849_s17 + $0x8] sm:$0xff]  ;;  %v13119_v23 = vld [vmem:[%s27849_s17 + $0x18] sm:$0xff] }
0x121d   :  { %v12141_v49 = vpop.f32.mrb[127].mxu1  ;;  %27952 = vst [vmem:[#allocation17_spill] sm:$0xff] %v26889_v9  ;;  %v26897_v59 = vadd.f32 %v20824_v53, %v12263_v17  ;;  %v12324_v54 = vsel %vm12281_vm6, %v26889_v9, 0.0  ;;  %v12360_v48 = vmul.f32 %v26889_v9, %v26889_v9  ;;  %20928 = vmatprep.mubr.f32.mxu1 %v26962_v33  ;;  %v13006_v53 = vld [vmem:[%s27848_s16 + $0x10] sm:$0xff]  ;;  %v13009_v39 = vld [vmem:[%s27848_s16 + $0x28] sm:$0xff] }
0x121e   :  { %27951 = vst [vmem:[#allocation26_spill] sm:$0xff] %v26887_v28  ;;  %v26891_v47 = vadd.f32 %v12253_v36, %v12141_v49  ;;  %v12318_v55 = vsel %vm12281_vm6, %v26887_v28, 0.0  ;;  %v12358_v3 = vmul.f32 %v26887_v28, %v26887_v28  ;;  %v13004_v36 = vld [vmem:[%s27848_s16] sm:$0xff]  ;;  %v13121_v17 = vld [vmem:[%s27849_s17 + $0x28] sm:$0xff] }
0x121f   :  { %12316 = vadd.xlane.f32.xlu0 %v12315_v40  ;;  %12319 = vadd.xlane.f32.xlu1 %v12318_v55  ;;  %27954 = vst [vmem:[#allocation24_spill] sm:$0xff] %v26897_v59  ;;  %v12327_v45 = vsel %vm12281_vm6, %v26897_v59, 0.0  ;;  %v12404_v27 = vsel %vm12281_vm6, %v12360_v48, 0.0  ;;  %v12361_v14 = vmul.f32 %v26897_v59, %v26897_v59  ;;  %v13116_v49 = vld [vmem:[%s27849_s17] sm:$0xff]  ;;  %v13011_v40 = vld [vmem:[%s27848_s16 + $0x38] sm:$0xff]  ;;  %v13118_v55 = vld [vmem:[%s27849_s17 + $0x10] sm:$0xff] }
0x1220   :  { %27953 = vst [vmem:[#allocation27_spill] sm:$0xff] %v26891_v47  ;;  %v12321_v50 = vsel %vm12281_vm6, %v26891_v47, 0.0  ;;  %v12398_v41 = vsel %vm12281_vm6, %v12358_v3, 0.0  ;;  %v12359_v12 = vmul.f32 %v26891_v47, %v26891_v47 }
0x1221   :  { %v12407_v10 = vsel %vm12281_vm6, %v12361_v14, 0.0 }
0x1222   :  { %v12401_v61 = vsel %vm12281_vm6, %v12359_v12, 0.0 }
0x1223   :  { %12322 = vadd.xlane.f32.xlu0 %v12321_v50  ;;  %12325 = vadd.xlane.f32.xlu1 %v12324_v54  ;;  %v13008_v50 = vld [vmem:[%s27848_s16 + $0x20] sm:$0xff]  ;;  %v13123_v54 = vld [vmem:[%s27849_s17 + $0x38] sm:$0xff] }
0x1227   :  { %12328 = vadd.xlane.f32.xlu0 %v12327_v45  ;;  %12363 = vadd.xlane.f32.xlu1 %v12362_v35  ;;  %v13013_v45 = vld [vmem:[%s27848_s16 + $0x48] sm:$0xff]  ;;  %v13120_v35 = vld [vmem:[%s27849_s17 + $0x20] sm:$0xff] }
0x122b   :  { %12366 = vadd.xlane.f32.xlu0 %v12365_v29  ;;  %12369 = vadd.xlane.f32.xlu1 %v12368_v25  ;;  %v13125_v29 = vld [vmem:[%s27849_s17 + $0x48] sm:$0xff]  ;;  %v13012_v25 = vld [vmem:[%s27848_s16 + $0x40] sm:$0xff] }
0x122f   :  { %12372 = vadd.xlane.f32.xlu0 %v12371_v11  ;;  %12375 = vadd.xlane.f32.xlu1 %v12374_v15  ;;  %v13124_v11 = vld [vmem:[%s27849_s17 + $0x40] sm:$0xff]  ;;  %v13126_v15 = vld [vmem:[%s27849_s17 + $0x50] sm:$0xff] }
0x1233   :  { %12378 = vadd.xlane.f32.xlu0 %v12377_v8  ;;  %12381 = vadd.xlane.f32.xlu1 %v12380_v57 }
0x1237   :  { %12384 = vadd.xlane.f32.xlu0 %v12383_v44  ;;  %12387 = vadd.xlane.f32.xlu1 %v12386_v52 }
0x123b   :  { %12390 = vadd.xlane.f32.xlu0 %v12389_v31  ;;  %12393 = vadd.xlane.f32.xlu1 %v12392_v56 }
0x123f   :  { %12396 = vadd.xlane.f32.xlu0 %v12395_v42  ;;  %12399 = vadd.xlane.f32.xlu1 %v12398_v41 }
0x1243   :  { %12402 = vadd.xlane.f32.xlu0 %v12401_v61  ;;  %12405 = vadd.xlane.f32.xlu1 %v12404_v27 }
0x1247   :  { %12408 = vadd.xlane.f32.xlu0 %v12407_v10 }
0x1254   :  { %13027 = vperm.xlu1 %22706, %v13005_v18  }
0x1258   :  { %13037 = vperm.xlu1 %22706, %v13007_v0  }
0x125c   :  { %13139 = vperm.xlu1 %22706, %v13117_v51  }
0x125d   :  { %13022 = vperm.xlu0 %22705, %v13004_v36  }
0x1260   :  { %13149 = vperm.xlu1 %22706, %v13119_v23  }
0x1261   :  { %13032 = vperm.xlu0 %22705, %v13006_v53  }
0x1264   :  { %13047 = vperm.xlu1 %22706, %v13009_v39  }
0x1265   :  { %13134 = vperm.xlu0 %22705, %v13116_v49  }
0x1268   :  { %13057 = vperm.xlu1 %22706, %v13011_v40  }
0x1269   :  { %13144 = vperm.xlu0 %22705, %v13118_v55  }
0x126c   :  { %13159 = vperm.xlu1 %22706, %v13121_v17  }
0x126d   :  { %13042 = vperm.xlu0 %22705, %v13008_v50  }
0x1270   :  { %13169 = vperm.xlu1 %22706, %v13123_v54  }
0x1271   :  { %13052 = vperm.xlu0 %22705, %v13010_v60  }
0x1274   :  { %13067 = vperm.xlu1 %22706, %v13013_v45  }
0x1275   :  { %13154 = vperm.xlu0 %22705, %v13120_v35  }
0x1278   :  { %13077 = vperm.xlu1 %22706, %v13015_v32  }
0x1279   :  { %13164 = vperm.xlu0 %22705, %v13122_v38  }
0x127c   :  { %13179 = vperm.xlu1 %22706, %v13125_v29  }
0x127d   :  { %13062 = vperm.xlu0 %22705, %v13012_v25  }
0x1280   :  { %13189 = vperm.xlu1 %22706, %v13127_v13  }
0x1281   :  { %13072 = vperm.xlu0 %22705, %v13014_v6  }
0x1285   :  { %13174 = vperm.xlu0 %22705, %v13124_v11  }
0x1289   :  { %13184 = vperm.xlu0 %22705, %v13126_v15   ;;  %v27040_v15 = vld [vmem:[%s27850_s18 + $0x8] sm:$0xff] }
0x1294   :  { %v12284_v63 = vpop.xlane.xlu0 %12283 }
0x1295   :  { %v12330_v8 = vmul.f32 0.03125, %v12284_v63 }
0x1296   :  { %v12287_v46 = vpop.xlane.xlu1 %12286 }
0x1297   :  { %v12331_v57 = vmul.f32 0.03125, %v12287_v46 }
0x1298   :  { %v12290_v43 = vpop.xlane.xlu0 %12289 }
0x1299   :  { %v21675_v1 = vpack.c.bf16 %v12331_v57, %v12330_v8  ;;  %v12332_v34 = vmul.f32 0.03125, %v12290_v43  ;;  %v27045_v57 = vld [vmem:[%s27850_s18 + $0x10] sm:$0xff] }
0x129b   :  { %21676 = vmatprep.subr.bf16.mxu0 %v21675_v1 }
0x129c   :  { %v12296_v44 = vpop.xlane.xlu1 %12295  ;;  %21678 = vmatpush3.bf16.msra.mxu0 %v21675_v1  ;;  %v12293_v52 = vpop.xlane.xlu0 %12292 }
0x129d   :  { %v12333_v5 = vmul.f32 0.03125, %v12293_v52  ;;  %v12334_v3 = vmul.f32 0.03125, %v12296_v44  ;;  %v27051_v44 = vld [vmem:[%s27850_s18 + $0x18] sm:$0xff] }
0x129f   :  { %v21679_v31 = vpack.c.bf16 %v12333_v5, %v12332_v34 }
0x12a0   :  { %v12302_v56 = vpop.xlane.xlu1 %12301  ;;  %v12299_v19 = vpop.xlane.xlu0 %12298 }
0x12a1   :  { %v12335_v42 = vmul.f32 0.03125, %v12299_v19  ;;  %21680 = vmatprep.subr.bf16.mxu0 %v21679_v31  ;;  %v12336_v61 = vmul.f32 0.03125, %v12302_v56 }
0x12a2   :  { %21682 = vmatpush3.bf16.msra.mxu0 %v21679_v31  ;;  %v27057_v31 = vld [vmem:[%s27850_s18 + $0x20] sm:$0xff] }
0x12a3   :  { %v21683_v41 = vpack.c.bf16 %v12335_v42, %v12334_v3  ;;  %v27063_v3 = vld [vmem:[%s27850_s18 + $0x28] sm:$0xff] }
0x12a4   :  { %v12308_v12 = vpop.xlane.xlu1 %12307  ;;  %v12305_v48 = vpop.xlane.xlu0 %12304 }
0x12a5   :  { %v12337_v27 = vmul.f32 0.03125, %v12305_v48  ;;  %21684 = vmatprep.subr.bf16.mxu0 %v21683_v41  ;;  %v12338_v0 = vmul.f32 0.03125, %v12308_v12  ;;  %v27069_v48 = vld [vmem:[%s27850_s18 + $0x30] sm:$0xff] }
0x12a6   :  { %21686 = vmatpush3.bf16.msra.mxu0 %v21683_v41 }
0x12a7   :  { %v21687_v14 = vpack.c.bf16 %v12337_v27, %v12336_v61 }
0x12a8   :  { %v12314_v10 = vpop.xlane.xlu1 %12313  ;;  %v12311_v18 = vpop.xlane.xlu0 %12310 }
0x12a9   :  { %v12339_v51 = vmul.f32 0.03125, %v12311_v18  ;;  %21688 = vmatprep.subr.bf16.mxu0 %v21687_v14  ;;  %v12340_v39 = vmul.f32 0.03125, %v12314_v10 }
0x12aa   :  { %21690 = vmatpush3.bf16.msra.mxu0 %v21687_v14  ;;  %v27075_v14 = vld [vmem:[%s27850_s18 + $0x38] sm:$0xff] }
0x12ab   :  { %v21691_v36 = vpack.c.bf16 %v12339_v51, %v12338_v0  ;;  %v27081_v51 = vld [vmem:[%s27850_s18 + $0x40] sm:$0xff] }
0x12ac   :  { %v12320_v23 = vpop.xlane.xlu1 %12319  ;;  %v12317_v53 = vpop.xlane.xlu0 %12316 }
0x12ad   :  { %v12341_v49 = vmul.f32 0.03125, %v12317_v53  ;;  %21692 = vmatprep.subr.bf16.mxu0 %v21691_v36  ;;  %v12342_v50 = vmul.f32 0.03125, %v12320_v23  ;;  %v12435_v53 = vld [vmem:[%s27850_s18 + $0x48] sm:$0xff] }
0x12ae   :  { %21694 = vmatpush3.bf16.msra.mxu0 %v21691_v36 }
0x12af   :  { %v21695_v40 = vpack.c.bf16 %v12341_v49, %v12340_v39 }
0x12b0   :  { %v12326_v55 = vpop.xlane.xlu1 %12325  ;;  %v12323_v17 = vpop.xlane.xlu0 %12322 }
0x12b1   :  { %v12343_v54 = vmul.f32 0.03125, %v12323_v17  ;;  %21696 = vmatprep.subr.bf16.mxu0 %v21695_v40  ;;  %v12344_v32 = vmul.f32 0.03125, %v12326_v55 }
0x12b2   :  { %21698 = vmatpush3.bf16.msra.mxu0 %v21695_v40 }
0x12b3   :  { %v21699_v60 = vpack.c.bf16 %v12343_v54, %v12342_v50  ;;  %v12437_v50 = vld [vmem:[%s27850_s18 + $0x58] sm:$0xff] }
0x12b4   :  { %v12364_v45 = vpop.xlane.xlu1 %12363  ;;  %v12329_v35 = vpop.xlane.xlu0 %12328 }
0x12b5   :  { %v12345_v38 = vmul.f32 0.03125, %v12329_v35  ;;  %21700 = vmatprep.subr.bf16.mxu0 %v21699_v60  ;;  %v12410_v6 = vmul.f32 0.03125, %v12364_v45  ;;  %v12438_v45 = vld [vmem:[%s27850_s18 + $0x60] sm:$0xff] }
0x12b6   :  { %21702 = vmatpush3.bf16.msra.mxu0 %v21699_v60 }
0x12b7   :  { %v21703_v29 = vpack.c.bf16 %v12345_v38, %v12344_v32 }
0x12b8   :  { %v12370_v25 = vpop.xlane.xlu1 %12369  ;;  %v12367_v13 = vpop.xlane.xlu0 %12366 }
0x12b9   :  { %v12411_v11 = vmul.f32 0.03125, %v12367_v13  ;;  %21704 = vmatprep.subr.bf16.mxu0 %v21703_v29  ;;  %v12412_v43 = vmul.f32 0.03125, %v12370_v25  ;;  %v12440_v13 = vld [vmem:[%s27850_s18 + $0x70] sm:$0xff] }
0x12ba   :  { %21706 = vmatpush3.bf16.msra.mxu0 %v21703_v29  ;;  %v12439_v29 = vld [vmem:[%s27850_s18 + $0x68] sm:$0xff] }
0x12bb   :  { %v21707_v63 = vpack.c.bf16 %v12411_v11, %v12410_v6 }
0x12bc   :  { %v12376_v46 = vpop.xlane.xlu1 %12375  ;;  %v12373_v8 = vpop.xlane.xlu0 %12372 }
0x12bd   :  { %v12413_v1 = vmul.f32 0.03125, %v12373_v8  ;;  %20858 = vmatmul.mubr.f32.vlgmr.msra.gmra.mrb[128].mxu0 %v27040_v15  ;;  %21708 = vmatprep.subr.bf16.mxu0 %v21707_v63  ;;  %v12414_v56 = vmul.f32 0.03125, %v12376_v46 }
0x12be   :  { %21769 = vmatprep.subr.bf16.mxu1 %v21707_v63  ;;  %21710 = vmatpush3.bf16.msra.mxu0 %v21707_v63 }
0x12bf   :  { %v21711_v52 = vpack.c.bf16 %v12413_v1, %v12412_v43  ;;  %21777 = vmatpush3.bf16.msra.mxu1 %v21707_v63  ;;  %20860 = vmatprep.mubr.f32.mxu0 %v27045_v57  ;;  %v12441_v63 = vld [vmem:[%s27850_s18 + $0x78] sm:$0xff] }
0x12c0   :  { %v12382_v34 = vpop.xlane.xlu1 %12381  ;;  %v12379_v5 = vpop.xlane.xlu0 %12378 }
0x12c1   :  { %v12415_v19 = vmul.f32 0.03125, %v12379_v5  ;;  %20861 = vmatmul.mubr.f32.gmra.mrb[130].mxu0 %v27051_v44  ;;  %21712 = vmatprep.subr.bf16.mxu0 %v21711_v52  ;;  %v12416_v61 = vmul.f32 0.03125, %v12382_v34 }
0x12c2   :  { %21770 = vmatprep.subr.bf16.mxu1 %v21711_v52  ;;  %21714 = vmatpush3.bf16.msra.mxu0 %v21711_v52 }
0x12c3   :  { %v21715_v42 = vpack.c.bf16 %v12415_v19, %v12414_v56  ;;  %21778 = vmatpush3.bf16.msra.mxu1 %v21711_v52  ;;  %20863 = vmatprep.mubr.f32.mxu0 %v27057_v31 }
0x12c4   :  { %v12388_v41 = vpop.xlane.xlu1 %12387  ;;  %v12385_v12 = vpop.xlane.xlu0 %12384 }
0x12c5   :  { %v12417_v27 = vmul.f32 0.03125, %v12385_v12  ;;  %20864 = vmatmul.mubr.f32.gmra.mrb[132].mxu0 %v27063_v3  ;;  %21716 = vmatprep.subr.bf16.mxu0 %v21715_v42  ;;  %v12418_v36 = vmul.f32 0.03125, %v12388_v41 }
0x12c6   :  { %21771 = vmatprep.subr.bf16.mxu1 %v21715_v42  ;;  %21718 = vmatpush3.bf16.msra.mxu0 %v21715_v42 }
0x12c7   :  { %v21719_v10 = vpack.c.bf16 %v12417_v27, %v12416_v61  ;;  %21779 = vmatpush3.bf16.msra.mxu1 %v21715_v42  ;;  %20866 = vmatprep.mubr.f32.mxu0 %v27069_v48 }
0x12c8   :  { %v12394_v18 = vpop.xlane.xlu1 %12393  ;;  %v12391_v0 = vpop.xlane.xlu0 %12390 }
0x12c9   :  { %v12419_v23 = vmul.f32 0.03125, %v12391_v0  ;;  %20867 = vmatmul.mubr.f32.gmra.mrb[134].mxu0 %v27075_v14  ;;  %21720 = vmatprep.subr.bf16.mxu0 %v21719_v10  ;;  %v12420_v55 = vmul.f32 0.03125, %v12394_v18 }
0x12ca   :  { %21772 = vmatprep.subr.bf16.mxu1 %v21719_v10  ;;  %21722 = vmatpush3.bf16.msra.mxu0 %v21719_v10 }
0x12cb   :  { %v21723_v39 = vpack.c.bf16 %v12419_v23, %v12418_v36  ;;  %21780 = vmatpush3.bf16.msra.mxu1 %v21719_v10  ;;  %20869 = vmatprep.mubr.f32.mxu0 %v27081_v51 }
0x12cc   :  { %v12400_v49 = vpop.xlane.xlu1 %12399  ;;  %v12397_v40 = vpop.xlane.xlu0 %12396 }
0x12cd   :  { %v12421_v17 = vmul.f32 0.03125, %v12397_v40  ;;  %20870 = vmatmul.mubr.f32.gmra.mrb[136].mxu0 %v12435_v53  ;;  %21724 = vmatprep.subr.bf16.mxu0 %v21723_v39  ;;  %v12422_v35 = vmul.f32 0.03125, %v12400_v49 }
0x12ce   :  { %21773 = vmatprep.subr.bf16.mxu1 %v21723_v39  ;;  %21726 = vmatpush3.bf16.msra.mxu0 %v21723_v39 }
0x12cf   :  { %v21727_v54 = vpack.c.bf16 %v12421_v17, %v12420_v55  ;;  %21781 = vmatpush3.bf16.msra.mxu1 %v21723_v39  ;;  %20872 = vmatprep.mubr.f32.mxu0 %v26962_v33 }
0x12d0   :  { %v12403_v60 = vpop.xlane.xlu0 %12402  ;;  %v12406_v38 = vpop.xlane.xlu1 %12405 }
0x12d1   :  { %v12423_v32 = vmul.f32 0.03125, %v12403_v60  ;;  %20873 = vmatmul.mubr.f32.gmra.mrb[138].mxu0 %v12437_v50  ;;  %21728 = vmatprep.subr.bf16.mxu0 %v21727_v54  ;;  %v12424_v6 = vmul.f32 0.03125, %v12406_v38 }
0x12d2   :  { %21774 = vmatprep.subr.bf16.mxu1 %v21727_v54  ;;  %21730 = vmatpush3.bf16.msra.mxu0 %v21727_v54 }
0x12d3   :  { %v21731_v25 = vpack.c.bf16 %v12423_v32, %v12422_v35  ;;  %21782 = vmatpush3.bf16.msra.mxu1 %v21727_v54  ;;  %20875 = vmatprep.mubr.f32.mxu0 %v12438_v45 }
0x12d4   :  { %v12409_v33 = vpop.xlane.xlu0 %12408 }
0x12d5   :  { %v12425_v11 = vmul.f32 0.03125, %v12409_v33  ;;  %20876 = vmatmul.mubr.f32.gmra.mrb[140].mxu0 %v12439_v29  ;;  %21732 = vmatprep.subr.bf16.mxu0 %v21731_v25 }
0x12d6   :  { %21775 = vmatprep.subr.bf16.mxu1 %v21731_v25  ;;  %21734 = vmatpush3.bf16.msra.mxu0 %v21731_v25 }
0x12d7   :  { %v21735_v46 = vpack.c.bf16 %v12425_v11, %v12424_v6  ;;  %21783 = vmatpush3.bf16.msra.mxu1 %v21731_v25  ;;  %20878 = vmatprep.mubr.f32.mxu0 %v12440_v13 }
0x12d9   :  { %20879 = vmatmul.mubr.f32.gmra.mrb[142].mxu0 %v12441_v63  ;;  %21736 = vmatprep.subr.bf16.mxu0 %v21735_v46 }
0x12da   :  { %21776 = vmatprep.subr.bf16.mxu1 %v21735_v46  ;;  %21738 = vmatpush3.bf16.msra.mxu0 %v21735_v46 }
0x12db   :  { %21784 = vmatpush3.bf16.msra.mxu1 %v21735_v46  ;;  %20913 = vmatprep.mubr.f32.mxu0 %v26945_v20 }
0x12dd   :  { %20914 = vmatmul.mubr.f32.vlgmr.msra.gmra.mrb[144].mxu0 %v27040_v15 }
0x12de   :  { %20929 = vmatmul.mubr.f32.vlgmr.msra.gmra.mrb[128].mxu1 %v12437_v50  ;;  %20916 = vmatprep.mubr.f32.mxu0 %v27045_v57 }
0x12df   :  { %20931 = vmatprep.mubr.f32.mxu1 %v12438_v45 }
0x12e1   :  { %20917 = vmatmul.mubr.f32.gmra.mrb[146].mxu0 %v27051_v44 }
0x12e2   :  { %20932 = vmatmul.mubr.f32.gmra.mrb[130].mxu1 %v12439_v29  ;;  %20919 = vmatprep.mubr.f32.mxu0 %v27057_v31 }
0x12e3   :  { %20934 = vmatprep.mubr.f32.mxu1 %v12440_v13 }
0x12e5   :  { %20920 = vmatmul.mubr.f32.gmra.mrb[148].mxu0 %v27063_v3 }
0x12e6   :  { %20935 = vmatmul.mubr.f32.gmra.mrb[132].mxu1 %v12441_v63  ;;  %20922 = vmatprep.mubr.f32.mxu0 %v27069_v48 }
0x12e9   :  { %20923 = vmatmul.mubr.f32.gmra.mrb[150].mxu0 %v27075_v14 }
0x12ea   :  { %20925 = vmatprep.mubr.f32.mxu0 %v27081_v51 }
0x12ed   :  { %20926 = vmatmul.mubr.f32.gmra.mrb[152].mxu0 %v12435_v53 }
0x1390   :  { %v20859_v20 = vpop.f32.mrb[128].mxu0 }
0x1391   :  { %12787 = vperm.xlu0 %22705, %v20859_v20   ;;  %v12508_v15 = vpop.f32.mrb[129].mxu0  ;;  %v12733_v48 = vmul.f32 %v20859_v20, %v20859_v20 }
0x1392   :  { %12782 = vperm.xlu1 %22706, %v12508_v15   ;;  %v12732_v27 = vmul.f32 %v12508_v15, %v12508_v15 }
0x1394   :  { %v20862_v8 = vpop.f32.mrb[130].mxu0 }
0x1395   :  { %v12518_v57 = vpop.f32.mrb[131].mxu0  ;;  %v12735_v39 = vmul.f32 %v20862_v8, %v20862_v8 }
0x1396   :  { %12797 = vperm.xlu1 %22706, %v20862_v8   ;;  %v12734_v55 = vmul.f32 %v12518_v57, %v12518_v57 }
0x1398   :  { %v20865_v43 = vpop.f32.mrb[132].mxu0 }
0x1399   :  { %v12528_v1 = vpop.f32.mrb[133].mxu0  ;;  %v12737_v13 = vmul.f32 %v20865_v43, %v20865_v43 }
0x139a   :  { %12792 = vperm.xlu1 %22706, %v12518_v57   ;;  %12802 = vperm.xlu0 %22705, %v12528_v1   ;;  %v12736_v15 = vmul.f32 %v12528_v1, %v12528_v1 }
0x139c   :  { %v27113_v44 = vpop.f32.mrb[134].mxu0 }
0x139d   :  { %v27115_v52 = vpop.f32.mrb[135].mxu0 }
0x139e   :  { %12807 = vperm.xlu1 %22706, %v20865_v43   ;;  %12812 = vperm.xlu0 %22705, %v27115_v52   ;;  %v12738_v43 = vmul.f32 %v27115_v52, %v27115_v52 }
0x13a0   :  { %v27118_v34 = vpop.f32.mrb[136].mxu0 }
0x13a1   :  { %v27120_v5 = vpop.f32.mrb[137].mxu0 }
0x13a2   :  { %12817 = vperm.xlu1 %22706, %v27113_v44   ;;  %12822 = vperm.xlu0 %22705, %v27120_v5   ;;  %v12740_v52 = vmul.f32 %v27120_v5, %v27120_v5 }
0x13a4   :  { %v20874_v31 = vpop.f32.mrb[138].mxu0 }
0x13a5   :  { %v12558_v56 = vpop.f32.mrb[139].mxu0  ;;  %v12743_v12 = vmul.f32 %v20874_v31, %v20874_v31 }
0x13a6   :  { %12827 = vperm.xlu1 %22706, %v27118_v34   ;;  %12832 = vperm.xlu0 %22705, %v12558_v56   ;;  %v12742_v61 = vmul.f32 %v12558_v56, %v12558_v56 }
0x13a8   :  { %v20877_v19 = vpop.f32.mrb[140].mxu0 }
0x13a9   :  { %v12568_v3 = vpop.f32.mrb[141].mxu0  ;;  %v12745_v51 = vmul.f32 %v20877_v19, %v20877_v19 }
0x13aa   :  { %12837 = vperm.xlu1 %22706, %v20874_v31   ;;  %12842 = vperm.xlu0 %22705, %v12568_v3   ;;  %v12744_v49 = vmul.f32 %v12568_v3, %v12568_v3 }
0x13ac   :  { %v20880_v42 = vpop.f32.mrb[142].mxu0 }
0x13ad   :  { %v12578_v41 = vpop.f32.mrb[143].mxu0  ;;  %v12747_v32 = vmul.f32 %v20880_v42, %v20880_v42 }
0x13ae   :  { %12847 = vperm.xlu1 %22706, %v20877_v19   ;;  %12852 = vperm.xlu0 %22705, %v12578_v41   ;;  %v12746_v63 = vmul.f32 %v12578_v41, %v12578_v41 }
0x13b0   :  { %v20915_v14 = vpop.f32.mrb[144].mxu0 }
0x13b1   :  { %v12749_v10 = vsub.f32 %v20915_v14, %v12733_v48  ;;  %v20930_v18 = vpop.f32.mrb[128].mxu1  ;;  %v12653_v0 = vpop.f32.mrb[145].mxu0 }
0x13b2   :  { %v12759_v36 = vsub.f32 %v20930_v18, %v12743_v12  ;;  %v12748_v23 = vsub.f32 %v12653_v0, %v12732_v27  ;;  %v12703_v53 = vpop.f32.mrb[129].mxu1  ;;  %12857 = vperm.xlu1 %22706, %v20880_v42   ;;  %v12739_v12 = vmul.f32 %v27113_v44, %v27113_v44  ;;  %v12741_v44 = vmul.f32 %v27118_v34, %v27118_v34 }
0x13b3   :  { %v12758_v40 = vsub.f32 %v12703_v53, %v12742_v61  ;;  %v12765_v61 = vmax.f32 %v12749_v10, 0.0 }
0x13b4   :  { %v12775_v17 = vmax.f32 %v12759_v36, 0.0  ;;  %v20918_v50 = vpop.f32.mrb[146].mxu0  ;;  %v12764_v18 = vmax.f32 %v12748_v23, 0.0 }
0x13b5   :  { %v12774_v54 = vmax.f32 %v12758_v40, 0.0  ;;  %v12751_v60 = vsub.f32 %v20918_v50, %v12735_v39  ;;  %v20933_v45 = vpop.f32.mrb[130].mxu1  ;;  %v12663_v35 = vpop.f32.mrb[147].mxu0 }
0x13b6   :  { %v12887_v38 = vadd.f32 1e-05, %v12775_v17  ;;  %v12761_v29 = vsub.f32 %v20933_v45, %v12745_v51  ;;  %v12750_v25 = vsub.f32 %v12663_v35, %v12734_v55  ;;  %v12713_v33 = vpop.f32.mrb[131].mxu1 }
0x13b7   :  { %v12886_v6 = vadd.f32 1e-05, %v12774_v54  ;;  %v12760_v11 = vsub.f32 %v12713_v33, %v12744_v49  ;;  %v12877_v49 = vadd.f32 1e-05, %v12765_v61  ;;  %v12767_v40 = vmax.f32 %v12751_v60, 0.0  ;;  %v23097_v61 = vld [vmem:[#allocation9 + $0x20] sm:$0xff]  }
0x13b8   :  { %23264 = vrsqrt.f32 %v12887_v38  ;;  %v12777_v46 = vmax.f32 %v12761_v29, 0.0  ;;  %v20921_v20 = vpop.f32.mrb[148].mxu0  ;;  %v12876_v54 = vadd.f32 1e-05, %v12764_v18  ;;  %v12766_v45 = vmax.f32 %v12750_v25, 0.0  ;;  %v27139_v18 = vpop.permute.xlu0 %13022  ;;  %21201 = vmatprep.subr.bf16.mxu1 %v23097_v61 }
0x13b9   :  { %v12776_v8 = vmax.f32 %v12760_v11, 0.0  ;;  %v12753_v57 = vsub.f32 %v20921_v20, %v12737_v13  ;;  %v20936_v31 = vpop.f32.mrb[132].mxu1  ;;  %v12673_v56 = vpop.f32.mrb[149].mxu0  ;;  %23266 = vrsqrt.f32 %v12886_v6  ;;  %v12879_v38 = vadd.f32 1e-05, %v12767_v40  ;;  %21202 = vmatpush3.bf16.msra.mxu1 %v23097_v61  ;;  %v13017_v40 = vld [vmem:[%s27848_s16 + $0x68] sm:$0xff] }
0x13ba   :  { %v12889_v19 = vadd.f32 1e-05, %v12777_v46  ;;  %v12763_v3 = vsub.f32 %v20936_v31, %v12747_v32  ;;  %v12723_v42 = vpop.f32.mrb[133].mxu1  ;;  %v12752_v41 = vsub.f32 %v12673_v56, %v12736_v15  ;;  %v12878_v5 = vadd.f32 1e-05, %v12766_v45  ;;  %v27133_v46 = vpop.permute.xlu1 %13027 }
0x13bb   :  { %v12888_v48 = vadd.f32 1e-05, %v12776_v8  ;;  %v12762_v1 = vsub.f32 %v12723_v42, %v12746_v63  ;;  %v12769_v34 = vmax.f32 %v12753_v57, 0.0 }
0x13bc   :  { %23268 = vrsqrt.f32 %v12889_v19  ;;  %v12779_v27 = vmax.f32 %v12763_v3, 0.0  ;;  %v20924_v14 = vpop.f32.mrb[150].mxu0  ;;  %v12768_v60 = vmax.f32 %v12752_v41, 0.0  ;;  %v23096_v41 = vld [vmem:[#allocation9] sm:$0xff]  }
0x13bd   :  { %v12755_v0 = vsub.f32 %v20924_v14, %v12739_v12  ;;  %v12683_v51 = vpop.f32.mrb[151].mxu0  ;;  %23270 = vrsqrt.f32 %v12888_v48  ;;  %v12778_v53 = vmax.f32 %v12762_v1, 0.0  ;;  %v12881_v13 = vadd.f32 1e-05, %v12769_v34  ;;  %20937 = vmatprep.subr.bf16.mxu0 %v23096_v41  ;;  %v13130_v34 = vld [vmem:[%s27849_s17 + $0x70] sm:$0xff] }
0x13be   :  { %v12891_v36 = vadd.f32 1e-05, %v12779_v27  ;;  %v12754_v39 = vsub.f32 %v12683_v51, %v12738_v43  ;;  %v12880_v25 = vadd.f32 1e-05, %v12768_v60  ;;  %v27135_v42 = vpop.permute.xlu1 %13037  ;;  %20938 = vmatpush3.bf16.msra.mxu0 %v23096_v41  ;;  %v23098_v51 = vld [vmem:[#allocation9 + $0x8] sm:$0xff]   ;;  %v16011_v60 = vld [vmem:[%s27853_s21 + $0x8] sm:$0xff] }
0x13bf   :  { %v12890_v10 = vadd.f32 1e-05, %v12778_v53  ;;  %v12771_v6 = vmax.f32 %v12755_v0, 0.0  ;;  %20939 = vmatprep.subr.bf16.mxu0 %v23098_v51  ;;  %v16020_v41 = vld [vmem:[%s27853_s21 + $0x50] sm:$0xff] }
0x13c0   :  { %23272 = vrsqrt.f32 %v12891_v36  ;;  %v20927_v55 = vpop.f32.mrb[152].mxu0  ;;  %v12770_v63 = vmax.f32 %v12754_v39, 0.0  ;;  %v23099_v36 = vld [vmem:[#allocation9 + $0x28] sm:$0xff]  }
0x13c1   :  { %v12757_v17 = vsub.f32 %v20927_v55, %v12741_v44  ;;  %v12693_v50 = vpop.f32.mrb[153].mxu0  ;;  %23274 = vrsqrt.f32 %v12890_v10  ;;  %v12883_v15 = vadd.f32 1e-05, %v12771_v6  ;;  %21203 = vmatprep.subr.bf16.mxu1 %v23099_v36  ;;  %v13016_v10 = vld [vmem:[%s27848_s16 + $0x60] sm:$0xff] }
0x13c2   :  { %v23265_v23 = vpop.eup %23264  ;;  %v12756_v35 = vsub.f32 %v12693_v50, %v12740_v52  ;;  %23276 = vrsqrt.f32 %v12877_v49  ;;  %v12882_v31 = vadd.f32 1e-05, %v12770_v63  ;;  %v27137_v1 = vpop.permute.xlu1 %13139  ;;  %20940 = vmatpush3.bf16.msra.mxu0 %v23098_v51  ;;  %21204 = vmatpush3.bf16.msra.mxu1 %v23099_v36  ;;  %v13019_v50 = vld [vmem:[%s27848_s16 + $0x78] sm:$0xff]  ;;  %v16012_v63 = vld [vmem:[%s27853_s21 + $0x10] sm:$0xff] }
0x13c3   :  { %12965 = vperm.xlu1 %22706, %v23265_v23   ;;  %v23267_v32 = vpop.eup %23266  ;;  %23278 = vrsqrt.f32 %v12876_v54  ;;  %v12773_v8 = vmax.f32 %v12757_v17, 0.0  ;;  %v27143_v52 = vpop.permute.xlu0 %13032  ;;  %v13018_v23 = vld [vmem:[%s27848_s16 + $0x70] sm:$0xff]  ;;  %v13129_v54 = vld [vmem:[%s27849_s17 + $0x68] sm:$0xff] }
0x13c4   :  { %12960 = vperm.xlu0 %22705, %v23267_v32   ;;  %23280 = vrsqrt.f32 %v12879_v38  ;;  %v12772_v56 = vmax.f32 %v12756_v35, 0.0  ;;  %v13128_v32 = vld [vmem:[%s27849_s17 + $0x60] sm:$0xff]  ;;  %v13131_v38 = vld [vmem:[%s27849_s17 + $0x78] sm:$0xff] }
0x13c5   :  { %23282 = vrsqrt.f32 %v12878_v5  ;;  %v12885_v3 = vadd.f32 1e-05, %v12773_v8 }
0x13c6   :  { %v23269_v29 = vpop.eup %23268  ;;  %23284 = vrsqrt.f32 %v12881_v13  ;;  %v12884_v43 = vadd.f32 1e-05, %v12772_v56  ;;  %v27141_v39 = vpop.permute.xlu1 %13149  ;;  %v16013_v13 = vld [vmem:[%s27853_s21 + $0x18] sm:$0xff]  ;;  %v16016_v56 = vld [vmem:[%s27853_s21 + $0x30] sm:$0xff] }
0x13c7   :  { %12975 = vperm.xlu1 %22706, %v23269_v29   ;;  %v23271_v33 = vpop.eup %23270  ;;  %23286 = vrsqrt.f32 %v12880_v25  ;;  %v27153_v17 = vpop.permute.xlu0 %13134 }
0x13c8   :  { %12970 = vperm.xlu0 %22705, %v23271_v33   ;;  %23288 = vrsqrt.f32 %v12883_v15  ;;  %v16010_v33 = vld [vmem:[%s27853_s21] sm:$0xff] }
0x13c9   :  { %23290 = vrsqrt.f32 %v12882_v31  ;;  %v16014_v15 = vld [vmem:[%s27853_s21 + $0x20] sm:$0xff]  ;;  %v16017_v31 = vld [vmem:[%s27853_s21 + $0x38] sm:$0xff] }
0x13ca   :  { %v23273_v11 = vpop.eup %23272  ;;  %23292 = vrsqrt.f32 %v12885_v3  ;;  %v27151_v55 = vpop.permute.xlu1 %13047 }
0x13cb   :  { %12985 = vperm.xlu1 %22706, %v23273_v11   ;;  %v23275_v20 = vpop.eup %23274  ;;  %23294 = vrsqrt.f32 %v12884_v43  ;;  %v27166_v35 = vpop.permute.xlu0 %13144  ;;  %v27192_v11 = vld [vmem:[#allocation9 + $0x30] sm:$0xff]  }
0x13cc   :  { %12980 = vperm.xlu0 %22705, %v23275_v20   ;;  %v23277_v57 = vpop.eup %23276  ;;  %21333 = vmatprep.subr.bf16.mxu1 %v27192_v11  ;;  %v16015_v20 = vld [vmem:[%s27853_s21 + $0x28] sm:$0xff]  ;;  %v16018_v43 = vld [vmem:[%s27853_s21 + $0x40] sm:$0xff] }
0x13cd   :  { %v23279_v19 = vpop.eup %23278 }
0x13ce   :  { %v23281_v12 = vpop.eup %23280  ;;  %v27164_v45 = vpop.permute.xlu1 %13057 }
0x13cf   :  { %12915 = vperm.xlu1 %22706, %v23277_v57   ;;  %v23283_v48 = vpop.eup %23282  ;;  %v27179_v5 = vpop.permute.xlu0 %13042 }
0x13d0   :  { %12910 = vperm.xlu0 %22705, %v23279_v19   ;;  %v23285_v27 = vpop.eup %23284  ;;  %v16019_v19 = vld [vmem:[%s27853_s21 + $0x48] sm:$0xff] }
0x13d1   :  { %v23287_v14 = vpop.eup %23286 }
0x13d2   :  { %v23289_v0 = vpop.eup %23288  ;;  %v27177_v29 = vpop.permute.xlu1 %13159 }
0x13d3   :  { %12925 = vperm.xlu1 %22706, %v23281_v12   ;;  %v23291_v53 = vpop.eup %23290  ;;  %v27194_v25 = vpop.permute.xlu0 %13052 }
0x13d4   :  { %12920 = vperm.xlu0 %22705, %v23283_v48   ;;  %v23293_v44 = vpop.eup %23292  ;;  %v16021_v48 = vld [vmem:[%s27853_s21 + $0x58] sm:$0xff] }
0x13d5   :  { %v23295_v49 = vpop.eup %23294 }
0x13d6   :  { %v27190_v6 = vpop.permute.xlu1 %13169 }
0x13d7   :  { %12935 = vperm.xlu1 %22706, %v23285_v27   ;;  %v27208_v57 = vpop.permute.xlu0 %13154 }
0x13d8   :  { %12930 = vperm.xlu0 %22705, %v23287_v14  }
0x13da   :  { %v27206_v8 = vpop.permute.xlu1 %13067 }
0x13db   :  { %12945 = vperm.xlu1 %22706, %v23289_v0   ;;  %v27219_v12 = vpop.permute.xlu0 %13164 }
0x13dc   :  { %12940 = vperm.xlu0 %22705, %v23291_v53  }
0x13de   :  { %v13078_v3 = vpop.permute.xlu1 %13077 }
0x13df   :  { %12955 = vperm.xlu1 %22706, %v23293_v44   ;;  %v27232_v27 = vpop.permute.xlu0 %13062 }
0x13e0   :  { %12950 = vperm.xlu0 %22705, %v23295_v49  }
0x13e2   :  { %v27230_v61 = vpop.permute.xlu1 %13179 }
0x13e3   :  { %13087 = vperm.xlu1 %22706, %v13017_v40   ;;  %v13073_v0 = vpop.permute.xlu0 %13072 }
0x13e4   :  { %13082 = vperm.xlu0 %22705, %v13016_v10  }
0x13e6   :  { %v13190_v14 = vpop.permute.xlu1 %13189 }
0x13e7   :  { %13097 = vperm.xlu1 %22706, %v13019_v50   ;;  %v27234_v36 = vpop.permute.xlu0 %13174 }
0x13e8   :  { %13092 = vperm.xlu0 %22705, %v13018_v23   ;;  %27955 = vst [vmem:[#allocation20_spill] sm:$0xff] %v27234_v36 }
0x13eb   :  { %13199 = vperm.xlu1 %22706, %v13129_v54   ;;  %v13185_v44 = vpop.permute.xlu0 %13184 }
0x13ec   :  { %13194 = vperm.xlu0 %22705, %v13128_v32  }
0x13ef   :  { %13209 = vperm.xlu1 %22706, %v13131_v38  }
0x13f0   :  { %13204 = vperm.xlu0 %22705, %v13130_v34  }
0x13f3   :  { %16029 = vperm.xlu1 %22706, %v16011_v60  }
0x13f4   :  { %16024 = vperm.xlu0 %22705, %v16010_v33  }
0x13f7   :  { %16039 = vperm.xlu1 %22706, %v16013_v13  }
0x13f8   :  { %16034 = vperm.xlu0 %22705, %v16012_v63  }
0x13fb   :  { %16049 = vperm.xlu1 %22706, %v16015_v20  }
0x13fc   :  { %16044 = vperm.xlu0 %22705, %v16014_v15  }
0x13ff   :  { %16059 = vperm.xlu1 %22706, %v16017_v31  }
0x1400   :  { %16054 = vperm.xlu0 %22705, %v16016_v56  }
0x1403   :  { %16069 = vperm.xlu1 %22706, %v16019_v19  }
0x1404   :  { %16064 = vperm.xlu0 %22705, %v16018_v43  }
0x1407   :  { %16079 = vperm.xlu1 %22706, %v16021_v48  }
0x1408   :  { %16074 = vperm.xlu0 %22705, %v16020_v41  }
0x1410   :  { %v12788_v40 = vpop.permute.xlu0 %12787 }
0x1411   :  { %v12783_v51 = vpop.permute.xlu1 %12782 }
0x1415   :  { %v12798_v53 = vpop.permute.xlu1 %12797 }
0x1419   :  { %v12793_v49 = vpop.permute.xlu1 %12792  ;;  %v12803_v50 = vpop.permute.xlu0 %12802 }
0x141d   :  { %v12808_v10 = vpop.permute.xlu1 %12807  ;;  %v27238_v54 = vpop.permute.xlu0 %12812 }
0x1421   :  { %v27236_v23 = vpop.permute.xlu1 %12817  ;;  %v27242_v38 = vpop.permute.xlu0 %12822 }
0x1425   :  { %v27240_v32 = vpop.permute.xlu1 %12827  ;;  %v12833_v60 = vpop.permute.xlu0 %12832 }
0x1426   :  { %v12870_v56 = vsub.f32 %v26873_v30, %v12833_v60 }
0x1429   :  { %v12838_v34 = vpop.permute.xlu1 %12837  ;;  %v27246_v13 = vpop.permute.xlu0 %12842 }
0x142a   :  { %27957 = vst [vmem:[#allocation28_spill] sm:$0xff] %v27246_v13  ;;  %v12871_v15 = vsub.f32 %v26881_v4, %v12838_v34  ;;  %v12861_v4 = vsub.f32 %v26845_v7, %v12788_v40  ;;  %v12865_v40 = vsub.f32 %v26859_v2, %v12808_v10 }
0x142d   :  { %v27244_v33 = vpop.permute.xlu1 %12847  ;;  %v27250_v20 = vpop.permute.xlu0 %12852 }
0x142e   :  { %27956 = vst [vmem:[#allocation19_spill] sm:$0xff] %v27244_v33  ;;  %27959 = vst [vmem:[#allocation22_spill] sm:$0xff] %v27250_v20 }
0x1431   :  { %v27248_v63 = vpop.permute.xlu1 %12857 }
0x1432   :  { %27958 = vst [vmem:[#allocation18_spill] sm:$0xff] %v27248_v63 }
0x1442   :  { %v12966_v31 = vpop.permute.xlu1 %12965 }
0x1443   :  { %v12999_v19 = vmul.f32 %v12966_v31, %v12871_v15  ;;  %v12961_v43 = vpop.permute.xlu0 %12960 }
0x1444   :  { %v12998_v41 = vmul.f32 %v12961_v43, %v12870_v56 }
0x1445   :  { %v13111_v48 = vmul.f32 %v13078_v3, %v12999_v19  ;;  %v12860_v3 = vsub.f32 %v26841_v58, %v12783_v51 }
0x1446   :  { %v27254_v9 = vpop.permute.xlu1 %12975  ;;  %v13110_v28 = vmul.f32 %v13073_v0, %v12998_v41 }
0x1447   :  { %v13223_v59 = vadd.f32 %v13190_v14, %v13111_v48  ;;  %v27256_v36 = vpop.permute.xlu0 %12970  ;;  %v12863_v14 = vsub.f32 %v26851_v22, %v12798_v53 }
0x1448   :  { %v13222_v47 = vadd.f32 %v13185_v44, %v13110_v28  ;;  %v12862_v44 = vsub.f32 %v26843_v62, %v12793_v49 }
0x1449   :  { %v13239_v13 = vmax.f32 %v13223_v59, 0.0 }
0x144a   :  { %v27258_v63 = vpop.permute.xlu1 %12985  ;;  %v13238_v20 = vmax.f32 %v13222_v47, 0.0 }
0x144b   :  { %v27260_v33 = vpop.permute.xlu0 %12980 }
0x144c   :  { %v27263_v30 = vpack.c.bf16 %v13239_v13, %v13238_v20 }
0x144e   :  { %v12916_v34 = vpop.permute.xlu1 %12915 }
0x144f   :  { %v12989_v60 = vmul.f32 %v12916_v34, %v12861_v4  ;;  %v12911_v15 = vpop.permute.xlu0 %12910 }
0x1450   :  { %v12988_v59 = vmul.f32 %v12911_v15, %v12860_v3 }
0x1451   :  { %v13101_v0 = vmul.f32 %v27133_v46, %v12989_v60 }
0x1452   :  { %v12926_v28 = vpop.permute.xlu1 %12925  ;;  %v13100_v31 = vmul.f32 %v27139_v18, %v12988_v59  ;;  %v12867_v18 = vsub.f32 %v26865_v16, %v27236_v23 }
0x1453   :  { %v13213_v47 = vadd.f32 %v27137_v1, %v13101_v0  ;;  %v12991_v7 = vmul.f32 %v12926_v28, %v12863_v14  ;;  %v12921_v13 = vpop.permute.xlu0 %12920  ;;  %v12864_v1 = vsub.f32 %v26855_v21, %v12803_v50  ;;  %v27961_v28 = vld [vmem:[#allocation27_spill] sm:$0xff] }
0x1454   :  { %v13212_v58 = vadd.f32 %v27153_v17, %v13100_v31  ;;  %v12990_v22 = vmul.f32 %v12921_v13, %v12862_v44  ;;  %v27962_v31 = vld [vmem:[#allocation20_spill] sm:$0xff]  ;;  %v27964_v13 = vld [vmem:[#allocation26_spill] sm:$0xff] }
0x1455   :  { %v13229_v20 = vmax.f32 %v13213_v47, 0.0  ;;  %v13103_v51 = vmul.f32 %v27135_v42, %v12991_v7 }
0x1456   :  { %v12936_v53 = vpop.permute.xlu1 %12935  ;;  %v13228_v46 = vmax.f32 %v13212_v58, 0.0  ;;  %v13102_v62 = vmul.f32 %v27143_v52, %v12990_v22  ;;  %v27965_v22 = vld [vmem:[#allocation18_spill] sm:$0xff] }
0x1457   :  { %v13215_v56 = vadd.f32 %v27141_v39, %v13103_v51  ;;  %v12993_v49 = vmul.f32 %v12936_v53, %v12865_v40  ;;  %v12931_v2 = vpop.permute.xlu0 %12930  ;;  %v12866_v39 = vsub.f32 %v26857_v37, %v27238_v54  ;;  %v23101_v54 = vld [vmem:[#allocation9 + $0x38] sm:$0xff]  }
0x1458   :  { %v27279_v10 = vpack.c.bf16 %v13229_v20, %v13228_v46  ;;  %v13214_v17 = vadd.f32 %v27166_v35, %v13102_v62  ;;  %v12992_v43 = vmul.f32 %v12931_v2, %v12864_v1  ;;  %v27966_v53 = vld [vmem:[#allocation24_spill] sm:$0xff]  ;;  %v27967_v1 = vld [vmem:[#allocation22_spill] sm:$0xff] }
0x1459   :  { %v13231_v19 = vmax.f32 %v13215_v56, 0.0  ;;  %v13105_v42 = vmul.f32 %v27151_v55, %v12993_v49  ;;  %v12869_v55 = vsub.f32 %v26875_v24, %v27240_v32  ;;  %v12875_v46 = vsub.f32 %v27966_v53, %v27965_v22 }
0x145a   :  { %v12946_v48 = vpop.permute.xlu1 %12945  ;;  %v13230_v52 = vmax.f32 %v13214_v17, 0.0  ;;  %20941 = vmatprep.mubr.msk.bf16.mxu0 %vm12281_vm6, %v27279_v10  ;;  %21205 = vmatprep.mubr.msk.bf16.mxu1 %vm12281_vm6, %v27279_v10  ;;  %v13104_v16 = vmul.f32 %v27179_v5, %v12992_v43 }
0x145b   :  { %v13217_v41 = vadd.f32 %v27177_v29, %v13105_v42  ;;  %v12995_v21 = vmul.f32 %v12946_v48, %v12867_v18  ;;  %v12941_v35 = vpop.permute.xlu0 %12940  ;;  %v12868_v29 = vsub.f32 %v26871_v26, %v27242_v38  ;;  %v27968_v18 = vld [vmem:[#allocation17_spill] sm:$0xff] }
0x145c   :  { %v27293_v50 = vpack.c.bf16 %v13231_v19, %v13230_v52  ;;  %v12994_v23 = vmul.f32 %v12941_v35, %v12866_v39  ;;  %v13216_v34 = vadd.f32 %v27208_v57, %v13104_v16  ;;  %v12874_v2 = vsub.f32 %v27968_v18, %v27967_v1 }
0x145d   :  { %v13107_v37 = vmul.f32 %v27164_v45, %v12995_v21  ;;  %v13233_v4 = vmax.f32 %v13217_v41, 0.0  ;;  %v13003_v19 = vmul.f32 %v27258_v63, %v12875_v46 }
0x145e   :  { %v12956_v3 = vpop.permute.xlu1 %12955  ;;  %v13106_v5 = vmul.f32 %v27194_v25, %v12994_v23  ;;  %20942 = vmatmul.mubr.msk.bf16.vlgmr.msra.gmra.mrb[156].mxu0 %vm12281_vm6, %v27293_v50  ;;  %21206 = vmatmul.mubr.msk.bf16.vlgmr.msra.gmra.mrb[136].mxu1 %vm12281_vm6, %v27293_v50  ;;  %v13232_v24 = vmax.f32 %v13216_v34, 0.0 }
0x145f   :  { %v13219_v60 = vadd.f32 %v27190_v6, %v13107_v37  ;;  %v12997_v15 = vmul.f32 %v12956_v3, %v12869_v55  ;;  %v12951_v45 = vpop.permute.xlu0 %12950  ;;  %21334 = vmatpush3.bf16.msra.mxu1 %v27192_v11 }
0x1460   :  { %v13218_v32 = vadd.f32 %v27219_v12, %v13106_v5  ;;  %v12996_v38 = vmul.f32 %v12951_v45, %v12868_v29  ;;  %21335 = vmatprep.subr.bf16.mxu1 %v23101_v54  ;;  %v27308_v6 = vpack.c.bf16 %v13233_v4, %v13232_v24  ;;  %v27960_v12 = vld [vmem:[#allocation19_spill] sm:$0xff]  ;;  %v27969_v29 = vmov 0.0   ;;  %v23102_v4 = vld [vmem:[#allocation7 + $0xc0] sm:$0xff]  }
0x1461   :  { %v13235_v26 = vmax.f32 %v13219_v60, 0.0  ;;  %v13109_v57 = vmul.f32 %v27206_v8, %v12997_v15  ;;  %v12873_v8 = vsub.f32 %v27961_v28, %v27960_v12 }
0x1462   :  { %v13088_v25 = vpop.permute.xlu1 %13087  ;;  %v13234_v14 = vmax.f32 %v13218_v32, 0.0  ;;  %v13108_v59 = vmul.f32 %v27232_v27, %v12996_v38  ;;  %20945 = vmatprep.mubr.msk.bf16.mxu0 %vm12281_vm6, %v27308_v6  ;;  %21209 = vmatprep.mubr.msk.bf16.mxu1 %vm12281_vm6, %v27308_v6 }
0x1463   :  { %v13221_v0 = vadd.f32 %v27230_v61, %v13109_v57  ;;  %v13083_v11 = vpop.permute.xlu0 %13082  ;;  %21336 = vmatpush3.bf16.msra.mxu1 %v23101_v54  ;;  %v27963_v61 = vld [vmem:[#allocation28_spill] sm:$0xff]  ;;  %v13001_v20 = vmul.f32 %v27254_v9, %v12873_v8 }
0x1464   :  { %v27318_v44 = vpack.c.bf16 %v13235_v26, %v13234_v14  ;;  %v13220_v7 = vadd.f32 %v27962_v31, %v13108_v59  ;;  %v12872_v27 = vsub.f32 %v27964_v13, %v27963_v61 }
0x1465   :  { %v13237_v47 = vmax.f32 %v13221_v0, 0.0  ;;  %v13113_v49 = vmul.f32 %v13088_v25, %v13001_v20 }
0x1466   :  { %v13098_v40 = vpop.permute.xlu1 %13097  ;;  %v13236_v58 = vmax.f32 %v13220_v7, 0.0  ;;  %20946 = vmatmul.mubr.msk.bf16.gmra.mrb[160].mxu0 %vm12281_vm6, %v27318_v44  ;;  %21210 = vmatmul.mubr.msk.bf16.gmra.mrb[140].mxu1 %vm12281_vm6, %v27318_v44  ;;  %v13000_v56 = vmul.f32 %v27256_v36, %v12872_v27  ;;  %v13002_v36 = vmul.f32 %v27260_v33, %v12874_v2 }
0x1467   :  { %v13093_v51 = vpop.permute.xlu0 %13092  ;;  %v13115_v48 = vmul.f32 %v13098_v40, %v13003_v19 }
0x1468   :  { %v27331_v62 = vpack.c.bf16 %v13237_v47, %v13236_v58  ;;  %v13112_v17 = vmul.f32 %v13083_v11, %v13000_v56  ;;  %v13114_v21 = vmul.f32 %v13093_v51, %v13002_v36 }
0x146a   :  { %v13200_v9 = vpop.permute.xlu1 %13199  ;;  %20949 = vmatprep.mubr.msk.bf16.mxu0 %vm12281_vm6, %v27331_v62  ;;  %21213 = vmatprep.mubr.msk.bf16.mxu1 %vm12281_vm6, %v27331_v62 }
0x146b   :  { %v13225_v42 = vadd.f32 %v13200_v9, %v13113_v49  ;;  %v13195_v43 = vpop.permute.xlu0 %13194 }
0x146c   :  { %v13224_v52 = vadd.f32 %v13195_v43, %v13112_v17 }
0x146d   :  { %v13241_v39 = vmax.f32 %v13225_v42, 0.0 }
0x146e   :  { %v13210_v41 = vpop.permute.xlu1 %13209  ;;  %v13240_v16 = vmax.f32 %v13224_v52, 0.0  ;;  %20950 = vmatmul.mubr.msk.bf16.gmra.mrb[164].mxu0 %vm12281_vm6, %v27263_v30  ;;  %21214 = vmatmul.mubr.msk.bf16.gmra.mrb[144].mxu1 %vm12281_vm6, %v27263_v30 }
0x146f   :  { %v13227_v35 = vadd.f32 %v13210_v41, %v13115_v48  ;;  %v13205_v63 = vpop.permute.xlu0 %13204 }
0x1470   :  { %v27345_v55 = vpack.c.bf16 %v13241_v39, %v13240_v16  ;;  %v13226_v23 = vadd.f32 %v13205_v63, %v13114_v21 }
0x1471   :  { %v13243_v37 = vmax.f32 %v13227_v35, 0.0 }
0x1472   :  { %v13242_v54 = vmax.f32 %v13226_v23, 0.0  ;;  %20953 = vmatprep.mubr.msk.bf16.mxu0 %vm12281_vm6, %v27345_v55  ;;  %21217 = vmatprep.mubr.msk.bf16.mxu1 %vm12281_vm6, %v27345_v55 }
0x1474   :  { %v27351_v33 = vpack.c.bf16 %v13243_v37, %v13242_v54  ;;  %v23103_v37 = vld [vmem:[#allocation7 + $0xc8] sm:$0xff]  }
0x1476   :  { %20954 = vmatmul.mubr.msk.bf16.gmra.mrb[168].mxu0 %vm12281_vm6, %v27351_v33  ;;  %21218 = vmatmul.mubr.msk.bf16.gmra.mrb[148].mxu1 %vm12281_vm6, %v27351_v33 }
0x1477   :  { %21337 = vmatprep.mubr.msk.bf16.mxu1 %vm12281_vm6, %v27279_v10  ;;  %20973 = vmatprep.mubr.bf16.mxu0 %v23102_v4  ;;  %v23104_v4 = vld [vmem:[#allocation7 + $0xd0] sm:$0xff]  }
0x147e   :  { %21338 = vmatmul.mubr.msk.bf16.vlgmr.msra.gmra.mrb[152].mxu1 %vm12281_vm6, %v27293_v50 }
0x147f   :  { %21341 = vmatprep.mubr.msk.bf16.mxu1 %vm12281_vm6, %v27308_v6 }
0x1486   :  { %21342 = vmatmul.mubr.msk.bf16.gmra.mrb[156].mxu1 %vm12281_vm6, %v27318_v44 }
0x1487   :  { %21345 = vmatprep.mubr.msk.bf16.mxu1 %vm12281_vm6, %v27331_v62 }
0x148e   :  { %21346 = vmatmul.mubr.msk.bf16.gmra.mrb[160].mxu1 %vm12281_vm6, %v27263_v30 }
0x148f   :  { %21349 = vmatprep.mubr.msk.bf16.mxu1 %vm12281_vm6, %v27345_v55 }
0x1496   :  { %21350 = vmatmul.mubr.msk.bf16.gmra.mrb[164].mxu1 %vm12281_vm6, %v27351_v33 }
0x1497   :  { %21489 = vmatprep.mubr.msk.f32.mxu1 %vm23478_vm0, %v27969_v29 }
0x1531   :  { %v20943_v34 = vpop.f32.mrb[156].mxu0  ;;  %v21207_v3 = vpop.f32.mrb[136].mxu1 }
0x1532   :  { %v13326_v60 = vpop.f32.mrb[157].mxu0  ;;  %v14681_v5 = vpop.f32.mrb[137].mxu1 }
0x1533   :  { %v20944_v15 = vpop.f32.mrb[158].mxu0  ;;  %v21208_v24 = vpop.f32.mrb[138].mxu1 }
0x1534   :  { %v27375_v45 = vpack.c.bf16 %v20944_v15, %v20943_v34  ;;  %v27377_v26 = vpack.c.bf16 %v21208_v24, %v21207_v3  ;;  %v13329_v32 = vpop.f32.mrb[159].mxu0  ;;  %v14684_v57 = vpop.f32.mrb[139].mxu1  ;;  %v23105_v15 = vld [vmem:[#allocation7 + $0xd8] sm:$0xff]  }
0x1535   :  { %v27379_v38 = vpack.c.bf16 %v13329_v32, %v13326_v60  ;;  %v27381_v25 = vpack.c.bf16 %v14684_v57, %v14681_v5  ;;  %v23106_v57 = vld [vmem:[#allocation7 + $0xe0] sm:$0xff]  }
0x1537   :  { %20957 = vmatprep.subr.bf16.mxu0 %v27379_v38 }
0x1538   :  { %20958 = vmatpush3.bf16.msra.mxu0 %v27379_v38 }
0x1539   :  { %v20947_v14 = vpop.f32.mrb[160].mxu0  ;;  %20959 = vmatprep.subr.bf16.mxu0 %v27375_v45  ;;  %v21211_v0 = vpop.f32.mrb[140].mxu1 }
0x153a   :  { %v13342_v59 = vpop.f32.mrb[161].mxu0  ;;  %v14697_v11 = vpop.f32.mrb[141].mxu1 }
0x153b   :  { %v20948_v12 = vpop.f32.mrb[162].mxu0  ;;  %v21212_v28 = vpop.f32.mrb[142].mxu1 }
0x153c   :  { %v27386_v8 = vpack.c.bf16 %v20948_v12, %v20947_v14  ;;  %v27388_v47 = vpack.c.bf16 %v21212_v28, %v21211_v0  ;;  %v13345_v31 = vpop.f32.mrb[163].mxu0  ;;  %20960 = vmatpush3.bf16.msra.mxu0 %v27375_v45  ;;  %v14700_v7 = vpop.f32.mrb[143].mxu1  ;;  %v23107_v12 = vld [vmem:[#allocation7 + $0xe8] sm:$0xff]  }
0x153d   :  { %v27391_v40 = vpack.c.bf16 %v13345_v31, %v13342_v59  ;;  %v27393_v61 = vpack.c.bf16 %v14700_v7, %v14697_v11  ;;  %v23108_v7 = vld [vmem:[#allocation7] sm:$0xff]  }
0x153f   :  { %20961 = vmatprep.subr.bf16.mxu0 %v27391_v40 }
0x1540   :  { %20962 = vmatpush3.bf16.msra.mxu0 %v27391_v40 }
0x1541   :  { %v20951_v13 = vpop.f32.mrb[164].mxu0  ;;  %20963 = vmatprep.subr.bf16.mxu0 %v27386_v8  ;;  %v21215_v27 = vpop.f32.mrb[144].mxu1 }
0x1542   :  { %v13358_v20 = vpop.f32.mrb[165].mxu0  ;;  %v14713_v58 = vpop.f32.mrb[145].mxu1 }
0x1543   :  { %v20952_v51 = vpop.f32.mrb[166].mxu0  ;;  %v21216_v22 = vpop.f32.mrb[146].mxu1 }
0x1544   :  { %v27398_v53 = vpack.c.bf16 %v20952_v51, %v20951_v13  ;;  %v27400_v46 = vpack.c.bf16 %v21216_v22, %v21215_v27  ;;  %v13361_v56 = vpop.f32.mrb[167].mxu0  ;;  %20964 = vmatpush3.bf16.msra.mxu0 %v27386_v8  ;;  %v14716_v49 = vpop.f32.mrb[147].mxu1 }
0x1545   :  { %v27403_v1 = vpack.c.bf16 %v13361_v56, %v13358_v20  ;;  %v27405_v18 = vpack.c.bf16 %v14716_v49, %v14713_v58  ;;  %v23109_v49 = vld [vmem:[#allocation7 + $0x8] sm:$0xff]  }
0x1547   :  { %20965 = vmatprep.subr.bf16.mxu0 %v27403_v1 }
0x1548   :  { %20966 = vmatpush3.bf16.msra.mxu0 %v27403_v1 }
0x1549   :  { %v20955_v2 = vpop.f32.mrb[168].mxu0  ;;  %20967 = vmatprep.subr.bf16.mxu0 %v27398_v53  ;;  %v21219_v9 = vpop.f32.mrb[148].mxu1 }
0x154a   :  { %v13374_v19 = vpop.f32.mrb[169].mxu0  ;;  %v14729_v17 = vpop.f32.mrb[149].mxu1 }
0x154b   :  { %v20956_v42 = vpop.f32.mrb[170].mxu0  ;;  %v21220_v43 = vpop.f32.mrb[150].mxu1 }
0x154c   :  { %v27410_v36 = vpack.c.bf16 %v20956_v42, %v20955_v2  ;;  %v27412_v48 = vpack.c.bf16 %v21220_v43, %v21219_v9  ;;  %v13377_v39 = vpop.f32.mrb[171].mxu0  ;;  %20968 = vmatpush3.bf16.msra.mxu0 %v27398_v53  ;;  %v14732_v52 = vpop.f32.mrb[151].mxu1  ;;  %v23110_v2 = vld [vmem:[#allocation7 + $0x10] sm:$0xff]   ;;  %v23111_v9 = vld [vmem:[#allocation7 + $0x18] sm:$0xff]   ;;  %v23114_v42 = vld [vmem:[#allocation7 + $0x180] sm:$0xff]  }
0x154d   :  { %v27415_v41 = vpack.c.bf16 %v13377_v39, %v13374_v19  ;;  %v27417_v21 = vpack.c.bf16 %v14732_v52, %v14729_v17  ;;  %v23112_v19 = vld [vmem:[#allocation7 + $0x20] sm:$0xff]   ;;  %v23113_v17 = vld [vmem:[#allocation7 + $0x28] sm:$0xff]   ;;  %v23116_v39 = vld [vmem:[#allocation7 + $0x190] sm:$0xff]  }
0x154e   :  { %v23115_v43 = vld [vmem:[#allocation7 + $0x188] sm:$0xff]   ;;  %v23117_v52 = vld [vmem:[#allocation7 + $0x198] sm:$0xff]  }
0x154f   :  { %20969 = vmatprep.subr.bf16.mxu0 %v27415_v41 }
0x1550   :  { %20970 = vmatpush3.bf16.msra.mxu0 %v27415_v41 }
0x1551   :  { %20971 = vmatprep.subr.bf16.mxu0 %v27410_v36  ;;  %v21339_v16 = vpop.f32.mrb[152].mxu1 }
0x1552   :  { %v15371_v35 = vpop.f32.mrb[153].mxu1 }
0x1553   :  { %v21340_v63 = vpop.f32.mrb[154].mxu1 }
0x1554   :  { %v27422_v23 = vpack.c.bf16 %v21340_v63, %v21339_v16  ;;  %20972 = vmatpush3.bf16.msra.mxu0 %v27410_v36  ;;  %v15374_v54 = vpop.f32.mrb[155].mxu1  ;;  %v23118_v16 = vld [vmem:[#allocation7 + $0x1a0] sm:$0xff]  }
0x1555   :  { %v27425_v34 = vpack.c.bf16 %v15374_v54, %v15371_v35  ;;  %20985 = vmatprep.subr.bf16.mxu0 %v27379_v38  ;;  %v23119_v35 = vld [vmem:[#allocation7 + $0x1a8] sm:$0xff]   ;;  %v23120_v63 = vld [vmem:[#allocation7 + $0x240] sm:$0xff]  }
0x1557   :  { %20974 = vmatmul.mubr.bf16.vlgmr.msra.gmra.mrb[172].mxu0 %v23103_v37  ;;  %v23125_v37 = vld [vmem:[#allocation7 + $0x260] sm:$0xff]  }
0x1558   :  { %20986 = vmatpush3.bf16.msra.mxu0 %v27379_v38  ;;  %20977 = vmatprep.mubr.bf16.mxu0 %v23104_v4 }
0x1559   :  { %20987 = vmatprep.subr.bf16.mxu0 %v27375_v45  ;;  %v21343_v3 = vpop.f32.mrb[156].mxu1 }
0x155a   :  { %v15387_v60 = vpop.f32.mrb[157].mxu1 }
0x155b   :  { %v21344_v5 = vpop.f32.mrb[158].mxu1 }
0x155c   :  { %v27430_v24 = vpack.c.bf16 %v21344_v5, %v21343_v3  ;;  %20988 = vmatpush3.bf16.msra.mxu0 %v27375_v45  ;;  %v15390_v32 = vpop.f32.mrb[159].mxu1 }
0x155d   :  { %v27433_v14 = vpack.c.bf16 %v15390_v32, %v15387_v60  ;;  %20989 = vmatprep.subr.bf16.mxu0 %v27391_v40 }
0x155f   :  { %20978 = vmatmul.mubr.bf16.gmra.mrb[176].mxu0 %v23105_v15 }
0x1560   :  { %20990 = vmatpush3.bf16.msra.mxu0 %v27391_v40  ;;  %20981 = vmatprep.mubr.bf16.mxu0 %v23106_v57 }
0x1561   :  { %20991 = vmatprep.subr.bf16.mxu0 %v27386_v8  ;;  %v21347_v0 = vpop.f32.mrb[160].mxu1 }
0x1562   :  { %v15403_v59 = vpop.f32.mrb[161].mxu1 }
0x1563   :  { %v21348_v11 = vpop.f32.mrb[162].mxu1 }
0x1564   :  { %v27438_v28 = vpack.c.bf16 %v21348_v11, %v21347_v0  ;;  %20992 = vmatpush3.bf16.msra.mxu0 %v27386_v8  ;;  %v15406_v31 = vpop.f32.mrb[163].mxu1 }
0x1565   :  { %v27441_v13 = vpack.c.bf16 %v15406_v31, %v15403_v59  ;;  %20993 = vmatprep.subr.bf16.mxu0 %v27403_v1 }
0x1567   :  { %20982 = vmatmul.mubr.bf16.gmra.mrb[180].mxu0 %v23107_v12 }
0x1568   :  { %20994 = vmatpush3.bf16.msra.mxu0 %v27403_v1  ;;  %21001 = vmatprep.mubr.bf16.mxu0 %v23108_v7 }
0x1569   :  { %20995 = vmatprep.subr.bf16.mxu0 %v27398_v53  ;;  %v21351_v27 = vpop.f32.mrb[164].mxu1 }
0x156a   :  { %v15419_v20 = vpop.f32.mrb[165].mxu1 }
0x156b   :  { %v21352_v58 = vpop.f32.mrb[166].mxu1 }
0x156c   :  { %v27446_v51 = vpack.c.bf16 %v21352_v58, %v21351_v27  ;;  %20996 = vmatpush3.bf16.msra.mxu0 %v27398_v53  ;;  %v15422_v22 = vpop.f32.mrb[167].mxu1  ;;  %v23130_v58 = vld [vmem:[#allocation7 + $0x40] sm:$0xff]  }
0x156d   :  { %v27449_v56 = vpack.c.bf16 %v15422_v22, %v15419_v20  ;;  %20997 = vmatprep.subr.bf16.mxu0 %v27415_v41  ;;  %v23129_v20 = vld [vmem:[#allocation7 + $0x38] sm:$0xff]   ;;  %v23131_v22 = vld [vmem:[#allocation7 + $0x48] sm:$0xff]  }
0x1570   :  { %20998 = vmatpush3.bf16.msra.mxu0 %v27415_v41 }
0x1571   :  { %20999 = vmatprep.subr.bf16.mxu0 %v27410_v36 }
0x1574   :  { %21000 = vmatpush3.bf16.msra.mxu0 %v27410_v36 }
0x1575   :  { %21013 = vmatprep.subr.bf16.mxu0 %v27379_v38 }
0x1577   :  { %21002 = vmatmul.mubr.bf16.vlgmr.msra.gmra.mrb[172].mxu0 %v23109_v49  ;;  %v23132_v49 = vld [vmem:[#allocation7 + $0x50] sm:$0xff]  }
0x1578   :  { %21014 = vmatpush3.bf16.msra.mxu0 %v27379_v38  ;;  %21005 = vmatprep.mubr.bf16.mxu0 %v23110_v2  ;;  %v23133_v2 = vld [vmem:[#allocation7 + $0x58] sm:$0xff]  }
0x1579   :  { %21015 = vmatprep.subr.bf16.mxu0 %v27375_v45 }
0x157c   :  { %21016 = vmatpush3.bf16.msra.mxu0 %v27375_v45 }
0x157d   :  { %21017 = vmatprep.subr.bf16.mxu0 %v27391_v40 }
0x157f   :  { %21006 = vmatmul.mubr.bf16.gmra.mrb[176].mxu0 %v23111_v9  ;;  %v23134_v9 = vld [vmem:[#allocation7 + $0xf0] sm:$0xff]  }
0x1580   :  { %21018 = vmatpush3.bf16.msra.mxu0 %v27391_v40  ;;  %21009 = vmatprep.mubr.bf16.mxu0 %v23112_v19  ;;  %v23135_v19 = vld [vmem:[#allocation7 + $0xf8] sm:$0xff]  }
0x1581   :  { %21019 = vmatprep.subr.bf16.mxu0 %v27386_v8 }
0x1584   :  { %21020 = vmatpush3.bf16.msra.mxu0 %v27386_v8 }
0x1585   :  { %21021 = vmatprep.subr.bf16.mxu0 %v27403_v1 }
0x1587   :  { %21010 = vmatmul.mubr.bf16.gmra.mrb[180].mxu0 %v23113_v17  ;;  %v23136_v17 = vld [vmem:[#allocation7 + $0x100] sm:$0xff]  }
0x1588   :  { %21022 = vmatpush3.bf16.msra.mxu0 %v27403_v1  ;;  %21029 = vmatprep.mubr.bf16.mxu0 %v23114_v42  ;;  %v23137_v42 = vld [vmem:[#allocation7 + $0x108] sm:$0xff]  }
0x1589   :  { %21023 = vmatprep.subr.bf16.mxu0 %v27398_v53 }
0x158c   :  { %21024 = vmatpush3.bf16.msra.mxu0 %v27398_v53 }
0x158d   :  { %21025 = vmatprep.subr.bf16.mxu0 %v27415_v41 }
0x1590   :  { %21026 = vmatpush3.bf16.msra.mxu0 %v27415_v41 }
0x1591   :  { %21027 = vmatprep.subr.bf16.mxu0 %v27410_v36 }
0x1594   :  { %21028 = vmatpush3.bf16.msra.mxu0 %v27410_v36 }
0x1595   :  { %21041 = vmatprep.subr.bf16.mxu0 %v27379_v38 }
0x1597   :  { %21030 = vmatmul.mubr.bf16.vlgmr.msra.gmra.mrb[172].mxu0 %v23115_v43  ;;  %v23138_v43 = vld [vmem:[#allocation7 + $0x110] sm:$0xff]  }
0x1598   :  { %21042 = vmatpush3.bf16.msra.mxu0 %v27379_v38  ;;  %21033 = vmatprep.mubr.bf16.mxu0 %v23116_v39  ;;  %v23121_v38 = vld [vmem:[#allocation7 + $0x248] sm:$0xff]   ;;  %v23139_v39 = vld [vmem:[#allocation7 + $0x118] sm:$0xff]  }
0x1599   :  { %21043 = vmatprep.subr.bf16.mxu0 %v27375_v45 }
0x159c   :  { %21044 = vmatpush3.bf16.msra.mxu0 %v27375_v45  ;;  %v23124_v45 = vld [vmem:[#allocation9 + $0x10] sm:$0xff]  }
0x159d   :  { %21045 = vmatprep.subr.bf16.mxu0 %v27391_v40 }
0x159f   :  { %21034 = vmatmul.mubr.bf16.gmra.mrb[176].mxu0 %v23117_v52  ;;  %v23140_v52 = vld [vmem:[#allocation7 + $0x1b0] sm:$0xff]  }
0x15a0   :  { %21046 = vmatpush3.bf16.msra.mxu0 %v27391_v40  ;;  %21037 = vmatprep.mubr.bf16.mxu0 %v23118_v16  ;;  %v23127_v40 = vld [vmem:[#allocation9 + $0x18] sm:$0xff]  }
0x15a1   :  { %21047 = vmatprep.subr.bf16.mxu0 %v27386_v8  ;;  %v23141_v16 = vld [vmem:[#allocation7 + $0x1b8] sm:$0xff]  }
0x15a4   :  { %21048 = vmatpush3.bf16.msra.mxu0 %v27386_v8  ;;  %v23122_v8 = vld [vmem:[#allocation7 + $0x250] sm:$0xff]  }
0x15a5   :  { %21049 = vmatprep.subr.bf16.mxu0 %v27403_v1 }
0x15a7   :  { %21038 = vmatmul.mubr.bf16.gmra.mrb[180].mxu0 %v23119_v35  ;;  %v23142_v35 = vld [vmem:[#allocation7 + $0x1c0] sm:$0xff]  }
0x15a8   :  { %21050 = vmatpush3.bf16.msra.mxu0 %v27403_v1  ;;  %21057 = vmatprep.mubr.bf16.mxu0 %v23120_v63  ;;  %v23123_v1 = vld [vmem:[#allocation7 + $0x258] sm:$0xff]   ;;  %v23143_v63 = vld [vmem:[#allocation7 + $0x1c8] sm:$0xff]  }
0x15a9   :  { %21051 = vmatprep.subr.bf16.mxu0 %v27398_v53 }
0x15ac   :  { %21052 = vmatpush3.bf16.msra.mxu0 %v27398_v53  ;;  %v23126_v53 = vld [vmem:[#allocation7 + $0x268] sm:$0xff]  }
0x15ad   :  { %21053 = vmatprep.subr.bf16.mxu0 %v27415_v41 }
0x15b0   :  { %21054 = vmatpush3.bf16.msra.mxu0 %v27415_v41 }
0x15b1   :  { %21055 = vmatprep.subr.bf16.mxu0 %v27410_v36 }
0x15b4   :  { %21056 = vmatpush3.bf16.msra.mxu0 %v27410_v36 }
0x15b5   :  { %21069 = vmatprep.subr.bf16.mxu0 %v23124_v45 }
0x15b7   :  { %21058 = vmatmul.mubr.bf16.vlgmr.msra.gmra.mrb[172].mxu0 %v23121_v38  ;;  %v23145_v38 = vld [vmem:[#allocation7 + $0x1d8] sm:$0xff]  }
0x15b8   :  { %21061 = vmatprep.mubr.bf16.mxu0 %v23122_v8  ;;  %21070 = vmatpush3.bf16.msra.mxu0 %v23124_v45  ;;  %v23144_v45 = vld [vmem:[#allocation7 + $0x1d0] sm:$0xff]  }
0x15b9   :  { %21071 = vmatprep.subr.bf16.mxu0 %v23127_v40  ;;  %v23146_v8 = vld [vmem:[#allocation7 + $0x270] sm:$0xff]  }
0x15bc   :  { %21072 = vmatpush3.bf16.msra.mxu0 %v23127_v40  ;;  %v23147_v40 = vld [vmem:[#allocation7 + $0x278] sm:$0xff]  }
0x15bf   :  { %21062 = vmatmul.mubr.bf16.gmra.mrb[176].mxu0 %v23123_v1  ;;  %v23148_v1 = vld [vmem:[#allocation7 + $0x280] sm:$0xff]  }
0x15c0   :  { %21065 = vmatprep.mubr.bf16.mxu0 %v23125_v37  ;;  %v23149_v37 = vld [vmem:[#allocation7 + $0x288] sm:$0xff]  }
0x15c7   :  { %21066 = vmatmul.mubr.bf16.gmra.mrb[180].mxu0 %v23126_v53  ;;  %v23150_v53 = vld [vmem:[#allocation7 + $0x290] sm:$0xff]  }
0x15c8   :  { %21073 = vmatprep.mubr.msk.bf16.mxu0 %vm12281_vm6, %v27279_v10  ;;  %v23128_v10 = vld [vmem:[#allocation7 + $0x30] sm:$0xff]  }
0x15cf   :  { %21074 = vmatmul.mubr.msk.bf16.vlgmr.msra.gmra.mrb[184].mxu0 %vm12281_vm6, %v27293_v50 }
0x15d0   :  { %21077 = vmatprep.mubr.msk.bf16.mxu0 %vm12281_vm6, %v27308_v6 }
0x15d7   :  { %21078 = vmatmul.mubr.msk.bf16.gmra.mrb[188].mxu0 %vm12281_vm6, %v27318_v44 }
0x15d8   :  { %21081 = vmatprep.mubr.msk.bf16.mxu0 %vm12281_vm6, %v27331_v62 }
0x15df   :  { %21082 = vmatmul.mubr.msk.bf16.gmra.mrb[192].mxu0 %vm12281_vm6, %v27263_v30 }
0x15e0   :  { %21085 = vmatprep.mubr.msk.bf16.mxu0 %vm12281_vm6, %v27345_v55 }
0x15e7   :  { %21086 = vmatmul.mubr.msk.bf16.gmra.mrb[196].mxu0 %vm12281_vm6, %v27351_v33 }
0x15e8   :  { %21105 = vmatprep.mubr.bf16.mxu0 %v23128_v10  ;;  %v23151_v10 = vld [vmem:[#allocation7 + $0x298] sm:$0xff]  }
0x16a2   :  { %v21075_v50 = vpop.f32.mrb[184].mxu0 }
0x16a3   :  { %v13991_v36 = vpop.f32.mrb[185].mxu0 }
0x16a4   :  { %v21076_v6 = vpop.f32.mrb[186].mxu0 }
0x16a5   :  { %v27503_v41 = vpack.c.bf16 %v21076_v6, %v21075_v50  ;;  %v13994_v44 = vpop.f32.mrb[187].mxu0  ;;  %v23152_v50 = vld [vmem:[#allocation7 + $0x60] sm:$0xff]   ;;  %v23154_v6 = vld [vmem:[#allocation7 + $0x70] sm:$0xff]  }
0x16a6   :  { %v27505_v54 = vpack.c.bf16 %v13994_v44, %v13991_v36  ;;  %v23153_v36 = vld [vmem:[#allocation7 + $0x68] sm:$0xff]   ;;  %v23156_v44 = vld [vmem:[#allocation7 + $0x80] sm:$0xff]  }
0x16a8   :  { %21089 = vmatprep.subr.bf16.mxu0 %v27505_v54 }
0x16a9   :  { %21090 = vmatpush3.bf16.msra.mxu0 %v27505_v54 }
0x16aa   :  { %v21079_v30 = vpop.f32.mrb[188].mxu0  ;;  %21091 = vmatprep.subr.bf16.mxu0 %v27503_v41 }
0x16ab   :  { %v14007_v62 = vpop.f32.mrb[189].mxu0 }
0x16ac   :  { %v21080_v55 = vpop.f32.mrb[190].mxu0 }
0x16ad   :  { %v27510_v33 = vpack.c.bf16 %v21080_v55, %v21079_v30  ;;  %v14010_v4 = vpop.f32.mrb[191].mxu0  ;;  %21092 = vmatpush3.bf16.msra.mxu0 %v27503_v41  ;;  %v23158_v30 = vld [vmem:[#allocation7 + $0x120] sm:$0xff]   ;;  %v23160_v55 = vld [vmem:[#allocation7 + $0x130] sm:$0xff]  }
0x16ae   :  { %v27513_v3 = vpack.c.bf16 %v14010_v4, %v14007_v62  ;;  %v23159_v62 = vld [vmem:[#allocation7 + $0x128] sm:$0xff]   ;;  %v23162_v4 = vld [vmem:[#allocation7 + $0x140] sm:$0xff]  }
0x16b0   :  { %21093 = vmatprep.subr.bf16.mxu0 %v27513_v3 }
0x16b1   :  { %21094 = vmatpush3.bf16.msra.mxu0 %v27513_v3 }
0x16b2   :  { %v21083_v60 = vpop.f32.mrb[192].mxu0  ;;  %21095 = vmatprep.subr.bf16.mxu0 %v27510_v33 }
0x16b3   :  { %v14023_v5 = vpop.f32.mrb[193].mxu0 }
0x16b4   :  { %v21084_v15 = vpop.f32.mrb[194].mxu0 }
0x16b5   :  { %v27518_v32 = vpack.c.bf16 %v21084_v15, %v21083_v60  ;;  %v14026_v57 = vpop.f32.mrb[195].mxu0  ;;  %21096 = vmatpush3.bf16.msra.mxu0 %v27510_v33  ;;  %v23164_v60 = vld [vmem:[#allocation7 + $0x1e0] sm:$0xff]   ;;  %v23166_v15 = vld [vmem:[#allocation7 + $0x1f0] sm:$0xff]  }
0x16b6   :  { %v27521_v0 = vpack.c.bf16 %v14026_v57, %v14023_v5  ;;  %v23165_v5 = vld [vmem:[#allocation7 + $0x1e8] sm:$0xff]   ;;  %v23168_v57 = vld [vmem:[#allocation7 + $0x200] sm:$0xff]  }
0x16b8   :  { %21097 = vmatprep.subr.bf16.mxu0 %v27521_v0 }
0x16b9   :  { %21098 = vmatpush3.bf16.msra.mxu0 %v27521_v0 }
0x16ba   :  { %v21087_v59 = vpop.f32.mrb[196].mxu0  ;;  %21099 = vmatprep.subr.bf16.mxu0 %v27518_v32 }
0x16bb   :  { %v14039_v11 = vpop.f32.mrb[197].mxu0 }
0x16bc   :  { %v21088_v12 = vpop.f32.mrb[198].mxu0 }
0x16bd   :  { %v27526_v31 = vpack.c.bf16 %v21088_v12, %v21087_v59  ;;  %v14042_v7 = vpop.f32.mrb[199].mxu0  ;;  %21100 = vmatpush3.bf16.msra.mxu0 %v27518_v32  ;;  %v23170_v59 = vld [vmem:[#allocation7 + $0x2a0] sm:$0xff]   ;;  %v23180_v12 = vld [vmem:[#allocation7 + $0xb0] sm:$0xff]  }
0x16be   :  { %v27529_v27 = vpack.c.bf16 %v14042_v7, %v14039_v11  ;;  %v23179_v11 = vld [vmem:[#allocation7 + $0xa8] sm:$0xff]   ;;  %v23182_v7 = vld [vmem:[#allocation7 + $0x150] sm:$0xff]  }
0x16c0   :  { %21101 = vmatprep.subr.bf16.mxu0 %v27529_v27 }
0x16c1   :  { %21102 = vmatpush3.bf16.msra.mxu0 %v27529_v27 }
0x16c2   :  { %21103 = vmatprep.subr.bf16.mxu0 %v27526_v31 }
0x16c5   :  { %21104 = vmatpush3.bf16.msra.mxu0 %v27526_v31 }
0x16c6   :  { %21117 = vmatprep.subr.bf16.mxu0 %v27505_v54 }
0x16c8   :  { %21106 = vmatmul.mubr.bf16.vlgmr.msra.gmra.mrb[172].mxu0 %v23129_v20  ;;  %v23184_v20 = vld [vmem:[#allocation7 + $0x160] sm:$0xff]  }
0x16c9   :  { %21118 = vmatpush3.bf16.msra.mxu0 %v27505_v54  ;;  %21109 = vmatprep.mubr.bf16.mxu0 %v23130_v58  ;;  %v23185_v58 = vld [vmem:[#allocation7 + $0x168] sm:$0xff]  }
0x16ca   :  { %21119 = vmatprep.subr.bf16.mxu0 %v27503_v41 }
0x16cd   :  { %21120 = vmatpush3.bf16.msra.mxu0 %v27503_v41 }
0x16ce   :  { %21121 = vmatprep.subr.bf16.mxu0 %v27513_v3 }
0x16d0   :  { %21110 = vmatmul.mubr.bf16.gmra.mrb[176].mxu0 %v23131_v22  ;;  %v23186_v22 = vld [vmem:[#allocation7 + $0x170] sm:$0xff]  }
0x16d1   :  { %21122 = vmatpush3.bf16.msra.mxu0 %v27513_v3  ;;  %21113 = vmatprep.mubr.bf16.mxu0 %v23132_v49  ;;  %v23187_v49 = vld [vmem:[#allocation7 + $0x178] sm:$0xff]  }
0x16d2   :  { %21123 = vmatprep.subr.bf16.mxu0 %v27510_v33 }
0x16d5   :  { %21124 = vmatpush3.bf16.msra.mxu0 %v27510_v33 }
0x16d6   :  { %21125 = vmatprep.subr.bf16.mxu0 %v27521_v0 }
0x16d8   :  { %21114 = vmatmul.mubr.bf16.gmra.mrb[180].mxu0 %v23133_v2  ;;  %v23188_v2 = vld [vmem:[#allocation7 + $0x210] sm:$0xff]  }
0x16d9   :  { %21126 = vmatpush3.bf16.msra.mxu0 %v27521_v0  ;;  %21133 = vmatprep.mubr.bf16.mxu0 %v23134_v9  ;;  %v23189_v9 = vld [vmem:[#allocation7 + $0x218] sm:$0xff]  }
0x16da   :  { %21127 = vmatprep.subr.bf16.mxu0 %v27518_v32 }
0x16dd   :  { %21128 = vmatpush3.bf16.msra.mxu0 %v27518_v32 }
0x16de   :  { %21129 = vmatprep.subr.bf16.mxu0 %v27529_v27 }
0x16e1   :  { %21130 = vmatpush3.bf16.msra.mxu0 %v27529_v27 }
0x16e2   :  { %21131 = vmatprep.subr.bf16.mxu0 %v27526_v31 }
0x16e5   :  { %21132 = vmatpush3.bf16.msra.mxu0 %v27526_v31 }
0x16e6   :  { %21145 = vmatprep.subr.bf16.mxu0 %v27505_v54 }
0x16e8   :  { %21134 = vmatmul.mubr.bf16.vlgmr.msra.gmra.mrb[172].mxu0 %v23135_v19  ;;  %v23190_v19 = vld [vmem:[#allocation7 + $0x220] sm:$0xff]  }
0x16e9   :  { %21146 = vmatpush3.bf16.msra.mxu0 %v27505_v54  ;;  %21137 = vmatprep.mubr.bf16.mxu0 %v23136_v17  ;;  %v23191_v17 = vld [vmem:[#allocation7 + $0x228] sm:$0xff]  }
0x16ea   :  { %21147 = vmatprep.subr.bf16.mxu0 %v27503_v41 }
0x16ed   :  { %21148 = vmatpush3.bf16.msra.mxu0 %v27503_v41 }
0x16ee   :  { %21149 = vmatprep.subr.bf16.mxu0 %v27513_v3 }
0x16f0   :  { %21138 = vmatmul.mubr.bf16.gmra.mrb[176].mxu0 %v23137_v42  ;;  %v23192_v42 = vld [vmem:[#allocation7 + $0x230] sm:$0xff]  }
0x16f1   :  { %21150 = vmatpush3.bf16.msra.mxu0 %v27513_v3  ;;  %21141 = vmatprep.mubr.bf16.mxu0 %v23138_v43  ;;  %v23193_v43 = vld [vmem:[#allocation7 + $0x238] sm:$0xff]  }
0x16f2   :  { %21151 = vmatprep.subr.bf16.mxu0 %v27510_v33 }
0x16f5   :  { %21152 = vmatpush3.bf16.msra.mxu0 %v27510_v33 }
0x16f6   :  { %21153 = vmatprep.subr.bf16.mxu0 %v27521_v0 }
0x16f8   :  { %21142 = vmatmul.mubr.bf16.gmra.mrb[180].mxu0 %v23139_v39  ;;  %v23194_v39 = vld [vmem:[#allocation7 + $0x2d0] sm:$0xff]  }
0x16f9   :  { %21154 = vmatpush3.bf16.msra.mxu0 %v27521_v0  ;;  %21161 = vmatprep.mubr.bf16.mxu0 %v23140_v52  ;;  %v23480_v52 = vmov 0.0|0.0  }
0x16fa   :  { %21155 = vmatprep.subr.bf16.mxu0 %v27518_v32  ;;  %21739 = vmatprep.subr.bf16.mxu1 %v23480_v52 }
0x16fd   :  { %21156 = vmatpush3.bf16.msra.mxu0 %v27518_v32 }
0x16fe   :  { %21157 = vmatprep.subr.bf16.mxu0 %v27529_v27 }
0x1701   :  { %21158 = vmatpush3.bf16.msra.mxu0 %v27529_v27 }
0x1702   :  { %21159 = vmatprep.subr.bf16.mxu0 %v27526_v31 }
0x1705   :  { %21160 = vmatpush3.bf16.msra.mxu0 %v27526_v31 }
0x1706   :  { %21173 = vmatprep.subr.bf16.mxu0 %v27505_v54 }
0x1708   :  { %21162 = vmatmul.mubr.bf16.vlgmr.msra.gmra.mrb[172].mxu0 %v23141_v16  ;;  %v16025_v16 = vpop.permute.xlu0 %16024 }
0x1709   :  { %21174 = vmatpush3.bf16.msra.mxu0 %v27505_v54  ;;  %21165 = vmatprep.mubr.bf16.mxu0 %v23142_v35  ;;  %v23157_v54 = vld [vmem:[#allocation7 + $0x88] sm:$0xff]  }
0x170a   :  { %21175 = vmatprep.subr.bf16.mxu0 %v27503_v41 }
0x170c   :  { %v16035_v35 = vpop.permute.xlu0 %16034 }
0x170d   :  { %21176 = vmatpush3.bf16.msra.mxu0 %v27503_v41  ;;  %v23155_v41 = vld [vmem:[#allocation7 + $0x78] sm:$0xff]  }
0x170e   :  { %21177 = vmatprep.subr.bf16.mxu0 %v27513_v3 }
0x1710   :  { %21166 = vmatmul.mubr.bf16.gmra.mrb[176].mxu0 %v23143_v63 }
0x1711   :  { %21178 = vmatpush3.bf16.msra.mxu0 %v27513_v3  ;;  %21169 = vmatprep.mubr.bf16.mxu0 %v23144_v45  ;;  %v23163_v3 = vld [vmem:[#allocation7 + $0x148] sm:$0xff]   ;;  %v16045_v45 = vpop.permute.xlu0 %16044 }
0x1712   :  { %21179 = vmatprep.subr.bf16.mxu0 %v27510_v33 }
0x1715   :  { %21180 = vmatpush3.bf16.msra.mxu0 %v27510_v33  ;;  %v23161_v33 = vld [vmem:[#allocation7 + $0x138] sm:$0xff]  }
0x1716   :  { %21181 = vmatprep.subr.bf16.mxu0 %v27521_v0 }
0x1718   :  { %21170 = vmatmul.mubr.bf16.gmra.mrb[180].mxu0 %v23145_v38 }
0x1719   :  { %21182 = vmatpush3.bf16.msra.mxu0 %v27521_v0  ;;  %21189 = vmatprep.mubr.bf16.mxu0 %v23146_v8  ;;  %v23169_v0 = vld [vmem:[#allocation7 + $0x208] sm:$0xff]  }
0x171a   :  { %21183 = vmatprep.subr.bf16.mxu0 %v27518_v32 }
0x171d   :  { %21184 = vmatpush3.bf16.msra.mxu0 %v27518_v32  ;;  %v23167_v32 = vld [vmem:[#allocation7 + $0x1f8] sm:$0xff]  }
0x171e   :  { %21185 = vmatprep.subr.bf16.mxu0 %v27529_v27 }
0x1721   :  { %21186 = vmatpush3.bf16.msra.mxu0 %v27529_v27  ;;  %v23183_v27 = vld [vmem:[#allocation7 + $0x158] sm:$0xff]  }
0x1722   :  { %21187 = vmatprep.subr.bf16.mxu0 %v27526_v31 }
0x1725   :  { %21188 = vmatpush3.bf16.msra.mxu0 %v27526_v31  ;;  %v23181_v31 = vld [vmem:[#allocation7 + $0xb8] sm:$0xff]  }
0x1726   :  { %21221 = vmatprep.subr.bf16.mxu0 %v27381_v25 }
0x1728   :  { %21190 = vmatmul.mubr.bf16.vlgmr.msra.gmra.mrb[172].mxu0 %v23147_v40 }
0x1729   :  { %21222 = vmatpush3.bf16.msra.mxu0 %v27381_v25  ;;  %21193 = vmatprep.mubr.bf16.mxu0 %v23148_v1 }
0x172a   :  { %21223 = vmatprep.subr.bf16.mxu0 %v27377_v26 }
0x172d   :  { %21224 = vmatpush3.bf16.msra.mxu0 %v27377_v26 }
0x172e   :  { %21225 = vmatprep.subr.bf16.mxu0 %v27393_v61 }
0x1730   :  { %21194 = vmatmul.mubr.bf16.gmra.mrb[176].mxu0 %v23149_v37 }
0x1731   :  { %21226 = vmatpush3.bf16.msra.mxu0 %v27393_v61  ;;  %21197 = vmatprep.mubr.bf16.mxu0 %v23150_v53 }
0x1732   :  { %21227 = vmatprep.subr.bf16.mxu0 %v27388_v47 }
0x1735   :  { %21228 = vmatpush3.bf16.msra.mxu0 %v27388_v47 }
0x1736   :  { %21229 = vmatprep.subr.bf16.mxu0 %v27405_v18 }
0x1738   :  { %21198 = vmatmul.mubr.bf16.gmra.mrb[180].mxu0 %v23151_v10 }
0x1739   :  { %21230 = vmatpush3.bf16.msra.mxu0 %v27405_v18  ;;  %21237 = vmatprep.mubr.bf16.mxu0 %v23152_v50 }
0x173a   :  { %21231 = vmatprep.subr.bf16.mxu0 %v27400_v46 }
0x173d   :  { %21232 = vmatpush3.bf16.msra.mxu0 %v27400_v46 }
0x173e   :  { %21233 = vmatprep.subr.bf16.mxu0 %v27417_v21 }
0x1741   :  { %21234 = vmatpush3.bf16.msra.mxu0 %v27417_v21 }
0x1742   :  { %21235 = vmatprep.subr.bf16.mxu0 %v27412_v48 }
0x1745   :  { %21236 = vmatpush3.bf16.msra.mxu0 %v27412_v48 }
0x1746   :  { %21249 = vmatprep.subr.bf16.mxu0 %v27381_v25 }
0x1748   :  { %21238 = vmatmul.mubr.bf16.vlgmr.msra.gmra.mrb[172].mxu0 %v23153_v36 }
0x1749   :  { %21250 = vmatpush3.bf16.msra.mxu0 %v27381_v25  ;;  %21241 = vmatprep.mubr.bf16.mxu0 %v23154_v6  ;;  %v16055_v6 = vpop.permute.xlu0 %16054 }
0x174a   :  { %21251 = vmatprep.subr.bf16.mxu0 %v27377_v26 }
0x174d   :  { %21252 = vmatpush3.bf16.msra.mxu0 %v27377_v26 }
0x174e   :  { %21253 = vmatprep.subr.bf16.mxu0 %v27393_v61 }
0x1750   :  { %21242 = vmatmul.mubr.bf16.gmra.mrb[176].mxu0 %v23155_v41 }
0x1751   :  { %21254 = vmatpush3.bf16.msra.mxu0 %v27393_v61  ;;  %21245 = vmatprep.mubr.bf16.mxu0 %v23156_v44 }
0x1752   :  { %21255 = vmatprep.subr.bf16.mxu0 %v27388_v47 }
0x1755   :  { %21256 = vmatpush3.bf16.msra.mxu0 %v27388_v47 }
0x1756   :  { %21257 = vmatprep.subr.bf16.mxu0 %v27405_v18 }
0x1758   :  { %21246 = vmatmul.mubr.bf16.gmra.mrb[180].mxu0 %v23157_v54 }
0x1759   :  { %21258 = vmatpush3.bf16.msra.mxu0 %v27405_v18  ;;  %21265 = vmatprep.mubr.bf16.mxu0 %v23158_v30 }
0x175a   :  { %21259 = vmatprep.subr.bf16.mxu0 %v27400_v46 }
0x175d   :  { %21260 = vmatpush3.bf16.msra.mxu0 %v27400_v46 }
0x175e   :  { %21261 = vmatprep.subr.bf16.mxu0 %v27417_v21 }
0x1761   :  { %21262 = vmatpush3.bf16.msra.mxu0 %v27417_v21 }
0x1762   :  { %21263 = vmatprep.subr.bf16.mxu0 %v27412_v48 }
0x1765   :  { %21264 = vmatpush3.bf16.msra.mxu0 %v27412_v48 }
0x1766   :  { %21277 = vmatprep.subr.bf16.mxu0 %v27381_v25 }
0x1768   :  { %21266 = vmatmul.mubr.bf16.vlgmr.msra.gmra.mrb[172].mxu0 %v23159_v62 }
0x1769   :  { %21278 = vmatpush3.bf16.msra.mxu0 %v27381_v25  ;;  %21269 = vmatprep.mubr.bf16.mxu0 %v23160_v55 }
0x176a   :  { %21279 = vmatprep.subr.bf16.mxu0 %v27377_v26 }
0x176d   :  { %21280 = vmatpush3.bf16.msra.mxu0 %v27377_v26 }
0x176e   :  { %21281 = vmatprep.subr.bf16.mxu0 %v27393_v61 }
0x1770   :  { %21270 = vmatmul.mubr.bf16.gmra.mrb[176].mxu0 %v23161_v33 }
0x1771   :  { %21282 = vmatpush3.bf16.msra.mxu0 %v27393_v61  ;;  %21273 = vmatprep.mubr.bf16.mxu0 %v23162_v4 }
0x1772   :  { %21283 = vmatprep.subr.bf16.mxu0 %v27388_v47 }
0x1775   :  { %21284 = vmatpush3.bf16.msra.mxu0 %v27388_v47 }
0x1776   :  { %21285 = vmatprep.subr.bf16.mxu0 %v27405_v18 }
0x1778   :  { %21274 = vmatmul.mubr.bf16.gmra.mrb[180].mxu0 %v23163_v3  ;;  %v16065_v3 = vpop.permute.xlu0 %16064 }
0x1779   :  { %21286 = vmatpush3.bf16.msra.mxu0 %v27405_v18  ;;  %21293 = vmatprep.mubr.bf16.mxu0 %v23164_v60 }
0x177a   :  { %21287 = vmatprep.subr.bf16.mxu0 %v27400_v46 }
0x177d   :  { %21288 = vmatpush3.bf16.msra.mxu0 %v27400_v46 }
0x177e   :  { %21289 = vmatprep.subr.bf16.mxu0 %v27417_v21 }
0x1781   :  { %21290 = vmatpush3.bf16.msra.mxu0 %v27417_v21 }
0x1782   :  { %21291 = vmatprep.subr.bf16.mxu0 %v27412_v48 }
0x1785   :  { %21292 = vmatpush3.bf16.msra.mxu0 %v27412_v48 }
0x1786   :  { %21305 = vmatprep.subr.bf16.mxu0 %v27381_v25 }
0x1788   :  { %21294 = vmatmul.mubr.bf16.vlgmr.msra.gmra.mrb[172].mxu0 %v23165_v5 }
0x1789   :  { %21306 = vmatpush3.bf16.msra.mxu0 %v27381_v25  ;;  %21297 = vmatprep.mubr.bf16.mxu0 %v23166_v15  ;;  %v23172_v25 = vld [vmem:[#allocation7 + $0x2b0] sm:$0xff]  }
0x178a   :  { %21307 = vmatprep.subr.bf16.mxu0 %v27377_v26 }
0x178d   :  { %21308 = vmatpush3.bf16.msra.mxu0 %v27377_v26  ;;  %v23171_v26 = vld [vmem:[#allocation7 + $0x2a8] sm:$0xff]  }
0x178e   :  { %21309 = vmatprep.subr.bf16.mxu0 %v27393_v61 }
0x1790   :  { %21298 = vmatmul.mubr.bf16.gmra.mrb[176].mxu0 %v23167_v32 }
0x1791   :  { %21310 = vmatpush3.bf16.msra.mxu0 %v27393_v61  ;;  %21301 = vmatprep.mubr.bf16.mxu0 %v23168_v57  ;;  %v23174_v61 = vld [vmem:[#allocation7 + $0x2c0] sm:$0xff]  }
0x1792   :  { %21311 = vmatprep.subr.bf16.mxu0 %v27388_v47 }
0x1795   :  { %21312 = vmatpush3.bf16.msra.mxu0 %v27388_v47  ;;  %v23173_v47 = vld [vmem:[#allocation7 + $0x2b8] sm:$0xff]  }
0x1796   :  { %21313 = vmatprep.subr.bf16.mxu0 %v27405_v18 }
0x1798   :  { %21302 = vmatmul.mubr.bf16.gmra.mrb[180].mxu0 %v23169_v0 }
0x1799   :  { %21314 = vmatpush3.bf16.msra.mxu0 %v27405_v18  ;;  %21321 = vmatprep.mubr.bf16.mxu0 %v23170_v59  ;;  %v23176_v18 = vld [vmem:[#allocation7 + $0x90] sm:$0xff]  }
0x179a   :  { %21315 = vmatprep.subr.bf16.mxu0 %v27400_v46 }
0x179d   :  { %21316 = vmatpush3.bf16.msra.mxu0 %v27400_v46  ;;  %v23175_v46 = vld [vmem:[#allocation7 + $0x2c8] sm:$0xff]  }
0x179e   :  { %21317 = vmatprep.subr.bf16.mxu0 %v27417_v21 }
0x17a1   :  { %21318 = vmatpush3.bf16.msra.mxu0 %v27417_v21  ;;  %v23178_v21 = vld [vmem:[#allocation7 + $0xa0] sm:$0xff]  }
0x17a2   :  { %21319 = vmatprep.subr.bf16.mxu0 %v27412_v48 }
0x17a5   :  { %21320 = vmatpush3.bf16.msra.mxu0 %v27412_v48  ;;  %v23177_v48 = vld [vmem:[#allocation7 + $0x98] sm:$0xff]  }
0x17a6   :  { %21353 = vmatprep.subr.bf16.mxu0 %v27425_v34 }
0x17a8   :  { %21322 = vmatmul.mubr.bf16.vlgmr.msra.gmra.mrb[172].mxu0 %v23171_v26  ;;  %v16075_v26 = vpop.permute.xlu0 %16074 }
0x17a9   :  { %21354 = vmatpush3.bf16.msra.mxu0 %v27425_v34  ;;  %21325 = vmatprep.mubr.bf16.mxu0 %v23172_v25 }
0x17aa   :  { %21355 = vmatprep.subr.bf16.mxu0 %v27422_v23 }
0x17ad   :  { %21356 = vmatpush3.bf16.msra.mxu0 %v27422_v23 }
0x17ae   :  { %21357 = vmatprep.subr.bf16.mxu0 %v27433_v14 }
0x17b0   :  { %21326 = vmatmul.mubr.bf16.gmra.mrb[176].mxu0 %v23173_v47 }
0x17b1   :  { %21358 = vmatpush3.bf16.msra.mxu0 %v27433_v14  ;;  %21329 = vmatprep.mubr.bf16.mxu0 %v23174_v61 }
0x17b2   :  { %21359 = vmatprep.subr.bf16.mxu0 %v27430_v24 }
0x17b5   :  { %21360 = vmatpush3.bf16.msra.mxu0 %v27430_v24 }
0x17b6   :  { %21361 = vmatprep.subr.bf16.mxu0 %v27441_v13 }
0x17b8   :  { %21330 = vmatmul.mubr.bf16.gmra.mrb[180].mxu0 %v23175_v46 }
0x17b9   :  { %21362 = vmatpush3.bf16.msra.mxu0 %v27441_v13  ;;  %21369 = vmatprep.mubr.bf16.mxu0 %v23176_v18 }
0x17ba   :  { %21363 = vmatprep.subr.bf16.mxu0 %v27438_v28 }
0x17bd   :  { %21364 = vmatpush3.bf16.msra.mxu0 %v27438_v28 }
0x17be   :  { %21365 = vmatprep.subr.bf16.mxu0 %v27449_v56 }
0x17c1   :  { %21366 = vmatpush3.bf16.msra.mxu0 %v27449_v56 }
0x17c2   :  { %21367 = vmatprep.subr.bf16.mxu0 %v27446_v51 }
0x17c5   :  { %21368 = vmatpush3.bf16.msra.mxu0 %v27446_v51 }
0x17c6   :  { %21381 = vmatprep.subr.bf16.mxu0 %v27425_v34 }
0x17c8   :  { %21370 = vmatmul.mubr.bf16.vlgmr.msra.gmra.mrb[172].mxu0 %v23177_v48 }
0x17c9   :  { %21382 = vmatpush3.bf16.msra.mxu0 %v27425_v34  ;;  %21373 = vmatprep.mubr.bf16.mxu0 %v23178_v21 }
0x17ca   :  { %21383 = vmatprep.subr.bf16.mxu0 %v27422_v23 }
0x17cd   :  { %21384 = vmatpush3.bf16.msra.mxu0 %v27422_v23 }
0x17ce   :  { %21385 = vmatprep.subr.bf16.mxu0 %v27433_v14 }
0x17d0   :  { %21374 = vmatmul.mubr.bf16.gmra.mrb[176].mxu0 %v23179_v11 }
0x17d1   :  { %21386 = vmatpush3.bf16.msra.mxu0 %v27433_v14  ;;  %21377 = vmatprep.mubr.bf16.mxu0 %v23180_v12  ;;  %v16223_v12 = vld [vmem:[%s27970_s0] sm:$0xff] }
0x17d2   :  { %21387 = vmatprep.subr.bf16.mxu0 %v27430_v24 }
0x17d5   :  { %21388 = vmatpush3.bf16.msra.mxu0 %v27430_v24 }
0x17d6   :  { %21389 = vmatprep.subr.bf16.mxu0 %v27441_v13 }
0x17d8   :  { %21378 = vmatmul.mubr.bf16.gmra.mrb[180].mxu0 %v23181_v31  ;;  %v16224_v31 = vld [vmem:[%s27970_s0 + $0x8] sm:$0xff] }
0x17d9   :  { %21390 = vmatpush3.bf16.msra.mxu0 %v27441_v13  ;;  %21397 = vmatprep.mubr.bf16.mxu0 %v23182_v7  ;;  %v16094_v7 = vld [vmem:[#allocation10] sm:$0xff] }
0x17da   :  { %21391 = vmatprep.subr.bf16.mxu0 %v27438_v28 }
0x17dd   :  { %21392 = vmatpush3.bf16.msra.mxu0 %v27438_v28 }
0x17de   :  { %21393 = vmatprep.subr.bf16.mxu0 %v27449_v56 }
0x17e1   :  { %21394 = vmatpush3.bf16.msra.mxu0 %v27449_v56 }
0x17e2   :  { %21395 = vmatprep.subr.bf16.mxu0 %v27446_v51 }
0x17e5   :  { %21396 = vmatpush3.bf16.msra.mxu0 %v27446_v51 }
0x17e6   :  { %21409 = vmatprep.subr.bf16.mxu0 %v27425_v34 }
0x17e8   :  { %21398 = vmatmul.mubr.bf16.vlgmr.msra.gmra.mrb[172].mxu0 %v23183_v27  ;;  %v21758_v27 = vpack.c.bf16 %v16224_v31, %v16223_v12 }
0x17e9   :  { %21410 = vmatpush3.bf16.msra.mxu0 %v27425_v34  ;;  %21401 = vmatprep.mubr.bf16.mxu0 %v23184_v20  ;;  %v16225_v20 = vld [vmem:[%s27970_s0 + $0x10] sm:$0xff] }
0x17ea   :  { %21411 = vmatprep.subr.bf16.mxu0 %v27422_v23 }
0x17ed   :  { %21412 = vmatpush3.bf16.msra.mxu0 %v27422_v23 }
0x17ee   :  { %21413 = vmatprep.subr.bf16.mxu0 %v27433_v14 }
0x17f0   :  { %21402 = vmatmul.mubr.bf16.gmra.mrb[176].mxu0 %v23185_v58  ;;  %v16226_v58 = vld [vmem:[%s27970_s0 + $0x18] sm:$0xff] }
0x17f1   :  { %21414 = vmatpush3.bf16.msra.mxu0 %v27433_v14  ;;  %21405 = vmatprep.mubr.bf16.mxu0 %v23186_v22  ;;  %v16095_v22 = vld [vmem:[#allocation10 + $0x8] sm:$0xff] }
0x17f2   :  { %21415 = vmatprep.subr.bf16.mxu0 %v27430_v24 }
0x17f5   :  { %21416 = vmatpush3.bf16.msra.mxu0 %v27430_v24 }
0x17f6   :  { %21417 = vmatprep.subr.bf16.mxu0 %v27441_v13 }
0x17f8   :  { %21406 = vmatmul.mubr.bf16.gmra.mrb[180].mxu0 %v23187_v49  ;;  %v21761_v49 = vpack.c.bf16 %v16226_v58, %v16225_v20 }
0x17f9   :  { %21418 = vmatpush3.bf16.msra.mxu0 %v27441_v13  ;;  %21425 = vmatprep.mubr.bf16.mxu0 %v23188_v2  ;;  %v16227_v2 = vld [vmem:[%s27970_s0 + $0x20] sm:$0xff] }
0x17fa   :  { %21419 = vmatprep.subr.bf16.mxu0 %v27438_v28 }
0x17fd   :  { %21420 = vmatpush3.bf16.msra.mxu0 %v27438_v28 }
0x17fe   :  { %21421 = vmatprep.subr.bf16.mxu0 %v27449_v56 }
0x1801   :  { %21422 = vmatpush3.bf16.msra.mxu0 %v27449_v56 }
0x1802   :  { %21423 = vmatprep.subr.bf16.mxu0 %v27446_v51 }
0x1805   :  { %21424 = vmatpush3.bf16.msra.mxu0 %v27446_v51 }
0x1806   :  { %21437 = vmatprep.subr.bf16.mxu0 %v27425_v34 }
0x1808   :  { %21426 = vmatmul.mubr.bf16.vlgmr.msra.gmra.mrb[172].mxu0 %v23189_v9  ;;  %v16228_v9 = vld [vmem:[%s27970_s0 + $0x28] sm:$0xff] }
0x1809   :  { %21438 = vmatpush3.bf16.msra.mxu0 %v27425_v34  ;;  %21429 = vmatprep.mubr.bf16.mxu0 %v23190_v19  ;;  %v23196_v34 = vld [vmem:[#allocation7 + $0x2e0] sm:$0xff]   ;;  %v16096_v19 = vld [vmem:[#allocation10 + $0x10] sm:$0xff] }
0x180a   :  { %21439 = vmatprep.subr.bf16.mxu0 %v27422_v23 }
0x180d   :  { %21440 = vmatpush3.bf16.msra.mxu0 %v27422_v23  ;;  %v23195_v23 = vld [vmem:[#allocation7 + $0x2d8] sm:$0xff]  }
0x180e   :  { %21441 = vmatprep.subr.bf16.mxu0 %v27433_v14 }
0x1810   :  { %21430 = vmatmul.mubr.bf16.gmra.mrb[176].mxu0 %v23191_v17  ;;  %v21764_v17 = vpack.c.bf16 %v16228_v9, %v16227_v2 }
0x1811   :  { %21442 = vmatpush3.bf16.msra.mxu0 %v27433_v14  ;;  %21433 = vmatprep.mubr.bf16.mxu0 %v23192_v42  ;;  %v23198_v14 = vld [vmem:[#allocation7 + $0x2f0] sm:$0xff]   ;;  %v16229_v42 = vld [vmem:[%s27970_s0 + $0x30] sm:$0xff] }
0x1812   :  { %21443 = vmatprep.subr.bf16.mxu0 %v27430_v24 }
0x1815   :  { %21444 = vmatpush3.bf16.msra.mxu0 %v27430_v24  ;;  %v23197_v24 = vld [vmem:[#allocation7 + $0x2e8] sm:$0xff]  }
0x1816   :  { %21445 = vmatprep.subr.bf16.mxu0 %v27441_v13 }
0x1818   :  { %21434 = vmatmul.mubr.bf16.gmra.mrb[180].mxu0 %v23193_v43  ;;  %v16230_v43 = vld [vmem:[%s27970_s0 + $0x38] sm:$0xff] }
0x1819   :  { %21446 = vmatpush3.bf16.msra.mxu0 %v27441_v13  ;;  %21453 = vmatprep.mubr.bf16.mxu0 %v23194_v39  ;;  %v23199_v13 = vld [vmem:[#allocation7 + $0x2f8] sm:$0xff]  }
0x181a   :  { %21447 = vmatprep.subr.bf16.mxu0 %v27438_v28  ;;  %v16097_v39 = vld [vmem:[#allocation10 + $0x18] sm:$0xff] }
0x181d   :  { %21448 = vmatpush3.bf16.msra.mxu0 %v27438_v28  ;;  %v16030_v28 = vpop.permute.xlu1 %16029 }
0x181e   :  { %21449 = vmatprep.subr.bf16.mxu0 %v27449_v56 }
0x1821   :  { %21450 = vmatpush3.bf16.msra.mxu0 %v27449_v56  ;;  %v16040_v56 = vpop.permute.xlu1 %16039 }
0x1822   :  { %21451 = vmatprep.subr.bf16.mxu0 %v27446_v51 }
0x1825   :  { %21452 = vmatpush3.bf16.msra.mxu0 %v27446_v51  ;;  %v16050_v63 = vpop.permute.xlu1 %16049 }
0x1828   :  { %21454 = vmatmul.mubr.bf16.vlgmr.msra.gmra.mrb[172].mxu0 %v23195_v23  ;;  %v21767_v23 = vpack.c.bf16 %v16230_v43, %v16229_v42 }
0x1829   :  { %21457 = vmatprep.mubr.bf16.mxu0 %v23196_v34  ;;  %v16060_v50 = vpop.permute.xlu1 %16059  ;;  %v16098_v34 = vld [vmem:[#allocation10 + $0x20] sm:$0xff] }
0x182d   :  { %v16070_v62 = vpop.permute.xlu1 %16069 }
0x1830   :  { %21458 = vmatmul.mubr.bf16.gmra.mrb[176].mxu0 %v23197_v24  ;;  %v16099_v24 = vld [vmem:[#allocation10 + $0x28] sm:$0xff] }
0x1831   :  { %21461 = vmatprep.mubr.bf16.mxu0 %v23198_v14  ;;  %v16080_v0 = vpop.permute.xlu1 %16079  ;;  %v16100_v14 = vld [vmem:[#allocation10 + $0x30] sm:$0x3f] }
0x1838   :  { %21462 = vmatmul.mubr.bf16.gmra.mrb[180].mxu0 %v23199_v13 }
0x18fb   :  { %v21455_v38 = vpop.f32.mrb[172].mxu0 }
0x18fc   :  { %v15951_v51 = vpop.f32.mrb[173].mxu0  ;;  %v16084_v40 = vadd.f32 %v21455_v38, %v16035_v35 }
0x18fd   :  { %v21456_v8 = vpop.f32.mrb[174].mxu0  ;;  %v16082_v53 = vadd.f32 %v16025_v16, %v15951_v51 }
0x18fe   :  { %v16085_v1 = vadd.f32 %v21456_v8, %v16040_v56  ;;  %v15954_v37 = vpop.f32.mrb[175].mxu0 }
0x18ff   :  { %v16083_v10 = vadd.f32 %v16030_v28, %v15954_v37 }
0x1900   :  { %v21743_v36 = vpack.c.bf16 %v16085_v1, %v16084_v40 }
0x1901   :  { %v21740_v41 = vpack.c.bf16 %v16083_v10, %v16082_v53 }
0x1903   :  { %v21459_v44 = vpop.f32.mrb[176].mxu0  ;;  %21741 = vmatpush3.bf16.msra.mxu1 %v21740_v41 }
0x1904   :  { %v15967_v54 = vpop.f32.mrb[177].mxu0  ;;  %21742 = vmatprep.subr.bf16.mxu1 %v23480_v52  ;;  %v16088_v55 = vadd.f32 %v21459_v44, %v16055_v6 }
0x1905   :  { %v21460_v30 = vpop.f32.mrb[178].mxu0  ;;  %v16086_v60 = vadd.f32 %v16045_v45, %v15967_v54 }
0x1906   :  { %v16089_v33 = vadd.f32 %v21460_v30, %v16060_v50  ;;  %v15970_v4 = vpop.f32.mrb[179].mxu0 }
0x1907   :  { %v16087_v5 = vadd.f32 %v16050_v63, %v15970_v4  ;;  %21744 = vmatpush3.bf16.msra.mxu1 %v21743_v36 }
0x1908   :  { %v21749_v15 = vpack.c.bf16 %v16089_v33, %v16088_v55  ;;  %21745 = vmatprep.subr.bf16.mxu1 %v23480_v52 }
0x1909   :  { %v21746_v32 = vpack.c.bf16 %v16087_v5, %v16086_v60 }
0x190b   :  { %v21463_v57 = vpop.f32.mrb[180].mxu0  ;;  %21747 = vmatpush3.bf16.msra.mxu1 %v21746_v32 }
0x190c   :  { %v15983_v59 = vpop.f32.mrb[181].mxu0  ;;  %21748 = vmatprep.subr.bf16.mxu1 %v23480_v52  ;;  %v16092_v47 = vadd.f32 %v21463_v57, %v16075_v26 }
0x190d   :  { %v21464_v25 = vpop.f32.mrb[182].mxu0  ;;  %v16090_v18 = vadd.f32 %v16065_v3, %v15983_v59 }
0x190e   :  { %v16093_v61 = vadd.f32 %v21464_v25, %v16080_v0  ;;  %v15986_v46 = vpop.f32.mrb[183].mxu0 }
0x190f   :  { %v16091_v48 = vadd.f32 %v16070_v62, %v15986_v46  ;;  %21750 = vmatpush3.bf16.msra.mxu1 %v21749_v15 }
0x1910   :  { %v21755_v21 = vpack.c.bf16 %v16093_v61, %v16092_v47  ;;  %21751 = vmatprep.subr.bf16.mxu1 %v23480_v52 }
0x1911   :  { %v21752_v11 = vpack.c.bf16 %v16091_v48, %v16090_v18 }
0x1913   :  { %21753 = vmatpush3.bf16.msra.mxu1 %v21752_v11 }
0x1914   :  { %21754 = vmatprep.subr.bf16.mxu1 %v23480_v52 }
0x1917   :  { %21756 = vmatpush3.bf16.msra.mxu1 %v21755_v21 }
0x1918   :  { %21757 = vmatprep.subr.bf16.mxu1 %v23480_v52 }
0x191a   :  { %21490 = vmatmul.mubr.msk.f32.vlgmr.msra.gmra.mrb[134].mxu1 %vm16101_vm7, %v16094_v7 }
0x191b   :  { %21492 = vmatprep.mubr.msk.f32.mxu1 %vm23478_vm0, %v27969_v29  ;;  %21759 = vmatpush3.bf16.msra.mxu1 %v21758_v27 }
0x191c   :  { %21760 = vmatprep.subr.bf16.mxu1 %v23480_v52 }
0x191e   :  { %21493 = vmatmul.mubr.msk.f32.gmra.mrb[168].mxu1 %vm16101_vm7, %v16095_v22 }
0x191f   :  { %21495 = vmatprep.mubr.msk.f32.mxu1 %vm23478_vm0, %v27969_v29  ;;  %21762 = vmatpush3.bf16.msra.mxu1 %v21761_v49 }
0x1920   :  { %21763 = vmatprep.subr.bf16.mxu1 %v23480_v52 }
0x1922   :  { %21496 = vmatmul.mubr.msk.f32.gmra.mrb[170].mxu1 %vm16101_vm7, %v16096_v19 }
0x1923   :  { %21498 = vmatprep.mubr.msk.f32.mxu1 %vm23478_vm0, %v27969_v29  ;;  %21765 = vmatpush3.bf16.msra.mxu1 %v21764_v17 }
0x1924   :  { %21766 = vmatprep.subr.bf16.mxu1 %v23480_v52 }
0x1926   :  { %21499 = vmatmul.mubr.msk.f32.gmra.mrb[172].mxu1 %vm16101_vm7, %v16097_v39 }
0x1927   :  { %21501 = vmatprep.mubr.msk.f32.mxu1 %vm23478_vm0, %v27969_v29  ;;  %21768 = vmatpush3.bf16.msra.mxu1 %v21767_v23 }
0x192a   :  { %21502 = vmatmul.mubr.msk.f32.gmra.mrb[174].mxu1 %vm16101_vm7, %v16098_v34 }
0x192b   :  { %21504 = vmatprep.mubr.msk.f32.mxu1 %vm23478_vm0, %v27969_v29 }
0x192e   :  { %21505 = vmatmul.mubr.msk.f32.gmra.mrb[176].mxu1 %vm16101_vm7, %v16099_v24 }
0x192f   :  { %21507 = vmatprep.mubr.msk.f32.mxu1 %vm23478_vm0, %v27969_v29 }
0x1932   :  { %21508 = vmatmul.mubr.msk.f32.gmra.mrb[178].mxu1 %vm16101_vm7, %v16100_v14 }
0x1933   :  { %21526 = vmatprep.mubr.msk.f32.mxu1 %vm23478_vm0, %v27969_v29 }
0x19ed   :  { %v16189_v13 = vpop.f32.mrb[134].mxu1 }
0x19ee   :  { %21527 = vmatmul.mubr.msk.f32.vlgmr.msra.gmra.mrb[180].mxu1 %vm16231_vm8, %v16189_v13  ;;  %v21491_v52 = vpop.f32.mrb[135].mxu1 }
0x19ef   :  { %21529 = vmatprep.mubr.msk.f32.mxu1 %vm23478_vm0, %v27969_v29 }
0x19f1   :  { %v16194_v28 = vpop.f32.mrb[168].mxu1 }
0x19f2   :  { %21530 = vmatmul.mubr.msk.f32.gmra.mrb[182].mxu1 %vm16231_vm8, %v16194_v28  ;;  %v21494_v16 = vpop.f32.mrb[169].mxu1 }
0x19f3   :  { %21532 = vmatprep.mubr.msk.f32.mxu1 %vm23478_vm0, %v27969_v29 }
0x19f5   :  { %v16199_v56 = vpop.f32.mrb[170].mxu1 }
0x19f6   :  { %21533 = vmatmul.mubr.msk.f32.gmra.mrb[184].mxu1 %vm16231_vm8, %v16199_v56  ;;  %v21497_v35 = vpop.f32.mrb[171].mxu1 }
0x19f7   :  { %21535 = vmatprep.mubr.msk.f32.mxu1 %vm23478_vm0, %v27969_v29 }
0x19f9   :  { %v16204_v63 = vpop.f32.mrb[172].mxu1 }
0x19fa   :  { %21536 = vmatmul.mubr.msk.f32.gmra.mrb[186].mxu1 %vm16231_vm8, %v16204_v63  ;;  %v21500_v45 = vpop.f32.mrb[173].mxu1 }
0x19fb   :  { %21538 = vmatprep.mubr.msk.f32.mxu1 %vm23478_vm0, %v27969_v29 }
0x19fd   :  { %v16209_v38 = vpop.f32.mrb[174].mxu1 }
0x19fe   :  { %21539 = vmatmul.mubr.msk.f32.gmra.mrb[188].mxu1 %vm16231_vm8, %v16209_v38  ;;  %v21503_v51 = vpop.f32.mrb[175].mxu1 }
0x19ff   :  { %21541 = vmatprep.mubr.msk.f32.mxu1 %vm23478_vm0, %v27969_v29 }
0x1a01   :  { %v16214_v8 = vpop.f32.mrb[176].mxu1 }
0x1a02   :  { %21542 = vmatmul.mubr.msk.f32.gmra.mrb[190].mxu1 %vm16231_vm8, %v16214_v8  ;;  %v21506_v40 = vpop.f32.mrb[177].mxu1 }
0x1a03   :  { %21544 = vmatprep.mubr.msk.f32.mxu1 %vm23478_vm0, %v27969_v29  ;;  %vm16430_vm0 = vcmask 177152  }
0x1a05   :  { %v16219_v1 = vpop.f32.mrb[178].mxu1 }
0x1a06   :  { %21545 = vmatmul.mubr.msk.f32.gmra.mrb[192].mxu1 %vm16231_vm8, %v16219_v1  ;;  %v21509_v37 = vpop.f32.mrb[179].mxu1 }
0x1ac1   :  { %v16319_v53 = vpop.f32.mrb[180].mxu1 }
0x1ac2   :  { %v16353_v10 = vand.u32 2147483647, %v16319_v53  ;;  %v21528_v50 = vpop.f32.mrb[181].mxu1  ;;  %vm16402_vm10 = vcmp.ge.f32.partialorder %v16319_v53, 0.0 }
0x1ac4   :  { %v16360_v36 = vsub.f32 0.0, %v16353_v10 }
0x1ac5   :  { %v27785_v6 = vpop.f32.mrb[182].mxu1 }
0x1ac6   :  { %v16367_v41 = vmul.f32 1.442695, %v16360_v36  ;;  %v16354_v44 = vand.u32 2147483647, %v27785_v6  ;;  %v21531_v54 = vpop.f32.mrb[183].mxu1  ;;  %vm16403_vm11 = vcmp.ge.f32.partialorder %v27785_v6, 0.0 }
0x1ac8   :  { %23296 = vpow2.f32 %v16367_v41  ;;  %v16361_v30 = vsub.f32 0.0, %v16354_v44 }
0x1ac9   :  { %v27788_v62 = vpop.f32.mrb[184].mxu1 }
0x1aca   :  { %v16369_v55 = vmul.f32 1.442695, %v16361_v30  ;;  %v16355_v29 = vand.u32 2147483647, %v27788_v62  ;;  %v21534_v33 = vpop.f32.mrb[185].mxu1  ;;  %vm16404_vm12 = vcmp.ge.f32.partialorder %v27788_v62, 0.0 }
0x1acc   :  { %23298 = vpow2.f32 %v16369_v55  ;;  %v16362_v4 = vsub.f32 0.0, %v16355_v29 }
0x1acd   :  { %v27791_v3 = vpop.f32.mrb[186].mxu1 }
0x1ace   :  { %v16371_v60 = vmul.f32 1.442695, %v16362_v4  ;;  %v16356_v5 = vand.u32 2147483647, %v27791_v3  ;;  %v21537_v15 = vpop.f32.mrb[187].mxu1  ;;  %vm16405_vm13 = vcmp.ge.f32.partialorder %v27791_v3, 0.0 }
0x1ad0   :  { %23300 = vpow2.f32 %v16371_v60  ;;  %v16363_v32 = vsub.f32 0.0, %v16356_v5 }
0x1ad1   :  { %v27794_v57 = vpop.f32.mrb[188].mxu1 }
0x1ad2   :  { %v23297_v0 = vpop.eup %23296  ;;  %v16373_v59 = vmul.f32 1.442695, %v16363_v32  ;;  %v16357_v26 = vand.u32 2147483647, %v27794_v57  ;;  %v21540_v25 = vpop.f32.mrb[189].mxu1  ;;  %vm16406_vm14 = vcmp.ge.f32.partialorder %v27794_v57, 0.0 }
0x1ad3   :  { %v16381_v47 = vadd.f32 1.0, %v23297_v0 }
0x1ad4   :  { %23302 = vpow2.f32 %v16373_v59  ;;  %v16364_v61 = vsub.f32 0.0, %v16357_v26 }
0x1ad5   :  { %23304 = vrcp.f32 %v16381_v47  ;;  %v27797_v46 = vpop.f32.mrb[190].mxu1 }
0x1ad6   :  { %v23299_v18 = vpop.eup %23298  ;;  %v16375_v48 = vmul.f32 1.442695, %v16364_v61  ;;  %v16358_v21 = vand.u32 2147483647, %v27797_v46  ;;  %v21543_v11 = vpop.f32.mrb[191].mxu1  ;;  %vm16407_vm15 = vcmp.ge.f32.partialorder %v27797_v46, 0.0 }
0x1ad7   :  { %v16382_v12 = vadd.f32 1.0, %v23299_v18 }
0x1ad8   :  { %23306 = vpow2.f32 %v16375_v48  ;;  %v16365_v31 = vsub.f32 0.0, %v16358_v21 }
0x1ad9   :  { %23308 = vrcp.f32 %v16382_v12  ;;  %v16349_v7 = vpop.f32.mrb[192].mxu1 }
0x1ada   :  { %v23301_v27 = vpop.eup %23300  ;;  %v16377_v20 = vmul.f32 1.442695, %v16365_v31  ;;  %v16359_v58 = vand.u32 2147483647, %v16349_v7  ;;  %v21546_v22 = vpop.f32.mrb[193].mxu1  ;;  %vm16408_vm1 = vcmp.ge.f32.partialorder %v16349_v7, 0.0 }
0x1adb   :  { %v16383_v49 = vadd.f32 1.0, %v23301_v27 }
0x1adc   :  { %23310 = vpow2.f32 %v16377_v20  ;;  %v16366_v2 = vsub.f32 0.0, %v16359_v58 }
0x1add   :  { %23312 = vrcp.f32 %v16383_v49 }
0x1ade   :  { %v23303_v9 = vpop.eup %23302  ;;  %v16379_v19 = vmul.f32 1.442695, %v16366_v2 }
0x1adf   :  { %v23305_v17 = vpop.eup %23304  ;;  %v16384_v42 = vadd.f32 1.0, %v23303_v9 }
0x1ae0   :  { %v16409_v43 = vmul.f32 %v23305_v17, %v23297_v0  ;;  %23314 = vpow2.f32 %v16379_v19 }
0x1ae1   :  { %23316 = vrcp.f32 %v16384_v42 }
0x1ae2   :  { %v23307_v39 = vpop.eup %23306  ;;  %v16416_v23 = vsel %vm16402_vm10, %v23305_v17, %v16409_v43 }
0x1ae3   :  { %v23309_v34 = vpop.eup %23308  ;;  %16424 = vst.msk [vmem:[%s27971_s6] sm:$0xff] %vm16423_vm9, %v16416_v23  ;;  %v16385_v24 = vadd.f32 1.0, %v23307_v39 }
0x1ae4   :  { %v16410_v14 = vmul.f32 %v23309_v34, %v23299_v18 }
0x1ae5   :  { %23318 = vrcp.f32 %v16385_v24 }
0x1ae6   :  { %v23311_v13 = vpop.eup %23310  ;;  %v16417_v52 = vsel %vm16403_vm11, %v23309_v34, %v16410_v14 }
0x1ae7   :  { %v23313_v28 = vpop.eup %23312  ;;  %16425 = vst.msk [vmem:[%s27971_s6 + $0x8] sm:$0xff] %vm16423_vm9, %v16417_v52  ;;  %v16386_v16 = vadd.f32 1.0, %v23311_v13 }
0x1ae8   :  { %v16411_v56 = vmul.f32 %v23313_v28, %v23301_v27 }
0x1ae9   :  { %23320 = vrcp.f32 %v16386_v16 }
0x1aea   :  { %v23315_v35 = vpop.eup %23314  ;;  %v16418_v63 = vsel %vm16404_vm12, %v23313_v28, %v16411_v56 }
0x1aeb   :  { %v23317_v45 = vpop.eup %23316  ;;  %16426 = vst.msk [vmem:[%s27971_s6 + $0x10] sm:$0xff] %vm16423_vm9, %v16418_v63  ;;  %v16387_v38 = vadd.f32 1.0, %v23315_v35 }
0x1aec   :  { %v16412_v51 = vmul.f32 %v23317_v45, %v23303_v9 }
0x1aed   :  { %23322 = vrcp.f32 %v16387_v38 }
0x1aee   :  { %v16419_v8 = vsel %vm16405_vm13, %v23317_v45, %v16412_v51 }
0x1aef   :  { %v23319_v40 = vpop.eup %23318  ;;  %16427 = vst.msk [vmem:[%s27971_s6 + $0x18] sm:$0xff] %vm16423_vm9, %v16419_v8 }
0x1af0   :  { %v16413_v1 = vmul.f32 %v23319_v40, %v23307_v39 }
0x1af2   :  { %v16420_v37 = vsel %vm16406_vm14, %v23319_v40, %v16413_v1 }
0x1af3   :  { %v23321_v53 = vpop.eup %23320  ;;  %16428 = vst.msk [vmem:[%s27971_s6 + $0x20] sm:$0xff] %vm16423_vm9, %v16420_v37 }
0x1af4   :  { %v16414_v10 = vmul.f32 %v23321_v53, %v23311_v13 }
0x1af6   :  { %v16421_v50 = vsel %vm16407_vm15, %v23321_v53, %v16414_v10 }
0x1af7   :  { %v23323_v36 = vpop.eup %23322  ;;  %16429 = vst.msk [vmem:[%s27971_s6 + $0x28] sm:$0xff] %vm16423_vm9, %v16421_v50 }
0x1af8   :  { %v16415_v6 = vmul.f32 %v23323_v36, %v23315_v35 }
0x1afa   :  { %v16422_v41 = vsel %vm16408_vm1, %v23323_v36, %v16415_v6 }
0x1afb   :  { %16431 = vst.msk [vmem:[%s27971_s6 + $0x30] sm:$0x3f] %vm16430_vm0, %v16422_v41 }
0x1afc   :  { %16436 = vsyncpa [#allocation3], 1 }
0x1afd   :  { %16437 = vsyncpa [#allocation5], 1 }
0x1afe   :  { %16438 = vsyncpa [#allocation8], 1 }
0x1aff   :  { %16439 = vsyncpa [#allocation11], 1 }

</bundles_post_ra>
